<compile_context>
chip_gen: v7x
topology: tpu7x:2x2x1
jax: 0.10.0
libtpu: 0.0.40
codegen_flags: <defaults>
</compile_context>

<pallas_src>
import functools

import jax
import jax.numpy as jnp
from jax.experimental import pallas as pl
from jax.experimental.pallas import tpu as pltpu


CMAX = 128   # channel padding width (TPU lane width)
COL0 = 8     # column offset of the image interior inside the act scratch
             # (multiple of 8 -> layer-output stores are sublane aligned)

# (cin, cout, relu) for the 5 conv3x3 layers (cin=2 is [x, t_embed])
LAYERS = ((2, 64, True), (64, 128, True), (128, 128, True),
          (128, 64, True), (64, 1, False))


def unet_fused_kernel(x_ref, w1, b1, w2, b2, w3, b3, w4, b4, w5, b5,
                      o_ref, act_ref, cols_ref, *, H, W):
    """One batch element: 5 fused 3x3 'same' convolutions.

    x_ref : (1, H+2, W+2, 128) f32  zero-padded input (channels = [x, t, 0..0])
    w_i   : (9*128, cout_i)    bf16 tap-major, channel-zero-padded weights
    b_i   : (1, cout_i)        f32  biases
    w5    : (8, 9*128)         bf16 final-layer weights as a sublane-padded row
    b5    : (1, 1)             f32
    o_ref : (1, 1, H*W)        f32  lane-dense output row
    act_ref : (H+2, ACT_W, 128) f32 scratch; image interior at
              [1:H+1, COL0:COL0+W, :]; halo & unused channels stay zero
    cols_ref: (H*W, 9*128)     bf16 im2col scratch
    """
    HW = H * W

    # Zero the activation scratch each grid step: guarantees a zero halo and
    # finite values in unused channel lanes (those hit zero weight rows).
    act_ref[...] = jnp.zeros_like(act_ref)

    def tap_from_input(dy, dx):
        return x_ref[0, dy:dy + H, dx:dx + W, :].reshape(HW, CMAX).astype(
            jnp.bfloat16)

    def tap_from_act(dy, dx):
        c0 = COL0 - 1 + dx
        return act_ref[dy:dy + H, c0:c0 + W, :].reshape(HW, CMAX).astype(
            jnp.bfloat16)

    def build_cols(tap_src):
        # im2col: 9 shifted (HW, 128) taps, each written to a 128-lane-aligned
        # block -> one big K = 1152 MXU matmul afterwards.
        for k in range(9):
            dy, dx = divmod(k, 3)
            cols_ref[:, k * CMAX:(k + 1) * CMAX] = tap_src(dy, dx)

    def conv_layer(tap_src, w_ref, b_ref, relu):
        cout = w_ref.shape[1]
        build_cols(tap_src)
        acc = jnp.dot(cols_ref[...], w_ref[...],
                      preferred_element_type=jnp.float32)      # (HW, cout) f32
        acc = acc + b_ref[...]
        if relu:
            acc = jnp.maximum(acc, 0.0)
        act_ref[1:1 + H, COL0:COL0 + W, :cout] = acc.reshape(H, W, cout)

    conv_layer(tap_from_input, w1, b1, True)    # 2   -> 64
    conv_layer(tap_from_act,   w2, b2, True)    # 64  -> 128
    conv_layer(tap_from_act,   w3, b3, True)    # 128 -> 128
    conv_layer(tap_from_act,   w4, b4, True)    # 128 -> 64

    # Final layer (64 -> 1): rhs-transposed matmul so the result is a
    # lane-dense (1, HW) row instead of an (HW, 1) column.
    build_cols(tap_from_act)
    row = jax.lax.dot_general(
        w5[...], cols_ref[...],
        dimension_numbers=(((1,), (1,)), ((), ())),
        preferred_element_type=jnp.float32)      # (8, HW); row 0 is the result
    o_ref[0] = (row[0:1, :] + b5[...]).astype(o_ref.dtype)


def _full_spec(shape):
    zeros = (0,) * len(shape)
    return pl.BlockSpec(shape, lambda bi: zeros)


def unet_forward(params, x_nchw, t):
    """x_nchw: (B, 1, H, W) f32, t: (B,) f32  ->  (B, 1, H, W) f32."""
    B, _, H, W = x_nchw.shape
    assert H % 8 == 0 and W % 8 == 0
    HW = H * W
    act_w = COL0 + ((W + 1 + 7) // 8) * 8        # interior + halo, 8-aligned

    # --- host-side prep (tiny tensors) --------------------------------------
    # t channel + NCHW->NHWC, pad ONCE: 1-px spatial halo + channels -> 128.
    t_embed = jnp.broadcast_to(t[:, None, None, None], (B, 1, H, W))
    x_in = jnp.concatenate([x_nchw, t_embed], axis=1)            # (B,2,H,W)
    x_nhwc = jnp.transpose(x_in, (0, 2, 3, 1))                   # (B,H,W,2)
    x_pad = jnp.pad(x_nhwc, ((0, 0), (1, 1), (1, 1), (0, CMAX - 2)))
    x_pad = x_pad.astype(jnp.float32)                            # (B,H+2,W+2,128)

    # Weights: (9, cin, cout) -> zero-pad cin to 128 -> (1152, cout) bf16.
    packed_w, packed_b = [], []
    for (w, b), (cin, cout, _) in zip(params, LAYERS):
        wp = jnp.zeros((9, CMAX, cout), jnp.float32).at[:, :cin, :].set(w)
        packed_w.append(wp.reshape(9 * CMAX, cout).astype(jnp.bfloat16))
        packed_b.append(b.reshape(1, cout).astype(jnp.float32))
    w1, w2, w3, w4, w5c = packed_w
    b1, b2, b3, b4, b5 = packed_b
    # Final layer as a sublane-padded row: (8, 1152), row 0 = real weights.
    w5 = jnp.zeros((8, 9 * CMAX), jnp.bfloat16).at[0, :].set(w5c[:, 0])

    kernel = functools.partial(unet_fused_kernel, H=H, W=W)
    out = pl.pallas_call(
        kernel,
        out_shape=jax.ShapeDtypeStruct((B, 1, HW), jnp.float32),
        grid=(B,),
        in_specs=[
            pl.BlockSpec((1, H + 2, W + 2, CMAX), lambda bi: (bi, 0, 0, 0)),
            _full_spec((9 * CMAX, 64)),  _full_spec((1, 64)),
            _full_spec((9 * CMAX, 128)), _full_spec((1, 128)),
            _full_spec((9 * CMAX, 128)), _full_spec((1, 128)),
            _full_spec((9 * CMAX, 64)),  _full_spec((1, 64)),
            _full_spec((8, 9 * CMAX)),   _full_spec((1, 1)),
        ],
        out_specs=pl.BlockSpec((1, 1, HW), lambda bi: (bi, 0, 0)),
        scratch_shapes=[
            pltpu.VMEM((H + 2, act_w, CMAX), jnp.float32),   # activation buffer
            pltpu.VMEM((HW, 9 * CMAX), jnp.bfloat16),        # im2col buffer
        ],
        compiler_params=pltpu.CompilerParams(
            dimension_semantics=("parallel",),
            vmem_limit_bytes=32 * 1024 * 1024),
    )(x_pad, w1, b1, w2, b2, w3, b3, w4, b4, w5, b5)

    return out.reshape(B, 1, H, W)


def init_unet_params(key):
    """Deterministic parameter init (kaiming-like scaling, not a checkpoint)."""
    layer_dims = [(2, 64), (64, 128), (128, 128), (128, 64), (64, 1)]
    params = []
    for i, (cin, cout) in enumerate(layer_dims):
        kw, kb = jax.random.split(jax.random.fold_in(key, i))
        fan_in = cin * 9
        scale = 1.0 / jnp.sqrt(jnp.float32(fan_in))
        w = jax.random.uniform(kw, (9, cin, cout), jnp.float32,
                               minval=-scale, maxval=scale)
        b = jax.random.uniform(kb, (cout,), jnp.float32,
                               minval=-scale, maxval=scale)
        params.append((w, b))
    return params


def unet_reference(params, x_nchw, t):
    """Pure-JAX f32 reference using lax.conv_general_dilated (verification)."""
    B, _, H, W = x_nchw.shape
    t_embed = jnp.broadcast_to(t[:, None, None, None], (B, 1, H, W))
    h = jnp.concatenate([x_nchw, t_embed], axis=1)
    relu_flags = [True, True, True, True, False]
    for (w, b), relu in zip(params, relu_flags):
        cin, cout = w.shape[1], w.shape[2]
        w_oihw = jnp.transpose(w.reshape(3, 3, cin, cout), (3, 2, 0, 1))
        h = jax.lax.conv_general_dilated(
            h, w_oihw, window_strides=(1, 1), padding="SAME",
            dimension_numbers=("NCHW", "OIHW", "NCHW"))
        h = h + b[None, :, None, None]
        if relu:
            h = jnp.maximum(h, 0.0)
    return h


if __name__ == "__main__":
    key = jax.random.PRNGKey(0)
    k_params, k_x, k_t = jax.random.split(key, 3)

    params = init_unet_params(k_params)

    B, H, W = 2, 16, 16
    x = jax.random.normal(k_x, (B, 1, H, W), jnp.float32)
    t = jax.random.uniform(k_t, (B,), jnp.float32)

    out = jax.block_until_ready(unet_forward(params, x, t))
    assert out.shape == (B, 1, H, W)

    # Kernel uses bf16 MXU operands with f32 accumulation -> modest tolerance
    # against the pure-f32 reference.
    ref = jax.block_until_ready(unet_reference(params, x, t))
    assert jnp.allclose(out, ref, atol=1e-2, rtol=1e-2), (
        float(jnp.max(jnp.abs(out - ref))))

    print("KERNEL_OK")
</pallas_src>

<mosaic_0001>
module attributes {stable_mosaic.version = 11 : i64} {
  func.func @unet_fused_kernel(%arg0: i32, %arg1: memref<1x18x18x128xf32, #tpu.memory_space<vmem>>, %arg2: memref<1152x64xbf16, #tpu.memory_space<vmem>>, %arg3: memref<1x64xf32, #tpu.memory_space<vmem>>, %arg4: memref<1152x128xbf16, #tpu.memory_space<vmem>>, %arg5: memref<1x128xf32, #tpu.memory_space<vmem>>, %arg6: memref<1152x128xbf16, #tpu.memory_space<vmem>>, %arg7: memref<1x128xf32, #tpu.memory_space<vmem>>, %arg8: memref<1152x64xbf16, #tpu.memory_space<vmem>>, %arg9: memref<1x64xf32, #tpu.memory_space<vmem>>, %arg10: memref<8x1152xbf16, #tpu.memory_space<vmem>>, %arg11: memref<1x1xf32, #tpu.memory_space<vmem>>, %arg12: memref<1x1x256xf32, #tpu.memory_space<vmem>>, %arg13: memref<18x32x128xf32, #tpu.memory_space<vmem>>, %arg14: memref<256x1152xbf16, #tpu.memory_space<vmem>>) attributes {dimension_semantics = [#tpu.dimension_semantics<parallel>], iteration_bounds = array<i64: 2>, scalar_prefetch = 0 : i64, scratch_operands = 2 : i64, tpu.core_type = #tpu.core_type<tc>, window_params = [{transform_indices = @transform_0, window_bounds = array<i64: 1, 18, 18, 128>}, {pipeline_mode = #tpu.pipeline_mode<synchronous>, transform_indices = @transform_1, window_bounds = array<i64: 1152, 64>}, {pipeline_mode = #tpu.pipeline_mode<synchronous>, transform_indices = @transform_2, window_bounds = array<i64: 1, 64>}, {pipeline_mode = #tpu.pipeline_mode<synchronous>, transform_indices = @transform_3, window_bounds = array<i64: 1152, 128>}, {pipeline_mode = #tpu.pipeline_mode<synchronous>, transform_indices = @transform_4, window_bounds = array<i64: 1, 128>}, {pipeline_mode = #tpu.pipeline_mode<synchronous>, transform_indices = @transform_5, window_bounds = array<i64: 1152, 128>}, {pipeline_mode = #tpu.pipeline_mode<synchronous>, transform_indices = @transform_6, window_bounds = array<i64: 1, 128>}, {pipeline_mode = #tpu.pipeline_mode<synchronous>, transform_indices = @transform_7, window_bounds = array<i64: 1152, 64>}, {pipeline_mode = #tpu.pipeline_mode<synchronous>, transform_indices = @transform_8, window_bounds = array<i64: 1, 64>}, {pipeline_mode = #tpu.pipeline_mode<synchronous>, transform_indices = @transform_9, window_bounds = array<i64: 8, 1152>}, {pipeline_mode = #tpu.pipeline_mode<synchronous>, transform_indices = @transform_10, window_bounds = array<i64: 1, 1>}, {transform_indices = @transform_11, window_bounds = array<i64: 1, 1, 256>}]} {
    %cst = arith.constant 0.000000e+00 : f32
    %0 = vector.broadcast %cst : f32 to vector<18x32x128xf32>
    %c0 = arith.constant 0 : index
    %c0_0 = arith.constant 0 : index
    %c0_1 = arith.constant 0 : index
    %1 = vector.load %arg13[%c0, %c0_0, %c0_1] : memref<18x32x128xf32, #tpu.memory_space<vmem>>, vector<18x32x128xf32>
    tpu.vector_store %arg13[%c0, %c0_0, %c0_1], %0 {strides = array<i32>} : memref<18x32x128xf32, #tpu.memory_space<vmem>>, vector<18x32x128xf32>,
    %c0_2 = arith.constant 0 : index
    %c0_3 = arith.constant 0 : index
    %c0_4 = arith.constant 0 : index
    %c0_5 = arith.constant 0 : index
    %2 = vector.load %arg1[%c0_2, %c0_3, %c0_4, %c0_5] : memref<1x18x18x128xf32, #tpu.memory_space<vmem>>, vector<1x16x16x128xf32>
    %3 = vector.shape_cast %2 : vector<1x16x16x128xf32> to vector<16x16x128xf32>
    %4 = vector.shape_cast %3 : vector<16x16x128xf32> to vector<256x128xf32>
    %5 = arith.truncf %4 : vector<256x128xf32> to vector<256x128xbf16>
    %c0_6 = arith.constant 0 : index
    %c0_7 = arith.constant 0 : index
    %6 = vector.load %arg14[%c0_6, %c0_7] : memref<256x1152xbf16, #tpu.memory_space<vmem>>, vector<256x128xbf16>
    tpu.vector_store %arg14[%c0_6, %c0_7], %5 {strides = array<i32>} : memref<256x1152xbf16, #tpu.memory_space<vmem>>, vector<256x128xbf16>,
    %c0_8 = arith.constant 0 : index
    %c0_9 = arith.constant 0 : index
    %c1 = arith.constant 1 : index
    %c0_10 = arith.constant 0 : index
    %7 = vector.load %arg1[%c0_8, %c0_9, %c1, %c0_10] : memref<1x18x18x128xf32, #tpu.memory_space<vmem>>, vector<1x16x16x128xf32>
    %8 = vector.shape_cast %7 : vector<1x16x16x128xf32> to vector<16x16x128xf32>
    %9 = vector.shape_cast %8 : vector<16x16x128xf32> to vector<256x128xf32>
    %10 = arith.truncf %9 : vector<256x128xf32> to vector<256x128xbf16>
    %c0_11 = arith.constant 0 : index
    %c128 = arith.constant 128 : index
    %11 = vector.load %arg14[%c0_11, %c128] : memref<256x1152xbf16, #tpu.memory_space<vmem>>, vector<256x128xbf16>
    tpu.vector_store %arg14[%c0_11, %c128], %10 {strides = array<i32>} : memref<256x1152xbf16, #tpu.memory_space<vmem>>, vector<256x128xbf16>,
    %c0_12 = arith.constant 0 : index
    %c0_13 = arith.constant 0 : index
    %c2 = arith.constant 2 : index
    %c0_14 = arith.constant 0 : index
    %12 = vector.load %arg1[%c0_12, %c0_13, %c2, %c0_14] : memref<1x18x18x128xf32, #tpu.memory_space<vmem>>, vector<1x16x16x128xf32>
    %13 = vector.shape_cast %12 : vector<1x16x16x128xf32> to vector<16x16x128xf32>
    %14 = vector.shape_cast %13 : vector<16x16x128xf32> to vector<256x128xf32>
    %15 = arith.truncf %14 : vector<256x128xf32> to vector<256x128xbf16>
    %c0_15 = arith.constant 0 : index
    %c256 = arith.constant 256 : index
    %16 = vector.load %arg14[%c0_15, %c256] : memref<256x1152xbf16, #tpu.memory_space<vmem>>, vector<256x128xbf16>
    tpu.vector_store %arg14[%c0_15, %c256], %15 {strides = array<i32>} : memref<256x1152xbf16, #tpu.memory_space<vmem>>, vector<256x128xbf16>,
    %c0_16 = arith.constant 0 : index
    %c1_17 = arith.constant 1 : index
    %c0_18 = arith.constant 0 : index
    %c0_19 = arith.constant 0 : index
    %17 = vector.load %arg1[%c0_16, %c1_17, %c0_18, %c0_19] : memref<1x18x18x128xf32, #tpu.memory_space<vmem>>, vector<1x16x16x128xf32>
    %18 = vector.shape_cast %17 : vector<1x16x16x128xf32> to vector<16x16x128xf32>
    %19 = vector.shape_cast %18 : vector<16x16x128xf32> to vector<256x128xf32>
    %20 = arith.truncf %19 : vector<256x128xf32> to vector<256x128xbf16>
    %c0_20 = arith.constant 0 : index
    %c384 = arith.constant 384 : index
    %21 = vector.load %arg14[%c0_20, %c384] : memref<256x1152xbf16, #tpu.memory_space<vmem>>, vector<256x128xbf16>
    tpu.vector_store %arg14[%c0_20, %c384], %20 {strides = array<i32>} : memref<256x1152xbf16, #tpu.memory_space<vmem>>, vector<256x128xbf16>,
    %c0_21 = arith.constant 0 : index
    %c1_22 = arith.constant 1 : index
    %c1_23 = arith.constant 1 : index
    %c0_24 = arith.constant 0 : index
    %22 = vector.load %arg1[%c0_21, %c1_22, %c1_23, %c0_24] : memref<1x18x18x128xf32, #tpu.memory_space<vmem>>, vector<1x16x16x128xf32>
    %23 = vector.shape_cast %22 : vector<1x16x16x128xf32> to vector<16x16x128xf32>
    %24 = vector.shape_cast %23 : vector<16x16x128xf32> to vector<256x128xf32>
    %25 = arith.truncf %24 : vector<256x128xf32> to vector<256x128xbf16>
    %c0_25 = arith.constant 0 : index
    %c512 = arith.constant 512 : index
    %26 = vector.load %arg14[%c0_25, %c512] : memref<256x1152xbf16, #tpu.memory_space<vmem>>, vector<256x128xbf16>
    tpu.vector_store %arg14[%c0_25, %c512], %25 {strides = array<i32>} : memref<256x1152xbf16, #tpu.memory_space<vmem>>, vector<256x128xbf16>,
    %c0_26 = arith.constant 0 : index
    %c1_27 = arith.constant 1 : index
    %c2_28 = arith.constant 2 : index
    %c0_29 = arith.constant 0 : index
    %27 = vector.load %arg1[%c0_26, %c1_27, %c2_28, %c0_29] : memref<1x18x18x128xf32, #tpu.memory_space<vmem>>, vector<1x16x16x128xf32>
    %28 = vector.shape_cast %27 : vector<1x16x16x128xf32> to vector<16x16x128xf32>
    %29 = vector.shape_cast %28 : vector<16x16x128xf32> to vector<256x128xf32>
    %30 = arith.truncf %29 : vector<256x128xf32> to vector<256x128xbf16>
    %c0_30 = arith.constant 0 : index
    %c640 = arith.constant 640 : index
    %31 = vector.load %arg14[%c0_30, %c640] : memref<256x1152xbf16, #tpu.memory_space<vmem>>, vector<256x128xbf16>
    tpu.vector_store %arg14[%c0_30, %c640], %30 {strides = array<i32>} : memref<256x1152xbf16, #tpu.memory_space<vmem>>, vector<256x128xbf16>,
    %c0_31 = arith.constant 0 : index
    %c2_32 = arith.constant 2 : index
    %c0_33 = arith.constant 0 : index
    %c0_34 = arith.constant 0 : index
    %32 = vector.load %arg1[%c0_31, %c2_32, %c0_33, %c0_34] : memref<1x18x18x128xf32, #tpu.memory_space<vmem>>, vector<1x16x16x128xf32>
    %33 = vector.shape_cast %32 : vector<1x16x16x128xf32> to vector<16x16x128xf32>
    %34 = vector.shape_cast %33 : vector<16x16x128xf32> to vector<256x128xf32>
    %35 = arith.truncf %34 : vector<256x128xf32> to vector<256x128xbf16>
    %c0_35 = arith.constant 0 : index
    %c768 = arith.constant 768 : index
    %36 = vector.load %arg14[%c0_35, %c768] : memref<256x1152xbf16, #tpu.memory_space<vmem>>, vector<256x128xbf16>
    tpu.vector_store %arg14[%c0_35, %c768], %35 {strides = array<i32>} : memref<256x1152xbf16, #tpu.memory_space<vmem>>, vector<256x128xbf16>,
    %c0_36 = arith.constant 0 : index
    %c2_37 = arith.constant 2 : index
    %c1_38 = arith.constant 1 : index
    %c0_39 = arith.constant 0 : index
    %37 = vector.load %arg1[%c0_36, %c2_37, %c1_38, %c0_39] : memref<1x18x18x128xf32, #tpu.memory_space<vmem>>, vector<1x16x16x128xf32>
    %38 = vector.shape_cast %37 : vector<1x16x16x128xf32> to vector<16x16x128xf32>
    %39 = vector.shape_cast %38 : vector<16x16x128xf32> to vector<256x128xf32>
    %40 = arith.truncf %39 : vector<256x128xf32> to vector<256x128xbf16>
    %c0_40 = arith.constant 0 : index
    %c896 = arith.constant 896 : index
    %41 = vector.load %arg14[%c0_40, %c896] : memref<256x1152xbf16, #tpu.memory_space<vmem>>, vector<256x128xbf16>
    tpu.vector_store %arg14[%c0_40, %c896], %40 {strides = array<i32>} : memref<256x1152xbf16, #tpu.memory_space<vmem>>, vector<256x128xbf16>,
    %c0_41 = arith.constant 0 : index
    %c2_42 = arith.constant 2 : index
    %c2_43 = arith.constant 2 : index
    %c0_44 = arith.constant 0 : index
    %42 = vector.load %arg1[%c0_41, %c2_42, %c2_43, %c0_44] : memref<1x18x18x128xf32, #tpu.memory_space<vmem>>, vector<1x16x16x128xf32>
    %43 = vector.shape_cast %42 : vector<1x16x16x128xf32> to vector<16x16x128xf32>
    %44 = vector.shape_cast %43 : vector<16x16x128xf32> to vector<256x128xf32>
    %45 = arith.truncf %44 : vector<256x128xf32> to vector<256x128xbf16>
    %c0_45 = arith.constant 0 : index
    %c1024 = arith.constant 1024 : index
    %46 = vector.load %arg14[%c0_45, %c1024] : memref<256x1152xbf16, #tpu.memory_space<vmem>>, vector<256x128xbf16>
    tpu.vector_store %arg14[%c0_45, %c1024], %45 {strides = array<i32>} : memref<256x1152xbf16, #tpu.memory_space<vmem>>, vector<256x128xbf16>,
    %c0_46 = arith.constant 0 : index
    %c0_47 = arith.constant 0 : index
    %47 = vector.load %arg14[%c0_46, %c0_47] : memref<256x1152xbf16, #tpu.memory_space<vmem>>, vector<256x1152xbf16>
    %c0_48 = arith.constant 0 : index
    %c0_49 = arith.constant 0 : index
    %48 = vector.load %arg2[%c0_48, %c0_49] : memref<1152x64xbf16, #tpu.memory_space<vmem>>, vector<1152x64xbf16>
    %cst_50 = arith.constant dense<0.000000e+00> : vector<256x64xf32>
    %49 = tpu.matmul %47, %48, %cst_50 {dimension_numbers = #tpu.dot_dimension_numbers<[1], [0], [0], [1], [0, 0, 1, 1], [], []>} : vector<256x1152xbf16>, vector<1152x64xbf16>, vector<256x64xf32> -> vector<256x64xf32>
    %c0_51 = arith.constant 0 : index
    %c0_52 = arith.constant 0 : index
    %50 = vector.load %arg3[%c0_51, %c0_52] : memref<1x64xf32, #tpu.memory_space<vmem>>, vector<1x64xf32>
    %51 = vector.broadcast %50 : vector<1x64xf32> to vector<256x64xf32>
    %52 = arith.addf %49, %51 : vector<256x64xf32>
    %cst_53 = arith.constant 0.000000e+00 : f32
    %53 = vector.broadcast %cst_53 : f32 to vector<256x64xf32>
    %54 = arith.maximumf %52, %53 : vector<256x64xf32>
    %55 = vector.shape_cast %54 : vector<256x64xf32> to vector<16x16x64xf32>
    %c1_54 = arith.constant 1 : index
    %c8 = arith.constant 8 : index
    %c0_55 = arith.constant 0 : index
    %56 = vector.load %arg13[%c1_54, %c8, %c0_55] : memref<18x32x128xf32, #tpu.memory_space<vmem>>, vector<16x16x64xf32>
    tpu.vector_store %arg13[%c1_54, %c8, %c0_55], %55 {strides = array<i32>} : memref<18x32x128xf32, #tpu.memory_space<vmem>>, vector<16x16x64xf32>,
    %c0_56 = arith.constant 0 : index
    %c7 = arith.constant 7 : index
    %c0_57 = arith.constant 0 : index
    %57 = vector.load %arg13[%c0_56, %c7, %c0_57] : memref<18x32x128xf32, #tpu.memory_space<vmem>>, vector<16x16x128xf32>
    %58 = vector.shape_cast %57 : vector<16x16x128xf32> to vector<256x128xf32>
    %59 = arith.truncf %58 : vector<256x128xf32> to vector<256x128xbf16>
    %c0_58 = arith.constant 0 : index
    %c0_59 = arith.constant 0 : index
    %60 = vector.load %arg14[%c0_58, %c0_59] : memref<256x1152xbf16, #tpu.memory_space<vmem>>, vector<256x128xbf16>
    tpu.vector_store %arg14[%c0_58, %c0_59], %59 {strides = array<i32>} : memref<256x1152xbf16, #tpu.memory_space<vmem>>, vector<256x128xbf16>,
    %c0_60 = arith.constant 0 : index
    %c8_61 = arith.constant 8 : index
    %c0_62 = arith.constant 0 : index
    %61 = vector.load %arg13[%c0_60, %c8_61, %c0_62] : memref<18x32x128xf32, #tpu.memory_space<vmem>>, vector<16x16x128xf32>
    %62 = vector.shape_cast %61 : vector<16x16x128xf32> to vector<256x128xf32>
    %63 = arith.truncf %62 : vector<256x128xf32> to vector<256x128xbf16>
    %c0_63 = arith.constant 0 : index
    %c128_64 = arith.constant 128 : index
    %64 = vector.load %arg14[%c0_63, %c128_64] : memref<256x1152xbf16, #tpu.memory_space<vmem>>, vector<256x128xbf16>
    tpu.vector_store %arg14[%c0_63, %c128_64], %63 {strides = array<i32>} : memref<256x1152xbf16, #tpu.memory_space<vmem>>, vector<256x128xbf16>,
    %c0_65 = arith.constant 0 : index
    %c9 = arith.constant 9 : index
    %c0_66 = arith.constant 0 : index
    %65 = vector.load %arg13[%c0_65, %c9, %c0_66] : memref<18x32x128xf32, #tpu.memory_space<vmem>>, vector<16x16x128xf32>
    %66 = vector.shape_cast %65 : vector<16x16x128xf32> to vector<256x128xf32>
    %67 = arith.truncf %66 : vector<256x128xf32> to vector<256x128xbf16>
    %c0_67 = arith.constant 0 : index
    %c256_68 = arith.constant 256 : index
    %68 = vector.load %arg14[%c0_67, %c256_68] : memref<256x1152xbf16, #tpu.memory_space<vmem>>, vector<256x128xbf16>
    tpu.vector_store %arg14[%c0_67, %c256_68], %67 {strides = array<i32>} : memref<256x1152xbf16, #tpu.memory_space<vmem>>, vector<256x128xbf16>,
    %c1_69 = arith.constant 1 : index
    %c7_70 = arith.constant 7 : index
    %c0_71 = arith.constant 0 : index
    %69 = vector.load %arg13[%c1_69, %c7_70, %c0_71] : memref<18x32x128xf32, #tpu.memory_space<vmem>>, vector<16x16x128xf32>
    %70 = vector.shape_cast %69 : vector<16x16x128xf32> to vector<256x128xf32>
    %71 = arith.truncf %70 : vector<256x128xf32> to vector<256x128xbf16>
    %c0_72 = arith.constant 0 : index
    %c384_73 = arith.constant 384 : index
    %72 = vector.load %arg14[%c0_72, %c384_73] : memref<256x1152xbf16, #tpu.memory_space<vmem>>, vector<256x128xbf16>
    tpu.vector_store %arg14[%c0_72, %c384_73], %71 {strides = array<i32>} : memref<256x1152xbf16, #tpu.memory_space<vmem>>, vector<256x128xbf16>,
    %c1_74 = arith.constant 1 : index
    %c8_75 = arith.constant 8 : index
    %c0_76 = arith.constant 0 : index
    %73 = vector.load %arg13[%c1_74, %c8_75, %c0_76] : memref<18x32x128xf32, #tpu.memory_space<vmem>>, vector<16x16x128xf32>
    %74 = vector.shape_cast %73 : vector<16x16x128xf32> to vector<256x128xf32>
    %75 = arith.truncf %74 : vector<256x128xf32> to vector<256x128xbf16>
    %c0_77 = arith.constant 0 : index
    %c512_78 = arith.constant 512 : index
    %76 = vector.load %arg14[%c0_77, %c512_78] : memref<256x1152xbf16, #tpu.memory_space<vmem>>, vector<256x128xbf16>
    tpu.vector_store %arg14[%c0_77, %c512_78], %75 {strides = array<i32>} : memref<256x1152xbf16, #tpu.memory_space<vmem>>, vector<256x128xbf16>,
    %c1_79 = arith.constant 1 : index
    %c9_80 = arith.constant 9 : index
    %c0_81 = arith.constant 0 : index
    %77 = vector.load %arg13[%c1_79, %c9_80, %c0_81] : memref<18x32x128xf32, #tpu.memory_space<vmem>>, vector<16x16x128xf32>
    %78 = vector.shape_cast %77 : vector<16x16x128xf32> to vector<256x128xf32>
    %79 = arith.truncf %78 : vector<256x128xf32> to vector<256x128xbf16>
    %c0_82 = arith.constant 0 : index
    %c640_83 = arith.constant 640 : index
    %80 = vector.load %arg14[%c0_82, %c640_83] : memref<256x1152xbf16, #tpu.memory_space<vmem>>, vector<256x128xbf16>
    tpu.vector_store %arg14[%c0_82, %c640_83], %79 {strides = array<i32>} : memref<256x1152xbf16, #tpu.memory_space<vmem>>, vector<256x128xbf16>,
    %c2_84 = arith.constant 2 : index
    %c7_85 = arith.constant 7 : index
    %c0_86 = arith.constant 0 : index
    %81 = vector.load %arg13[%c2_84, %c7_85, %c0_86] : memref<18x32x128xf32, #tpu.memory_space<vmem>>, vector<16x16x128xf32>
    %82 = vector.shape_cast %81 : vector<16x16x128xf32> to vector<256x128xf32>
    %83 = arith.truncf %82 : vector<256x128xf32> to vector<256x128xbf16>
    %c0_87 = arith.constant 0 : index
    %c768_88 = arith.constant 768 : index
    %84 = vector.load %arg14[%c0_87, %c768_88] : memref<256x1152xbf16, #tpu.memory_space<vmem>>, vector<256x128xbf16>
    tpu.vector_store %arg14[%c0_87, %c768_88], %83 {strides = array<i32>} : memref<256x1152xbf16, #tpu.memory_space<vmem>>, vector<256x128xbf16>,
    %c2_89 = arith.constant 2 : index
    %c8_90 = arith.constant 8 : index
    %c0_91 = arith.constant 0 : index
    %85 = vector.load %arg13[%c2_89, %c8_90, %c0_91] : memref<18x32x128xf32, #tpu.memory_space<vmem>>, vector<16x16x128xf32>
    %86 = vector.shape_cast %85 : vector<16x16x128xf32> to vector<256x128xf32>
    %87 = arith.truncf %86 : vector<256x128xf32> to vector<256x128xbf16>
    %c0_92 = arith.constant 0 : index
    %c896_93 = arith.constant 896 : index
    %88 = vector.load %arg14[%c0_92, %c896_93] : memref<256x1152xbf16, #tpu.memory_space<vmem>>, vector<256x128xbf16>
    tpu.vector_store %arg14[%c0_92, %c896_93], %87 {strides = array<i32>} : memref<256x1152xbf16, #tpu.memory_space<vmem>>, vector<256x128xbf16>,
    %c2_94 = arith.constant 2 : index
    %c9_95 = arith.constant 9 : index
    %c0_96 = arith.constant 0 : index
    %89 = vector.load %arg13[%c2_94, %c9_95, %c0_96] : memref<18x32x128xf32, #tpu.memory_space<vmem>>, vector<16x16x128xf32>
    %90 = vector.shape_cast %89 : vector<16x16x128xf32> to vector<256x128xf32>
    %91 = arith.truncf %90 : vector<256x128xf32> to vector<256x128xbf16>
    %c0_97 = arith.constant 0 : index
    %c1024_98 = arith.constant 1024 : index
    %92 = vector.load %arg14[%c0_97, %c1024_98] : memref<256x1152xbf16, #tpu.memory_space<vmem>>, vector<256x128xbf16>
    tpu.vector_store %arg14[%c0_97, %c1024_98], %91 {strides = array<i32>} : memref<256x1152xbf16, #tpu.memory_space<vmem>>, vector<256x128xbf16>,
    %c0_99 = arith.constant 0 : index
    %c0_100 = arith.constant 0 : index
    %93 = vector.load %arg14[%c0_99, %c0_100] : memref<256x1152xbf16, #tpu.memory_space<vmem>>, vector<256x1152xbf16>
    %c0_101 = arith.constant 0 : index
    %c0_102 = arith.constant 0 : index
    %94 = vector.load %arg4[%c0_101, %c0_102] : memref<1152x128xbf16, #tpu.memory_space<vmem>>, vector<1152x128xbf16>
    %cst_103 = arith.constant dense<0.000000e+00> : vector<256x128xf32>
    %95 = tpu.matmul %93, %94, %cst_103 {dimension_numbers = #tpu.dot_dimension_numbers<[1], [0], [0], [1], [0, 0, 1, 1], [], []>} : vector<256x1152xbf16>, vector<1152x128xbf16>, vector<256x128xf32> -> vector<256x128xf32>
    %c0_104 = arith.constant 0 : index
    %c0_105 = arith.constant 0 : index
    %96 = vector.load %arg5[%c0_104, %c0_105] : memref<1x128xf32, #tpu.memory_space<vmem>>, vector<1x128xf32>
    %97 = vector.broadcast %96 : vector<1x128xf32> to vector<256x128xf32>
    %98 = arith.addf %95, %97 : vector<256x128xf32>
    %cst_106 = arith.constant 0.000000e+00 : f32
    %99 = vector.broadcast %cst_106 : f32 to vector<256x128xf32>
    %100 = arith.maximumf %98, %99 : vector<256x128xf32>
    %101 = vector.shape_cast %100 : vector<256x128xf32> to vector<16x16x128xf32>
    %c1_107 = arith.constant 1 : index
    %c8_108 = arith.constant 8 : index
    %c0_109 = arith.constant 0 : index
    %102 = vector.load %arg13[%c1_107, %c8_108, %c0_109] : memref<18x32x128xf32, #tpu.memory_space<vmem>>, vector<16x16x128xf32>
    tpu.vector_store %arg13[%c1_107, %c8_108, %c0_109], %101 {strides = array<i32>} : memref<18x32x128xf32, #tpu.memory_space<vmem>>, vector<16x16x128xf32>,
    %c0_110 = arith.constant 0 : index
    %c7_111 = arith.constant 7 : index
    %c0_112 = arith.constant 0 : index
    %103 = vector.load %arg13[%c0_110, %c7_111, %c0_112] : memref<18x32x128xf32, #tpu.memory_space<vmem>>, vector<16x16x128xf32>
    %104 = vector.shape_cast %103 : vector<16x16x128xf32> to vector<256x128xf32>
    %105 = arith.truncf %104 : vector<256x128xf32> to vector<256x128xbf16>
    %c0_113 = arith.constant 0 : index
    %c0_114 = arith.constant 0 : index
    %106 = vector.load %arg14[%c0_113, %c0_114] : memref<256x1152xbf16, #tpu.memory_space<vmem>>, vector<256x128xbf16>
    tpu.vector_store %arg14[%c0_113, %c0_114], %105 {strides = array<i32>} : memref<256x1152xbf16, #tpu.memory_space<vmem>>, vector<256x128xbf16>,
    %c0_115 = arith.constant 0 : index
    %c8_116 = arith.constant 8 : index
    %c0_117 = arith.constant 0 : index
    %107 = vector.load %arg13[%c0_115, %c8_116, %c0_117] : memref<18x32x128xf32, #tpu.memory_space<vmem>>, vector<16x16x128xf32>
    %108 = vector.shape_cast %107 : vector<16x16x128xf32> to vector<256x128xf32>
    %109 = arith.truncf %108 : vector<256x128xf32> to vector<256x128xbf16>
    %c0_118 = arith.constant 0 : index
    %c128_119 = arith.constant 128 : index
    %110 = vector.load %arg14[%c0_118, %c128_119] : memref<256x1152xbf16, #tpu.memory_space<vmem>>, vector<256x128xbf16>
    tpu.vector_store %arg14[%c0_118, %c128_119], %109 {strides = array<i32>} : memref<256x1152xbf16, #tpu.memory_space<vmem>>, vector<256x128xbf16>,
    %c0_120 = arith.constant 0 : index
    %c9_121 = arith.constant 9 : index
    %c0_122 = arith.constant 0 : index
    %111 = vector.load %arg13[%c0_120, %c9_121, %c0_122] : memref<18x32x128xf32, #tpu.memory_space<vmem>>, vector<16x16x128xf32>
    %112 = vector.shape_cast %111 : vector<16x16x128xf32> to vector<256x128xf32>
    %113 = arith.truncf %112 : vector<256x128xf32> to vector<256x128xbf16>
    %c0_123 = arith.constant 0 : index
    %c256_124 = arith.constant 256 : index
    %114 = vector.load %arg14[%c0_123, %c256_124] : memref<256x1152xbf16, #tpu.memory_space<vmem>>, vector<256x128xbf16>
    tpu.vector_store %arg14[%c0_123, %c256_124], %113 {strides = array<i32>} : memref<256x1152xbf16, #tpu.memory_space<vmem>>, vector<256x128xbf16>,
    %c1_125 = arith.constant 1 : index
    %c7_126 = arith.constant 7 : index
    %c0_127 = arith.constant 0 : index
    %115 = vector.load %arg13[%c1_125, %c7_126, %c0_127] : memref<18x32x128xf32, #tpu.memory_space<vmem>>, vector<16x16x128xf32>
    %116 = vector.shape_cast %115 : vector<16x16x128xf32> to vector<256x128xf32>
    %117 = arith.truncf %116 : vector<256x128xf32> to vector<256x128xbf16>
    %c0_128 = arith.constant 0 : index
    %c384_129 = arith.constant 384 : index
    %118 = vector.load %arg14[%c0_128, %c384_129] : memref<256x1152xbf16, #tpu.memory_space<vmem>>, vector<256x128xbf16>
    tpu.vector_store %arg14[%c0_128, %c384_129], %117 {strides = array<i32>} : memref<256x1152xbf16, #tpu.memory_space<vmem>>, vector<256x128xbf16>,
    %c1_130 = arith.constant 1 : index
    %c8_131 = arith.constant 8 : index
    %c0_132 = arith.constant 0 : index
    %119 = vector.load %arg13[%c1_130, %c8_131, %c0_132] : memref<18x32x128xf32, #tpu.memory_space<vmem>>, vector<16x16x128xf32>
    %120 = vector.shape_cast %119 : vector<16x16x128xf32> to vector<256x128xf32>
    %121 = arith.truncf %120 : vector<256x128xf32> to vector<256x128xbf16>
    %c0_133 = arith.constant 0 : index
    %c512_134 = arith.constant 512 : index
    %122 = vector.load %arg14[%c0_133, %c512_134] : memref<256x1152xbf16, #tpu.memory_space<vmem>>, vector<256x128xbf16>
    tpu.vector_store %arg14[%c0_133, %c512_134], %121 {strides = array<i32>} : memref<256x1152xbf16, #tpu.memory_space<vmem>>, vector<256x128xbf16>,
    %c1_135 = arith.constant 1 : index
    %c9_136 = arith.constant 9 : index
    %c0_137 = arith.constant 0 : index
    %123 = vector.load %arg13[%c1_135, %c9_136, %c0_137] : memref<18x32x128xf32, #tpu.memory_space<vmem>>, vector<16x16x128xf32>
    %124 = vector.shape_cast %123 : vector<16x16x128xf32> to vector<256x128xf32>
    %125 = arith.truncf %124 : vector<256x128xf32> to vector<256x128xbf16>
    %c0_138 = arith.constant 0 : index
    %c640_139 = arith.constant 640 : index
    %126 = vector.load %arg14[%c0_138, %c640_139] : memref<256x1152xbf16, #tpu.memory_space<vmem>>, vector<256x128xbf16>
    tpu.vector_store %arg14[%c0_138, %c640_139], %125 {strides = array<i32>} : memref<256x1152xbf16, #tpu.memory_space<vmem>>, vector<256x128xbf16>,
    %c2_140 = arith.constant 2 : index
    %c7_141 = arith.constant 7 : index
    %c0_142 = arith.constant 0 : index
    %127 = vector.load %arg13[%c2_140, %c7_141, %c0_142] : memref<18x32x128xf32, #tpu.memory_space<vmem>>, vector<16x16x128xf32>
    %128 = vector.shape_cast %127 : vector<16x16x128xf32> to vector<256x128xf32>
    %129 = arith.truncf %128 : vector<256x128xf32> to vector<256x128xbf16>
    %c0_143 = arith.constant 0 : index
    %c768_144 = arith.constant 768 : index
    %130 = vector.load %arg14[%c0_143, %c768_144] : memref<256x1152xbf16, #tpu.memory_space<vmem>>, vector<256x128xbf16>
    tpu.vector_store %arg14[%c0_143, %c768_144], %129 {strides = array<i32>} : memref<256x1152xbf16, #tpu.memory_space<vmem>>, vector<256x128xbf16>,
    %c2_145 = arith.constant 2 : index
    %c8_146 = arith.constant 8 : index
    %c0_147 = arith.constant 0 : index
    %131 = vector.load %arg13[%c2_145, %c8_146, %c0_147] : memref<18x32x128xf32, #tpu.memory_space<vmem>>, vector<16x16x128xf32>
    %132 = vector.shape_cast %131 : vector<16x16x128xf32> to vector<256x128xf32>
    %133 = arith.truncf %132 : vector<256x128xf32> to vector<256x128xbf16>
    %c0_148 = arith.constant 0 : index
    %c896_149 = arith.constant 896 : index
    %134 = vector.load %arg14[%c0_148, %c896_149] : memref<256x1152xbf16, #tpu.memory_space<vmem>>, vector<256x128xbf16>
    tpu.vector_store %arg14[%c0_148, %c896_149], %133 {strides = array<i32>} : memref<256x1152xbf16, #tpu.memory_space<vmem>>, vector<256x128xbf16>,
    %c2_150 = arith.constant 2 : index
    %c9_151 = arith.constant 9 : index
    %c0_152 = arith.constant 0 : index
    %135 = vector.load %arg13[%c2_150, %c9_151, %c0_152] : memref<18x32x128xf32, #tpu.memory_space<vmem>>, vector<16x16x128xf32>
    %136 = vector.shape_cast %135 : vector<16x16x128xf32> to vector<256x128xf32>
    %137 = arith.truncf %136 : vector<256x128xf32> to vector<256x128xbf16>
    %c0_153 = arith.constant 0 : index
    %c1024_154 = arith.constant 1024 : index
    %138 = vector.load %arg14[%c0_153, %c1024_154] : memref<256x1152xbf16, #tpu.memory_space<vmem>>, vector<256x128xbf16>
    tpu.vector_store %arg14[%c0_153, %c1024_154], %137 {strides = array<i32>} : memref<256x1152xbf16, #tpu.memory_space<vmem>>, vector<256x128xbf16>,
    %c0_155 = arith.constant 0 : index
    %c0_156 = arith.constant 0 : index
    %139 = vector.load %arg14[%c0_155, %c0_156] : memref<256x1152xbf16, #tpu.memory_space<vmem>>, vector<256x1152xbf16>
    %c0_157 = arith.constant 0 : index
    %c0_158 = arith.constant 0 : index
    %140 = vector.load %arg6[%c0_157, %c0_158] : memref<1152x128xbf16, #tpu.memory_space<vmem>>, vector<1152x128xbf16>
    %cst_159 = arith.constant dense<0.000000e+00> : vector<256x128xf32>
    %141 = tpu.matmul %139, %140, %cst_159 {dimension_numbers = #tpu.dot_dimension_numbers<[1], [0], [0], [1], [0, 0, 1, 1], [], []>} : vector<256x1152xbf16>, vector<1152x128xbf16>, vector<256x128xf32> -> vector<256x128xf32>
    %c0_160 = arith.constant 0 : index
    %c0_161 = arith.constant 0 : index
    %142 = vector.load %arg7[%c0_160, %c0_161] : memref<1x128xf32, #tpu.memory_space<vmem>>, vector<1x128xf32>
    %143 = vector.broadcast %142 : vector<1x128xf32> to vector<256x128xf32>
    %144 = arith.addf %141, %143 : vector<256x128xf32>
    %cst_162 = arith.constant 0.000000e+00 : f32
    %145 = vector.broadcast %cst_162 : f32 to vector<256x128xf32>
    %146 = arith.maximumf %144, %145 : vector<256x128xf32>
    %147 = vector.shape_cast %146 : vector<256x128xf32> to vector<16x16x128xf32>
    %c1_163 = arith.constant 1 : index
    %c8_164 = arith.constant 8 : index
    %c0_165 = arith.constant 0 : index
    %148 = vector.load %arg13[%c1_163, %c8_164, %c0_165] : memref<18x32x128xf32, #tpu.memory_space<vmem>>, vector<16x16x128xf32>
    tpu.vector_store %arg13[%c1_163, %c8_164, %c0_165], %147 {strides = array<i32>} : memref<18x32x128xf32, #tpu.memory_space<vmem>>, vector<16x16x128xf32>,
    %c0_166 = arith.constant 0 : index
    %c7_167 = arith.constant 7 : index
    %c0_168 = arith.constant 0 : index
    %149 = vector.load %arg13[%c0_166, %c7_167, %c0_168] : memref<18x32x128xf32, #tpu.memory_space<vmem>>, vector<16x16x128xf32>
    %150 = vector.shape_cast %149 : vector<16x16x128xf32> to vector<256x128xf32>
    %151 = arith.truncf %150 : vector<256x128xf32> to vector<256x128xbf16>
    %c0_169 = arith.constant 0 : index
    %c0_170 = arith.constant 0 : index
    %152 = vector.load %arg14[%c0_169, %c0_170] : memref<256x1152xbf16, #tpu.memory_space<vmem>>, vector<256x128xbf16>
    tpu.vector_store %arg14[%c0_169, %c0_170], %151 {strides = array<i32>} : memref<256x1152xbf16, #tpu.memory_space<vmem>>, vector<256x128xbf16>,
    %c0_171 = arith.constant 0 : index
    %c8_172 = arith.constant 8 : index
    %c0_173 = arith.constant 0 : index
    %153 = vector.load %arg13[%c0_171, %c8_172, %c0_173] : memref<18x32x128xf32, #tpu.memory_space<vmem>>, vector<16x16x128xf32>
    %154 = vector.shape_cast %153 : vector<16x16x128xf32> to vector<256x128xf32>
    %155 = arith.truncf %154 : vector<256x128xf32> to vector<256x128xbf16>
    %c0_174 = arith.constant 0 : index
    %c128_175 = arith.constant 128 : index
    %156 = vector.load %arg14[%c0_174, %c128_175] : memref<256x1152xbf16, #tpu.memory_space<vmem>>, vector<256x128xbf16>
    tpu.vector_store %arg14[%c0_174, %c128_175], %155 {strides = array<i32>} : memref<256x1152xbf16, #tpu.memory_space<vmem>>, vector<256x128xbf16>,
    %c0_176 = arith.constant 0 : index
    %c9_177 = arith.constant 9 : index
    %c0_178 = arith.constant 0 : index
    %157 = vector.load %arg13[%c0_176, %c9_177, %c0_178] : memref<18x32x128xf32, #tpu.memory_space<vmem>>, vector<16x16x128xf32>
    %158 = vector.shape_cast %157 : vector<16x16x128xf32> to vector<256x128xf32>
    %159 = arith.truncf %158 : vector<256x128xf32> to vector<256x128xbf16>
    %c0_179 = arith.constant 0 : index
    %c256_180 = arith.constant 256 : index
    %160 = vector.load %arg14[%c0_179, %c256_180] : memref<256x1152xbf16, #tpu.memory_space<vmem>>, vector<256x128xbf16>
    tpu.vector_store %arg14[%c0_179, %c256_180], %159 {strides = array<i32>} : memref<256x1152xbf16, #tpu.memory_space<vmem>>, vector<256x128xbf16>,
    %c1_181 = arith.constant 1 : index
    %c7_182 = arith.constant 7 : index
    %c0_183 = arith.constant 0 : index
    %161 = vector.load %arg13[%c1_181, %c7_182, %c0_183] : memref<18x32x128xf32, #tpu.memory_space<vmem>>, vector<16x16x128xf32>
    %162 = vector.shape_cast %161 : vector<16x16x128xf32> to vector<256x128xf32>
    %163 = arith.truncf %162 : vector<256x128xf32> to vector<256x128xbf16>
    %c0_184 = arith.constant 0 : index
    %c384_185 = arith.constant 384 : index
    %164 = vector.load %arg14[%c0_184, %c384_185] : memref<256x1152xbf16, #tpu.memory_space<vmem>>, vector<256x128xbf16>
    tpu.vector_store %arg14[%c0_184, %c384_185], %163 {strides = array<i32>} : memref<256x1152xbf16, #tpu.memory_space<vmem>>, vector<256x128xbf16>,
    %c1_186 = arith.constant 1 : index
    %c8_187 = arith.constant 8 : index
    %c0_188 = arith.constant 0 : index
    %165 = vector.load %arg13[%c1_186, %c8_187, %c0_188] : memref<18x32x128xf32, #tpu.memory_space<vmem>>, vector<16x16x128xf32>
    %166 = vector.shape_cast %165 : vector<16x16x128xf32> to vector<256x128xf32>
    %167 = arith.truncf %166 : vector<256x128xf32> to vector<256x128xbf16>
    %c0_189 = arith.constant 0 : index
    %c512_190 = arith.constant 512 : index
    %168 = vector.load %arg14[%c0_189, %c512_190] : memref<256x1152xbf16, #tpu.memory_space<vmem>>, vector<256x128xbf16>
    tpu.vector_store %arg14[%c0_189, %c512_190], %167 {strides = array<i32>} : memref<256x1152xbf16, #tpu.memory_space<vmem>>, vector<256x128xbf16>,
    %c1_191 = arith.constant 1 : index
    %c9_192 = arith.constant 9 : index
    %c0_193 = arith.constant 0 : index
    %169 = vector.load %arg13[%c1_191, %c9_192, %c0_193] : memref<18x32x128xf32, #tpu.memory_space<vmem>>, vector<16x16x128xf32>
    %170 = vector.shape_cast %169 : vector<16x16x128xf32> to vector<256x128xf32>
    %171 = arith.truncf %170 : vector<256x128xf32> to vector<256x128xbf16>
    %c0_194 = arith.constant 0 : index
    %c640_195 = arith.constant 640 : index
    %172 = vector.load %arg14[%c0_194, %c640_195] : memref<256x1152xbf16, #tpu.memory_space<vmem>>, vector<256x128xbf16>
    tpu.vector_store %arg14[%c0_194, %c640_195], %171 {strides = array<i32>} : memref<256x1152xbf16, #tpu.memory_space<vmem>>, vector<256x128xbf16>,
    %c2_196 = arith.constant 2 : index
    %c7_197 = arith.constant 7 : index
    %c0_198 = arith.constant 0 : index
    %173 = vector.load %arg13[%c2_196, %c7_197, %c0_198] : memref<18x32x128xf32, #tpu.memory_space<vmem>>, vector<16x16x128xf32>
    %174 = vector.shape_cast %173 : vector<16x16x128xf32> to vector<256x128xf32>
    %175 = arith.truncf %174 : vector<256x128xf32> to vector<256x128xbf16>
    %c0_199 = arith.constant 0 : index
    %c768_200 = arith.constant 768 : index
    %176 = vector.load %arg14[%c0_199, %c768_200] : memref<256x1152xbf16, #tpu.memory_space<vmem>>, vector<256x128xbf16>
    tpu.vector_store %arg14[%c0_199, %c768_200], %175 {strides = array<i32>} : memref<256x1152xbf16, #tpu.memory_space<vmem>>, vector<256x128xbf16>,
    %c2_201 = arith.constant 2 : index
    %c8_202 = arith.constant 8 : index
    %c0_203 = arith.constant 0 : index
    %177 = vector.load %arg13[%c2_201, %c8_202, %c0_203] : memref<18x32x128xf32, #tpu.memory_space<vmem>>, vector<16x16x128xf32>
    %178 = vector.shape_cast %177 : vector<16x16x128xf32> to vector<256x128xf32>
    %179 = arith.truncf %178 : vector<256x128xf32> to vector<256x128xbf16>
    %c0_204 = arith.constant 0 : index
    %c896_205 = arith.constant 896 : index
    %180 = vector.load %arg14[%c0_204, %c896_205] : memref<256x1152xbf16, #tpu.memory_space<vmem>>, vector<256x128xbf16>
    tpu.vector_store %arg14[%c0_204, %c896_205], %179 {strides = array<i32>} : memref<256x1152xbf16, #tpu.memory_space<vmem>>, vector<256x128xbf16>,
    %c2_206 = arith.constant 2 : index
    %c9_207 = arith.constant 9 : index
    %c0_208 = arith.constant 0 : index
    %181 = vector.load %arg13[%c2_206, %c9_207, %c0_208] : memref<18x32x128xf32, #tpu.memory_space<vmem>>, vector<16x16x128xf32>
    %182 = vector.shape_cast %181 : vector<16x16x128xf32> to vector<256x128xf32>
    %183 = arith.truncf %182 : vector<256x128xf32> to vector<256x128xbf16>
    %c0_209 = arith.constant 0 : index
    %c1024_210 = arith.constant 1024 : index
    %184 = vector.load %arg14[%c0_209, %c1024_210] : memref<256x1152xbf16, #tpu.memory_space<vmem>>, vector<256x128xbf16>
    tpu.vector_store %arg14[%c0_209, %c1024_210], %183 {strides = array<i32>} : memref<256x1152xbf16, #tpu.memory_space<vmem>>, vector<256x128xbf16>,
    %c0_211 = arith.constant 0 : index
    %c0_212 = arith.constant 0 : index
    %185 = vector.load %arg14[%c0_211, %c0_212] : memref<256x1152xbf16, #tpu.memory_space<vmem>>, vector<256x1152xbf16>
    %c0_213 = arith.constant 0 : index
    %c0_214 = arith.constant 0 : index
    %186 = vector.load %arg8[%c0_213, %c0_214] : memref<1152x64xbf16, #tpu.memory_space<vmem>>, vector<1152x64xbf16>
    %cst_215 = arith.constant dense<0.000000e+00> : vector<256x64xf32>
    %187 = tpu.matmul %185, %186, %cst_215 {dimension_numbers = #tpu.dot_dimension_numbers<[1], [0], [0], [1], [0, 0, 1, 1], [], []>} : vector<256x1152xbf16>, vector<1152x64xbf16>, vector<256x64xf32> -> vector<256x64xf32>
    %c0_216 = arith.constant 0 : index
    %c0_217 = arith.constant 0 : index
    %188 = vector.load %arg9[%c0_216, %c0_217] : memref<1x64xf32, #tpu.memory_space<vmem>>, vector<1x64xf32>
    %189 = vector.broadcast %188 : vector<1x64xf32> to vector<256x64xf32>
    %190 = arith.addf %187, %189 : vector<256x64xf32>
    %cst_218 = arith.constant 0.000000e+00 : f32
    %191 = vector.broadcast %cst_218 : f32 to vector<256x64xf32>
    %192 = arith.maximumf %190, %191 : vector<256x64xf32>
    %193 = vector.shape_cast %192 : vector<256x64xf32> to vector<16x16x64xf32>
    %c1_219 = arith.constant 1 : index
    %c8_220 = arith.constant 8 : index
    %c0_221 = arith.constant 0 : index
    %194 = vector.load %arg13[%c1_219, %c8_220, %c0_221] : memref<18x32x128xf32, #tpu.memory_space<vmem>>, vector<16x16x64xf32>
    tpu.vector_store %arg13[%c1_219, %c8_220, %c0_221], %193 {strides = array<i32>} : memref<18x32x128xf32, #tpu.memory_space<vmem>>, vector<16x16x64xf32>,
    %c0_222 = arith.constant 0 : index
    %c7_223 = arith.constant 7 : index
    %c0_224 = arith.constant 0 : index
    %195 = vector.load %arg13[%c0_222, %c7_223, %c0_224] : memref<18x32x128xf32, #tpu.memory_space<vmem>>, vector<16x16x128xf32>
    %196 = vector.shape_cast %195 : vector<16x16x128xf32> to vector<256x128xf32>
    %197 = arith.truncf %196 : vector<256x128xf32> to vector<256x128xbf16>
    %c0_225 = arith.constant 0 : index
    %c0_226 = arith.constant 0 : index
    %198 = vector.load %arg14[%c0_225, %c0_226] : memref<256x1152xbf16, #tpu.memory_space<vmem>>, vector<256x128xbf16>
    tpu.vector_store %arg14[%c0_225, %c0_226], %197 {strides = array<i32>} : memref<256x1152xbf16, #tpu.memory_space<vmem>>, vector<256x128xbf16>,
    %c0_227 = arith.constant 0 : index
    %c8_228 = arith.constant 8 : index
    %c0_229 = arith.constant 0 : index
    %199 = vector.load %arg13[%c0_227, %c8_228, %c0_229] : memref<18x32x128xf32, #tpu.memory_space<vmem>>, vector<16x16x128xf32>
    %200 = vector.shape_cast %199 : vector<16x16x128xf32> to vector<256x128xf32>
    %201 = arith.truncf %200 : vector<256x128xf32> to vector<256x128xbf16>
    %c0_230 = arith.constant 0 : index
    %c128_231 = arith.constant 128 : index
    %202 = vector.load %arg14[%c0_230, %c128_231] : memref<256x1152xbf16, #tpu.memory_space<vmem>>, vector<256x128xbf16>
    tpu.vector_store %arg14[%c0_230, %c128_231], %201 {strides = array<i32>} : memref<256x1152xbf16, #tpu.memory_space<vmem>>, vector<256x128xbf16>,
    %c0_232 = arith.constant 0 : index
    %c9_233 = arith.constant 9 : index
    %c0_234 = arith.constant 0 : index
    %203 = vector.load %arg13[%c0_232, %c9_233, %c0_234] : memref<18x32x128xf32, #tpu.memory_space<vmem>>, vector<16x16x128xf32>
    %204 = vector.shape_cast %203 : vector<16x16x128xf32> to vector<256x128xf32>
    %205 = arith.truncf %204 : vector<256x128xf32> to vector<256x128xbf16>
    %c0_235 = arith.constant 0 : index
    %c256_236 = arith.constant 256 : index
    %206 = vector.load %arg14[%c0_235, %c256_236] : memref<256x1152xbf16, #tpu.memory_space<vmem>>, vector<256x128xbf16>
    tpu.vector_store %arg14[%c0_235, %c256_236], %205 {strides = array<i32>} : memref<256x1152xbf16, #tpu.memory_space<vmem>>, vector<256x128xbf16>,
    %c1_237 = arith.constant 1 : index
    %c7_238 = arith.constant 7 : index
    %c0_239 = arith.constant 0 : index
    %207 = vector.load %arg13[%c1_237, %c7_238, %c0_239] : memref<18x32x128xf32, #tpu.memory_space<vmem>>, vector<16x16x128xf32>
    %208 = vector.shape_cast %207 : vector<16x16x128xf32> to vector<256x128xf32>
    %209 = arith.truncf %208 : vector<256x128xf32> to vector<256x128xbf16>
    %c0_240 = arith.constant 0 : index
    %c384_241 = arith.constant 384 : index
    %210 = vector.load %arg14[%c0_240, %c384_241] : memref<256x1152xbf16, #tpu.memory_space<vmem>>, vector<256x128xbf16>
    tpu.vector_store %arg14[%c0_240, %c384_241], %209 {strides = array<i32>} : memref<256x1152xbf16, #tpu.memory_space<vmem>>, vector<256x128xbf16>,
    %c1_242 = arith.constant 1 : index
    %c8_243 = arith.constant 8 : index
    %c0_244 = arith.constant 0 : index
    %211 = vector.load %arg13[%c1_242, %c8_243, %c0_244] : memref<18x32x128xf32, #tpu.memory_space<vmem>>, vector<16x16x128xf32>
    %212 = vector.shape_cast %211 : vector<16x16x128xf32> to vector<256x128xf32>
    %213 = arith.truncf %212 : vector<256x128xf32> to vector<256x128xbf16>
    %c0_245 = arith.constant 0 : index
    %c512_246 = arith.constant 512 : index
    %214 = vector.load %arg14[%c0_245, %c512_246] : memref<256x1152xbf16, #tpu.memory_space<vmem>>, vector<256x128xbf16>
    tpu.vector_store %arg14[%c0_245, %c512_246], %213 {strides = array<i32>} : memref<256x1152xbf16, #tpu.memory_space<vmem>>, vector<256x128xbf16>,
    %c1_247 = arith.constant 1 : index
    %c9_248 = arith.constant 9 : index
    %c0_249 = arith.constant 0 : index
    %215 = vector.load %arg13[%c1_247, %c9_248, %c0_249] : memref<18x32x128xf32, #tpu.memory_space<vmem>>, vector<16x16x128xf32>
    %216 = vector.shape_cast %215 : vector<16x16x128xf32> to vector<256x128xf32>
    %217 = arith.truncf %216 : vector<256x128xf32> to vector<256x128xbf16>
    %c0_250 = arith.constant 0 : index
    %c640_251 = arith.constant 640 : index
    %218 = vector.load %arg14[%c0_250, %c640_251] : memref<256x1152xbf16, #tpu.memory_space<vmem>>, vector<256x128xbf16>
    tpu.vector_store %arg14[%c0_250, %c640_251], %217 {strides = array<i32>} : memref<256x1152xbf16, #tpu.memory_space<vmem>>, vector<256x128xbf16>,
    %c2_252 = arith.constant 2 : index
    %c7_253 = arith.constant 7 : index
    %c0_254 = arith.constant 0 : index
    %219 = vector.load %arg13[%c2_252, %c7_253, %c0_254] : memref<18x32x128xf32, #tpu.memory_space<vmem>>, vector<16x16x128xf32>
    %220 = vector.shape_cast %219 : vector<16x16x128xf32> to vector<256x128xf32>
    %221 = arith.truncf %220 : vector<256x128xf32> to vector<256x128xbf16>
    %c0_255 = arith.constant 0 : index
    %c768_256 = arith.constant 768 : index
    %222 = vector.load %arg14[%c0_255, %c768_256] : memref<256x1152xbf16, #tpu.memory_space<vmem>>, vector<256x128xbf16>
    tpu.vector_store %arg14[%c0_255, %c768_256], %221 {strides = array<i32>} : memref<256x1152xbf16, #tpu.memory_space<vmem>>, vector<256x128xbf16>,
    %c2_257 = arith.constant 2 : index
    %c8_258 = arith.constant 8 : index
    %c0_259 = arith.constant 0 : index
    %223 = vector.load %arg13[%c2_257, %c8_258, %c0_259] : memref<18x32x128xf32, #tpu.memory_space<vmem>>, vector<16x16x128xf32>
    %224 = vector.shape_cast %223 : vector<16x16x128xf32> to vector<256x128xf32>
    %225 = arith.truncf %224 : vector<256x128xf32> to vector<256x128xbf16>
    %c0_260 = arith.constant 0 : index
    %c896_261 = arith.constant 896 : index
    %226 = vector.load %arg14[%c0_260, %c896_261] : memref<256x1152xbf16, #tpu.memory_space<vmem>>, vector<256x128xbf16>
    tpu.vector_store %arg14[%c0_260, %c896_261], %225 {strides = array<i32>} : memref<256x1152xbf16, #tpu.memory_space<vmem>>, vector<256x128xbf16>,
    %c2_262 = arith.constant 2 : index
    %c9_263 = arith.constant 9 : index
    %c0_264 = arith.constant 0 : index
    %227 = vector.load %arg13[%c2_262, %c9_263, %c0_264] : memref<18x32x128xf32, #tpu.memory_space<vmem>>, vector<16x16x128xf32>
    %228 = vector.shape_cast %227 : vector<16x16x128xf32> to vector<256x128xf32>
    %229 = arith.truncf %228 : vector<256x128xf32> to vector<256x128xbf16>
    %c0_265 = arith.constant 0 : index
    %c1024_266 = arith.constant 1024 : index
    %230 = vector.load %arg14[%c0_265, %c1024_266] : memref<256x1152xbf16, #tpu.memory_space<vmem>>, vector<256x128xbf16>
    tpu.vector_store %arg14[%c0_265, %c1024_266], %229 {strides = array<i32>} : memref<256x1152xbf16, #tpu.memory_space<vmem>>, vector<256x128xbf16>,
    %c0_267 = arith.constant 0 : index
    %c0_268 = arith.constant 0 : index
    %231 = vector.load %arg10[%c0_267, %c0_268] : memref<8x1152xbf16, #tpu.memory_space<vmem>>, vector<8x1152xbf16>
    %c0_269 = arith.constant 0 : index
    %c0_270 = arith.constant 0 : index
    %232 = vector.load %arg14[%c0_269, %c0_270] : memref<256x1152xbf16, #tpu.memory_space<vmem>>, vector<256x1152xbf16>
    %cst_271 = arith.constant dense<0.000000e+00> : vector<8x256xf32>
    %233 = tpu.matmul %231, %232, %cst_271 {dimension_numbers = #tpu.dot_dimension_numbers<[1], [1], [0], [0], [0, 0, 1, 0], [], []>} : vector<8x1152xbf16>, vector<256x1152xbf16>, vector<8x256xf32> -> vector<8x256xf32>
    %234 = vector.extract_strided_slice %233 {offsets = [0, 0], sizes = [1, 256], strides = [1, 1]} : vector<8x256xf32> to vector<1x256xf32>
    %c0_272 = arith.constant 0 : index
    %c0_273 = arith.constant 0 : index
    %235 = vector.load %arg11[%c0_272, %c0_273] : memref<1x1xf32, #tpu.memory_space<vmem>>, vector<1x1xf32>
    %236 = vector.broadcast %235 : vector<1x1xf32> to vector<1x256xf32>
    %237 = arith.addf %234, %236 : vector<1x256xf32>
    %c0_274 = arith.constant 0 : index
    %c0_275 = arith.constant 0 : index
    %c0_276 = arith.constant 0 : index
    %238 = vector.load %arg12[%c0_274, %c0_275, %c0_276] : memref<1x1x256xf32, #tpu.memory_space<vmem>>, vector<1x1x256xf32>
    %239 = vector.shape_cast %238 : vector<1x1x256xf32> to vector<1x256xf32>
    %240 = vector.shape_cast %237 : vector<1x256xf32> to vector<1x1x256xf32>
    tpu.vector_store %arg12[%c0_274, %c0_275, %c0_276], %240 {strides = array<i32>} : memref<1x1x256xf32, #tpu.memory_space<vmem>>, vector<1x1x256xf32>,
    return
  }
  func.func @transform_0(%arg0: i32) -> (i32, i32, i32, i32) {
    %c0_i32 = arith.constant 0 : i32
    %c0_i32_0 = arith.constant 0 : i32
    %c0_i32_1 = arith.constant 0 : i32
    %c0_i32_2 = arith.constant 0 : i32
    return %arg0, %c0_i32, %c0_i32_0, %c0_i32_1 : i32, i32, i32, i32
  }
  func.func @transform_1(%arg0: i32) -> (i32, i32) {
    %c0_i32 = arith.constant 0 : i32
    %c0_i32_0 = arith.constant 0 : i32
    %c0_i32_1 = arith.constant 0 : i32
    return %c0_i32, %c0_i32_0 : i32, i32
  }
  func.func @transform_2(%arg0: i32) -> (i32, i32) {
    %c0_i32 = arith.constant 0 : i32
    %c0_i32_0 = arith.constant 0 : i32
    %c0_i32_1 = arith.constant 0 : i32
    return %c0_i32, %c0_i32_0 : i32, i32
  }
  func.func @transform_3(%arg0: i32) -> (i32, i32) {
    %c0_i32 = arith.constant 0 : i32
    %c0_i32_0 = arith.constant 0 : i32
    %c0_i32_1 = arith.constant 0 : i32
    return %c0_i32, %c0_i32_0 : i32, i32
  }
  func.func @transform_4(%arg0: i32) -> (i32, i32) {
    %c0_i32 = arith.constant 0 : i32
    %c0_i32_0 = arith.constant 0 : i32
    %c0_i32_1 = arith.constant 0 : i32
    return %c0_i32, %c0_i32_0 : i32, i32
  }
  func.func @transform_5(%arg0: i32) -> (i32, i32) {
    %c0_i32 = arith.constant 0 : i32
    %c0_i32_0 = arith.constant 0 : i32
    %c0_i32_1 = arith.constant 0 : i32
    return %c0_i32, %c0_i32_0 : i32, i32
  }
  func.func @transform_6(%arg0: i32) -> (i32, i32) {
    %c0_i32 = arith.constant 0 : i32
    %c0_i32_0 = arith.constant 0 : i32
    %c0_i32_1 = arith.constant 0 : i32
    return %c0_i32, %c0_i32_0 : i32, i32
  }
  func.func @transform_7(%arg0: i32) -> (i32, i32) {
    %c0_i32 = arith.constant 0 : i32
    %c0_i32_0 = arith.constant 0 : i32
    %c0_i32_1 = arith.constant 0 : i32
    return %c0_i32, %c0_i32_0 : i32, i32
  }
  func.func @transform_8(%arg0: i32) -> (i32, i32) {
    %c0_i32 = arith.constant 0 : i32
    %c0_i32_0 = arith.constant 0 : i32
    %c0_i32_1 = arith.constant 0 : i32
    return %c0_i32, %c0_i32_0 : i32, i32
  }
  func.func @transform_9(%arg0: i32) -> (i32, i32) {
    %c0_i32 = arith.constant 0 : i32
    %c0_i32_0 = arith.constant 0 : i32
    %c0_i32_1 = arith.constant 0 : i32
    return %c0_i32, %c0_i32_0 : i32, i32
  }
  func.func @transform_10(%arg0: i32) -> (i32, i32) {
    %c0_i32 = arith.constant 0 : i32
    %c0_i32_0 = arith.constant 0 : i32
    %c0_i32_1 = arith.constant 0 : i32
    return %c0_i32, %c0_i32_0 : i32, i32
  }
  func.func @transform_11(%arg0: i32) -> (i32, i32, i32) {
    %c0_i32 = arith.constant 0 : i32
    %c0_i32_0 = arith.constant 0 : i32
    %c0_i32_1 = arith.constant 0 : i32
    return %arg0, %c0_i32, %c0_i32_0 : i32, i32, i32
  }
}

</mosaic_0001>

<bundles_post_ra>
// kernel: tpu_custom_call.1
= control target key start
LH: loop header
LB: loop body
LE: loop exit
PB: predicated region body
PF: predicated region fallthrough
CT: control target
= control target key end

     0   :  { %s16554_s0 = inlined_call_operand.vmem [shape: f32[2,18,18,128], index: 0, kind: input, shape index: {}]   ;;  %s16555_s1 = inlined_call_operand.vmem [shape: bf16[1152,64], index: 1, kind: input, shape index: {}]   ;;  %s16556_s2 = inlined_call_operand.vmem [shape: f32[1,64], index: 2, kind: input, shape index: {}]   ;;  %s16557_s3 = inlined_call_operand.vmem [shape: bf16[1152,128], index: 3, kind: input, shape index: {}]   ;;  %s16558_s4 = inlined_call_operand.vmem [shape: f32[1,128], index: 4, kind: input, shape index: {}]   ;;  %s16559_s5 = inlined_call_operand.vmem [shape: bf16[1152,128], index: 5, kind: input, shape index: {}]   ;;  %s16560_s6 = inlined_call_operand.vmem [shape: f32[1,128], index: 6, kind: input, shape index: {}]   ;;  %s16561_s7 = inlined_call_operand.vmem [shape: bf16[1152,64], index: 7, kind: input, shape index: {}]   ;;  %s16562_s8 = inlined_call_operand.vmem [shape: f32[1,64], index: 8, kind: input, shape index: {}]   ;;  %s16563_s9 = inlined_call_operand.vmem [shape: bf16[8,1152], index: 9, kind: input, shape index: {}]   ;;  %s16564_s10 = inlined_call_operand.<no memory space> [shape: f32[1,1], index: 10, kind: input, shape index: {}]   ;;  %s16565_s11 = inlined_call_operand.hbm [shape: f32[2,1,256], index: 11, kind: output, shape index: {}]  }
   0x1   :  { %v16_v0 = vstv %s16564_s10 }
   0x2   :  { %17 = vst [vmem:[#allocation4] sm:$0x1] %v16_v0 }
   0x3   :  { %18 = vsyncpa [#allocation6], 0 }
   0x4   :  { %20 = vsyncpa [#allocation6 + $0x1], 0  ;;  %s13304_s19 = smov 0   ;;  %s13306_s20 = smov 0  }
   0x5   :  { %s13308_s21 = smov 0   ;;  %s13310_s22 = smov 0  }
   0x6 LB: > { %s13325_s10 = sadd.s32 4294967295, %s13234_s22   ;;  %s10224_s23 = sadd.s32 4294967294, %s13234_s22   ;;  %s13234_s22 = sphi %s13310_s22, %s16571_s22   ;;  %s13230_s21 = sphi %s13308_s21, %s16570_s21   ;;  %s13226_s20 = sphi %s13306_s20, %s16569_s20   ;;  %s13222_s19 = sphi %s13304_s19, %s16568_s19  }
   0x7   : > { %s13329_s24 = sadd.s32 1, %s13234_s22   ;;  %s269_s25 = sadd.s32 1, %s13230_s21 }
   0x8   : > { %s266_s26 = ssub.s32 %s13234_s22, %s13329_s24  ;;  %p279_p0 = scmp.ne.s32.totalorder %s13230_s21, %s13226_s20 }
   0x9   : > { %p267_p1 = scmp.eq.s32.totalorder %s266_s26, 0  ;;  %p280_p2 = scmp.eq.s32.totalorder %s13325_s10, 1 }
   0xa   : > { %p285_p3 = scmp.ne.s32.totalorder %s13226_s20, %s13222_s19  ;;  %p286_p4 = scmp.eq.s32.totalorder %s10224_s23, 1 }
   0xb   : > { %s13340_s27 = scalar_select %p267_p1, %s13230_s21, %s269_s25  }
   0xc   : > { %p13342_p5 = por %p280_p2, %p279_p0  ;;  %p13346_p6 = por %p286_p4, %p285_p3 }
   0xd   : > { %p10227_p7 = scmp.ge.s32.totalorder %s13234_s22, 1  ;;  %p342_p8 = scmp.lt.s32.totalorder %s13234_s22, 3 }
   0xf   : > { %p343_p9 = pnand %p10227_p7, %p342_p8 }
  0x10   : > { %v12871_v1 = vld [vmem:[%s16555_s1 + $0x40] sm:$0xff] (!%p343_p9)   ;;  %v12875_v5 = vld [vmem:[%s16555_s1 + $0x48] sm:$0xff] (!%p343_p9)   ;;  %v12879_v9 = vld [vmem:[%s16555_s1 + $0x50] sm:$0xff] (!%p343_p9)   ;;  %p382_p10 = scmp.lt.s32.totalorder (!%p343_p9), %s13325_s10, 1  ;;  %vm2603_vm0 = vcmask (!%p343_p9), 523264   ;;  %s379_s16 = sand.u32 (!%p343_p9), 1, %s13226_s20  }
  0x11   : > { %346 = sbr.rel (%p343_p9) target bundleno = 2515 (0x9d3), region = 64  ;;  %v12872_v2 = vld [vmem:[%s16555_s1] sm:$0xff] (!%p343_p9)   ;;  %10729 = vmatprep.subr.bf16.mxu0 (!%p343_p9), %v12871_v1  ;;  %v12876_v6 = vld [vmem:[%s16555_s1 + $0x8] sm:$0xff] (!%p343_p9)   ;;  %v12880_v10 = vld [vmem:[%s16555_s1 + $0x10] sm:$0xff] (!%p343_p9)   ;;  %s10728_s17 = sshll.u32 (!%p343_p9), %s13325_s10, 5 }
  0x12   : > { %v12873_v3 = vld [vmem:[%s16555_s1 + $0xc0] sm:$0xff] (!%p343_p9)   ;;  %10730 = vmatpush3.bf16.msra.mxu0 (!%p343_p9), %v12872_v2  ;;  %v12877_v7 = vld [vmem:[%s16555_s1 + $0xc8] sm:$0xff] (!%p343_p9)   ;;  %v12881_v11 = vld [vmem:[%s16555_s1 + $0xd0] sm:$0xff] (!%p343_p9)   ;;  %s16512_s13 = scalar_lea.hbm (!%p343_p9), %s16565_s11, %s10728_s17 }
  0x13   : > { %v12874_v4 = vld [vmem:[%s16555_s1 + $0x80] sm:$0xff] (!%p343_p9)   ;;  %10841 = vmatprep.subr.bf16.mxu1 (!%p343_p9), %v12873_v3  ;;  %10731 = vmatprep.subr.bf16.mxu0 (!%p343_p9), %v12875_v5  ;;  %v12878_v8 = vld [vmem:[%s16555_s1 + $0x88] sm:$0xff] (!%p343_p9)   ;;  %v12882_v12 = vld [vmem:[%s16555_s1 + $0x90] sm:$0xff] (!%p343_p9)  }
  0x14   : > { %10842 = vmatpush3.bf16.msra.mxu1 (!%p343_p9), %v12874_v4  ;;  %v12883_v13 = vld [vmem:[%s16555_s1 + $0x58] sm:$0xff] (!%p343_p9)   ;;  %v12887_v17 = vld [vmem:[%s16555_s1 + $0x60] sm:$0xff] (!%p343_p9)   ;;  %v12891_v21 = vld [vmem:[%s16555_s1 + $0x68] sm:$0xff] (!%p343_p9)  }
  0x15   : > { %10843 = vmatprep.subr.bf16.mxu1 (!%p343_p9), %v12877_v7  ;;  %v12884_v14 = vld [vmem:[%s16555_s1 + $0x18] sm:$0xff] (!%p343_p9)   ;;  %v12888_v18 = vld [vmem:[%s16555_s1 + $0x20] sm:$0xff] (!%p343_p9)   ;;  %v12892_v22 = vld [vmem:[%s16555_s1 + $0x28] sm:$0xff] (!%p343_p9)  }
  0x16   : > { %10732 = vmatpush3.bf16.msra.mxu0 (!%p343_p9), %v12876_v6  ;;  %v12885_v15 = vld [vmem:[%s16555_s1 + $0xd8] sm:$0xff] (!%p343_p9)   ;;  %v12889_v19 = vld [vmem:[%s16555_s1 + $0xe0] sm:$0xff] (!%p343_p9)   ;;  %v12893_v23 = vld [vmem:[%s16555_s1 + $0xe8] sm:$0xff] (!%p343_p9)  }
  0x17   : > { %10733 = vmatprep.subr.bf16.mxu0 (!%p343_p9), %v12879_v9  ;;  %v12886_v16 = vld [vmem:[%s16555_s1 + $0x98] sm:$0xff] (!%p343_p9)   ;;  %v12890_v20 = vld [vmem:[%s16555_s1 + $0xa0] sm:$0xff] (!%p343_p9)   ;;  %v12894_v24 = vld [vmem:[%s16555_s1 + $0xa8] sm:$0xff] (!%p343_p9)  }
  0x18   : > { %10844 = vmatpush3.bf16.msra.mxu1 %v12878_v8  ;;  %s383_s25 = scalar_select %p382_p10, %s13325_s10, 1  ;;  %v12895_v25 = vld [vmem:[%s16555_s1 + $0x70] sm:$0xff]   ;;  %v12899_v29 = vld [vmem:[%s16555_s1 + $0x78] sm:$0xff]   ;;  %v12903_v39 = vld [vmem:[%s16555_s1 + $0x140] sm:$0xff]  }
  0x19   : > { %10845 = vmatprep.subr.bf16.mxu1 %v12881_v11  ;;  %v12896_v26 = vld [vmem:[%s16555_s1 + $0x30] sm:$0xff]   ;;  %v12900_v30 = vld [vmem:[%s16555_s1 + $0x38] sm:$0xff]   ;;  %v12904_v43 = vld [vmem:[%s16555_s1 + $0x100] sm:$0xff]   ;;  %s13240_s10 = smov [#allocation5]  }
  0x1a   : > { %10734 = vmatpush3.bf16.msra.mxu0 %v12880_v10  ;;  %s12827_s18 = smul.u32 432, %s383_s25  ;;  %v12897_v27 = vld [vmem:[%s16555_s1 + $0xf0] sm:$0xff]   ;;  %v12901_v31 = vld [vmem:[%s16555_s1 + $0xf8] sm:$0xff]   ;;  %v12905_v57 = vld [vmem:[%s16555_s1 + $0x148] sm:$0xff]   ;;  %s10228_s25 = sshll.u32 %s379_s16, 1 }
  0x1b   : > { %10735 = vmatprep.subr.bf16.mxu0 %v12883_v13  ;;  %v12898_v28 = vld [vmem:[%s16555_s1 + $0xb0] sm:$0xff]   ;;  %v12902_v35 = vld [vmem:[%s16555_s1 + $0xb8] sm:$0xff]   ;;  %v12906_v61 = vld [vmem:[%s16555_s1 + $0x108] sm:$0xff]   ;;  %s381_s26 = scalar_lea.vmem [#allocation5], %s10228_s25  ;;  %s13176_s15 = sshll.u32 %s13240_s10, 4  ;;  %s13177_s15 = int_to_ptr.vmem [resolvable:$false] %s13176_s15 }
  0x1c   : > { %10846 = vmatpush3.bf16.msra.mxu1 %v12882_v12  ;;  %s13444_s23 = scalar_lea.vmem %s16554_s0, %s12827_s18  ;;  %v12907_v2 = vld [vmem:[%s16555_s1 + $0x150] sm:$0xff]   ;;  %v12909_v11 = vld [vmem:[%s16555_s1 + $0x158] sm:$0xff]   ;;  %s10165_s30 = sshll.u32 %s381_s26, 4  ;;  %s16514_s30 = int_to_ptr.vmem [resolvable:$true] %s10165_s30 }
  0x1d   : > { %10847 = vmatprep.subr.bf16.mxu1 %v12885_v15  ;;  %v524_v32 = vld [vmem:[%s13444_s23 + $0x1] sm:$0xff]  ;;  %v525_v33 = vld [vmem:[%s13444_s23 + $0x9] sm:$0xff]  ;;  %v10230_v40 = vld [vmem:[%s13444_s23 + $0x18] sm:$0xff]  ;;  %s10151_s18 = scalar_lea.sflag [#allocation6], %s379_s16  ;;  %s13172_s14 = scalar_lea.vmem %s16514_s30, 32 }
  0x1e   : > { %10736 = vmatpush3.bf16.msra.mxu0 %v12884_v14  ;;  %v556_v34 = vpack.c.bf16 %v525_v33, %v524_v32  ;;  %v460_v36 = vld [vmem:[%s13444_s23] sm:$0xff]  ;;  %v461_v37 = vld [vmem:[%s13444_s23 + $0x8] sm:$0xff]  ;;  %v10232_v49 = vld [vmem:[%s13444_s23 + $0x30] sm:$0xff]  ;;  %p13173_p11 = scmp.ne.s32.totalorder %s16514_s30, %s13172_s14  ;;  %s13178_s25 = scalar_lea.vmem %s13177_s15, 64 }
  0x1f   : > { %10737 = vmatprep.subr.bf16.mxu0 %v12887_v17  ;;  %v492_v38 = vpack.c.bf16 %v461_v37, %v460_v36  ;;  %v10231_v41 = vld [vmem:[%s13444_s23 + $0x20] sm:$0xff]  ;;  %v589_v45 = vld [vmem:[%s13444_s23 + $0xa] sm:$0xff]  ;;  %v10233_v50 = vld [vmem:[%s13444_s23 + $0x38] sm:$0xff]  ;;  %p13179_p0 = scmp.lt.s32.totalorder %s16514_s30, %s13177_s15  ;;  %p13180_p1 = scmp.lt.s32.totalorder %s13178_s25, %s13172_s14 }
  0x20   : > { %10848 = vmatpush3.bf16.msra.mxu1 %v12886_v16  ;;  %1797 = vmatprep.mubr.bf16.mxu0 %v556_v34  ;;  %v685_v42 = vpack.c.bf16 %v10231_v41, %v10230_v40  ;;  %v588_v44 = vld [vmem:[%s13444_s23 + $0x2] sm:$0xff]  ;;  %v526_v46 = vld [vmem:[%s13444_s23 + $0x19] sm:$0xff]  ;;  %v13475_v52 = vpack.c.bf16 %v10233_v50, %v10232_v49  ;;  %v528_v55 = vld [vmem:[%s13444_s23 + $0x31] sm:$0xff]  ;;  %p13174_p12 = pnand %p13173_p11, %p13342_p5 }
  0x21   : > { %10849 = vmatprep.subr.bf16.mxu1 %v12889_v19  ;;  %v620_v47 = vpack.c.bf16 %v589_v45, %v588_v44  ;;  %v527_v48 = vld [vmem:[%s13444_s23 + $0x21] sm:$0xff]  ;;  %v529_v56 = vld [vmem:[%s13444_s23 + $0x39] sm:$0xff]  ;;  %v10235_v59 = vld [vmem:[%s13444_s23 + $0x50] sm:$0xff]  ;;  %p13181_p2 = por %p13180_p1, %p13179_p0 }
  0x22   : > { %10738 = vmatpush3.bf16.msra.mxu0 %v12888_v18  ;;  %1958 = vmatprep.mubr.bf16.mxu1 %v685_v42  ;;  %v13473_v51 = vpack.c.bf16 %v527_v48, %v526_v46  ;;  %v590_v53 = vld [vmem:[%s13444_s23 + $0x1a] sm:$0xff]  ;;  %v591_v54 = vld [vmem:[%s13444_s23 + $0x22] sm:$0xff]  ;;  %v13488_v60 = vpack.c.bf16 %v529_v56, %v528_v55  ;;  %v531_v1 = vld [vmem:[%s13444_s23 + $0x51] sm:$0xff]  ;;  %p13175_p13 = pneg %p13174_p12 }
  0x23   : > { %10739 = vmatprep.subr.bf16.mxu0 %v12891_v21  ;;  %v10234_v58 = vld [vmem:[%s13444_s23 + $0x48] sm:$0xff]  ;;  %v13493_v62 = vpack.c.bf16 %v591_v54, %v590_v53  ;;  %v12908_v3 = vld [vmem:[%s16555_s1 + $0x110] sm:$0xff]   ;;  %v593_v5 = vld [vmem:[%s13444_s23 + $0x3a] sm:$0xff] }
  0x24   : > { %10850 = vmatpush3.bf16.msra.mxu1 %v12890_v20  ;;  %v13495_v63 = vpack.c.bf16 %v10235_v59, %v10234_v58  ;;  %v530_v0 = vld [vmem:[%s13444_s23 + $0x49] sm:$0xff]  ;;  %v592_v4 = vld [vmem:[%s13444_s23 + $0x32] sm:$0xff]  ;;  %v10236_v7 = vld [vmem:[%s13444_s23 + $0x60] sm:$0xff]  ;;  %p13182_p3 = pnand %p13181_p2, %p13175_p13 }
  0x25   : > { %10851 = vmatprep.subr.bf16.mxu1 %v12893_v23  ;;  %v13510_v6 = vpack.c.bf16 %v531_v1, %v530_v0  ;;  %v10237_v8 = vld [vmem:[%s13444_s23 + $0x68] sm:$0xff]  ;;  %v13514_v9 = vpack.c.bf16 %v593_v5, %v592_v4  ;;  %v12910_v12 = vld [vmem:[%s16555_s1 + $0x118] sm:$0xff]   ;;  %v10239_v19 = vld [vmem:[%s13444_s23 + $0x80] sm:$0xff] }
  0x26   : > { %10740 = vmatpush3.bf16.msra.mxu0 %v12892_v22  ;;  %v13517_v10 = vpack.c.bf16 %v10237_v8, %v10236_v7  ;;  %v532_v13 = vld [vmem:[%s13444_s23 + $0x61] sm:$0xff]  ;;  %v533_v14 = vld [vmem:[%s13444_s23 + $0x69] sm:$0xff]  ;;  %v595_v16 = vld [vmem:[%s13444_s23 + $0x52] sm:$0xff] }
  0x27   : > { %10741 = vmatprep.subr.bf16.mxu0 %v12895_v25  ;;  %v594_v15 = vld [vmem:[%s13444_s23 + $0x4a] sm:$0xff]  ;;  %v10238_v17 = vld [vmem:[%s13444_s23 + $0x78] sm:$0xff]  ;;  %v13533_v18 = vpack.c.bf16 %v533_v14, %v532_v13  ;;  %v12911_v20 = vld [vmem:[%s16555_s1 + $0x160] sm:$0xff]  }
  0x28   : > { %10852 = vmatpush3.bf16.msra.mxu1 %v12894_v24  ;;  %v13539_v21 = vpack.c.bf16 %v595_v16, %v594_v15  ;;  %v12912_v22 = vld [vmem:[%s16555_s1 + $0x120] sm:$0xff]   ;;  %v13545_v23 = vpack.c.bf16 %v10239_v19, %v10238_v17  ;;  %v12914_v32 = vld [vmem:[%s16555_s1 + $0x128] sm:$0xff]   ;;  %v536_v37 = vld [vmem:[%s13444_s23 + $0x91] sm:$0xff] }
  0x29   : > { %10853 = vmatprep.subr.bf16.mxu1 %v12897_v27  ;;  %v596_v24 = vld [vmem:[%s13444_s23 + $0x62] sm:$0xff]  ;;  %v534_v25 = vld [vmem:[%s13444_s23 + $0x79] sm:$0xff]  ;;  %v597_v27 = vld [vmem:[%s13444_s23 + $0x6a] sm:$0xff] }
  0x2a   : > { %10742 = vmatpush3.bf16.msra.mxu0 %v12896_v26  ;;  %v535_v26 = vld [vmem:[%s13444_s23 + $0x81] sm:$0xff]  ;;  %v13564_v33 = vpack.c.bf16 %v597_v27, %v596_v24  ;;  %v12916_v40 = vld [vmem:[%s16555_s1 + $0x130] sm:$0xff]   ;;  %v12923_v0 = vld [vmem:[%s16555_s1 + $0x1d8] sm:$0xff]  }
  0x2b   : > { %10743 = vmatprep.subr.bf16.mxu0 %v12899_v29  ;;  %v10241_v29 = vld [vmem:[%s13444_s23 + $0x98] sm:$0xff]  ;;  %v599_v36 = vld [vmem:[%s13444_s23 + $0x82] sm:$0xff]  ;;  %v12922_v58 = vld [vmem:[%s16555_s1 + $0x190] sm:$0xff]  }
  0x2c   : > { %10854 = vmatpush3.bf16.msra.mxu1 %v12898_v28  ;;  %v10240_v28 = vld [vmem:[%s13444_s23 + $0x90] sm:$0xff]  ;;  %v10242_v41 = vld [vmem:[%s13444_s23 + $0xa8] sm:$0xff]  ;;  %v12917_v44 = vld [vmem:[%s16555_s1 + $0x1c0] sm:$0xff]  }
  0x2d   : > { %10855 = vmatprep.subr.bf16.mxu1 %v12901_v31  ;;  %v13559_v31 = vpack.c.bf16 %v535_v26, %v534_v25  ;;  %v13567_v34 = vpack.c.bf16 %v10241_v29, %v10240_v28  ;;  %v12918_v45 = vld [vmem:[%s16555_s1 + $0x180] sm:$0xff]   ;;  %v12920_v49 = vld [vmem:[%s16555_s1 + $0x188] sm:$0xff]   ;;  %v600_v50 = vld [vmem:[%s13444_s23 + $0x92] sm:$0xff] }
  0x2e   : > { %10744 = vmatpush3.bf16.msra.mxu0 %v12900_v30  ;;  %v12913_v30 = vld [vmem:[%s16555_s1 + $0x168] sm:$0xff]   ;;  %v601_v53 = vld [vmem:[%s13444_s23 + $0x9a] sm:$0xff]  ;;  %v539_v55 = vld [vmem:[%s13444_s23 + $0xb1] sm:$0xff] }
  0x2f   : > { %10953 = vmatprep.subr.bf16.mxu0 %v12903_v39  ;;  %v12915_v39 = vld [vmem:[%s16555_s1 + $0x170] sm:$0xff]   ;;  %v10244_v56 = vld [vmem:[%s13444_s23 + $0xc0] sm:$0xff]  ;;  %v13623_v1 = vpack.c.bf16 %v601_v53, %v600_v50  ;;  %v12925_v4 = vld [vmem:[%s16555_s1 + $0x178] sm:$0xff]  }
  0x30   : > { %10856 = vmatpush3.bf16.msra.mxu1 %v12902_v35  ;;  %v598_v35 = vld [vmem:[%s13444_s23 + $0x7a] sm:$0xff]  ;;  %v538_v54 = vld [vmem:[%s13444_s23 + $0xa9] sm:$0xff]  ;;  %v603_v8 = vld [vmem:[%s13444_s23 + $0xb2] sm:$0xff] }
  0x31   : > { %1798 = vmatmul.mubr.bf16.vlgmr.msra.gmra.mrb[0].mxu0 %v492_v38  ;;  %v537_v38 = vld [vmem:[%s13444_s23 + $0x99] sm:$0xff]  ;;  %v13592_v46 = vpack.c.bf16 %v599_v36, %v598_v35  ;;  %11065 = vmatprep.subr.bf16.mxu1 %v12917_v44  ;;  %v13617_v59 = vpack.c.bf16 %v539_v55, %v538_v54  ;;  %v602_v7 = vld [vmem:[%s13444_s23 + $0xaa] sm:$0xff]  ;;  %v604_v27 = vld [vmem:[%s13444_s23 + $0xc2] sm:$0xff] }
  0x32   : > { %10954 = vmatpush3.bf16.msra.mxu0 %v12904_v43  ;;  %1805 = vmatprep.mubr.bf16.mxu0 %v13473_v51  ;;  %v13584_v43 = vpack.c.bf16 %v537_v38, %v536_v37  ;;  %v12926_v5 = vld [vmem:[%s16555_s1 + $0x138] sm:$0xff]   ;;  %v12927_v14 = vld [vmem:[%s16555_s1 + $0x1e0] sm:$0xff]   ;;  %v12929_v19 = vld [vmem:[%s16555_s1 + $0x1e8] sm:$0xff]  }
  0x33   : > { %1959 = vmatmul.mubr.bf16.vlgmr.msra.gmra.mrb[0].mxu1 %v620_v47  ;;  %10955 = vmatprep.subr.bf16.mxu0 %v12905_v57  ;;  %v12919_v47 = vld [vmem:[%s16555_s1 + $0x1c8] sm:$0xff]   ;;  %v12921_v57 = vld [vmem:[%s16555_s1 + $0x1d0] sm:$0xff]   ;;  %v10246_v13 = vld [vmem:[%s13444_s23 + $0xd8] sm:$0xff] }
  0x34   : > { %1966 = vmatprep.mubr.bf16.mxu1 %v13475_v52  ;;  %11066 = vmatpush3.bf16.msra.mxu1 %v12918_v45  ;;  %v12928_v15 = vld [vmem:[%s16555_s1 + $0x1a0] sm:$0xff]   ;;  %v12930_v25 = vld [vmem:[%s16555_s1 + $0x1a8] sm:$0xff]   ;;  %v12931_v26 = vld [vmem:[%s16555_s1 + $0x1f0] sm:$0xff]  }
  0x35   : > { %11067 = vmatprep.subr.bf16.mxu1 %v12919_v47  ;;  %v10247_v17 = vld [vmem:[%s13444_s23 + $0xe0] sm:$0xff]  ;;  %v605_v28 = vld [vmem:[%s13444_s23 + $0xca] sm:$0xff]  ;;  %v12933_v36 = vld [vmem:[%s16555_s1 + $0x1f8] sm:$0xff]  }
  0x36   : > { %10956 = vmatpush3.bf16.msra.mxu0 %v12906_v61  ;;  %v10245_v61 = vld [vmem:[%s13444_s23 + $0xc8] sm:$0xff]  ;;  %v542_v24 = vld [vmem:[%s13444_s23 + $0xd9] sm:$0xff]  ;;  %v12932_v35 = vld [vmem:[%s16555_s1 + $0x1b0] sm:$0xff]  }
  0x37   : > { %10957 = vmatprep.subr.bf16.mxu0 %v12907_v2  ;;  %v13626_v2 = vpack.c.bf16 %v10245_v61, %v10244_v56  ;;  %v543_v29 = vld [vmem:[%s13444_s23 + $0xe1] sm:$0xff]  ;;  %v545_v44 = vld [vmem:[%s13444_s23 + $0xf9] sm:$0xff]  ;;  %v10251_v50 = vld [vmem:[%s13444_s23 + $0x110] sm:$0xff] }
  0x38   : > { %11068 = vmatpush3.bf16.msra.mxu1 %v12920_v49  ;;  %v13683_v37 = vpack.c.bf16 %v543_v29, %v542_v24  ;;  %v13688_v38 = vld [vmem:[%s16555_s1 + $0x200] sm:$0xff]   ;;  %v10250_v49 = vld [vmem:[%s13444_s23 + $0x108] sm:$0xff]  ;;  %v10256_v29 = vld [vmem:[%s13444_s23 + $0x150] sm:$0xff] }
  0x39   : > { %1806 = vmatmul.mubr.bf16.gmra.mrb[4].mxu0 %v685_v42  ;;  %v10243_v42 = vld [vmem:[%s13444_s23 + $0xb0] sm:$0xff]  ;;  %11069 = vmatprep.subr.bf16.mxu1 %v12921_v57  ;;  %v606_v45 = vld [vmem:[%s13444_s23 + $0xda] sm:$0xff]  ;;  %v607_v47 = vld [vmem:[%s13444_s23 + $0xe2] sm:$0xff]  ;;  %v13713_v55 = vpack.c.bf16 %v10251_v50, %v10250_v49 }
  0x3a   : > { %1813 = vmatprep.mubr.bf16.mxu0 %v13488_v60  ;;  %10958 = vmatpush3.bf16.msra.mxu0 %v12908_v3  ;;  %v13598_v48 = vpack.c.bf16 %v10243_v42, %v10242_v41  ;;  %v12924_v3 = vld [vmem:[%s16555_s1 + $0x198] sm:$0xff]   ;;  %v13710_v54 = vpack.c.bf16 %v607_v47, %v606_v45  ;;  %v546_v56 = vld [vmem:[%s13444_s23 + $0x109] sm:$0xff] }
  0x3b   : > { %1967 = vmatmul.mubr.bf16.gmra.mrb[4].mxu1 %v13493_v62  ;;  %10959 = vmatprep.subr.bf16.mxu0 %v12909_v11  ;;  %v540_v11 = vld [vmem:[%s13444_s23 + $0xc1] sm:$0xff]  ;;  %v544_v41 = vld [vmem:[%s13444_s23 + $0xf1] sm:$0xff] }
  0x3c   : > { %1974 = vmatprep.mubr.bf16.mxu1 %v13495_v63  ;;  %11070 = vmatpush3.bf16.msra.mxu1 %v12922_v58  ;;  %v12934_v42 = vld [vmem:[%s16555_s1 + $0x1b8] sm:$0xff]   ;;  %v13708_v53 = vpack.c.bf16 %v545_v44, %v544_v41  ;;  %v615_v45 = vld [vmem:[%s13444_s23 + $0x142] sm:$0xff]  ;;  %v10259_v49 = vld [vmem:[%s13444_s23 + $0x170] sm:$0xff] }
  0x3d   : > { %11071 = vmatprep.subr.bf16.mxu1 %v12923_v0  ;;  %v547_v57 = vld [vmem:[%s13444_s23 + $0x111] sm:$0xff]  ;;  %v609_v61 = vld [vmem:[%s13444_s23 + $0xfa] sm:$0xff]  ;;  %v10258_v47 = vld [vmem:[%s13444_s23 + $0x168] sm:$0xff] }
  0x3e   : > { %10960 = vmatpush3.bf16.msra.mxu0 %v12910_v12  ;;  %v541_v12 = vld [vmem:[%s13444_s23 + $0xc9] sm:$0xff]  ;;  %v608_v58 = vld [vmem:[%s13444_s23 + $0xf2] sm:$0xff]  ;;  %v10252_v0 = vld [vmem:[%s13444_s23 + $0x120] sm:$0xff] }
  0x3f   : > { %10961 = vmatprep.subr.bf16.mxu0 %v12911_v20  ;;  %v13651_v16 = vpack.c.bf16 %v541_v12, %v540_v11  ;;  %v13657_v20 = vpack.c.bf16 %v603_v8, %v602_v7  ;;  %v548_v8 = vld [vmem:[%s13444_s23 + $0x121] sm:$0xff]  ;;  %v549_v11 = vld [vmem:[%s13444_s23 + $0x129] sm:$0xff]  ;;  %v552_v41 = vld [vmem:[%s13444_s23 + $0x151] sm:$0xff] }
  0x40   : > { %11072 = vmatpush3.bf16.msra.mxu1 %v12924_v3  ;;  %v10253_v3 = vld [vmem:[%s13444_s23 + $0x128] sm:$0xff]  ;;  %v614_v44 = vld [vmem:[%s13444_s23 + $0x13a] sm:$0xff] }
  0x41   : > { %1814 = vmatmul.mubr.bf16.gmra.mrb[8].mxu0 %v13475_v52  ;;  %11073 = vmatprep.subr.bf16.mxu1 %v12927_v14  ;;  %v13729_v7 = vpack.c.bf16 %v10253_v3, %v10252_v0  ;;  %v610_v12 = vld [vmem:[%s13444_s23 + $0x10a] sm:$0xff]  ;;  %v10254_v14 = vld [vmem:[%s13444_s23 + $0x138] sm:$0xff] }
  0x42   : > { %1821 = vmatprep.mubr.bf16.mxu0 %v13510_v6  ;;  %10962 = vmatpush3.bf16.msra.mxu0 %v12912_v22  ;;  %v13660_v22 = vpack.c.bf16 %v10247_v17, %v10246_v13  ;;  %v611_v13 = vld [vmem:[%s13444_s23 + $0x112] sm:$0xff]  ;;  %v13740_v17 = vpack.c.bf16 %v549_v11, %v548_v8  ;;  %v617_v3 = vld [vmem:[%s13444_s23 + $0x15a] sm:$0xff]  ;;  %v10261_v11 = vld [vmem:[%s13444_s23 + $0x188] sm:$0xff] }
  0x43   : > { %1975 = vmatmul.mubr.bf16.gmra.mrb[8].mxu1 %v13514_v9  ;;  %10963 = vmatprep.subr.bf16.mxu0 %v12913_v30  ;;  %v10248_v30 = vld [vmem:[%s13444_s23 + $0xf0] sm:$0xff]  ;;  %v10260_v8 = vld [vmem:[%s13444_s23 + $0x180] sm:$0xff] }
  0x44   : > { %1982 = vmatprep.mubr.bf16.mxu1 %v13517_v10  ;;  %11074 = vmatpush3.bf16.msra.mxu1 %v12928_v15  ;;  %v10255_v15 = vld [vmem:[%s13444_s23 + $0x140] sm:$0xff]  ;;  %v616_v0 = vld [vmem:[%s13444_s23 + $0x152] sm:$0xff] }
  0x45   : > { %11075 = vmatprep.subr.bf16.mxu1 %v12929_v19  ;;  %v13742_v19 = vpack.c.bf16 %v611_v13, %v610_v12  ;;  %v13745_v24 = vpack.c.bf16 %v10255_v15, %v10254_v14  ;;  %v13790_v13 = vpack.c.bf16 %v617_v3, %v616_v0  ;;  %v13793_v14 = vpack.c.bf16 %v10261_v11, %v10260_v8  ;;  %v618_v15 = vld [vmem:[%s13444_s23 + $0x16a] sm:$0xff] }
  0x46   : > { %10964 = vmatpush3.bf16.msra.mxu0 %v12914_v32  ;;  %v10249_v32 = vld [vmem:[%s13444_s23 + $0xf8] sm:$0xff] }
  0x47   : > { %10965 = vmatprep.subr.bf16.mxu0 %v12915_v39  ;;  %v13690_v39 = vpack.c.bf16 %v605_v28, %v604_v27  ;;  %v612_v27 = vld [vmem:[%s13444_s23 + $0x122] sm:$0xff]  ;;  %v613_v28 = vld [vmem:[%s13444_s23 + $0x12a] sm:$0xff] }
  0x48   : > { %11076 = vmatpush3.bf16.msra.mxu1 %v12930_v25  ;;  %v550_v25 = vld [vmem:[%s13444_s23 + $0x139] sm:$0xff] }
  0x49   : > { %1822 = vmatmul.mubr.bf16.gmra.mrb[12].mxu0 %v13495_v63  ;;  %11077 = vmatprep.subr.bf16.mxu1 %v12931_v26  ;;  %v551_v26 = vld [vmem:[%s13444_s23 + $0x141] sm:$0xff] }
  0x4a   : > { %1829 = vmatprep.mubr.bf16.mxu0 %v13533_v18  ;;  %10966 = vmatpush3.bf16.msra.mxu0 %v12916_v40  ;;  %v13694_v40 = vpack.c.bf16 %v10249_v32, %v10248_v30  ;;  %v10257_v30 = vld [vmem:[%s13444_s23 + $0x158] sm:$0xff]  ;;  %v13756_v32 = vpack.c.bf16 %v551_v26, %v550_v25 }
  0x4b   : > { %1983 = vmatmul.mubr.bf16.gmra.mrb[12].mxu1 %v13539_v21  ;;  %10967 = vmatprep.subr.bf16.mxu0 %v12925_v4  ;;  %v13724_v4 = vpack.c.bf16 %v547_v57, %v546_v56  ;;  %v13774_v56 = vpack.c.bf16 %v615_v45, %v614_v44  ;;  %v13777_v57 = vpack.c.bf16 %v10259_v49, %v10258_v47  ;;  %v619_v25 = vld [vmem:[%s13444_s23 + $0x172] sm:$0xff]  ;;  %v10386_v44 = vld [vmem:[%s13444_s23 + $0x181] sm:$0xff]  ;;  %v10387_v49 = vld [vmem:[%s13444_s23 + $0x189] sm:$0xff] }
  0x4c   : > { %1990 = vmatprep.mubr.bf16.mxu1 %v13545_v23  ;;  %11078 = vmatpush3.bf16.msra.mxu1 %v12932_v35  ;;  %v13758_v35 = vpack.c.bf16 %v613_v28, %v612_v27  ;;  %v13800_v26 = vpack.c.bf16 %v619_v25, %v618_v15  ;;  %v12936_v27 = vld [vmem:[%s16555_s1 + $0x208] sm:$0xff]   ;;  %v12937_v28 = vld [vmem:[%s16555_s1 + $0x210] sm:$0xff]   ;;  %v956_v11 = vpack.c.bf16 %v10387_v49, %v10386_v44 }
  0x4d   : > { %11079 = vmatprep.subr.bf16.mxu1 %v12933_v36  ;;  %v13761_v36 = vpack.c.bf16 %v10257_v30, %v10256_v29  ;;  %v12944_v29 = vld [vmem:[%s16557_s3] sm:$0xff]  }
  0x4e   : > { %10968 = vmatpush3.bf16.msra.mxu0 %v12926_v5  ;;  %v13726_v5 = vpack.c.bf16 %v609_v61, %v608_v58  ;;  %v554_v58 = vld [vmem:[%s13444_s23 + $0x169] sm:$0xff]  ;;  %v555_v61 = vld [vmem:[%s13444_s23 + $0x171] sm:$0xff] }
  0x4f   : > { %12635 = vmatprep.subr.bf16.mxu0 %v13688_v38  ;;  %v13788_v12 = vpack.c.bf16 %v555_v61, %v554_v58 }
  0x50   : > { %11080 = vmatpush3.bf16.msra.mxu1 %v12934_v42  ;;  %v553_v42 = vld [vmem:[%s13444_s23 + $0x159] sm:$0xff] }
  0x51   : > { %1830 = vmatmul.mubr.bf16.gmra.mrb[16].mxu0 %v13517_v10  ;;  %v13772_v50 = vpack.c.bf16 %v553_v42, %v552_v41 }
  0x52   : > { %1837 = vmatprep.mubr.bf16.mxu0 %v13559_v31 }
  0x53   : > { %1991 = vmatmul.mubr.bf16.gmra.mrb[16].mxu1 %v13564_v33 }
  0x54   : > { %1998 = vmatprep.mubr.bf16.mxu1 %v13567_v34 }
  0x59   : > { %1838 = vmatmul.mubr.bf16.gmra.mrb[20].mxu0 %v13545_v23 }
  0x5a   : > { %1845 = vmatprep.mubr.bf16.mxu0 %v13584_v43 }
  0x5b   : > { %1999 = vmatmul.mubr.bf16.gmra.mrb[20].mxu1 %v13592_v46 }
  0x5c   : > { %2006 = vmatprep.mubr.bf16.mxu1 %v13598_v48 }
  0x61   : > { %1846 = vmatmul.mubr.bf16.gmra.mrb[24].mxu0 %v13567_v34 }
  0x62   : > { %1853 = vmatprep.mubr.bf16.mxu0 %v13617_v59 }
  0x63   : > { %2007 = vmatmul.mubr.bf16.gmra.mrb[24].mxu1 %v13623_v1 }
  0x64   : > { %2014 = vmatprep.mubr.bf16.mxu1 %v13626_v2 }
  0x69   : > { %1854 = vmatmul.mubr.bf16.gmra.mrb[28].mxu0 %v13598_v48 }
  0x6a   : > { %1861 = vmatprep.mubr.bf16.mxu0 %v13651_v16 }
  0x6b   : > { %2015 = vmatmul.mubr.bf16.gmra.mrb[28].mxu1 %v13657_v20 }
  0x6c   : > { %2022 = vmatprep.mubr.bf16.mxu1 %v13660_v22 }
  0x71   : > { %1862 = vmatmul.mubr.bf16.gmra.mrb[32].mxu0 %v13626_v2 }
  0x72   : > { %1869 = vmatprep.mubr.bf16.mxu0 %v13683_v37 }
  0x73   : > { %2023 = vmatmul.mubr.bf16.gmra.mrb[32].mxu1 %v13690_v39 }
  0x74   : > { %2030 = vmatprep.mubr.bf16.mxu1 %v13694_v40 }
  0x79   : > { %1870 = vmatmul.mubr.bf16.gmra.mrb[36].mxu0 %v13660_v22 }
  0x7a   : > { %1877 = vmatprep.mubr.bf16.mxu0 %v13708_v53 }
  0x7b   : > { %2031 = vmatmul.mubr.bf16.gmra.mrb[36].mxu1 %v13710_v54 }
  0x7c   : > { %2038 = vmatprep.mubr.bf16.mxu1 %v13713_v55 }
  0x81   : > { %1878 = vmatmul.mubr.bf16.gmra.mrb[40].mxu0 %v13694_v40 }
  0x82   : > { %1885 = vmatprep.mubr.bf16.mxu0 %v13724_v4 }
  0x83   : > { %2039 = vmatmul.mubr.bf16.gmra.mrb[40].mxu1 %v13726_v5 }
  0x84   : > { %2046 = vmatprep.mubr.bf16.mxu1 %v13729_v7 }
  0x89   : > { %1886 = vmatmul.mubr.bf16.gmra.mrb[44].mxu0 %v13713_v55 }
  0x8a   : > { %1893 = vmatprep.mubr.bf16.mxu0 %v13740_v17 }
  0x8b   : > { %2047 = vmatmul.mubr.bf16.gmra.mrb[44].mxu1 %v13742_v19 }
  0x8c   : > { %2054 = vmatprep.mubr.bf16.mxu1 %v13745_v24 }
  0x91   : > { %1894 = vmatmul.mubr.bf16.gmra.mrb[48].mxu0 %v13729_v7 }
  0x92   : > { %1901 = vmatprep.mubr.bf16.mxu0 %v13756_v32 }
  0x93   : > { %2055 = vmatmul.mubr.bf16.gmra.mrb[48].mxu1 %v13758_v35 }
  0x94   : > { %2062 = vmatprep.mubr.bf16.mxu1 %v13761_v36 }
  0x99   : > { %1902 = vmatmul.mubr.bf16.gmra.mrb[52].mxu0 %v13745_v24 }
  0x9a   : > { %1909 = vmatprep.mubr.bf16.mxu0 %v13772_v50 }
  0x9b   : > { %2063 = vmatmul.mubr.bf16.gmra.mrb[52].mxu1 %v13774_v56 }
  0x9c   : > { %2070 = vmatprep.mubr.bf16.mxu1 %v13777_v57 }
  0xa1   : > { %1910 = vmatmul.mubr.bf16.gmra.mrb[56].mxu0 %v13761_v36 }
  0xa2   : > { %1917 = vmatprep.mubr.bf16.mxu0 %v13788_v12 }
  0xa3   : > { %2071 = vmatmul.mubr.bf16.gmra.mrb[56].mxu1 %v13790_v13 }
  0xa4   : > { %2078 = vmatprep.mubr.bf16.mxu1 %v13793_v14 }
  0xa9   : > { %1918 = vmatmul.mubr.bf16.gmra.mrb[60].mxu0 %v13777_v57 }
  0xaa   : > { %2119 = vmatprep.mubr.bf16.mxu0 %v13493_v62  ;;  %v12938_v62 = vld [vmem:[%s16555_s1 + $0x218] sm:$0xff]  }
  0xab   : > { %2079 = vmatmul.mubr.bf16.gmra.mrb[60].mxu1 %v13800_v26 }
  0xac   : > { %2280 = vmatprep.mubr.bf16.mxu1 %v13488_v60 }
  0xb1   : > { %2120 = vmatmul.mubr.bf16.vlgmr.msra.gmra.mrb[64].mxu0 %v13473_v51  ;;  %v12939_v51 = vld [vmem:[%s16555_s1 + $0x220] sm:$0xff]  }
  0xb2   : > { %12636 = vmatpush3.bf16.msra.mxu0 %v13688_v38  ;;  %2127 = vmatprep.mubr.bf16.mxu0 %v13514_v9 }
  0xb3   : > { %12637 = vmatprep.subr.bf16.mxu0 %v12936_v27  ;;  %2281 = vmatmul.mubr.bf16.vlgmr.msra.gmra.mrb[64].mxu1 %v13475_v52  ;;  %v12940_v52 = vld [vmem:[%s16555_s1 + $0x228] sm:$0xff]  }
  0xb4   : > { %2288 = vmatprep.mubr.bf16.mxu1 %v13510_v6 }
  0xb6   : > { %12638 = vmatpush3.bf16.msra.mxu0 %v12936_v27 }
  0xb7   : > { %12639 = vmatprep.subr.bf16.mxu0 %v12937_v28 }
  0xb9   : > { %2128 = vmatmul.mubr.bf16.gmra.mrb[68].mxu0 %v13488_v60  ;;  %v12941_v60 = vld [vmem:[%s16555_s1 + $0x230] sm:$0xff]  }
  0xba   : > { %2135 = vmatprep.mubr.bf16.mxu0 %v13539_v21  ;;  %12640 = vmatpush3.bf16.msra.mxu0 %v12937_v28  ;;  %v10324_v28 = vld [vmem:[%s13444_s23 + $0x182] sm:$0xff] }
  0xbb   : > { %12641 = vmatprep.subr.bf16.mxu0 %v12938_v62  ;;  %2289 = vmatmul.mubr.bf16.gmra.mrb[68].mxu1 %v13495_v63  ;;  %v12942_v63 = vld [vmem:[%s16555_s1 + $0x238] sm:$0xff]  }
  0xbc   : > { %2296 = vmatprep.mubr.bf16.mxu1 %v13533_v18 }
  0xbe   : > { %12642 = vmatpush3.bf16.msra.mxu0 %v12938_v62  ;;  %v10325_v62 = vld [vmem:[%s13444_s23 + $0x18a] sm:$0xff] }
  0xbf   : > { %12643 = vmatprep.subr.bf16.mxu0 %v12939_v51 }
  0xc1   : > { %2136 = vmatmul.mubr.bf16.gmra.mrb[72].mxu0 %v13510_v6  ;;  %v13873_v6 = vld [vmem:[%s16556_s2] ss:$0 sm:$0xff] }
  0xc2   : > { %2143 = vmatprep.mubr.bf16.mxu0 %v13564_v33  ;;  %12644 = vmatpush3.bf16.msra.mxu0 %v12939_v51 }
  0xc3   : > { %12645 = vmatprep.subr.bf16.mxu0 %v12940_v52  ;;  %2297 = vmatmul.mubr.bf16.gmra.mrb[72].mxu1 %v13517_v10 }
  0xc4   : > { %2304 = vmatprep.mubr.bf16.mxu1 %v13559_v31 }
  0xc6   : > { %12646 = vmatpush3.bf16.msra.mxu0 %v12940_v52 }
  0xc7   : > { %12647 = vmatprep.subr.bf16.mxu0 %v12941_v60 }
  0xc9   : > { %2144 = vmatmul.mubr.bf16.gmra.mrb[76].mxu0 %v13533_v18 }
  0xca   : > { %2151 = vmatprep.mubr.bf16.mxu0 %v13592_v46  ;;  %12648 = vmatpush3.bf16.msra.mxu0 %v12941_v60 }
  0xcb   : > { %12649 = vmatprep.subr.bf16.mxu0 %v12942_v63  ;;  %2305 = vmatmul.mubr.bf16.gmra.mrb[76].mxu1 %v13545_v23 }
  0xcc   : > { %2312 = vmatprep.mubr.bf16.mxu1 %v13584_v43 }
  0xce   : > { %12650 = vmatpush3.bf16.msra.mxu0 %v12942_v63 }
  0xd1   : > { %2152 = vmatmul.mubr.bf16.gmra.mrb[80].mxu0 %v13559_v31 }
  0xd2   : > { %2159 = vmatprep.mubr.bf16.mxu0 %v13623_v1 }
  0xd3   : > { %2313 = vmatmul.mubr.bf16.gmra.mrb[80].mxu1 %v13567_v34 }
  0xd4   : > { %2320 = vmatprep.mubr.bf16.mxu1 %v13617_v59 }
  0xd9   : > { %2160 = vmatmul.mubr.bf16.gmra.mrb[84].mxu0 %v13584_v43 }
  0xda   : > { %2167 = vmatprep.mubr.bf16.mxu0 %v13657_v20 }
  0xdb   : > { %2321 = vmatmul.mubr.bf16.gmra.mrb[84].mxu1 %v13598_v48 }
  0xdc   : > { %2328 = vmatprep.mubr.bf16.mxu1 %v13651_v16 }
  0xe1   : > { %2168 = vmatmul.mubr.bf16.gmra.mrb[88].mxu0 %v13617_v59 }
  0xe2   : > { %2175 = vmatprep.mubr.bf16.mxu0 %v13690_v39 }
  0xe3   : > { %2329 = vmatmul.mubr.bf16.gmra.mrb[88].mxu1 %v13626_v2 }
  0xe4   : > { %2336 = vmatprep.mubr.bf16.mxu1 %v13683_v37 }
  0xe9   : > { %2176 = vmatmul.mubr.bf16.gmra.mrb[92].mxu0 %v13651_v16 }
  0xea   : > { %2183 = vmatprep.mubr.bf16.mxu0 %v13710_v54 }
  0xeb   : > { %2337 = vmatmul.mubr.bf16.gmra.mrb[92].mxu1 %v13660_v22 }
  0xec   : > { %2344 = vmatprep.mubr.bf16.mxu1 %v13708_v53 }
  0xf1   : > { %2184 = vmatmul.mubr.bf16.gmra.mrb[96].mxu0 %v13683_v37 }
  0xf2   : > { %2191 = vmatprep.mubr.bf16.mxu0 %v13726_v5 }
  0xf3   : > { %2345 = vmatmul.mubr.bf16.gmra.mrb[96].mxu1 %v13694_v40 }
  0xf4   : > { %2352 = vmatprep.mubr.bf16.mxu1 %v13724_v4 }
  0xf9   : > { %2192 = vmatmul.mubr.bf16.gmra.mrb[100].mxu0 %v13708_v53 }
  0xfa   : > { %2199 = vmatprep.mubr.bf16.mxu0 %v13742_v19 }
  0xfb   : > { %2353 = vmatmul.mubr.bf16.gmra.mrb[100].mxu1 %v13713_v55 }
  0xfc   : > { %2360 = vmatprep.mubr.bf16.mxu1 %v13740_v17 }
 0x101   : > { %2200 = vmatmul.mubr.bf16.gmra.mrb[104].mxu0 %v13724_v4 }
 0x102   : > { %2207 = vmatprep.mubr.bf16.mxu0 %v13758_v35 }
 0x103   : > { %2361 = vmatmul.mubr.bf16.gmra.mrb[104].mxu1 %v13729_v7 }
 0x104   : > { %v10745_v9 = vpop.f32.mrb[0].mxu0  ;;  %2368 = vmatprep.mubr.bf16.mxu1 %v13756_v32 }
 0x105   : > { %v10746_v10 = vpop.f32.mrb[1].mxu0 }
 0x106   : > { %v10747_v18 = vadd.f32 %v10746_v10, %v10745_v9  ;;  %v10748_v21 = vpop.f32.mrb[2].mxu0  ;;  %v10857_v23 = vpop.f32.mrb[0].mxu1  ;;  %v13916_v9 = vpack.c.bf16 %v10325_v62, %v10324_v28  ;;  %v10388_v10 = vld [vmem:[%s13444_s23 + $0x199] sm:$0xff] }
 0x107   : > { %v10749_v31 = vpop.f32.mrb[3].mxu0  ;;  %v10858_v43 = vpop.f32.mrb[1].mxu1 }
 0x108   : > { %v1800_v33 = vadd.f32 %v10747_v18, %v13873_v6  ;;  %v10750_v34 = vadd.f32 %v10749_v31, %v10748_v21  ;;  %v10859_v46 = vadd.f32 %v10858_v43, %v10857_v23  ;;  %v10860_v48 = vpop.f32.mrb[2].mxu1  ;;  %v10389_v18 = vld [vmem:[%s13444_s23 + $0x1a1] sm:$0xff] }
 0x109   : > { %2208 = vmatmul.mubr.bf16.gmra.mrb[108].mxu0 %v13740_v17  ;;  %v10861_v1 = vpop.f32.mrb[3].mxu1  ;;  %v957_v43 = vpack.c.bf16 %v10389_v18, %v10388_v10  ;;  %v10396_v10 = vld [vmem:[%s13444_s23 + $0x7a] sm:$0xff] }
 0x10a   : > { %v1803_v59 = vadd.f32 %v10750_v34, %v13873_v6  ;;  %2215 = vmatprep.mubr.bf16.mxu0 %v13774_v56  ;;  %v13881_v2 = vadd.f32 %v10859_v46, %v1800_v33  ;;  %v10862_v16 = vadd.f32 %v10861_v1, %v10860_v48  ;;  %v12946_v1 = vld [vmem:[%s16557_s3 + $0x8] sm:$0xff]  }
 0x10b   : > { %2369 = vmatmul.mubr.bf16.gmra.mrb[108].mxu1 %v13745_v24  ;;  %v12943_v24 = vld [vmem:[%s16557_s3 + $0x40] sm:$0xff]  }
 0x10c   : > { %v10751_v20 = vpop.f32.mrb[4].mxu0  ;;  %v13884_v22 = vadd.f32 %v10862_v16, %v1803_v59  ;;  %2376 = vmatprep.mubr.bf16.mxu1 %v13772_v50  ;;  %11201 = vmatprep.subr.bf16.mxu1 %v12943_v24  ;;  %v12945_v59 = vld [vmem:[%s16557_s3 + $0x48] sm:$0xff]  }
 0x10d   : > { %v10752_v37 = vpop.f32.mrb[5].mxu0  ;;  %11202 = vmatpush3.bf16.msra.mxu1 %v12944_v29 }
 0x10e   : > { %v10753_v38 = vadd.f32 %v10752_v37, %v10751_v20  ;;  %v10754_v39 = vpop.f32.mrb[6].mxu0  ;;  %v10863_v40 = vpop.f32.mrb[4].mxu1  ;;  %v10391_v37 = vld [vmem:[%s13444_s23 + $0x3a] sm:$0xff]  ;;  %11203 = vmatprep.subr.bf16.mxu1 %v12945_v59 }
 0x10f   : > { %v10755_v53 = vpop.f32.mrb[7].mxu0  ;;  %v10864_v4 = vpop.f32.mrb[5].mxu1 }
 0x110   : > { %v1808_v54 = vadd.f32 %v10753_v38, %v13873_v6  ;;  %v10756_v55 = vadd.f32 %v10755_v53, %v10754_v39  ;;  %v10865_v5 = vadd.f32 %v10864_v4, %v10863_v40  ;;  %v10866_v7 = vpop.f32.mrb[6].mxu1  ;;  %v10356_v53 = vld [vmem:[%s13444_s23 + $0x198] sm:$0xff] }
 0x111   : > { %2216 = vmatmul.mubr.bf16.gmra.mrb[112].mxu0 %v13756_v32  ;;  %v10867_v19 = vpop.f32.mrb[7].mxu1  ;;  %11204 = vmatpush3.bf16.msra.mxu1 %v12946_v1 }
 0x112   : > { %v1811_v17 = vadd.f32 %v10756_v55, %v13873_v6  ;;  %2223 = vmatprep.mubr.bf16.mxu0 %v13790_v13  ;;  %v13897_v30 = vadd.f32 %v10865_v5, %v1808_v54  ;;  %v10868_v35 = vadd.f32 %v10867_v19, %v10866_v7  ;;  %v10357_v54 = vld [vmem:[%s13444_s23 + $0x1a0] sm:$0xff] }
 0x113   : > { %2377 = vmatmul.mubr.bf16.gmra.mrb[112].mxu1 %v13761_v36  ;;  %v893_v29 = vpack.c.bf16 %v10357_v54, %v10356_v53 }
 0x114   : > { %v10757_v32 = vpop.f32.mrb[8].mxu0  ;;  %v13900_v41 = vadd.f32 %v10868_v35, %v1811_v17  ;;  %2384 = vmatprep.mubr.bf16.mxu1 %v13788_v12 }
 0x115   : > { %v10758_v42 = vpop.f32.mrb[9].mxu0 }
 0x116   : > { %v10759_v45 = vadd.f32 %v10758_v42, %v10757_v32  ;;  %v10760_v47 = vpop.f32.mrb[10].mxu0  ;;  %v10869_v56 = vpop.f32.mrb[8].mxu1 }
 0x117   : > { %v10761_v58 = vpop.f32.mrb[11].mxu0  ;;  %v10870_v36 = vpop.f32.mrb[9].mxu1 }
 0x118   : > { %v1816_v61 = vadd.f32 %v10759_v45, %v13873_v6  ;;  %v10762_v0 = vadd.f32 %v10761_v58, %v10760_v47  ;;  %v10871_v3 = vadd.f32 %v10870_v36, %v10869_v56  ;;  %v10872_v8 = vpop.f32.mrb[10].mxu1  ;;  %v10392_v45 = vld [vmem:[%s13444_s23 + $0x4a] sm:$0xff]  ;;  %v10393_v47 = vld [vmem:[%s13444_s23 + $0x52] sm:$0xff]  ;;  %v10394_v58 = vld [vmem:[%s13444_s23 + $0x62] sm:$0xff] }
 0x119   : > { %2224 = vmatmul.mubr.bf16.gmra.mrb[116].mxu0 %v13772_v50  ;;  %v10873_v15 = vpop.f32.mrb[11].mxu1 }
 0x11a   : > { %v1819_v13 = vadd.f32 %v10762_v0, %v13873_v6  ;;  %2231 = vmatprep.mubr.bf16.mxu0 %v13800_v26  ;;  %v13909_v25 = vadd.f32 %v10871_v3, %v1816_v61  ;;  %v10874_v27 = vadd.f32 %v10873_v15, %v10872_v8  ;;  %v10395_v61 = vld [vmem:[%s13444_s23 + $0x6a] sm:$0xff]  ;;  %v1007_v8 = vpack.c.bf16 %v10393_v47, %v10392_v45 }
 0x11b   : > { %2385 = vmatmul.mubr.bf16.gmra.mrb[116].mxu1 %v13777_v57  ;;  %v1008_v15 = vpack.c.bf16 %v10395_v61, %v10394_v58 }
 0x11c   : > { %v10763_v51 = vpop.f32.mrb[12].mxu0  ;;  %v13914_v52 = vadd.f32 %v10874_v27, %v1819_v13  ;;  %2392 = vmatprep.mubr.bf16.mxu1 %v956_v11 }
 0x11d   : > { %v10764_v60 = vpop.f32.mrb[13].mxu0 }
 0x11e   : > { %v10765_v50 = vadd.f32 %v10764_v60, %v10763_v51  ;;  %v10766_v63 = vpop.f32.mrb[14].mxu0  ;;  %v10875_v21 = vpop.f32.mrb[12].mxu1 }
 0x11f   : > { %v10767_v26 = vpop.f32.mrb[15].mxu0  ;;  %v10876_v33 = vpop.f32.mrb[13].mxu1 }
 0x120   : > { %v1824_v23 = vadd.f32 %v10765_v50, %v13873_v6  ;;  %v10768_v31 = vadd.f32 %v10767_v26, %v10766_v63  ;;  %v10877_v57 = vadd.f32 %v10876_v33, %v10875_v21  ;;  %v10878_v34 = vpop.f32.mrb[14].mxu1  ;;  %v10397_v26 = vld [vmem:[%s13444_s23 + $0x82] sm:$0xff] }
 0x121   : > { %2232 = vmatmul.mubr.bf16.gmra.mrb[120].mxu0 %v13788_v12  ;;  %v10879_v48 = vpop.f32.mrb[15].mxu1  ;;  %v10390_v12 = vld [vmem:[%s13444_s23 + $0x32] sm:$0xff]  ;;  %v1009_v1 = vpack.c.bf16 %v10397_v26, %v10396_v10  ;;  %v10407_v26 = vld [vmem:[%s13444_s23 + $0xfa] sm:$0xff] }
 0x122   : > { %v1827_v46 = vadd.f32 %v10768_v31, %v13873_v6  ;;  %2239 = vmatprep.mubr.bf16.mxu0 %v13916_v9  ;;  %v13930_v16 = vadd.f32 %v10877_v57, %v1824_v23  ;;  %v10880_v20 = vadd.f32 %v10879_v48, %v10878_v34  ;;  %v1006_v5 = vpack.c.bf16 %v10391_v37, %v10390_v12  ;;  %v12947_v23 = vld [vmem:[%s16557_s3 + $0x50] sm:$0xff]  }
 0x123   : > { %2393 = vmatmul.mubr.bf16.gmra.mrb[120].mxu1 %v13793_v14  ;;  %v12948_v31 = vld [vmem:[%s16557_s3 + $0x10] sm:$0xff]   ;;  %11205 = vmatprep.subr.bf16.mxu1 %v12947_v23 }
 0x124   : > { %v10769_v38 = vpop.f32.mrb[16].mxu0  ;;  %v13935_v39 = vadd.f32 %v10880_v20, %v1827_v46  ;;  %2400 = vmatprep.mubr.bf16.mxu1 %v957_v43  ;;  %v10398_v34 = vld [vmem:[%s13444_s23 + $0x92] sm:$0xff]  ;;  %v10399_v43 = vld [vmem:[%s13444_s23 + $0x9a] sm:$0xff]  ;;  %11206 = vmatpush3.bf16.msra.mxu1 %v12948_v31 }
 0x125   : > { %v10770_v40 = vpop.f32.mrb[17].mxu0  ;;  %v1010_v37 = vpack.c.bf16 %v10399_v43, %v10398_v34 }
 0x126   : > { %v10771_v55 = vadd.f32 %v10770_v40, %v10769_v38  ;;  %v10772_v4 = vpop.f32.mrb[18].mxu0  ;;  %v10881_v7 = vpop.f32.mrb[16].mxu1 }
 0x127   : > { %v10773_v17 = vpop.f32.mrb[19].mxu0  ;;  %v10882_v24 = vpop.f32.mrb[17].mxu1 }
 0x128   : > { %v1832_v14 = vadd.f32 %v10771_v55, %v13873_v6  ;;  %v10774_v19 = vadd.f32 %v10773_v17, %v10772_v4  ;;  %v10883_v35 = vadd.f32 %v10882_v24, %v10881_v7  ;;  %v10884_v32 = vpop.f32.mrb[18].mxu1 }
 0x129   : > { %2240 = vmatmul.mubr.bf16.gmra.mrb[124].mxu0 %v956_v11  ;;  %v10885_v44 = vpop.f32.mrb[19].mxu1 }
 0x12a   : > { %v1835_v42 = vadd.f32 %v10774_v19, %v13873_v6  ;;  %12651 = vmatprep.mubr.bf16.mxu0 %v1006_v5  ;;  %v13943_v49 = vadd.f32 %v10883_v35, %v1832_v14  ;;  %v10886_v56 = vadd.f32 %v10885_v44, %v10884_v32  ;;  %v10400_v14 = vld [vmem:[%s13444_s23 + $0xaa] sm:$0xff]  ;;  %v10401_v19 = vld [vmem:[%s13444_s23 + $0xb2] sm:$0xff]  ;;  %v10402_v35 = vld [vmem:[%s13444_s23 + $0xc2] sm:$0xff] }
 0x12b   : > { %2401 = vmatmul.mubr.bf16.gmra.mrb[124].mxu1 %v893_v29  ;;  %v10403_v32 = vld [vmem:[%s13444_s23 + $0xca] sm:$0xff]  ;;  %v1011_v47 = vpack.c.bf16 %v10401_v19, %v10400_v14  ;;  %v10410_v14 = vld [vmem:[%s13444_s23 + $0x122] sm:$0xff] }
 0x12c   : > { %v10775_v0 = vpop.f32.mrb[20].mxu0  ;;  %v13947_v36 = vadd.f32 %v10886_v56, %v1835_v42  ;;  %v1012_v61 = vpack.c.bf16 %v10403_v32, %v10402_v35  ;;  %v10411_v19 = vld [vmem:[%s13444_s23 + $0x12a] sm:$0xff] }
 0x12d   : > { %v10776_v3 = vpop.f32.mrb[21].mxu0 }
 0x12e   : > { %v10777_v11 = vadd.f32 %v10776_v3, %v10775_v0  ;;  %v10778_v13 = vpop.f32.mrb[22].mxu0  ;;  %v10887_v27 = vpop.f32.mrb[20].mxu1 }
 0x12f   : > { %v10779_v28 = vpop.f32.mrb[23].mxu0  ;;  %v10888_v60 = vpop.f32.mrb[21].mxu1 }
 0x130   : > { %v1840_v62 = vadd.f32 %v10777_v11, %v13873_v6  ;;  %v10780_v51 = vadd.f32 %v10779_v28, %v10778_v13  ;;  %v10889_v50 = vadd.f32 %v10888_v60, %v10887_v27  ;;  %v10890_v63 = vpop.f32.mrb[22].mxu1  ;;  %v10404_v28 = vld [vmem:[%s13444_s23 + $0xda] sm:$0xff]  ;;  %v10405_v60 = vld [vmem:[%s13444_s23 + $0xe2] sm:$0xff] }
 0x131   : > { %12652 = vmatmul.mubr.bf16.vlgmr.msra.gmra.mrb[128].mxu0 %v1007_v8  ;;  %v10891_v21 = vpop.f32.mrb[23].mxu1  ;;  %v1013_v34 = vpack.c.bf16 %v10405_v60, %v10404_v28  ;;  %v12952_v60 = vld [vmem:[%s16557_s3 + $0x20] sm:$0xff]  }
 0x132   : > { %v1843_v18 = vadd.f32 %v10780_v51, %v13873_v6  ;;  %12655 = vmatprep.mubr.bf16.mxu0 %v1008_v15  ;;  %v13959_v33 = vadd.f32 %v10889_v50, %v1840_v62  ;;  %v10892_v57 = vadd.f32 %v10891_v21, %v10890_v63  ;;  %v12949_v50 = vld [vmem:[%s16557_s3 + $0x58] sm:$0xff]  }
 0x133   : > { %v12950_v63 = vld [vmem:[%s16557_s3 + $0x18] sm:$0xff]   ;;  %11207 = vmatprep.subr.bf16.mxu1 %v12949_v50 }
 0x134   : > { %v10781_v46 = vpop.f32.mrb[24].mxu0  ;;  %v13963_v48 = vadd.f32 %v10892_v57, %v1843_v18  ;;  %v10406_v21 = vld [vmem:[%s13444_s23 + $0xf2] sm:$0xff]  ;;  %11208 = vmatpush3.bf16.msra.mxu1 %v12950_v63 }
 0x135   : > { %v10782_v59 = vpop.f32.mrb[25].mxu0 }
 0x136   : > { %v10783_v20 = vadd.f32 %v10782_v59, %v10781_v46  ;;  %v10784_v12 = vpop.f32.mrb[26].mxu0  ;;  %v10893_v38 = vpop.f32.mrb[24].mxu1  ;;  %v1014_v59 = vpack.c.bf16 %v10407_v26, %v10406_v21  ;;  %v10415_v21 = vld [vmem:[%s13444_s23 + $0x15a] sm:$0xff] }
 0x137   : > { %v10785_v40 = vpop.f32.mrb[27].mxu0  ;;  %v10894_v55 = vpop.f32.mrb[25].mxu1 }
 0x138   : > { %v1848_v53 = vadd.f32 %v10783_v20, %v13873_v6  ;;  %v10786_v54 = vadd.f32 %v10785_v40, %v10784_v12  ;;  %v10895_v4 = vadd.f32 %v10894_v55, %v10893_v38  ;;  %v10896_v5 = vpop.f32.mrb[26].mxu1 }
 0x139   : > { %12656 = vmatmul.mubr.bf16.gmra.mrb[132].mxu0 %v1009_v1  ;;  %v10897_v17 = vpop.f32.mrb[27].mxu1 }
 0x13a   : > { %v1851_v7 = vadd.f32 %v10786_v54, %v13873_v6  ;;  %12659 = vmatprep.mubr.bf16.mxu0 %v1010_v37  ;;  %v13969_v24 = vadd.f32 %v10895_v4, %v1848_v53  ;;  %v10898_v29 = vadd.f32 %v10897_v17, %v10896_v5  ;;  %v10408_v4 = vld [vmem:[%s13444_s23 + $0x10a] sm:$0xff]  ;;  %v10409_v5 = vld [vmem:[%s13444_s23 + $0x112] sm:$0xff] }
 0x13c   : > { %v10787_v42 = vpop.f32.mrb[28].mxu0  ;;  %v13973_v44 = vadd.f32 %v10898_v29, %v1851_v7 }
 0x13d   : > { %v10788_v45 = vpop.f32.mrb[29].mxu0 }
 0x13e   : > { %v10789_v56 = vadd.f32 %v10788_v45, %v10787_v42  ;;  %v10790_v58 = vpop.f32.mrb[30].mxu0  ;;  %v10899_v0 = vpop.f32.mrb[28].mxu1  ;;  %v1015_v42 = vpack.c.bf16 %v10409_v5, %v10408_v4  ;;  %v10416_v4 = vld [vmem:[%s13444_s23 + $0x16a] sm:$0xff]  ;;  %v10417_v5 = vld [vmem:[%s13444_s23 + $0x172] sm:$0xff] }
 0x13f   : > { %v10791_v3 = vpop.f32.mrb[31].mxu0  ;;  %v10900_v13 = vpop.f32.mrb[29].mxu1 }
 0x140   : > { %v1856_v8 = vadd.f32 %v10789_v56, %v13873_v6  ;;  %v10792_v11 = vadd.f32 %v10791_v3, %v10790_v58  ;;  %v10901_v15 = vadd.f32 %v10900_v13, %v10899_v0  ;;  %v10902_v27 = vpop.f32.mrb[30].mxu1  ;;  %v1016_v56 = vpack.c.bf16 %v10411_v19, %v10410_v14 }
 0x141   : > { %12660 = vmatmul.mubr.bf16.gmra.mrb[136].mxu0 %v1011_v47  ;;  %v10903_v51 = vpop.f32.mrb[31].mxu1 }
 0x142   : > { %v1859_v62 = vadd.f32 %v10792_v11, %v13873_v6  ;;  %12663 = vmatprep.mubr.bf16.mxu0 %v1012_v61  ;;  %v13985_v10 = vadd.f32 %v10901_v15, %v1856_v8  ;;  %v10904_v18 = vadd.f32 %v10903_v51, %v10902_v27  ;;  %v10412_v15 = vld [vmem:[%s13444_s23 + $0x13a] sm:$0xff] }
 0x143   : > { %v12951_v51 = vld [vmem:[%s16557_s3 + $0x60] sm:$0xff]  }
 0x144   : > { %v10793_v23 = vpop.f32.mrb[32].mxu0  ;;  %v13989_v31 = vadd.f32 %v10904_v18, %v1859_v62  ;;  %v10413_v62 = vld [vmem:[%s13444_s23 + $0x142] sm:$0xff]  ;;  %v10414_v18 = vld [vmem:[%s13444_s23 + $0x152] sm:$0xff]  ;;  %11209 = vmatprep.subr.bf16.mxu1 %v12951_v51 }
 0x145   : > { %v10794_v57 = vpop.f32.mrb[33].mxu0  ;;  %11210 = vmatpush3.bf16.msra.mxu1 %v12952_v60  ;;  %v12954_v51 = vld [vmem:[%s16557_s3 + $0x28] sm:$0xff]  }
 0x146   : > { %v10795_v43 = vadd.f32 %v10794_v57, %v10793_v23  ;;  %v10796_v46 = vpop.f32.mrb[34].mxu0  ;;  %v10905_v1 = vpop.f32.mrb[32].mxu1 }
 0x147   : > { %v10797_v20 = vpop.f32.mrb[35].mxu0  ;;  %v10906_v38 = vpop.f32.mrb[33].mxu1 }
 0x148   : > { %v1864_v12 = vadd.f32 %v10795_v43, %v13873_v6  ;;  %v10798_v37 = vadd.f32 %v10797_v20, %v10796_v46  ;;  %v10907_v40 = vadd.f32 %v10906_v38, %v10905_v1  ;;  %v10908_v53 = vpop.f32.mrb[34].mxu1 }
 0x149   : > { %12664 = vmatmul.mubr.bf16.gmra.mrb[140].mxu0 %v1013_v34  ;;  %v10909_v55 = vpop.f32.mrb[35].mxu1  ;;  %v1017_v34 = vpack.c.bf16 %v10413_v62, %v10412_v15  ;;  %v12953_v62 = vld [vmem:[%s16557_s3 + $0x68] sm:$0xff]  }
 0x14a   : > { %v1867_v54 = vadd.f32 %v10798_v37, %v13873_v6  ;;  %12667 = vmatprep.mubr.bf16.mxu0 %v1014_v59  ;;  %v13995_v7 = vadd.f32 %v10907_v40, %v1864_v12  ;;  %v10910_v17 = vadd.f32 %v10909_v55, %v10908_v53  ;;  %v1018_v59 = vpack.c.bf16 %v10415_v21, %v10414_v18 }
 0x14b   : > { %11211 = vmatprep.subr.bf16.mxu1 %v12953_v62 }
 0x14c   : > { %v10799_v29 = vpop.f32.mrb[36].mxu0  ;;  %v13999_v35 = vadd.f32 %v10910_v17, %v1867_v54  ;;  %11212 = vmatpush3.bf16.msra.mxu1 %v12954_v51 }
 0x14d   : > { %v10800_v32 = vpop.f32.mrb[37].mxu0 }
 0x14e   : > { %v10801_v45 = vadd.f32 %v10800_v32, %v10799_v29  ;;  %v10802_v47 = vpop.f32.mrb[38].mxu0  ;;  %v10911_v58 = vpop.f32.mrb[36].mxu1 }
 0x14f   : > { %v10803_v61 = vpop.f32.mrb[39].mxu0  ;;  %v10912_v8 = vpop.f32.mrb[37].mxu1 }
 0x150   : > { %v1872_v0 = vadd.f32 %v10801_v45, %v13873_v6  ;;  %v10804_v3 = vadd.f32 %v10803_v61, %v10802_v47  ;;  %v10913_v11 = vadd.f32 %v10912_v8, %v10911_v58  ;;  %v10914_v13 = vpop.f32.mrb[38].mxu1 }
 0x151   : > { %12668 = vmatmul.mubr.bf16.gmra.mrb[144].mxu0 %v1015_v42  ;;  %v10915_v28 = vpop.f32.mrb[39].mxu1  ;;  %v1019_v42 = vpack.c.bf16 %v10417_v5, %v10416_v4 }
 0x152   : > { %v1875_v27 = vadd.f32 %v10804_v3, %v13873_v6  ;;  %12671 = vmatprep.mubr.bf16.mxu0 %v1016_v56  ;;  %v14011_v50 = vadd.f32 %v10913_v11, %v1872_v0  ;;  %v10916_v63 = vadd.f32 %v10915_v28, %v10914_v13  ;;  %v10420_v13 = vld [vmem:[%s13444_s23 + $0x19a] sm:$0xff]  ;;  %v10421_v28 = vld [vmem:[%s13444_s23 + $0x1a2] sm:$0xff] }
 0x154   : > { %v10805_v26 = vpop.f32.mrb[40].mxu0  ;;  %v14015_v23 = vadd.f32 %v10916_v63, %v1875_v27 }
 0x155   : > { %v10806_v57 = vpop.f32.mrb[41].mxu0 }
 0x156   : > { %v10807_v43 = vadd.f32 %v10806_v57, %v10805_v26  ;;  %v10808_v46 = vpop.f32.mrb[42].mxu0  ;;  %v10917_v1 = vpop.f32.mrb[40].mxu1  ;;  %v1021_v57 = vpack.c.bf16 %v10421_v28, %v10420_v13 }
 0x157   : > { %v10809_v20 = vpop.f32.mrb[43].mxu0  ;;  %v10918_v38 = vpop.f32.mrb[41].mxu1 }
 0x158   : > { %v1880_v12 = vadd.f32 %v10807_v43, %v13873_v6  ;;  %v10810_v37 = vadd.f32 %v10809_v20, %v10808_v46  ;;  %v10919_v40 = vadd.f32 %v10918_v38, %v10917_v1  ;;  %v10920_v53 = vpop.f32.mrb[42].mxu1 }
 0x159   : > { %12672 = vmatmul.mubr.bf16.gmra.mrb[148].mxu0 %v1017_v34  ;;  %v10921_v55 = vpop.f32.mrb[43].mxu1 }
 0x15a   : > { %v1883_v54 = vadd.f32 %v10810_v37, %v13873_v6  ;;  %12675 = vmatprep.mubr.bf16.mxu0 %v1018_v59  ;;  %v14021_v17 = vadd.f32 %v10919_v40, %v1880_v12  ;;  %v10922_v14 = vadd.f32 %v10921_v55, %v10920_v53 }
 0x15c   : > { %v10811_v19 = vpop.f32.mrb[44].mxu0  ;;  %v14023_v29 = vadd.f32 %v10922_v14, %v1883_v54 }
 0x15d   : > { %v10812_v32 = vpop.f32.mrb[45].mxu0 }
 0x15e   : > { %v10813_v45 = vadd.f32 %v10812_v32, %v10811_v19  ;;  %v10814_v47 = vpop.f32.mrb[46].mxu0  ;;  %v10923_v56 = vpop.f32.mrb[44].mxu1 }
 0x15f   : > { %v10815_v58 = vpop.f32.mrb[47].mxu0  ;;  %v10924_v3 = vpop.f32.mrb[45].mxu1 }
 0x160   : > { %v1888_v61 = vadd.f32 %v10813_v45, %v13873_v6  ;;  %v10816_v0 = vadd.f32 %v10815_v58, %v10814_v47  ;;  %v10925_v8 = vadd.f32 %v10924_v3, %v10923_v56  ;;  %v10926_v11 = vpop.f32.mrb[46].mxu1 }
 0x161   : > { %12676 = vmatmul.mubr.bf16.gmra.mrb[152].mxu0 %v1019_v42  ;;  %v10927_v27 = vpop.f32.mrb[47].mxu1 }
 0x162   : > { %v1891_v15 = vadd.f32 %v10816_v0, %v13873_v6  ;;  %12679 = vmatprep.mubr.bf16.mxu0 %v13916_v9  ;;  %v14036_v60 = vadd.f32 %v10925_v8, %v1888_v61  ;;  %v10928_v63 = vadd.f32 %v10927_v27, %v10926_v11  ;;  %v12955_v8 = vld [vmem:[%s16557_s3 + $0x70] sm:$0xff]  }
 0x163   : > { %v12956_v11 = vld [vmem:[%s16557_s3 + $0x30] sm:$0xff]   ;;  %11213 = vmatprep.subr.bf16.mxu1 %v12955_v8 }
 0x164   : > { %v10817_v18 = vpop.f32.mrb[48].mxu0  ;;  %v14038_v21 = vadd.f32 %v10928_v63, %v1891_v15  ;;  %11214 = vmatpush3.bf16.msra.mxu1 %v12956_v11 }
 0x165   : > { %v10818_v26 = vpop.f32.mrb[49].mxu0 }
 0x166   : > { %v10819_v9 = vadd.f32 %v10818_v26, %v10817_v18  ;;  %v10820_v34 = vpop.f32.mrb[50].mxu0  ;;  %v10929_v43 = vpop.f32.mrb[48].mxu1  ;;  %v12957_v18 = vld [vmem:[%s16557_s3 + $0xc0] sm:$0xff]  }
 0x167   : > { %v10821_v46 = vpop.f32.mrb[51].mxu0  ;;  %v10930_v20 = vpop.f32.mrb[49].mxu1  ;;  %11313 = vmatprep.subr.bf16.mxu0 %v12957_v18  ;;  %v13236_v18 = vmov 0.0  }
 0x168   : > { %v1896_v59 = vadd.f32 %v10819_v9, %v13873_v6  ;;  %v10822_v1 = vadd.f32 %v10821_v46, %v10820_v34  ;;  %v10931_v12 = vadd.f32 %v10930_v20, %v10929_v43  ;;  %v10932_v37 = vpop.f32.mrb[50].mxu1  ;;  %v12958_v9 = vld [vmem:[%s16557_s3 + $0x80] sm:$0xff]   ;;  %397 = vst [vmem:[#allocation2 + $0x48] sm:$0xff] %v13236_v18  ;;  %388 = vst [vmem:[#allocation2] sm:$0xff] %v13236_v18 }
 0x169   : > { %12680 = vmatmul.mubr.bf16.gmra.mrb[156].mxu0 %v1021_v57  ;;  %v10933_v40 = vpop.f32.mrb[51].mxu1  ;;  %389 = vst [vmem:[#allocation2 + $0x8] sm:$0xff] %v13236_v18  ;;  %390 = vst [vmem:[#allocation2 + $0x10] sm:$0xff] %v13236_v18 }
 0x16a   : > { %v1899_v38 = vadd.f32 %v10822_v1, %v13873_v6  ;;  %v14042_v53 = vadd.f32 %v10931_v12, %v1896_v59  ;;  %v10934_v54 = vadd.f32 %v10933_v40, %v10932_v37  ;;  %11314 = vmatpush3.bf16.msra.mxu0 %v12958_v9  ;;  %v12959_v37 = vld [vmem:[%s16557_s3 + $0xc8] sm:$0xff]   ;;  %391 = vst [vmem:[#allocation2 + $0x18] sm:$0xff] %v13236_v18  ;;  %392 = vst [vmem:[#allocation2 + $0x20] sm:$0xff] %v13236_v18 }
 0x16b   : > { %11315 = vmatprep.subr.bf16.mxu0 %v12959_v37  ;;  %393 = vst [vmem:[#allocation2 + $0x28] sm:$0xff] %v13236_v18  ;;  %394 = vst [vmem:[#allocation2 + $0x30] sm:$0xff] %v13236_v18 }
 0x16c   : > { %v10823_v55 = vpop.f32.mrb[52].mxu0  ;;  %v14044_v4 = vadd.f32 %v10934_v54, %v1899_v38  ;;  %v12960_v54 = vld [vmem:[%s16557_s3 + $0x88] sm:$0xff]   ;;  %395 = vst [vmem:[#allocation2 + $0x38] sm:$0xff] %v13236_v18  ;;  %396 = vst [vmem:[#allocation2 + $0x40] sm:$0xff] %v13236_v18 }
 0x16d   : > { %v10824_v5 = vpop.f32.mrb[53].mxu0  ;;  %398 = vst [vmem:[#allocation2 + $0x50] sm:$0xff] %v13236_v18  ;;  %399 = vst [vmem:[#allocation2 + $0x58] sm:$0xff] %v13236_v18 }
 0x16e   : > { %v10825_v14 = vadd.f32 %v10824_v5, %v10823_v55  ;;  %v10826_v19 = vpop.f32.mrb[54].mxu0  ;;  %v10935_v32 = vpop.f32.mrb[52].mxu1  ;;  %11316 = vmatpush3.bf16.msra.mxu0 %v12960_v54  ;;  %400 = vst [vmem:[#allocation2 + $0x60] sm:$0xff] %v13236_v18  ;;  %401 = vst [vmem:[#allocation2 + $0x68] sm:$0xff] %v13236_v18 }
 0x16f   : > { %v10827_v42 = vpop.f32.mrb[55].mxu0  ;;  %v10936_v56 = vpop.f32.mrb[53].mxu1  ;;  %402 = vst [vmem:[#allocation2 + $0x70] sm:$0xff] %v13236_v18  ;;  %403 = vst [vmem:[#allocation2 + $0x78] sm:$0xff] %v13236_v18 }
 0x170   : > { %v1904_v45 = vadd.f32 %v10825_v14, %v13873_v6  ;;  %v10828_v47 = vadd.f32 %v10827_v42, %v10826_v19  ;;  %v10937_v58 = vadd.f32 %v10936_v56, %v10935_v32  ;;  %v10938_v61 = vpop.f32.mrb[54].mxu1  ;;  %v12962_v42 = vld [vmem:[%s16557_s3 + $0xd0] sm:$0xff]   ;;  %404 = vst [vmem:[#allocation2 + $0x80] sm:$0xff] %v13236_v18  ;;  %405 = vst [vmem:[#allocation2 + $0x88] sm:$0xff] %v13236_v18 }
 0x171   : > { %v10939_v3 = vpop.f32.mrb[55].mxu1  ;;  %v12964_v56 = vld [vmem:[%s16557_s3 + $0x90] sm:$0xff]   ;;  %11317 = vmatprep.subr.bf16.mxu0 %v12962_v42  ;;  %406 = vst [vmem:[#allocation2 + $0x90] sm:$0xff] %v13236_v18  ;;  %407 = vst [vmem:[#allocation2 + $0x98] sm:$0xff] %v13236_v18  ;;  %v12969_v42 = vld [vmem:[%s16557_s3 + $0xe8] sm:$0xff]  }
 0x172   : > { %v1907_v0 = vadd.f32 %v10828_v47, %v13873_v6  ;;  %v14054_v13 = vadd.f32 %v10937_v58, %v1904_v45  ;;  %v10940_v15 = vadd.f32 %v10939_v3, %v10938_v61  ;;  %11318 = vmatpush3.bf16.msra.mxu0 %v12964_v56  ;;  %408 = vst [vmem:[#allocation2 + $0xa0] sm:$0xff] %v13236_v18  ;;  %409 = vst [vmem:[#allocation2 + $0xa8] sm:$0xff] %v13236_v18 }
 0x173   : > { %410 = vst [vmem:[#allocation2 + $0xb0] sm:$0xff] %v13236_v18  ;;  %411 = vst [vmem:[#allocation2 + $0xb8] sm:$0xff] %v13236_v18 }
 0x174   : > { %v10829_v27 = vpop.f32.mrb[56].mxu0  ;;  %v14056_v28 = vadd.f32 %v10940_v15, %v1907_v0  ;;  %412 = vst [vmem:[#allocation2 + $0xc0] sm:$0xff] %v13236_v18  ;;  %413 = vst [vmem:[#allocation2 + $0xc8] sm:$0xff] %v13236_v18 }
 0x175   : > { %v10830_v62 = vpop.f32.mrb[57].mxu0  ;;  %414 = vst [vmem:[#allocation2 + $0xd0] sm:$0xff] %v13236_v18  ;;  %415 = vst [vmem:[#allocation2 + $0xd8] sm:$0xff] %v13236_v18 }
 0x176   : > { %v10831_v51 = vadd.f32 %v10830_v62, %v10829_v27  ;;  %v10832_v63 = vpop.f32.mrb[58].mxu0  ;;  %v10941_v26 = vpop.f32.mrb[56].mxu1  ;;  %v14089_v27 = vld [vmem:[%s16557_s3 + $0x78] sm:$0xff]   ;;  %416 = vst [vmem:[#allocation2 + $0xe0] sm:$0xff] %v13236_v18  ;;  %417 = vst [vmem:[#allocation2 + $0xe8] sm:$0xff] %v13236_v18 }
 0x177   : > { %v10833_v57 = vpop.f32.mrb[59].mxu0  ;;  %v10942_v46 = vpop.f32.mrb[57].mxu1  ;;  %v14094_v62 = vld [vmem:[%s16557_s3 + $0x38] sm:$0xff]   ;;  %418 = vst [vmem:[#allocation2 + $0xf0] sm:$0xff] %v13236_v18  ;;  %419 = vst [vmem:[#allocation2 + $0xf8] sm:$0xff] %v13236_v18  ;;  %11215 = vmatprep.subr.bf16.mxu1 %v14089_v27  ;;  %v12971_v27 = vld [vmem:[%s16557_s3 + $0xf0] sm:$0xff]  }
 0x178   : > { %v1912_v34 = vadd.f32 %v10831_v51, %v13873_v6  ;;  %v10834_v43 = vadd.f32 %v10833_v57, %v10832_v63  ;;  %v10943_v59 = vadd.f32 %v10942_v46, %v10941_v26  ;;  %v10944_v1 = vpop.f32.mrb[58].mxu1  ;;  %v14099_v51 = vld [vmem:[%s16557_s3 + $0xd8] sm:$0xff]   ;;  %420 = vst [vmem:[#allocation2 + $0x100] sm:$0xff] %v13236_v18  ;;  %421 = vst [vmem:[#allocation2 + $0x108] sm:$0xff] %v13236_v18  ;;  %11216 = vmatpush3.bf16.msra.mxu1 %v14094_v62 }
 0x179   : > { %v10945_v12 = vpop.f32.mrb[59].mxu1  ;;  %422 = vst [vmem:[#allocation2 + $0x110] sm:$0xff] %v13236_v18  ;;  %423 = vst [vmem:[#allocation2 + $0x118] sm:$0xff] %v13236_v18  ;;  %v12966_v26 = vld [vmem:[%s16557_s3 + $0x98] sm:$0xff]   ;;  %11319 = vmatprep.subr.bf16.mxu0 %v14099_v51 }
 0x17a   : > { %v1915_v20 = vadd.f32 %v10834_v43, %v13873_v6  ;;  %v14069_v38 = vadd.f32 %v10943_v59, %v1912_v34  ;;  %v10946_v40 = vadd.f32 %v10945_v12, %v10944_v1  ;;  %424 = vst [vmem:[#allocation2 + $0x120] sm:$0xff] %v13236_v18  ;;  %425 = vst [vmem:[#allocation2 + $0x128] sm:$0xff] %v13236_v18  ;;  %11320 = vmatpush3.bf16.msra.mxu0 %v12966_v26  ;;  %v12967_v59 = vld [vmem:[%s16557_s3 + $0xe0] sm:$0xff]  }
 0x17b   : > { %426 = vst [vmem:[#allocation2 + $0x130] sm:$0xff] %v13236_v18  ;;  %427 = vst [vmem:[#allocation2 + $0x138] sm:$0xff] %v13236_v18  ;;  %v12968_v12 = vld [vmem:[%s16557_s3 + $0xa0] sm:$0xff]   ;;  %11321 = vmatprep.subr.bf16.mxu0 %v12967_v59 }
 0x17c   : > { %v10835_v55 = vpop.f32.mrb[60].mxu0  ;;  %v14074_v5 = vadd.f32 %v10946_v40, %v1915_v20  ;;  %428 = vst [vmem:[#allocation2 + $0x140] sm:$0xff] %v13236_v18  ;;  %429 = vst [vmem:[#allocation2 + $0x148] sm:$0xff] %v13236_v18 }
 0x17d   : > { %v10836_v14 = vpop.f32.mrb[61].mxu0  ;;  %430 = vst [vmem:[#allocation2 + $0x150] sm:$0xff] %v13236_v18  ;;  %431 = vst [vmem:[#allocation2 + $0x158] sm:$0xff] %v13236_v18 }
 0x17e   : > { %v10837_v19 = vadd.f32 %v10836_v14, %v10835_v55  ;;  %v10838_v32 = vpop.f32.mrb[62].mxu0  ;;  %v10947_v45 = vpop.f32.mrb[60].mxu1  ;;  %432 = vst [vmem:[#allocation2 + $0x160] sm:$0xff] %v13236_v18  ;;  %433 = vst [vmem:[#allocation2 + $0x168] sm:$0xff] %v13236_v18  ;;  %11322 = vmatpush3.bf16.msra.mxu0 %v12968_v12 }
 0x17f   : > { %v10839_v47 = vpop.f32.mrb[63].mxu0  ;;  %v10948_v0 = vpop.f32.mrb[61].mxu1  ;;  %434 = vst [vmem:[#allocation2 + $0x170] sm:$0xff] %v13236_v18  ;;  %435 = vst [vmem:[#allocation2 + $0x178] sm:$0xff] %v13236_v18  ;;  %11323 = vmatprep.subr.bf16.mxu0 %v12969_v42 }
 0x180   : > { %v1920_v58 = vadd.f32 %v10837_v19, %v13873_v6  ;;  %v10840_v61 = vadd.f32 %v10839_v47, %v10838_v32  ;;  %v10949_v3 = vadd.f32 %v10948_v0, %v10947_v45  ;;  %v10950_v8 = vpop.f32.mrb[62].mxu1  ;;  %436 = vst [vmem:[#allocation2 + $0x180] sm:$0xff] %v13236_v18  ;;  %437 = vst [vmem:[#allocation2 + $0x188] sm:$0xff] %v13236_v18  ;;  %v2636_v45 = vld [vmem:[#allocation2 + $0x7] sm:$0xff]  ;;  %v2637_v47 = vld [vmem:[#allocation2 + $0xf] sm:$0xff] }
 0x181   : > { %v10951_v15 = vpop.f32.mrb[63].mxu1  ;;  %438 = vst [vmem:[#allocation2 + $0x190] sm:$0xff] %v13236_v18  ;;  %439 = vst [vmem:[#allocation2 + $0x198] sm:$0xff] %v13236_v18 }
 0x182   : > { %v14084_v11 = vadd.f32 %v10840_v61, %v13873_v6  ;;  %v14101_v63 = vadd.f32 %v10949_v3, %v1920_v58  ;;  %v14103_v6 = vadd.f32 %v10951_v15, %v10950_v8  ;;  %440 = vst [vmem:[#allocation2 + $0x1a0] sm:$0xff] %v13236_v18  ;;  %441 = vst [vmem:[#allocation2 + $0x1a8] sm:$0xff] %v13236_v18  ;;  %v13237_v3 = vmov 0.0|0.0  }
 0x183   : > { %442 = vst [vmem:[#allocation2 + $0x1b0] sm:$0xff] %v13236_v18  ;;  %443 = vst [vmem:[#allocation2 + $0x1b8] sm:$0xff] %v13236_v18  ;;  %v2668_v61 = vpack.c.bf16 %v2637_v47, %v2636_v45  ;;  %3972 = vmatprep.mubr.bf16.mxu1 %v13237_v3 }
 0x184   : > { %444 = vst [vmem:[#allocation2 + $0x1c0] sm:$0xff] %v13236_v18  ;;  %445 = vst [vmem:[#allocation2 + $0x1c8] sm:$0xff] %v13236_v18  ;;  %v10969_v57 = vpop.f32.mrb[64].mxu0  ;;  %v14184_v9 = vadd.f32 %v14103_v6, %v14084_v11  ;;  %v12973_v6 = vld [vmem:[%s16557_s3 + $0xb0] sm:$0xff]  }
 0x185   : > { %446 = vst [vmem:[#allocation2 + $0x1d0] sm:$0xff] %v13236_v18  ;;  %447 = vst [vmem:[#allocation2 + $0x1d8] sm:$0xff] %v13236_v18  ;;  %v10970_v34 = vpop.f32.mrb[65].mxu0  ;;  %3973 = vmatmul.mubr.bf16.vlgmr.msra.gmra.mrb[128].mxu1 %v2668_v61 }
 0x186   : > { %448 = vst [vmem:[#allocation2 + $0x1e0] sm:$0xff] %v13236_v18  ;;  %449 = vst [vmem:[#allocation2 + $0x1e8] sm:$0xff] %v13236_v18  ;;  %v10971_v43 = vadd.f32 %v10970_v34, %v10969_v57  ;;  %v10972_v46 = vpop.f32.mrb[66].mxu0  ;;  %v11081_v1 = vpop.f32.mrb[64].mxu1 }
 0x187   : > { %450 = vst [vmem:[#allocation2 + $0x1f0] sm:$0xff] %v13236_v18  ;;  %451 = vst [vmem:[#allocation2 + $0x1f8] sm:$0xff] %v13236_v18  ;;  %v10973_v20 = vpop.f32.mrb[67].mxu0  ;;  %v11082_v54 = vpop.f32.mrb[65].mxu1 }
 0x188   : > { %452 = vst [vmem:[#allocation2 + $0x200] sm:$0xff] %v13236_v18  ;;  %453 = vst [vmem:[#allocation2 + $0x208] sm:$0xff] %v13236_v18  ;;  %v2122_v37 = vadd.f32 %v10971_v43, %v13881_v2  ;;  %v10974_v40 = vadd.f32 %v10973_v20, %v10972_v46  ;;  %v11083_v55 = vadd.f32 %v11082_v54, %v11081_v1  ;;  %v11084_v14 = vpop.f32.mrb[66].mxu1  ;;  %v12970_v2 = vld [vmem:[%s16557_s3 + $0xa8] sm:$0xff]   ;;  %v12975_v1 = vld [vmem:[%s16557_s3 + $0xf8] sm:$0xff]  }
 0x189   : > { %454 = vst [vmem:[#allocation2 + $0x210] sm:$0xff] %v13236_v18  ;;  %455 = vst [vmem:[#allocation2 + $0x218] sm:$0xff] %v13236_v18  ;;  %v11085_v32 = vpop.f32.mrb[67].mxu1  ;;  %11324 = vmatpush3.bf16.msra.mxu0 %v12970_v2 }
 0x18a   : > { %456 = vst [vmem:[#allocation2 + $0x220] sm:$0xff] %v13236_v18  ;;  %457 = vst [vmem:[#allocation2 + $0x228] sm:$0xff] %v13236_v18  ;;  %v2125_v19 = vadd.f32 %v10974_v40, %v13884_v22  ;;  %v11086_v56 = vadd.f32 %v11085_v32, %v11084_v14  ;;  %v14198_v58 = vadd.f32 %v11083_v55, %v2122_v37  ;;  %11325 = vmatprep.subr.bf16.mxu0 %v12971_v27 }
 0x18b   : > { %458 = vst [vmem:[#allocation2 + $0x230] sm:$0xff] %v13236_v18  ;;  %459 = vst [vmem:[#allocation2 + $0x238] sm:$0xff] %v13236_v18 }
 0x18c   : > { %v10975_v0 = vpop.f32.mrb[68].mxu0  ;;  %v14203_v8 = vadd.f32 %v11086_v56, %v2125_v19 }
 0x18d   : > { %v10976_v22 = vpop.f32.mrb[69].mxu0  ;;  %11326 = vmatpush3.bf16.msra.mxu0 %v12973_v6 }
 0x18e   : > { %v10977_v11 = vadd.f32 %v10976_v22, %v10975_v0  ;;  %v10978_v15 = vpop.f32.mrb[70].mxu0  ;;  %v11087_v62 = vpop.f32.mrb[68].mxu1  ;;  %11327 = vmatprep.subr.bf16.mxu0 %v12975_v1  ;;  %v12972_v22 = vld [vmem:[%s16557_s3 + $0x140] sm:$0xff]  }
 0x18f   : > { %v10979_v51 = vpop.f32.mrb[71].mxu0  ;;  %v11088_v57 = vpop.f32.mrb[69].mxu1  ;;  %11425 = vmatprep.subr.bf16.mxu1 %v12972_v22 }
 0x190   : > { %v2130_v18 = vadd.f32 %v10977_v11, %v13897_v30  ;;  %v10980_v26 = vadd.f32 %v10979_v51, %v10978_v15  ;;  %v11089_v34 = vadd.f32 %v11088_v57, %v11087_v62  ;;  %v11090_v43 = vpop.f32.mrb[70].mxu1  ;;  %v12976_v30 = vld [vmem:[%s16557_s3 + $0xb8] sm:$0xff]   ;;  %v12974_v11 = vld [vmem:[%s16557_s3 + $0x100] sm:$0xff]  }
 0x191   : > { %v11091_v59 = vpop.f32.mrb[71].mxu1  ;;  %11328 = vmatpush3.bf16.msra.mxu0 %v12976_v30  ;;  %11426 = vmatpush3.bf16.msra.mxu1 %v12974_v11 }
 0x192   : > { %v2133_v46 = vadd.f32 %v10980_v26, %v13900_v41  ;;  %v11092_v20 = vadd.f32 %v11091_v59, %v11090_v43  ;;  %v14216_v12 = vadd.f32 %v11089_v34, %v2130_v18 }
 0x194   : > { %v10981_v37 = vpop.f32.mrb[72].mxu0  ;;  %v14221_v54 = vadd.f32 %v11092_v20, %v2133_v46 }
 0x195   : > { %v10982_v40 = vpop.f32.mrb[73].mxu0 }
 0x196   : > { %v10983_v55 = vadd.f32 %v10982_v40, %v10981_v37  ;;  %v10984_v41 = vpop.f32.mrb[74].mxu0  ;;  %v11093_v14 = vpop.f32.mrb[72].mxu1  ;;  %v12977_v37 = vld [vmem:[%s16557_s3 + $0x148] sm:$0xff]  }
 0x197   : > { %v10985_v19 = vpop.f32.mrb[75].mxu0  ;;  %v11094_v45 = vpop.f32.mrb[73].mxu1  ;;  %v12978_v40 = vld [vmem:[%s16557_s3 + $0x108] sm:$0xff]   ;;  %11427 = vmatprep.subr.bf16.mxu1 %v12977_v37  ;;  %v12980_v37 = vld [vmem:[%s16557_s3 + $0x110] sm:$0xff]  }
 0x198   : > { %v2138_v32 = vadd.f32 %v10983_v55, %v13909_v25  ;;  %v10986_v42 = vadd.f32 %v10985_v19, %v10984_v41  ;;  %v11095_v47 = vadd.f32 %v11094_v45, %v11093_v14  ;;  %v11096_v56 = vpop.f32.mrb[74].mxu1  ;;  %11428 = vmatpush3.bf16.msra.mxu1 %v12978_v40 }
 0x199   : > { %v11097_v61 = vpop.f32.mrb[75].mxu1 }
 0x19a   : > { %v2141_v2 = vadd.f32 %v10986_v42, %v13914_v52  ;;  %v11098_v0 = vadd.f32 %v11097_v61, %v11096_v56  ;;  %v14225_v3 = vadd.f32 %v11095_v47, %v2138_v32 }
 0x19c   : > { %v10987_v15 = vpop.f32.mrb[76].mxu0  ;;  %v14233_v27 = vadd.f32 %v11098_v0, %v2141_v2 }
 0x19d   : > { %v10988_v25 = vpop.f32.mrb[77].mxu0 }
 0x19e   : > { %v10989_v62 = vadd.f32 %v10988_v25, %v10987_v15  ;;  %v10990_v51 = vpop.f32.mrb[78].mxu0  ;;  %v11099_v52 = vpop.f32.mrb[76].mxu1 }
 0x19f   : > { %v10991_v6 = vpop.f32.mrb[79].mxu0  ;;  %v11100_v57 = vpop.f32.mrb[77].mxu1 }
 0x1a0   : > { %v2146_v18 = vadd.f32 %v10989_v62, %v13930_v16  ;;  %v10992_v26 = vadd.f32 %v10991_v6, %v10990_v51  ;;  %v11101_v34 = vadd.f32 %v11100_v57, %v11099_v52  ;;  %v11102_v43 = vpop.f32.mrb[78].mxu1 }
 0x1a1   : > { %v11103_v59 = vpop.f32.mrb[79].mxu1 }
 0x1a2   : > { %v2149_v46 = vadd.f32 %v10992_v26, %v13935_v39  ;;  %v11104_v1 = vadd.f32 %v11103_v59, %v11102_v43  ;;  %v14237_v20 = vadd.f32 %v11101_v34, %v2146_v18 }
 0x1a4   : > { %v10993_v30 = vpop.f32.mrb[80].mxu0  ;;  %v14245_v55 = vadd.f32 %v11104_v1, %v2149_v46 }
 0x1a5   : > { %v10994_v16 = vpop.f32.mrb[81].mxu0 }
 0x1a6   : > { %v10995_v41 = vadd.f32 %v10994_v16, %v10993_v30  ;;  %v10996_v14 = vpop.f32.mrb[82].mxu0  ;;  %v11105_v39 = vpop.f32.mrb[80].mxu1  ;;  %v12979_v30 = vld [vmem:[%s16557_s3 + $0x150] sm:$0xff]  }
 0x1a7   : > { %v10997_v19 = vpop.f32.mrb[83].mxu0  ;;  %v11106_v45 = vpop.f32.mrb[81].mxu1  ;;  %11429 = vmatprep.subr.bf16.mxu1 %v12979_v30  ;;  %v12982_v30 = vld [vmem:[%s16557_s3 + $0x118] sm:$0xff]  }
 0x1a8   : > { %v2154_v32 = vadd.f32 %v10995_v41, %v13943_v49  ;;  %v10998_v42 = vadd.f32 %v10997_v19, %v10996_v14  ;;  %v11107_v47 = vadd.f32 %v11106_v45, %v11105_v39  ;;  %v11108_v56 = vpop.f32.mrb[82].mxu1  ;;  %11430 = vmatpush3.bf16.msra.mxu1 %v12980_v37 }
 0x1a9   : > { %v11109_v61 = vpop.f32.mrb[83].mxu1 }
 0x1aa   : > { %v2157_v2 = vadd.f32 %v10998_v42, %v13947_v36  ;;  %v11110_v0 = vadd.f32 %v11109_v61, %v11108_v56  ;;  %v14249_v22 = vadd.f32 %v11107_v47, %v2154_v32 }
 0x1ac   : > { %v10999_v11 = vpop.f32.mrb[84].mxu0  ;;  %v14251_v25 = vadd.f32 %v11110_v0, %v2157_v2 }
 0x1ad   : > { %v11000_v15 = vpop.f32.mrb[85].mxu0 }
 0x1ae   : > { %v11001_v62 = vadd.f32 %v11000_v15, %v10999_v11  ;;  %v11002_v51 = vpop.f32.mrb[86].mxu0  ;;  %v11111_v52 = vpop.f32.mrb[84].mxu1 }
 0x1af   : > { %v11003_v6 = vpop.f32.mrb[87].mxu0  ;;  %v11112_v26 = vpop.f32.mrb[85].mxu1 }
 0x1b0   : > { %v2162_v49 = vadd.f32 %v11001_v62, %v13959_v33  ;;  %v11004_v18 = vadd.f32 %v11003_v6, %v11002_v51  ;;  %v11113_v57 = vadd.f32 %v11112_v26, %v11111_v52  ;;  %v11114_v34 = vpop.f32.mrb[86].mxu1 }
 0x1b1   : > { %v11115_v43 = vpop.f32.mrb[87].mxu1 }
 0x1b2   : > { %v2165_v36 = vadd.f32 %v11004_v18, %v13963_v48  ;;  %v11116_v46 = vadd.f32 %v11115_v43, %v11114_v34  ;;  %v14255_v59 = vadd.f32 %v11113_v57, %v2162_v49 }
 0x1b4   : > { %v11005_v1 = vpop.f32.mrb[88].mxu0  ;;  %v14263_v40 = vadd.f32 %v11116_v46, %v2165_v36 }
 0x1b5   : > { %v11006_v33 = vpop.f32.mrb[89].mxu0 }
 0x1b6   : > { %v11007_v16 = vadd.f32 %v11006_v33, %v11005_v1  ;;  %v11008_v41 = vpop.f32.mrb[90].mxu0  ;;  %v11117_v48 = vpop.f32.mrb[88].mxu1  ;;  %v12981_v1 = vld [vmem:[%s16557_s3 + $0x158] sm:$0xff]  }
 0x1b7   : > { %v11009_v14 = vpop.f32.mrb[91].mxu0  ;;  %v11118_v32 = vpop.f32.mrb[89].mxu1  ;;  %11431 = vmatprep.subr.bf16.mxu1 %v12981_v1 }
 0x1b8   : > { %v2170_v39 = vadd.f32 %v11007_v16, %v13969_v24  ;;  %v11010_v19 = vadd.f32 %v11009_v14, %v11008_v41  ;;  %v11119_v42 = vadd.f32 %v11118_v32, %v11117_v48  ;;  %v11120_v45 = vpop.f32.mrb[90].mxu1  ;;  %11432 = vmatpush3.bf16.msra.mxu1 %v12982_v30 }
 0x1b9   : > { %v11121_v56 = vpop.f32.mrb[91].mxu1 }
 0x1ba   : > { %v2173_v47 = vadd.f32 %v11010_v19, %v13973_v44  ;;  %v11122_v2 = vadd.f32 %v11121_v56, %v11120_v45  ;;  %v14267_v61 = vadd.f32 %v11119_v42, %v2170_v39 }
 0x1bc   : > { %v11011_v0 = vpop.f32.mrb[92].mxu0  ;;  %v14269_v15 = vadd.f32 %v11122_v2, %v2173_v47 }
 0x1bd   : > { %v11012_v11 = vpop.f32.mrb[93].mxu0 }
 0x1be   : > { %v11013_v62 = vadd.f32 %v11012_v11, %v11011_v0  ;;  %v11014_v51 = vpop.f32.mrb[94].mxu0  ;;  %v11123_v52 = vpop.f32.mrb[92].mxu1 }
 0x1bf   : > { %v11015_v6 = vpop.f32.mrb[95].mxu0  ;;  %v11124_v18 = vpop.f32.mrb[93].mxu1 }
 0x1c0   : > { %v2178_v24 = vadd.f32 %v11013_v62, %v13985_v10  ;;  %v11016_v49 = vadd.f32 %v11015_v6, %v11014_v51  ;;  %v11125_v26 = vadd.f32 %v11124_v18, %v11123_v52  ;;  %v11126_v57 = vpop.f32.mrb[94].mxu1  ;;  %v12984_v18 = vld [vmem:[%s16557_s3 + $0x120] sm:$0xff]  }
 0x1c1   : > { %v11127_v34 = vpop.f32.mrb[95].mxu1 }
 0x1c2   : > { %v2181_v44 = vadd.f32 %v11016_v49, %v13989_v31  ;;  %v11128_v36 = vadd.f32 %v11127_v34, %v11126_v57  ;;  %v14273_v43 = vadd.f32 %v11125_v26, %v2178_v24 }
 0x1c4   : > { %v11017_v46 = vpop.f32.mrb[96].mxu0  ;;  %v14281_v37 = vadd.f32 %v11128_v36, %v2181_v44 }
 0x1c5   : > { %v11018_v10 = vpop.f32.mrb[97].mxu0 }
 0x1c6   : > { %v11019_v33 = vadd.f32 %v11018_v10, %v11017_v46  ;;  %v11020_v16 = vpop.f32.mrb[98].mxu0  ;;  %v11129_v31 = vpop.f32.mrb[96].mxu1 }
 0x1c7   : > { %v11021_v41 = vpop.f32.mrb[99].mxu0  ;;  %v11130_v39 = vpop.f32.mrb[97].mxu1 }
 0x1c8   : > { %v2186_v48 = vadd.f32 %v11019_v33, %v13995_v7  ;;  %v11022_v14 = vadd.f32 %v11021_v41, %v11020_v16  ;;  %v11131_v19 = vadd.f32 %v11130_v39, %v11129_v31  ;;  %v11132_v32 = vpop.f32.mrb[98].mxu1  ;;  %v12983_v7 = vld [vmem:[%s16557_s3 + $0x160] sm:$0xff]  }
 0x1c9   : > { %v11133_v45 = vpop.f32.mrb[99].mxu1  ;;  %11433 = vmatprep.subr.bf16.mxu1 %v12983_v7 }
 0x1ca   : > { %v2189_v42 = vadd.f32 %v11022_v14, %v13999_v35  ;;  %v11134_v47 = vadd.f32 %v11133_v45, %v11132_v32  ;;  %v14285_v56 = vadd.f32 %v11131_v19, %v2186_v48  ;;  %11434 = vmatpush3.bf16.msra.mxu1 %v12984_v18 }
 0x1cc   : > { %v11023_v2 = vpop.f32.mrb[100].mxu0  ;;  %v14287_v11 = vadd.f32 %v11134_v47, %v2189_v42 }
 0x1cd   : > { %v11024_v0 = vpop.f32.mrb[101].mxu0 }
 0x1ce   : > { %v11025_v62 = vadd.f32 %v11024_v0, %v11023_v2  ;;  %v11026_v51 = vpop.f32.mrb[102].mxu0  ;;  %v11135_v52 = vpop.f32.mrb[100].mxu1 }
 0x1cf   : > { %v11027_v6 = vpop.f32.mrb[103].mxu0  ;;  %v11136_v35 = vpop.f32.mrb[101].mxu1 }
 0x1d0   : > { %v2194_v24 = vadd.f32 %v11025_v62, %v14011_v50  ;;  %v11028_v49 = vadd.f32 %v11027_v6, %v11026_v51  ;;  %v11137_v26 = vadd.f32 %v11136_v35, %v11135_v52  ;;  %v11138_v57 = vpop.f32.mrb[102].mxu1 }
 0x1d1   : > { %v11139_v34 = vpop.f32.mrb[103].mxu1 }
 0x1d2   : > { %v2197_v44 = vadd.f32 %v11028_v49, %v14015_v23  ;;  %v11140_v36 = vadd.f32 %v11139_v34, %v11138_v57  ;;  %v14297_v46 = vadd.f32 %v11137_v26, %v2194_v24  ;;  %v12986_v49 = vld [vmem:[%s16557_s3 + $0x128] sm:$0xff]  }
 0x1d4   : > { %v11029_v1 = vpop.f32.mrb[104].mxu0  ;;  %v14299_v10 = vadd.f32 %v11140_v36, %v2197_v44 }
 0x1d5   : > { %v11030_v30 = vpop.f32.mrb[105].mxu0 }
 0x1d6   : > { %v11031_v50 = vadd.f32 %v11030_v30, %v11029_v1  ;;  %v11032_v33 = vpop.f32.mrb[106].mxu0  ;;  %v11141_v16 = vpop.f32.mrb[104].mxu1 }
 0x1d7   : > { %v11033_v31 = vpop.f32.mrb[107].mxu0  ;;  %v11142_v14 = vpop.f32.mrb[105].mxu1 }
 0x1d8   : > { %v2202_v41 = vadd.f32 %v11031_v50, %v14021_v17  ;;  %v11034_v48 = vadd.f32 %v11033_v31, %v11032_v33  ;;  %v11143_v39 = vadd.f32 %v11142_v14, %v11141_v16  ;;  %v11144_v19 = vpop.f32.mrb[106].mxu1  ;;  %v12985_v17 = vld [vmem:[%s16557_s3 + $0x168] sm:$0xff]  }
 0x1d9   : > { %v11145_v32 = vpop.f32.mrb[107].mxu1  ;;  %11435 = vmatprep.subr.bf16.mxu1 %v12985_v17 }
 0x1da   : > { %v2205_v23 = vadd.f32 %v11034_v48, %v14023_v29  ;;  %v11146_v42 = vadd.f32 %v11145_v32, %v11144_v19  ;;  %v14303_v45 = vadd.f32 %v11143_v39, %v2202_v41  ;;  %11436 = vmatpush3.bf16.msra.mxu1 %v12986_v49 }
 0x1dc   : > { %v11035_v47 = vpop.f32.mrb[108].mxu0  ;;  %v14305_v0 = vadd.f32 %v11146_v42, %v2205_v23 }
 0x1dd   : > { %v11036_v2 = vpop.f32.mrb[109].mxu0 }
 0x1de   : > { %v11037_v62 = vadd.f32 %v11036_v2, %v11035_v47  ;;  %v11038_v51 = vpop.f32.mrb[110].mxu0  ;;  %v11147_v52 = vpop.f32.mrb[108].mxu1 }
 0x1df   : > { %v11039_v6 = vpop.f32.mrb[111].mxu0  ;;  %v11148_v29 = vpop.f32.mrb[109].mxu1 }
 0x1e0   : > { %v2210_v7 = vadd.f32 %v11037_v62, %v14036_v60  ;;  %v11040_v24 = vadd.f32 %v11039_v6, %v11038_v51  ;;  %v11149_v35 = vadd.f32 %v11148_v29, %v11147_v52  ;;  %v11150_v18 = vpop.f32.mrb[110].mxu1 }
 0x1e1   : > { %v11151_v57 = vpop.f32.mrb[111].mxu1 }
 0x1e2   : > { %v2213_v26 = vadd.f32 %v11040_v24, %v14038_v21  ;;  %v11152_v44 = vadd.f32 %v11151_v57, %v11150_v18  ;;  %v14315_v34 = vadd.f32 %v11149_v35, %v2210_v7  ;;  %v12988_v24 = vld [vmem:[%s16557_s3 + $0x130] sm:$0xff]  }
 0x1e4   : > { %v11041_v36 = vpop.f32.mrb[112].mxu0  ;;  %v14317_v30 = vadd.f32 %v11152_v44, %v2213_v26 }
 0x1e5   : > { %v11042_v1 = vpop.f32.mrb[113].mxu0 }
 0x1e6   : > { %v11043_v60 = vadd.f32 %v11042_v1, %v11041_v36  ;;  %v11044_v50 = vpop.f32.mrb[114].mxu0  ;;  %v11153_v33 = vpop.f32.mrb[112].mxu1 }
 0x1e7   : > { %v11045_v16 = vpop.f32.mrb[115].mxu0  ;;  %v11154_v48 = vpop.f32.mrb[113].mxu1 }
 0x1e8   : > { %v2218_v31 = vadd.f32 %v11043_v60, %v14042_v53  ;;  %v11046_v41 = vadd.f32 %v11045_v16, %v11044_v50  ;;  %v11155_v14 = vadd.f32 %v11154_v48, %v11153_v33  ;;  %v11156_v39 = vpop.f32.mrb[114].mxu1  ;;  %v12987_v53 = vld [vmem:[%s16557_s3 + $0x170] sm:$0xff]   ;;  %v12989_v16 = vld [vmem:[%s16557_s3 + $0x1c0] sm:$0xff]  }
 0x1e9   : > { %v11157_v19 = vpop.f32.mrb[115].mxu1  ;;  %11437 = vmatprep.subr.bf16.mxu1 %v12987_v53  ;;  %11537 = vmatprep.subr.bf16.mxu0 %v12989_v16 }
 0x1ea   : > { %v2221_v21 = vadd.f32 %v11046_v41, %v14044_v4  ;;  %v11158_v23 = vadd.f32 %v11157_v19, %v11156_v39  ;;  %v14321_v32 = vadd.f32 %v11155_v14, %v2218_v31  ;;  %11438 = vmatpush3.bf16.msra.mxu1 %v12988_v24 }
 0x1ec   : > { %v11047_v42 = vpop.f32.mrb[116].mxu0  ;;  %v14323_v2 = vadd.f32 %v11158_v23, %v2221_v21 }
 0x1ed   : > { %v11048_v47 = vpop.f32.mrb[117].mxu0 }
 0x1ee   : > { %v11049_v62 = vadd.f32 %v11048_v47, %v11047_v42  ;;  %v11050_v51 = vpop.f32.mrb[118].mxu0  ;;  %v11159_v52 = vpop.f32.mrb[116].mxu1 }
 0x1ef   : > { %v11051_v6 = vpop.f32.mrb[119].mxu0  ;;  %v11160_v4 = vpop.f32.mrb[117].mxu1 }
 0x1f0   : > { %v2226_v17 = vadd.f32 %v11049_v62, %v14054_v13  ;;  %v11052_v7 = vadd.f32 %v11051_v6, %v11050_v51  ;;  %v11161_v29 = vadd.f32 %v11160_v4, %v11159_v52  ;;  %v11162_v49 = vpop.f32.mrb[118].mxu1  ;;  %v12995_v4 = vld [vmem:[%s16557_s3 + $0x138] sm:$0xff]  }
 0x1f1   : > { %v11163_v18 = vpop.f32.mrb[119].mxu1 }
 0x1f2   : > { %v2229_v35 = vadd.f32 %v11052_v7, %v14056_v28  ;;  %v11164_v26 = vadd.f32 %v11163_v18, %v11162_v49  ;;  %v14333_v57 = vadd.f32 %v11161_v29, %v2226_v17 }
 0x1f4   : > { %v11053_v44 = vpop.f32.mrb[120].mxu0  ;;  %v14335_v1 = vadd.f32 %v11164_v26, %v2229_v35 }
 0x1f5   : > { %v11054_v36 = vpop.f32.mrb[121].mxu0 }
 0x1f6   : > { %v11055_v13 = vadd.f32 %v11054_v36, %v11053_v44  ;;  %v11056_v60 = vpop.f32.mrb[122].mxu0  ;;  %v11165_v50 = vpop.f32.mrb[120].mxu1 }
 0x1f7   : > { %v11057_v33 = vpop.f32.mrb[123].mxu0  ;;  %v11166_v41 = vpop.f32.mrb[121].mxu1 }
 0x1f8   : > { %v2234_v31 = vadd.f32 %v11055_v13, %v14069_v38  ;;  %v11058_v28 = vadd.f32 %v11057_v33, %v11056_v60  ;;  %v11167_v48 = vadd.f32 %v11166_v41, %v11165_v50  ;;  %v11168_v14 = vpop.f32.mrb[122].mxu1  ;;  %v12993_v38 = vld [vmem:[%s16557_s3 + $0x178] sm:$0xff]  }
 0x1f9   : > { %v11169_v21 = vpop.f32.mrb[123].mxu1  ;;  %11439 = vmatprep.subr.bf16.mxu1 %v12993_v38 }
 0x1fa   : > { %v2237_v39 = vadd.f32 %v11058_v28, %v14074_v5  ;;  %v11170_v19 = vadd.f32 %v11169_v21, %v11168_v14  ;;  %v14342_v23 = vadd.f32 %v11167_v48, %v2234_v31  ;;  %11440 = vmatpush3.bf16.msra.mxu1 %v12995_v4 }
 0x1fc   : > { %v11059_v42 = vpop.f32.mrb[124].mxu0  ;;  %v14344_v62 = vadd.f32 %v11170_v19, %v2237_v39 }
 0x1fd   : > { %v11060_v47 = vpop.f32.mrb[125].mxu0 }
 0x1fe   : > { %v11061_v51 = vadd.f32 %v11060_v47, %v11059_v42  ;;  %v11062_v52 = vpop.f32.mrb[126].mxu0  ;;  %v11171_v6 = vpop.f32.mrb[124].mxu1  ;;  %v14372_v42 = vld [vmem:[%s16557_s3 + $0x200] sm:$0xff]  }
 0x1ff   : > { %v11063_v53 = vpop.f32.mrb[127].mxu0  ;;  %v11172_v5 = vpop.f32.mrb[125].mxu1  ;;  %12683 = vmatprep.subr.bf16.mxu1 %v14372_v42 }
 0x200   : > { %v2242_v17 = vadd.f32 %v11061_v51, %v14101_v63  ;;  %v11064_v7 = vadd.f32 %v11063_v53, %v11062_v52  ;;  %v11173_v24 = vadd.f32 %v11172_v5, %v11171_v6  ;;  %v11174_v29 = vpop.f32.mrb[126].mxu1  ;;  %v2764_v52 = vld [vmem:[#allocation2 + $0x9] sm:$0xff]  ;;  %v2765_v6 = vld [vmem:[#allocation2 + $0x11] sm:$0xff] }
 0x201   : > { %v11175_v35 = vpop.f32.mrb[127].mxu1  ;;  %v2796_v5 = vpack.c.bf16 %v2765_v6, %v2764_v52  ;;  %v12996_v52 = vld [vmem:[%s16557_s3 + $0x190] sm:$0xff]  }
 0x202   : > { %v2245_v49 = vadd.f32 %v11064_v7, %v14184_v9  ;;  %v11176_v18 = vadd.f32 %v11175_v35, %v11174_v29  ;;  %v14354_v26 = vadd.f32 %v11173_v24, %v2242_v17 }
 0x204   : > { %v12653_v44 = vpop.f32.mrb[128].mxu0  ;;  %v14357_v13 = vadd.f32 %v11176_v18, %v2245_v49 }
 0x205   : > { %v2452_v36 = vadd.f32 %v12653_v44, %v14216_v12  ;;  %v2443_v63 = vpop.f32.mrb[129].mxu0 }
 0x206   : > { %v2444_v60 = vadd.f32 %v2443_v63, %v14198_v58  ;;  %v12654_v50 = vpop.f32.mrb[130].mxu0 }
 0x207   : > { %v2572_v33 = vmax.f32 %v2452_v36, 0.0  ;;  %v2455_v16 = vadd.f32 %v12654_v50, %v14221_v54  ;;  %v2446_v31 = vpop.f32.mrb[131].mxu0  ;;  %v12990_v36 = vld [vmem:[%s16557_s3 + $0x180] sm:$0xff]  }
 0x208   : > { %v2570_v9 = vmax.f32 %v2444_v60, 0.0  ;;  %v2447_v28 = vadd.f32 %v2446_v31, %v14203_v8 }
 0x209   : > { %2606 = vst.msk [vmem:[#allocation2 + $0x48] sm:$0xff] %vm2603_vm0, %v2572_v33  ;;  %v2573_v41 = vmax.f32 %v2455_v16, 0.0 }
 0x20a   : > { %2604 = vst.msk [vmem:[#allocation2 + $0x28] sm:$0xff] %vm2603_vm0, %v2570_v9  ;;  %v2571_v12 = vmax.f32 %v2447_v28, 0.0 }
 0x20b   : > { %2607 = vst.msk [vmem:[#allocation2 + $0x50] sm:$0xff] %vm2603_vm0, %v2573_v41 }
 0x20c   : > { %2605 = vst.msk [vmem:[#allocation2 + $0x30] sm:$0xff] %vm2603_vm0, %v2571_v12  ;;  %v12657_v48 = vpop.f32.mrb[132].mxu0  ;;  %v12992_v12 = vld [vmem:[%s16557_s3 + $0x188] sm:$0xff]  }
 0x20d   : > { %v2468_v58 = vadd.f32 %v12657_v48, %v14237_v20  ;;  %v2459_v14 = vpop.f32.mrb[133].mxu0 }
 0x20e   : > { %v2460_v54 = vadd.f32 %v2459_v14, %v14225_v3  ;;  %v12658_v39 = vpop.f32.mrb[134].mxu0 }
 0x20f   : > { %v2576_v21 = vmax.f32 %v2468_v58, 0.0  ;;  %v2471_v8 = vadd.f32 %v12658_v39, %v14245_v55  ;;  %v2462_v19 = vpop.f32.mrb[135].mxu0 }
 0x210   : > { %v2574_v47 = vmax.f32 %v2460_v54, 0.0  ;;  %v2463_v51 = vadd.f32 %v2462_v19, %v14233_v27  ;;  %v2704_v18 = vld [vmem:[#allocation2 + $0x48] sm:$0xff] }
 0x211   : > { %2610 = vst.msk [vmem:[#allocation2 + $0x88] sm:$0xff] %vm2603_vm0, %v2576_v21  ;;  %v2577_v20 = vmax.f32 %v2471_v8, 0.0  ;;  %v2702_v55 = vld [vmem:[#allocation2 + $0x28] sm:$0xff] }
 0x212   : > { %2608 = vst.msk [vmem:[#allocation2 + $0x68] sm:$0xff] %vm2603_vm0, %v2574_v47  ;;  %v2575_v3 = vmax.f32 %v2463_v51, 0.0  ;;  %v2828_v53 = vld [vmem:[#allocation2 + $0x27] sm:$0xff]  ;;  %v2705_v38 = vld [vmem:[#allocation2 + $0x50] sm:$0xff] }
 0x213   : > { %2611 = vst.msk [vmem:[#allocation2 + $0x90] sm:$0xff] %vm2603_vm0, %v2577_v20  ;;  %v2703_v17 = vld [vmem:[#allocation2 + $0x30] sm:$0xff]  ;;  %v2830_v44 = vld [vmem:[#allocation2 + $0x47] sm:$0xff]  ;;  %v14388_v50 = vpack.c.bf16 %v2705_v38, %v2704_v18 }
 0x214   : > { %v2829_v7 = vld [vmem:[#allocation2 + $0x2f] sm:$0xff]  ;;  %2609 = vst.msk [vmem:[#allocation2 + $0x70] sm:$0xff] %vm2603_vm0, %v2575_v3  ;;  %v12661_v27 = vpop.f32.mrb[136].mxu0  ;;  %v14380_v24 = vpack.c.bf16 %v2703_v17, %v2702_v55 }
 0x215   : > { %v2831_v4 = vld [vmem:[#allocation2 + $0x4f] sm:$0xff]  ;;  %v2860_v29 = vpack.c.bf16 %v2829_v7, %v2828_v53  ;;  %v2484_v49 = vadd.f32 %v12661_v27, %v14255_v59  ;;  %v2475_v35 = vpop.f32.mrb[137].mxu0 }
 0x216   : > { %v2476_v63 = vadd.f32 %v2475_v35, %v14249_v22  ;;  %v12662_v60 = vpop.f32.mrb[138].mxu0  ;;  %3980 = vmatprep.mubr.bf16.mxu1 %v14380_v24  ;;  %v14390_v33 = vpack.c.bf16 %v2831_v4, %v2830_v44  ;;  %v12991_v59 = vld [vmem:[%s16557_s3 + $0x1c8] sm:$0xff]   ;;  %v2767_v58 = vld [vmem:[#allocation2 + $0x31] sm:$0xff] }
 0x217   : > { %4133 = vmatprep.mubr.bf16.mxu0 %v2860_v29  ;;  %v2580_v16 = vmax.f32 %v2484_v49, 0.0  ;;  %v2487_v31 = vadd.f32 %v12662_v60, %v14263_v40  ;;  %v2478_v9 = vpop.f32.mrb[139].mxu0  ;;  %3981 = vmatmul.mubr.bf16.gmra.mrb[132].mxu1 %v2860_v29  ;;  %v2766_v48 = vld [vmem:[#allocation2 + $0x29] sm:$0xff]  ;;  %v2769_v29 = vld [vmem:[#allocation2 + $0x51] sm:$0xff] }
 0x218   : > { %4134 = vmatmul.mubr.bf16.vlgmr.msra.gmra.mrb[160].mxu0 %v2796_v5  ;;  %v2578_v28 = vmax.f32 %v2476_v63, 0.0  ;;  %v2479_v22 = vadd.f32 %v2478_v9, %v14251_v25  ;;  %3988 = vmatprep.mubr.bf16.mxu1 %v14388_v50  ;;  %v12994_v25 = vld [vmem:[%s16557_s3 + $0x1d0] sm:$0xff]   ;;  %v14410_v19 = vpack.c.bf16 %v2767_v58, %v2766_v48  ;;  %v2708_v60 = vld [vmem:[#allocation2 + $0x88] sm:$0xff] }
 0x219   : > { %4141 = vmatprep.mubr.bf16.mxu0 %v14390_v33  ;;  %2614 = vst.msk [vmem:[#allocation2 + $0xc8] sm:$0xff] %vm2603_vm0, %v2580_v16  ;;  %v2581_v41 = vmax.f32 %v2487_v31, 0.0  ;;  %11538 = vmatpush3.bf16.msra.mxu0 %v12990_v36  ;;  %v2706_v47 = vld [vmem:[#allocation2 + $0x68] sm:$0xff]  ;;  %v13000_v16 = vld [vmem:[%s16557_s3 + $0x1a0] sm:$0xff]  }
 0x21a   : > { %2612 = vst.msk [vmem:[#allocation2 + $0xa8] sm:$0xff] %vm2603_vm0, %v2578_v28  ;;  %v2579_v40 = vmax.f32 %v2479_v22, 0.0  ;;  %11539 = vmatprep.subr.bf16.mxu0 %v12991_v59  ;;  %v2832_v51 = vld [vmem:[#allocation2 + $0x67] sm:$0xff]  ;;  %v2709_v49 = vld [vmem:[#allocation2 + $0x90] sm:$0xff] }
 0x21b   : > { %2615 = vst.msk [vmem:[#allocation2 + $0xd0] sm:$0xff] %vm2603_vm0, %v2581_v41  ;;  %v2707_v14 = vld [vmem:[#allocation2 + $0x70] sm:$0xff]  ;;  %v2834_v59 = vld [vmem:[#allocation2 + $0x87] sm:$0xff]  ;;  %v14446_v28 = vpack.c.bf16 %v2709_v49, %v2708_v60 }
 0x21c   : > { %v2833_v54 = vld [vmem:[#allocation2 + $0x6f] sm:$0xff]  ;;  %2613 = vst.msk [vmem:[#allocation2 + $0xb0] sm:$0xff] %vm2603_vm0, %v2579_v40  ;;  %v12665_v39 = vpop.f32.mrb[140].mxu0  ;;  %v14416_v3 = vpack.c.bf16 %v2707_v14, %v2706_v47 }
 0x21d   : > { %v2500_v21 = vadd.f32 %v12665_v39, %v14273_v43  ;;  %v2491_v8 = vpop.f32.mrb[141].mxu0  ;;  %11540 = vmatpush3.bf16.msra.mxu0 %v12992_v12  ;;  %v14418_v55 = vpack.c.bf16 %v2833_v54, %v2832_v51  ;;  %v12997_v43 = vld [vmem:[%s16557_s3 + $0x1d8] sm:$0xff]   ;;  %v2768_v27 = vld [vmem:[#allocation2 + $0x49] sm:$0xff] }
 0x21e   : > { %v2492_v6 = vadd.f32 %v2491_v8, %v14267_v61  ;;  %v12666_v20 = vpop.f32.mrb[142].mxu0  ;;  %11541 = vmatprep.subr.bf16.mxu0 %v12994_v25  ;;  %v2835_v35 = vld [vmem:[#allocation2 + $0x8f] sm:$0xff]  ;;  %v14440_v63 = vpack.c.bf16 %v2769_v29, %v2768_v27  ;;  %v13007_v29 = vld [vmem:[%s16557_s3 + $0x1b8] sm:$0xff]  }
 0x21f   : > { %v2584_v53 = vmax.f32 %v2500_v21, 0.0  ;;  %v2503_v38 = vadd.f32 %v12666_v20, %v14281_v37  ;;  %v2494_v17 = vpop.f32.mrb[143].mxu0  ;;  %3989 = vmatmul.mubr.bf16.gmra.mrb[136].mxu1 %v14390_v33  ;;  %v12998_v37 = vld [vmem:[%s16557_s3 + $0x198] sm:$0xff]   ;;  %v14448_v22 = vpack.c.bf16 %v2835_v35, %v2834_v59  ;;  %v14463_v25 = vld [vmem:[#allocation2 + $0x69] sm:$0xff] }
 0x220   : > { %4142 = vmatmul.mubr.bf16.gmra.mrb[164].mxu0 %v14410_v19  ;;  %v2582_v7 = vmax.f32 %v2492_v6, 0.0  ;;  %v2495_v61 = vadd.f32 %v2494_v17, %v14269_v15  ;;  %3996 = vmatprep.mubr.bf16.mxu1 %v14416_v3  ;;  %v12999_v15 = vld [vmem:[%s16557_s3 + $0x1e0] sm:$0xff]   ;;  %v14466_v54 = vld [vmem:[#allocation2 + $0x71] sm:$0xff]  ;;  %v2712_v59 = vld [vmem:[#allocation2 + $0xc8] sm:$0xff] }
 0x221   : > { %4149 = vmatprep.mubr.bf16.mxu0 %v14418_v55  ;;  %2618 = vst.msk [vmem:[#allocation2 + $0x108] sm:$0xff] %vm2603_vm0, %v2584_v53  ;;  %v2585_v5 = vmax.f32 %v2503_v38, 0.0  ;;  %11542 = vmatpush3.bf16.msra.mxu0 %v12996_v52  ;;  %v2799_v52 = vpack.c.bf16 %v14466_v54, %v14463_v25  ;;  %v2710_v6 = vld [vmem:[#allocation2 + $0xa8] sm:$0xff]  ;;  %v2773_v49 = vld [vmem:[#allocation2 + $0x91] sm:$0xff] }
 0x222   : > { %2616 = vst.msk [vmem:[#allocation2 + $0xe8] sm:$0xff] %vm2603_vm0, %v2582_v7  ;;  %v2583_v4 = vmax.f32 %v2495_v61, 0.0  ;;  %11543 = vmatprep.subr.bf16.mxu0 %v12997_v43  ;;  %v2836_v20 = vld [vmem:[#allocation2 + $0xa7] sm:$0xff]  ;;  %v13005_v43 = vld [vmem:[%s16557_s3 + $0x1b0] sm:$0xff]  }
 0x223   : > { %2619 = vst.msk [vmem:[#allocation2 + $0x110] sm:$0xff] %vm2603_vm0, %v2585_v5  ;;  %v2711_v39 = vld [vmem:[#allocation2 + $0xb0] sm:$0xff] }
 0x224   : > { %2617 = vst.msk [vmem:[#allocation2 + $0xf0] sm:$0xff] %vm2603_vm0, %v2583_v4  ;;  %v12669_v18 = vpop.f32.mrb[144].mxu0  ;;  %v2837_v21 = vld [vmem:[#allocation2 + $0xaf] sm:$0xff]  ;;  %v14480_v17 = vpack.c.bf16 %v2711_v39, %v2710_v6 }
 0x225   : > { %v2516_v44 = vadd.f32 %v12669_v18, %v14297_v46  ;;  %v2507_v36 = vpop.f32.mrb[145].mxu0  ;;  %11544 = vmatpush3.bf16.msra.mxu0 %v12998_v37  ;;  %v13001_v46 = vld [vmem:[%s16557_s3 + $0x1e8] sm:$0xff]   ;;  %v14482_v7 = vpack.c.bf16 %v2837_v21, %v2836_v20 }
 0x226   : > { %v2508_v31 = vadd.f32 %v2507_v36, %v14285_v56  ;;  %v12670_v9 = vpop.f32.mrb[146].mxu0  ;;  %11545 = vmatprep.subr.bf16.mxu0 %v12999_v15  ;;  %v2772_v15 = vld [vmem:[#allocation2 + $0x89] sm:$0xff] }
 0x227   : > { %v2588_v41 = vmax.f32 %v2516_v44, 0.0  ;;  %v2519_v12 = vadd.f32 %v12670_v9, %v14299_v10  ;;  %v2510_v40 = vpop.f32.mrb[147].mxu0  ;;  %3997 = vmatmul.mubr.bf16.gmra.mrb[140].mxu1 %v14418_v55  ;;  %v13002_v10 = vld [vmem:[%s16557_s3 + $0x1a8] sm:$0xff]   ;;  %v14500_v60 = vpack.c.bf16 %v2773_v49, %v2772_v15 }
 0x228   : > { %4150 = vmatmul.mubr.bf16.gmra.mrb[168].mxu0 %v14440_v63  ;;  %v2586_v48 = vmax.f32 %v2508_v31, 0.0  ;;  %v2511_v56 = vadd.f32 %v2510_v40, %v14287_v11  ;;  %4004 = vmatprep.mubr.bf16.mxu1 %v14446_v28  ;;  %v13003_v11 = vld [vmem:[%s16557_s3 + $0x1f0] sm:$0xff]  }
 0x229   : > { %4157 = vmatprep.mubr.bf16.mxu0 %v14448_v22  ;;  %2622 = vst.msk [vmem:[#allocation2 + $0x148] sm:$0xff] %vm2603_vm0, %v2588_v41  ;;  %v2589_v58 = vmax.f32 %v2519_v12, 0.0  ;;  %11546 = vmatpush3.bf16.msra.mxu0 %v13000_v16  ;;  %v2839_v35 = vld [vmem:[#allocation2 + $0xcf] sm:$0xff]  ;;  %v2838_v16 = vld [vmem:[#allocation2 + $0xc7] sm:$0xff] }
 0x22a   : > { %2620 = vst.msk [vmem:[#allocation2 + $0x128] sm:$0xff] %vm2603_vm0, %v2586_v48  ;;  %v2587_v14 = vmax.f32 %v2511_v56, 0.0  ;;  %11547 = vmatprep.subr.bf16.mxu0 %v13001_v46  ;;  %v14505_v41 = vpack.c.bf16 %v2839_v35, %v2838_v16 }
 0x22b   : > { %2623 = vst.msk [vmem:[#allocation2 + $0x150] sm:$0xff] %vm2603_vm0, %v2589_v58  ;;  %v2778_v49 = vld [vmem:[#allocation2 + $0xe9] sm:$0xff] }
 0x22c   : > { %2621 = vst.msk [vmem:[#allocation2 + $0x130] sm:$0xff] %vm2603_vm0, %v2587_v14  ;;  %v12673_v8 = vpop.f32.mrb[148].mxu0  ;;  %v2715_v14 = vld [vmem:[#allocation2 + $0xf0] sm:$0xff] }
 0x22d   : > { %v2532_v47 = vadd.f32 %v12673_v8, %v14315_v34  ;;  %v2523_v51 = vpop.f32.mrb[149].mxu0  ;;  %11548 = vmatpush3.bf16.msra.mxu0 %v13002_v10  ;;  %v13006_v34 = vld [vmem:[%s16557_s3 + $0x1f8] sm:$0xff]   ;;  %v2774_v10 = vld [vmem:[#allocation2 + $0xa9] sm:$0xff] }
 0x22e   : > { %v2524_v53 = vadd.f32 %v2523_v51, %v14303_v45  ;;  %v12674_v38 = vpop.f32.mrb[150].mxu0  ;;  %11549 = vmatprep.subr.bf16.mxu0 %v13003_v11  ;;  %v2841_v11 = vld [vmem:[#allocation2 + $0xef] sm:$0xff]  ;;  %v2840_v51 = vld [vmem:[#allocation2 + $0xe7] sm:$0xff] }
 0x22f   : > { %v2592_v61 = vmax.f32 %v2532_v47, 0.0  ;;  %v2535_v5 = vadd.f32 %v12674_v38, %v14317_v30  ;;  %v2526_v37 = vpop.f32.mrb[151].mxu0  ;;  %4005 = vmatmul.mubr.bf16.gmra.mrb[144].mxu1 %v14448_v22  ;;  %v2714_v47 = vld [vmem:[#allocation2 + $0xe8] sm:$0xff] }
 0x230   : > { %4158 = vmatmul.mubr.bf16.gmra.mrb[172].mxu0 %v2799_v52  ;;  %v2590_v4 = vmax.f32 %v2524_v53, 0.0  ;;  %v2527_v45 = vadd.f32 %v2526_v37, %v14305_v0  ;;  %4012 = vmatprep.mubr.bf16.mxu1 %v14480_v17  ;;  %v2713_v0 = vld [vmem:[#allocation2 + $0xd0] sm:$0xff]  ;;  %v14521_v20 = vpack.c.bf16 %v2715_v14, %v2714_v47 }
 0x231   : > { %4165 = vmatprep.mubr.bf16.mxu0 %v14482_v7  ;;  %2626 = vst.msk [vmem:[#allocation2 + $0x188] sm:$0xff] %vm2603_vm0, %v2592_v61  ;;  %v2593_v27 = vmax.f32 %v2535_v5, 0.0  ;;  %11550 = vmatpush3.bf16.msra.mxu0 %v13005_v43  ;;  %v14503_v46 = vpack.c.bf16 %v2713_v0, %v2712_v59  ;;  %v14523_v43 = vpack.c.bf16 %v2841_v11, %v2840_v51  ;;  %v2776_v37 = vld [vmem:[#allocation2 + $0xc9] sm:$0xff]  ;;  %v2779_v0 = vld [vmem:[#allocation2 + $0xf1] sm:$0xff] }
 0x232   : > { %2624 = vst.msk [vmem:[#allocation2 + $0x168] sm:$0xff] %vm2603_vm0, %v2590_v4  ;;  %v2591_v30 = vmax.f32 %v2527_v45, 0.0  ;;  %11551 = vmatprep.subr.bf16.mxu0 %v13006_v34  ;;  %v2717_v4 = vld [vmem:[#allocation2 + $0x110] sm:$0xff]  ;;  %v2844_v59 = vld [vmem:[#allocation2 + $0x127] sm:$0xff] }
 0x233   : > { %2627 = vst.msk [vmem:[#allocation2 + $0x190] sm:$0xff] %vm2603_vm0, %v2593_v27  ;;  %v2843_v45 = vld [vmem:[#allocation2 + $0x10f] sm:$0xff] }
 0x234   : > { %2625 = vst.msk [vmem:[#allocation2 + $0x170] sm:$0xff] %vm2603_vm0, %v2591_v30  ;;  %v12677_v18 = vpop.f32.mrb[152].mxu0  ;;  %v2719_v35 = vld [vmem:[#allocation2 + $0x130] sm:$0xff] }
 0x235   : > { %v2548_v44 = vadd.f32 %v12677_v18, %v14333_v57  ;;  %v2539_v36 = vpop.f32.mrb[153].mxu0  ;;  %11552 = vmatpush3.bf16.msra.mxu0 %v13007_v29  ;;  %v2842_v29 = vld [vmem:[#allocation2 + $0x107] sm:$0xff]  ;;  %v2845_v18 = vld [vmem:[#allocation2 + $0x12f] sm:$0xff] }
 0x236   : > { %v2540_v31 = vadd.f32 %v2539_v36, %v14321_v32  ;;  %v12678_v9 = vpop.f32.mrb[154].mxu0  ;;  %v14539_v15 = vpack.c.bf16 %v2843_v45, %v2842_v29  ;;  %v2718_v36 = vld [vmem:[#allocation2 + $0x128] sm:$0xff]  ;;  %v2783_v14 = vld [vmem:[#allocation2 + $0x131] sm:$0xff] }
 0x237   : > { %v2596_v12 = vmax.f32 %v2548_v44, 0.0  ;;  %v2551_v40 = vadd.f32 %v12678_v9, %v14335_v1  ;;  %v2542_v48 = vpop.f32.mrb[155].mxu0  ;;  %4013 = vmatmul.mubr.bf16.gmra.mrb[148].mxu1 %v14482_v7  ;;  %v2775_v1 = vld [vmem:[#allocation2 + $0xb1] sm:$0xff]  ;;  %v14545_v44 = vpack.c.bf16 %v2779_v0, %v2778_v49  ;;  %v14547_v16 = vpack.c.bf16 %v2719_v35, %v2718_v36  ;;  %v2780_v9 = vld [vmem:[#allocation2 + $0x109] sm:$0xff] }
 0x238   : > { %4166 = vmatmul.mubr.bf16.gmra.mrb[176].mxu0 %v14500_v60  ;;  %v2594_v57 = vmax.f32 %v2540_v31, 0.0  ;;  %v2543_v56 = vadd.f32 %v2542_v48, %v14323_v2  ;;  %4020 = vmatprep.mubr.bf16.mxu1 %v14503_v46  ;;  %v14518_v8 = vpack.c.bf16 %v2775_v1, %v2774_v10  ;;  %v14549_v31 = vpack.c.bf16 %v2845_v18, %v2844_v59  ;;  %v2847_v48 = vld [vmem:[#allocation2 + $0x14f] sm:$0xff] }
 0x239   : > { %4173 = vmatprep.mubr.bf16.mxu0 %v14505_v41  ;;  %2630 = vst.msk [vmem:[#allocation2 + $0x1c8] sm:$0xff] %vm2603_vm0, %v2596_v12  ;;  %v2597_v32 = vmax.f32 %v2551_v40, 0.0  ;;  %v2781_v12 = vld [vmem:[#allocation2 + $0x111] sm:$0xff]  ;;  %v2782_v1 = vld [vmem:[#allocation2 + $0x129] sm:$0xff] }
 0x23a   : > { %2628 = vst.msk [vmem:[#allocation2 + $0x1a8] sm:$0xff] %vm2603_vm0, %v2594_v57  ;;  %v2595_v58 = vmax.f32 %v2543_v56, 0.0  ;;  %v2721_v40 = vld [vmem:[#allocation2 + $0x150] sm:$0xff]  ;;  %v14555_v57 = vpack.c.bf16 %v2781_v12, %v2780_v9  ;;  %v2720_v56 = vld [vmem:[#allocation2 + $0x148] sm:$0xff] }
 0x23b   : > { %2631 = vst.msk [vmem:[#allocation2 + $0x1d0] sm:$0xff] %vm2603_vm0, %v2597_v32  ;;  %v2846_v32 = vld [vmem:[#allocation2 + $0x147] sm:$0xff]  ;;  %v2723_v11 = vld [vmem:[#allocation2 + $0x170] sm:$0xff] }
 0x23c   : > { %2629 = vst.msk [vmem:[#allocation2 + $0x1b0] sm:$0xff] %vm2603_vm0, %v2595_v58  ;;  %v12681_v39 = vpop.f32.mrb[156].mxu0  ;;  %v14557_v58 = vpack.c.bf16 %v2721_v40, %v2720_v56  ;;  %v14559_v10 = vpack.c.bf16 %v2847_v48, %v2846_v32  ;;  %v2848_v47 = vld [vmem:[#allocation2 + $0x167] sm:$0xff]  ;;  %v2787_v35 = vld [vmem:[#allocation2 + $0x171] sm:$0xff] }
 0x23d   : > { %v2564_v2 = vadd.f32 %v12681_v39, %v14354_v26  ;;  %v2555_v21 = vpop.f32.mrb[157].mxu0  ;;  %v2849_v39 = vld [vmem:[#allocation2 + $0x16f] sm:$0xff] }
 0x23e   : > { %v2556_v52 = vadd.f32 %v2555_v21, %v14342_v23  ;;  %v12682_v6 = vpop.f32.mrb[158].mxu0  ;;  %v2722_v21 = vld [vmem:[#allocation2 + $0x168] sm:$0xff]  ;;  %v2789_v32 = vld [vmem:[#allocation2 + $0x191] sm:$0xff] }
 0x23f   : > { %v2600_v53 = vmax.f32 %v2564_v2, 0.0  ;;  %v2567_v38 = vadd.f32 %v12682_v6, %v14357_v13  ;;  %v2558_v34 = vpop.f32.mrb[159].mxu0  ;;  %4021 = vmatmul.mubr.bf16.gmra.mrb[152].mxu1 %v14505_v41  ;;  %v2777_v13 = vld [vmem:[#allocation2 + $0xd1] sm:$0xff]  ;;  %v14565_v2 = vpack.c.bf16 %v2783_v14, %v2782_v1  ;;  %v14567_v51 = vpack.c.bf16 %v2723_v11, %v2722_v21  ;;  %v2724_v45 = vld [vmem:[#allocation2 + $0x188] sm:$0xff] }
 0x240   : > { %4174 = vmatmul.mubr.bf16.gmra.mrb[180].mxu0 %v14518_v8  ;;  %v2598_v26 = vmax.f32 %v2556_v52, 0.0  ;;  %v2559_v61 = vadd.f32 %v2558_v34, %v14344_v62  ;;  %4028 = vmatprep.mubr.bf16.mxu1 %v14521_v20  ;;  %v14535_v27 = vpack.c.bf16 %v2777_v13, %v2776_v37  ;;  %v2716_v62 = vld [vmem:[#allocation2 + $0x108] sm:$0xff]  ;;  %v14569_v52 = vpack.c.bf16 %v2849_v39, %v2848_v47  ;;  %v2785_v34 = vld [vmem:[#allocation2 + $0x151] sm:$0xff] }
 0x241   : > { %4181 = vmatprep.mubr.bf16.mxu0 %v14523_v43  ;;  %2634 = vst.msk [vmem:[#allocation2 + $0x208] sm:$0xff] %vm2603_vm0, %v2600_v53  ;;  %v2601_v23 = vmax.f32 %v2567_v38, 0.0  ;;  %v14537_v30 = vpack.c.bf16 %v2717_v4, %v2716_v62  ;;  %v2784_v38 = vld [vmem:[#allocation2 + $0x149] sm:$0xff] }
 0x242   : > { %2632 = vst.msk [vmem:[#allocation2 + $0x1e8] sm:$0xff] %vm2603_vm0, %v2598_v26  ;;  %v2599_v5 = vmax.f32 %v2559_v61, 0.0  ;;  %v14579_v4 = vpack.c.bf16 %v2785_v34, %v2784_v38  ;;  %v2850_v62 = vld [vmem:[#allocation2 + $0x187] sm:$0xff]  ;;  %v2729_v1 = vld [vmem:[#allocation2 + $0x1d0] sm:$0xff] }
 0x243   : > { %2635 = vst.msk [vmem:[#allocation2 + $0x210] sm:$0xff] %vm2603_vm0, %v2601_v23  ;;  %v2725_v23 = vld [vmem:[#allocation2 + $0x190] sm:$0xff]  ;;  %v2726_v9 = vld [vmem:[#allocation2 + $0x1a8] sm:$0xff] }
 0x244   : > { %2633 = vst.msk [vmem:[#allocation2 + $0x1f0] sm:$0xff] %vm2603_vm0, %v2599_v5  ;;  %v2851_v5 = vld [vmem:[#allocation2 + $0x18f] sm:$0xff]  ;;  %v14581_v29 = vpack.c.bf16 %v2725_v23, %v2724_v45  ;;  %v2852_v12 = vld [vmem:[#allocation2 + $0x1a7] sm:$0xff] }
 0x245   : > { %v14583_v49 = vpack.c.bf16 %v2851_v5, %v2850_v62  ;;  %v2786_v0 = vld [vmem:[#allocation2 + $0x169] sm:$0xff]  ;;  %v2791_v38 = vld [vmem:[#allocation2 + $0x1b1] sm:$0xff] }
 0x246   : > { %v2727_v18 = vld [vmem:[#allocation2 + $0x1b0] sm:$0xff]  ;;  %v14589_v59 = vpack.c.bf16 %v2787_v35, %v2786_v0  ;;  %v2728_v39 = vld [vmem:[#allocation2 + $0x1c8] sm:$0xff] }
 0x247   : > { %4029 = vmatmul.mubr.bf16.gmra.mrb[156].mxu1 %v14523_v43  ;;  %v2853_v36 = vld [vmem:[#allocation2 + $0x1af] sm:$0xff]  ;;  %v14591_v40 = vpack.c.bf16 %v2727_v18, %v2726_v9  ;;  %v2854_v21 = vld [vmem:[#allocation2 + $0x1c7] sm:$0xff]  ;;  %v14601_v47 = vpack.c.bf16 %v2729_v1, %v2728_v39 }
 0x248   : > { %4182 = vmatmul.mubr.bf16.gmra.mrb[184].mxu0 %v14535_v27  ;;  %4036 = vmatprep.mubr.bf16.mxu1 %v14537_v30  ;;  %v14593_v48 = vpack.c.bf16 %v2853_v36, %v2852_v12  ;;  %v2788_v56 = vld [vmem:[#allocation2 + $0x189] sm:$0xff]  ;;  %v2793_v35 = vld [vmem:[#allocation2 + $0x1d1] sm:$0xff] }
 0x249   : > { %4189 = vmatprep.mubr.bf16.mxu0 %v14539_v15  ;;  %v2855_v14 = vld [vmem:[#allocation2 + $0x1cf] sm:$0xff]  ;;  %v14599_v11 = vpack.c.bf16 %v2789_v32, %v2788_v56  ;;  %v2858_v9 = vld [vmem:[#allocation2 + $0x207] sm:$0xff] }
 0x24a   : > { %v2730_v5 = vld [vmem:[#allocation2 + $0x1e8] sm:$0xff] }
 0x24b   : > { %v2731_v34 = vld [vmem:[#allocation2 + $0x1f0] sm:$0xff] }
 0x24c   : > { %v14611_v45 = vpack.c.bf16 %v2731_v34, %v2730_v5  ;;  %v2792_v0 = vld [vmem:[#allocation2 + $0x1c9] sm:$0xff]  ;;  %v2795_v32 = vld [vmem:[#allocation2 + $0x1f1] sm:$0xff] }
 0x24d   : > { %v2859_v18 = vld [vmem:[#allocation2 + $0x20f] sm:$0xff]  ;;  %v14619_v36 = vpack.c.bf16 %v2793_v35, %v2792_v0 }
 0x24e   : > { %v14621_v12 = vpack.c.bf16 %v2859_v18, %v2858_v9  ;;  %v2794_v56 = vld [vmem:[#allocation2 + $0x1e9] sm:$0xff] }
 0x24f   : > { %4037 = vmatmul.mubr.bf16.gmra.mrb[160].mxu1 %v14539_v15  ;;  %v14627_v1 = vpack.c.bf16 %v2795_v32, %v2794_v56  ;;  %v2960_v39 = vld [vmem:[#allocation2 + $0x69] sm:$0xff] }
 0x250   : > { %4190 = vmatmul.mubr.bf16.gmra.mrb[188].mxu0 %v14545_v44  ;;  %4044 = vmatprep.mubr.bf16.mxu1 %v14547_v16  ;;  %v3114_v5 = vld [vmem:[#allocation2 + $0x210] sm:$0xff] }
 0x251   : > { %4197 = vmatprep.mubr.bf16.mxu0 %v14549_v31 }
 0x257   : > { %4045 = vmatmul.mubr.bf16.gmra.mrb[164].mxu1 %v14549_v31 }
 0x258   : > { %4198 = vmatmul.mubr.bf16.gmra.mrb[192].mxu0 %v14555_v57  ;;  %4052 = vmatprep.mubr.bf16.mxu1 %v14557_v58  ;;  %v11217_v6 = vpop.f32.mrb[128].mxu1 }
 0x259   : > { %4205 = vmatprep.mubr.bf16.mxu0 %v14559_v10  ;;  %v11218_v53 = vpop.f32.mrb[129].mxu1 }
 0x25a   : > { %v14575_v26 = vadd.f32 %v11218_v53, %v11217_v6  ;;  %v11220_v61 = vpop.f32.mrb[130].mxu1  ;;  %v14603_v6 = vpack.c.bf16 %v2855_v14, %v2854_v21  ;;  %v2790_v53 = vld [vmem:[#allocation2 + $0x1a9] sm:$0xff]  ;;  %v2990_v21 = vpack.c.bf16 %v14466_v54, %v2960_v39 }
 0x25b   : > { %v11221_v37 = vpop.f32.mrb[131].mxu1  ;;  %v14609_v23 = vpack.c.bf16 %v2791_v38, %v2790_v53  ;;  %v13008_v14 = vld [vmem:[%s16557_s3 + $0x208] sm:$0xff]  }
 0x25c   : > { %v14577_v13 = vadd.f32 %v11221_v37, %v11220_v61  ;;  %v2857_v61 = vld [vmem:[#allocation2 + $0x1ef] sm:$0xff]  ;;  %v2856_v37 = vld [vmem:[#allocation2 + $0x1e7] sm:$0xff] }
 0x25d   : > { %v14613_v62 = vpack.c.bf16 %v2857_v61, %v2856_v37  ;;  %v2986_v61 = vld [vmem:[#allocation2 + $0x209] sm:$0xff] }
 0x25f   : > { %4053 = vmatmul.mubr.bf16.gmra.mrb[168].mxu1 %v14559_v10 }
 0x260   : > { %4206 = vmatmul.mubr.bf16.gmra.mrb[196].mxu0 %v14565_v2  ;;  %4060 = vmatprep.mubr.bf16.mxu1 %v14567_v51 }
 0x261   : > { %4213 = vmatprep.mubr.bf16.mxu0 %v14569_v52 }
 0x267   : > { %4061 = vmatmul.mubr.bf16.gmra.mrb[172].mxu1 %v14569_v52 }
 0x268   : > { %4214 = vmatmul.mubr.bf16.gmra.mrb[200].mxu0 %v14579_v4  ;;  %4068 = vmatprep.mubr.bf16.mxu1 %v14581_v29 }
 0x269   : > { %4221 = vmatprep.mubr.bf16.mxu0 %v14583_v49 }
 0x26f   : > { %4069 = vmatmul.mubr.bf16.gmra.mrb[176].mxu1 %v14583_v49 }
 0x270   : > { %4222 = vmatmul.mubr.bf16.gmra.mrb[204].mxu0 %v14589_v59  ;;  %4076 = vmatprep.mubr.bf16.mxu1 %v14591_v40 }
 0x271   : > { %4229 = vmatprep.mubr.bf16.mxu0 %v14593_v48 }
 0x277   : > { %4077 = vmatmul.mubr.bf16.gmra.mrb[180].mxu1 %v14593_v48 }
 0x278   : > { %4230 = vmatmul.mubr.bf16.gmra.mrb[208].mxu0 %v14599_v11  ;;  %4084 = vmatprep.mubr.bf16.mxu1 %v14601_v47 }
 0x279   : > { %4237 = vmatprep.mubr.bf16.mxu0 %v14603_v6 }
 0x27f   : > { %4085 = vmatmul.mubr.bf16.gmra.mrb[184].mxu1 %v14603_v6 }
 0x280   : > { %4238 = vmatmul.mubr.bf16.gmra.mrb[212].mxu0 %v14609_v23  ;;  %4092 = vmatprep.mubr.bf16.mxu1 %v14611_v45 }
 0x281   : > { %4245 = vmatprep.mubr.bf16.mxu0 %v14613_v62 }
 0x287   : > { %4093 = vmatmul.mubr.bf16.gmra.mrb[188].mxu1 %v14613_v62 }
 0x288   : > { %4246 = vmatmul.mubr.bf16.gmra.mrb[216].mxu0 %v14619_v36  ;;  %4294 = vmatprep.mubr.bf16.mxu1 %v14410_v19  ;;  %v13009_v19 = vld [vmem:[%s16557_s3 + $0x210] sm:$0xff]  }
 0x289   : > { %4253 = vmatprep.mubr.bf16.mxu0 %v14621_v12 }
 0x28f   : > { %4295 = vmatmul.mubr.bf16.vlgmr.msra.gmra.mrb[192].mxu1 %v14380_v24  ;;  %v13010_v24 = vld [vmem:[%s16557_s3 + $0x218] sm:$0xff]  }
 0x290   : > { %4254 = vmatmul.mubr.bf16.gmra.mrb[220].mxu0 %v14627_v1  ;;  %4302 = vmatprep.mubr.bf16.mxu1 %v14440_v63  ;;  %v13012_v63 = vld [vmem:[%s16557_s3 + $0x228] sm:$0xff]  }
 0x291   : > { %4455 = vmatprep.mubr.bf16.mxu0 %v14388_v50  ;;  %12684 = vmatpush3.bf16.msra.mxu1 %v14372_v42  ;;  %v13011_v42 = vld [vmem:[%s16557_s3 + $0x220] sm:$0xff]  }
 0x292   : > { %12685 = vmatprep.subr.bf16.mxu1 %v13008_v14 }
 0x295   : > { %12686 = vmatpush3.bf16.msra.mxu1 %v13008_v14 }
 0x296   : > { %12687 = vmatprep.subr.bf16.mxu1 %v13009_v19 }
 0x297   : > { %4303 = vmatmul.mubr.bf16.gmra.mrb[196].mxu1 %v14388_v50  ;;  %v13013_v50 = vld [vmem:[%s16557_s3 + $0x230] sm:$0xff]  }
 0x298   : > { %4456 = vmatmul.mubr.bf16.vlgmr.msra.gmra.mrb[224].mxu0 %v14390_v33  ;;  %4310 = vmatprep.mubr.bf16.mxu1 %v2990_v21  ;;  %v13014_v33 = vld [vmem:[%s16557_s3 + $0x238] sm:$0xff]  }
 0x299   : > { %4463 = vmatprep.mubr.bf16.mxu0 %v14416_v3  ;;  %12688 = vmatpush3.bf16.msra.mxu1 %v13009_v19 }
 0x29a   : > { %12689 = vmatprep.subr.bf16.mxu1 %v13010_v24 }
 0x29d   : > { %12690 = vmatpush3.bf16.msra.mxu1 %v13010_v24 }
 0x29e   : > { %12691 = vmatprep.subr.bf16.mxu1 %v13011_v42 }
 0x29f   : > { %4311 = vmatmul.mubr.bf16.gmra.mrb[200].mxu1 %v14416_v3  ;;  %v14702_v3 = vld [vmem:[%s16558_s4] ss:$0 sm:$0xff] }
 0x2a0   : > { %4464 = vmatmul.mubr.bf16.gmra.mrb[228].mxu0 %v14418_v55  ;;  %4318 = vmatprep.mubr.bf16.mxu1 %v14500_v60 }
 0x2a1   : > { %4471 = vmatprep.mubr.bf16.mxu0 %v14446_v28  ;;  %12692 = vmatpush3.bf16.msra.mxu1 %v13011_v42 }
 0x2a2   : > { %12693 = vmatprep.subr.bf16.mxu1 %v13012_v63 }
 0x2a5   : > { %12694 = vmatpush3.bf16.msra.mxu1 %v13012_v63  ;;  %v13017_v63 = vld [vmem:[%s16559_s5 + $0x48] sm:$0xff]  }
 0x2a6   : > { %12695 = vmatprep.subr.bf16.mxu1 %v13013_v50 }
 0x2a7   : > { %4319 = vmatmul.mubr.bf16.gmra.mrb[204].mxu1 %v14446_v28 }
 0x2a8   : > { %4472 = vmatmul.mubr.bf16.gmra.mrb[232].mxu0 %v14448_v22  ;;  %4326 = vmatprep.mubr.bf16.mxu1 %v14518_v8 }
 0x2a9   : > { %4479 = vmatprep.mubr.bf16.mxu0 %v14480_v17  ;;  %12696 = vmatpush3.bf16.msra.mxu1 %v13013_v50  ;;  %v13018_v50 = vld [vmem:[%s16559_s5 + $0x8] sm:$0xff]  }
 0x2aa   : > { %12697 = vmatprep.subr.bf16.mxu1 %v13014_v33 }
 0x2ad   : > { %12698 = vmatpush3.bf16.msra.mxu1 %v13014_v33 }
 0x2af   : > { %4327 = vmatmul.mubr.bf16.gmra.mrb[208].mxu1 %v14480_v17  ;;  %v3975_v17 = vadd.f32 %v14575_v26, %v14702_v3 }
 0x2b0   : > { %4480 = vmatmul.mubr.bf16.gmra.mrb[236].mxu0 %v14482_v7  ;;  %4334 = vmatprep.mubr.bf16.mxu1 %v14535_v27 }
 0x2b1   : > { %4487 = vmatprep.mubr.bf16.mxu0 %v14503_v46 }
 0x2b7   : > { %4335 = vmatmul.mubr.bf16.gmra.mrb[212].mxu1 %v14503_v46 }
 0x2b8   : > { %4488 = vmatmul.mubr.bf16.gmra.mrb[240].mxu0 %v14505_v41  ;;  %4342 = vmatprep.mubr.bf16.mxu1 %v14545_v44 }
 0x2b9   : > { %4495 = vmatprep.mubr.bf16.mxu0 %v14521_v20 }
 0x2bf   : > { %4343 = vmatmul.mubr.bf16.gmra.mrb[216].mxu1 %v14521_v20 }
 0x2c0   : > { %4496 = vmatmul.mubr.bf16.gmra.mrb[244].mxu0 %v14523_v43  ;;  %4350 = vmatprep.mubr.bf16.mxu1 %v14555_v57  ;;  %v3978_v43 = vadd.f32 %v14577_v13, %v14702_v3 }
 0x2c1   : > { %4503 = vmatprep.mubr.bf16.mxu0 %v14537_v30 }
 0x2c7   : > { %4351 = vmatmul.mubr.bf16.gmra.mrb[220].mxu1 %v14537_v30 }
 0x2c8   : > { %4504 = vmatmul.mubr.bf16.gmra.mrb[248].mxu0 %v14539_v15  ;;  %4358 = vmatprep.mubr.bf16.mxu1 %v14565_v2 }
 0x2c9   : > { %4511 = vmatprep.mubr.bf16.mxu0 %v14547_v16 }
 0x2cf   : > { %4359 = vmatmul.mubr.bf16.gmra.mrb[224].mxu1 %v14547_v16  ;;  %v13015_v16 = vld [vmem:[%s16559_s5 + $0x40] sm:$0xff]  }
 0x2d0   : > { %4512 = vmatmul.mubr.bf16.gmra.mrb[252].mxu0 %v14549_v31  ;;  %4366 = vmatprep.mubr.bf16.mxu1 %v14579_v4  ;;  %v13016_v31 = vld [vmem:[%s16559_s5] sm:$0xff]  }
 0x2d1   : > { %4519 = vmatprep.mubr.bf16.mxu0 %v14557_v58  ;;  %11673 = vmatprep.subr.bf16.mxu0 %v13015_v16 }
 0x2d2   : > { %11674 = vmatpush3.bf16.msra.mxu0 %v13016_v31 }
 0x2d3   : > { %11675 = vmatprep.subr.bf16.mxu0 %v13017_v63 }
 0x2d6   : > { %11676 = vmatpush3.bf16.msra.mxu0 %v13018_v50 }
 0x2d7   : > { %4367 = vmatmul.mubr.bf16.gmra.mrb[228].mxu1 %v14557_v58 }
 0x2d8   : > { %4520 = vmatmul.mubr.bf16.gmra.mrb[0].mxu0 %v14559_v10  ;;  %4374 = vmatprep.mubr.bf16.mxu1 %v14589_v59 }
 0x2d9   : > { %4527 = vmatprep.mubr.bf16.mxu0 %v14567_v51 }
 0x2df   : > { %4375 = vmatmul.mubr.bf16.gmra.mrb[232].mxu1 %v14567_v51 }
 0x2e0   : > { %4528 = vmatmul.mubr.bf16.gmra.mrb[4].mxu0 %v14569_v52  ;;  %4382 = vmatprep.mubr.bf16.mxu1 %v14599_v11 }
 0x2e1   : > { %4535 = vmatprep.mubr.bf16.mxu0 %v14581_v29 }
 0x2e7   : > { %4383 = vmatmul.mubr.bf16.gmra.mrb[236].mxu1 %v14581_v29 }
 0x2e8   : > { %4536 = vmatmul.mubr.bf16.gmra.mrb[8].mxu0 %v14583_v49  ;;  %4390 = vmatprep.mubr.bf16.mxu1 %v14609_v23  ;;  %v2987_v23 = vld [vmem:[#allocation2 + $0x211] sm:$0xff] }
 0x2e9   : > { %4543 = vmatprep.mubr.bf16.mxu0 %v14591_v40  ;;  %v14733_v14 = vpack.c.bf16 %v2987_v23, %v2986_v61 }
 0x2ea   : > { %v11223_v55 = vpop.f32.mrb[132].mxu1 }
 0x2eb   : > { %v11329_v28 = vpop.f32.mrb[160].mxu0  ;;  %v11224_v22 = vpop.f32.mrb[133].mxu1 }
 0x2ec   : > { %v11330_v54 = vpop.f32.mrb[161].mxu0  ;;  %v11225_v7 = vadd.f32 %v11224_v22, %v11223_v55  ;;  %v11226_v46 = vpop.f32.mrb[134].mxu1  ;;  %v3150_v22 = vld [vmem:[#allocation2 + $0x51] sm:$0xff] }
 0x2ed   : > { %v11331_v60 = vadd.f32 %v11330_v54, %v11329_v28  ;;  %v11332_v41 = vpop.f32.mrb[162].mxu0  ;;  %v11227_v8 = vpop.f32.mrb[135].mxu1  ;;  %v3149_v28 = vld [vmem:[#allocation2 + $0x49] sm:$0xff] }
 0x2ee   : > { %v11333_v20 = vpop.f32.mrb[163].mxu0  ;;  %v11228_v30 = vadd.f32 %v11227_v8, %v11226_v46  ;;  %v3983_v51 = vadd.f32 %v11225_v7, %v14702_v3 }
 0x2ef   : > { %v14708_v27 = vadd.f32 %v11331_v60, %v3975_v17  ;;  %v11334_v15 = vadd.f32 %v11333_v20, %v11332_v41  ;;  %4391 = vmatmul.mubr.bf16.gmra.mrb[240].mxu1 %v14591_v40  ;;  %v13168_v41 = vld [vmem:[#allocation2] sm:$0xff] }
 0x2f0   : > { %4544 = vmatmul.mubr.bf16.gmra.mrb[12].mxu0 %v14593_v48  ;;  %4398 = vmatprep.mubr.bf16.mxu1 %v14619_v36  ;;  %v3986_v59 = vadd.f32 %v11228_v30, %v14702_v3  ;;  %v14750_v8 = vpack.c.bf16 %v13168_v41, %v13168_v41  ;;  %v3181_v30 = vpack.c.bf16 %v3150_v22, %v3149_v28 }
 0x2f1   : > { %v14712_v44 = vadd.f32 %v11334_v15, %v3978_v43  ;;  %4551 = vmatprep.mubr.bf16.mxu0 %v14601_v47 }
 0x2f2   : > { %v11229_v57 = vpop.f32.mrb[136].mxu1 }
 0x2f3   : > { %v11335_v58 = vpop.f32.mrb[164].mxu0  ;;  %v11230_v10 = vpop.f32.mrb[137].mxu1 }
 0x2f4   : > { %v11336_v2 = vpop.f32.mrb[165].mxu0  ;;  %v11231_v52 = vadd.f32 %v11230_v10, %v11229_v57  ;;  %v11232_v13 = vpop.f32.mrb[138].mxu1  ;;  %v3051_v10 = vld [vmem:[#allocation2 + $0x227] sm:$0xff] }
 0x2f5   : > { %v11337_v26 = vadd.f32 %v11336_v2, %v11335_v58  ;;  %v11338_v4 = vpop.f32.mrb[166].mxu0  ;;  %v11233_v29 = vpop.f32.mrb[139].mxu1  ;;  %v3052_v2 = vld [vmem:[#allocation2 + $0x22f] sm:$0xff] }
 0x2f6   : > { %v11339_v49 = vpop.f32.mrb[167].mxu0  ;;  %v11234_v48 = vadd.f32 %v11233_v29, %v11232_v13  ;;  %v3991_v35 = vadd.f32 %v11231_v52, %v14702_v3  ;;  %v3153_v13 = vld [vmem:[#allocation2 + $0x89] sm:$0xff] }
 0x2f7   : > { %v14724_v40 = vadd.f32 %v11337_v26, %v3983_v51  ;;  %v11340_v11 = vadd.f32 %v11339_v49, %v11338_v4  ;;  %4399 = vmatmul.mubr.bf16.gmra.mrb[244].mxu1 %v14601_v47  ;;  %v3152_v26 = vld [vmem:[#allocation2 + $0x71] sm:$0xff] }
 0x2f8   : > { %4552 = vmatmul.mubr.bf16.gmra.mrb[16].mxu0 %v14603_v6  ;;  %4406 = vmatprep.mubr.bf16.mxu1 %v14627_v1  ;;  %v3113_v6 = vld [vmem:[#allocation2 + $0x208] sm:$0xff]  ;;  %v3994_v19 = vadd.f32 %v11234_v48, %v14702_v3  ;;  %v3154_v4 = vld [vmem:[#allocation2 + $0x91] sm:$0xff] }
 0x2f9   : > { %v14728_v53 = vadd.f32 %v11340_v11, %v3986_v59  ;;  %4559 = vmatprep.mubr.bf16.mxu0 %v14611_v45  ;;  %v3131_v1 = vpack.c.bf16 %v3114_v5, %v3113_v6  ;;  %v3068_v59 = vpack.c.bf16 %v3052_v2, %v3051_v10  ;;  %v3182_v5 = vpack.c.bf16 %v3152_v26, %v14463_v25  ;;  %v13020_v25 = vld [vmem:[%s16559_s5 + $0x10] sm:$0xff]  }
 0x2fa   : > { %v11235_v38 = vpop.f32.mrb[140].mxu1  ;;  %v3155_v6 = vld [vmem:[#allocation2 + $0xa9] sm:$0xff]  ;;  %v3162_v10 = vld [vmem:[#allocation2 + $0x111] sm:$0xff] }
 0x2fb   : > { %v11341_v34 = vpop.f32.mrb[168].mxu0  ;;  %v11236_v37 = vpop.f32.mrb[141].mxu1 }
 0x2fc   : > { %v11342_v0 = vpop.f32.mrb[169].mxu0  ;;  %v11237_v18 = vadd.f32 %v11236_v37, %v11235_v38  ;;  %v11238_v47 = vpop.f32.mrb[142].mxu1  ;;  %v3183_v37 = vpack.c.bf16 %v3154_v4, %v3153_v13 }
 0x2fd   : > { %v11343_v36 = vadd.f32 %v11342_v0, %v11341_v34  ;;  %v11344_v9 = vpop.f32.mrb[170].mxu0  ;;  %v11239_v56 = vpop.f32.mrb[143].mxu1 }
 0x2fe   : > { %v11345_v32 = vpop.f32.mrb[171].mxu0  ;;  %v11240_v21 = vadd.f32 %v11239_v56, %v11238_v47  ;;  %v3999_v54 = vadd.f32 %v11237_v18, %v14702_v3 }
 0x2ff   : > { %v14736_v39 = vadd.f32 %v11343_v36, %v3991_v35  ;;  %v11346_v24 = vadd.f32 %v11345_v32, %v11344_v9  ;;  %4407 = vmatmul.mubr.bf16.gmra.mrb[248].mxu1 %v14611_v45  ;;  %v13019_v9 = vld [vmem:[%s16559_s5 + $0x50] sm:$0xff]  }
 0x300   : > { %4560 = vmatmul.mubr.bf16.gmra.mrb[20].mxu0 %v14613_v62  ;;  %4414 = vmatprep.mubr.bf16.mxu1 %v14733_v14  ;;  %v4002_v15 = vadd.f32 %v11240_v21, %v14702_v3  ;;  %v3158_v21 = vld [vmem:[#allocation2 + $0xd1] sm:$0xff] }
 0x301   : > { %v14740_v42 = vadd.f32 %v11346_v24, %v3994_v19  ;;  %4567 = vmatprep.mubr.bf16.mxu0 %v3131_v1  ;;  %v3157_v19 = vld [vmem:[#allocation2 + $0xc9] sm:$0xff]  ;;  %11677 = vmatprep.subr.bf16.mxu0 %v13019_v9  ;;  %v3164_v9 = vld [vmem:[#allocation2 + $0x131] sm:$0xff] }
 0x302   : > { %v11241_v33 = vpop.f32.mrb[144].mxu1  ;;  %11678 = vmatpush3.bf16.msra.mxu0 %v13020_v25  ;;  %v3165_v25 = vld [vmem:[#allocation2 + $0x149] sm:$0xff] }
 0x303   : > { %v11347_v55 = vpop.f32.mrb[172].mxu0  ;;  %v11242_v45 = vpop.f32.mrb[145].mxu1 }
 0x304   : > { %v11348_v62 = vpop.f32.mrb[173].mxu0  ;;  %v11243_v17 = vadd.f32 %v11242_v45, %v11241_v33  ;;  %v11244_v60 = vpop.f32.mrb[146].mxu1 }
 0x305   : > { %v11349_v7 = vadd.f32 %v11348_v62, %v11347_v55  ;;  %v11350_v46 = vpop.f32.mrb[174].mxu0  ;;  %v11245_v20 = vpop.f32.mrb[147].mxu1 }
 0x306   : > { %v11351_v43 = vpop.f32.mrb[175].mxu0  ;;  %v11246_v31 = vadd.f32 %v11245_v20, %v11244_v60  ;;  %v4007_v48 = vadd.f32 %v11243_v17, %v14702_v3  ;;  %v3185_v17 = vpack.c.bf16 %v3158_v21, %v3157_v19 }
 0x307   : > { %v14753_v16 = vadd.f32 %v11349_v7, %v3999_v54  ;;  %v11352_v57 = vadd.f32 %v11351_v43, %v11350_v46  ;;  %4415 = vmatmul.mubr.bf16.gmra.mrb[252].mxu1 %v3131_v1  ;;  %v3156_v1 = vld [vmem:[#allocation2 + $0xb1] sm:$0xff]  ;;  %v3159_v43 = vld [vmem:[#allocation2 + $0xe9] sm:$0xff] }
 0x308   : > { %4568 = vmatmul.mubr.bf16.gmra.mrb[24].mxu0 %v14621_v12  ;;  %12699 = vmatprep.mubr.bf16.mxu1 %v3181_v30  ;;  %v4010_v0 = vadd.f32 %v11246_v31, %v14702_v3  ;;  %v3184_v54 = vpack.c.bf16 %v3156_v1, %v3155_v6  ;;  %v3160_v31 = vld [vmem:[#allocation2 + $0xf1] sm:$0xff] }
 0x309   : > { %v14756_v58 = vadd.f32 %v11352_v57, %v4002_v15  ;;  %4575 = vmatprep.mubr.bf16.mxu0 %v14750_v8  ;;  %v3161_v57 = vld [vmem:[#allocation2 + $0x109] sm:$0xff]  ;;  %v3166_v6 = vld [vmem:[#allocation2 + $0x151] sm:$0xff] }
 0x30a   : > { %v11247_v51 = vpop.f32.mrb[148].mxu1 }
 0x30b   : > { %v11353_v52 = vpop.f32.mrb[176].mxu0  ;;  %v11248_v29 = vpop.f32.mrb[149].mxu1 }
 0x30c   : > { %v11354_v49 = vpop.f32.mrb[177].mxu0  ;;  %v11249_v11 = vadd.f32 %v11248_v29, %v11247_v51  ;;  %v11250_v12 = vpop.f32.mrb[150].mxu1 }
 0x30d   : > { %v11355_v38 = vadd.f32 %v11354_v49, %v11353_v52  ;;  %v11356_v34 = vpop.f32.mrb[178].mxu0  ;;  %v11251_v61 = vpop.f32.mrb[151].mxu1 }
 0x30e   : > { %v11357_v23 = vpop.f32.mrb[179].mxu0  ;;  %v11252_v18 = vadd.f32 %v11251_v61, %v11250_v12  ;;  %v4015_v50 = vadd.f32 %v11249_v11, %v14702_v3  ;;  %v3187_v11 = vpack.c.bf16 %v3162_v10, %v3161_v57 }
 0x30f   : > { %v14762_v35 = vadd.f32 %v11355_v38, %v4007_v48  ;;  %v11358_v36 = vadd.f32 %v11357_v23, %v11356_v34  ;;  %12700 = vmatmul.mubr.bf16.vlgmr.msra.gmra.mrb[0].mxu1 %v3182_v5  ;;  %v3186_v48 = vpack.c.bf16 %v3160_v31, %v3159_v43  ;;  %v13021_v5 = vld [vmem:[%s16559_s5 + $0x58] sm:$0xff]  }
 0x310   : > { %4576 = vmatmul.mubr.bf16.gmra.mrb[28].mxu0 %v3068_v59  ;;  %12703 = vmatprep.mubr.bf16.mxu1 %v3183_v37  ;;  %v4018_v7 = vadd.f32 %v11252_v18, %v14702_v3  ;;  %v13022_v37 = vld [vmem:[%s16559_s5 + $0x18] sm:$0xff]  }
 0x311   : > { %v14764_v47 = vadd.f32 %v11358_v36, %v4010_v0  ;;  %v3163_v0 = vld [vmem:[#allocation2 + $0x129] sm:$0xff]  ;;  %11679 = vmatprep.subr.bf16.mxu0 %v13021_v5  ;;  %v3168_v43 = vld [vmem:[#allocation2 + $0x171] sm:$0xff]  ;;  %v13024_v5 = vld [vmem:[%s16559_s5 + $0x20] sm:$0xff]   ;;  %6144 = vmatprep.mubr.bf16.mxu0 %v14750_v8 }
 0x312   : > { %v11253_v56 = vpop.f32.mrb[152].mxu1  ;;  %11680 = vmatpush3.bf16.msra.mxu0 %v13022_v37  ;;  %v3171_v37 = vld [vmem:[#allocation2 + $0x1a9] sm:$0xff] }
 0x313   : > { %v11359_v32 = vpop.f32.mrb[180].mxu0  ;;  %v11254_v24 = vpop.f32.mrb[153].mxu1  ;;  %v13043_v8 = vld [vmem:[%s16559_s5 + $0xf0] sm:$0xff]  }
 0x314   : > { %v11360_v63 = vpop.f32.mrb[181].mxu0  ;;  %v11255_v33 = vadd.f32 %v11254_v24, %v11253_v56  ;;  %v11256_v28 = vpop.f32.mrb[154].mxu1 }
 0x315   : > { %v11361_v55 = vadd.f32 %v11360_v63, %v11359_v32  ;;  %v11362_v22 = vpop.f32.mrb[182].mxu0  ;;  %v11257_v45 = vpop.f32.mrb[155].mxu1 }
 0x316   : > { %v11363_v62 = vpop.f32.mrb[183].mxu0  ;;  %v11258_v46 = vadd.f32 %v11257_v45, %v11256_v28  ;;  %v4023_v52 = vadd.f32 %v11255_v33, %v14702_v3  ;;  %v3189_v28 = vpack.c.bf16 %v3166_v6, %v3165_v25  ;;  %v3174_v25 = vld [vmem:[#allocation2 + $0x1d1] sm:$0xff] }
 0x317   : > { %v14774_v60 = vadd.f32 %v11361_v55, %v4015_v50  ;;  %v11364_v41 = vadd.f32 %v11363_v62, %v11362_v22  ;;  %12704 = vmatmul.mubr.bf16.gmra.mrb[4].mxu1 %v3184_v54  ;;  %v3188_v55 = vpack.c.bf16 %v3164_v9, %v3163_v0  ;;  %v3173_v9 = vld [vmem:[#allocation2 + $0x1c9] sm:$0xff] }
 0x318   : > { %12707 = vmatprep.mubr.bf16.mxu1 %v3185_v17  ;;  %v4026_v38 = vadd.f32 %v11258_v46, %v14702_v3 }
 0x319   : > { %v14776_v20 = vadd.f32 %v11364_v41, %v4018_v7  ;;  %v3167_v7 = vld [vmem:[#allocation2 + $0x169] sm:$0xff] }
 0x31a   : > { %v11259_v30 = vpop.f32.mrb[156].mxu1 }
 0x31b   : > { %v11365_v15 = vpop.f32.mrb[184].mxu0  ;;  %v11260_v2 = vpop.f32.mrb[157].mxu1 }
 0x31c   : > { %v11366_v51 = vpop.f32.mrb[185].mxu0  ;;  %v11261_v26 = vadd.f32 %v11260_v2, %v11259_v30  ;;  %v11262_v4 = vpop.f32.mrb[158].mxu1  ;;  %v3169_v30 = vld [vmem:[#allocation2 + $0x189] sm:$0xff] }
 0x31d   : > { %v11367_v13 = vadd.f32 %v11366_v51, %v11365_v15  ;;  %v11368_v29 = vpop.f32.mrb[186].mxu0  ;;  %v11263_v49 = vpop.f32.mrb[159].mxu1  ;;  %v3170_v15 = vld [vmem:[#allocation2 + $0x191] sm:$0xff] }
 0x31e   : > { %v11369_v59 = vpop.f32.mrb[187].mxu0  ;;  %v11264_v34 = vadd.f32 %v11263_v49, %v11262_v4  ;;  %v4031_v1 = vadd.f32 %v11261_v26, %v14702_v3  ;;  %v3191_v49 = vpack.c.bf16 %v3170_v15, %v3169_v30  ;;  %v3176_v30 = vld [vmem:[#allocation2 + $0x1f1] sm:$0xff] }
 0x31f   : > { %v14780_v12 = vadd.f32 %v11367_v13, %v4023_v52  ;;  %v11370_v61 = vadd.f32 %v11369_v59, %v11368_v29  ;;  %12708 = vmatmul.mubr.bf16.gmra.mrb[8].mxu1 %v3186_v48  ;;  %v3190_v29 = vpack.c.bf16 %v3168_v43, %v3167_v7  ;;  %v3175_v43 = vld [vmem:[#allocation2 + $0x1e9] sm:$0xff] }
 0x320   : > { %12711 = vmatprep.mubr.bf16.mxu1 %v3187_v11  ;;  %v4034_v22 = vadd.f32 %v11264_v34, %v14702_v3 }
 0x321   : > { %v14782_v23 = vadd.f32 %v11370_v61, %v4026_v38  ;;  %v13023_v61 = vld [vmem:[%s16559_s5 + $0x60] sm:$0xff]  }
 0x322   : > { %v11265_v18 = vpop.f32.mrb[160].mxu1  ;;  %11681 = vmatprep.subr.bf16.mxu0 %v13023_v61 }
 0x323   : > { %v11371_v36 = vpop.f32.mrb[188].mxu0  ;;  %v11266_v56 = vpop.f32.mrb[161].mxu1  ;;  %11682 = vmatpush3.bf16.msra.mxu0 %v13024_v5  ;;  %v3180_v5 = vld [vmem:[#allocation2 + $0x231] sm:$0xff] }
 0x324   : > { %v11372_v32 = vpop.f32.mrb[189].mxu0  ;;  %v11267_v19 = vadd.f32 %v11266_v56, %v11265_v18  ;;  %v11268_v24 = vpop.f32.mrb[162].mxu1 }
 0x325   : > { %v11373_v21 = vadd.f32 %v11372_v32, %v11371_v36  ;;  %v11374_v63 = vpop.f32.mrb[190].mxu0  ;;  %v11269_v50 = vpop.f32.mrb[163].mxu1  ;;  %v3172_v36 = vld [vmem:[#allocation2 + $0x1b1] sm:$0xff] }
 0x326   : > { %v11375_v33 = vpop.f32.mrb[191].mxu0  ;;  %v11270_v62 = vadd.f32 %v11269_v50, %v11268_v24  ;;  %v4039_v10 = vadd.f32 %v11267_v19, %v14702_v3 }
 0x327   : > { %v14792_v45 = vadd.f32 %v11373_v21, %v4031_v1  ;;  %v11376_v54 = vadd.f32 %v11375_v33, %v11374_v63  ;;  %12712 = vmatmul.mubr.bf16.gmra.mrb[12].mxu1 %v3188_v55  ;;  %v3192_v33 = vpack.c.bf16 %v3172_v36, %v3171_v37  ;;  %v3193_v55 = vpack.c.bf16 %v3174_v25, %v3173_v9  ;;  %v13025_v37 = vld [vmem:[%s16559_s5 + $0x68] sm:$0xff]  }
 0x328   : > { %12715 = vmatprep.mubr.bf16.mxu1 %v3189_v28  ;;  %v4042_v59 = vadd.f32 %v11270_v62, %v14702_v3  ;;  %11683 = vmatprep.subr.bf16.mxu0 %v13025_v37 }
 0x329   : > { %v14794_v17 = vadd.f32 %v11376_v54, %v4034_v22 }
 0x32a   : > { %v11271_v46 = vpop.f32.mrb[164].mxu1 }
 0x32b   : > { %v11377_v41 = vpop.f32.mrb[192].mxu0  ;;  %v11272_v31 = vpop.f32.mrb[165].mxu1 }
 0x32c   : > { %v11378_v57 = vpop.f32.mrb[193].mxu0  ;;  %v11273_v2 = vadd.f32 %v11272_v31, %v11271_v46  ;;  %v11274_v52 = vpop.f32.mrb[166].mxu1 }
 0x32d   : > { %v11379_v51 = vadd.f32 %v11378_v57, %v11377_v41  ;;  %v11380_v26 = vpop.f32.mrb[194].mxu0  ;;  %v11275_v13 = vpop.f32.mrb[167].mxu1 }
 0x32e   : > { %v11381_v4 = vpop.f32.mrb[195].mxu0  ;;  %v11276_v11 = vadd.f32 %v11275_v13, %v11274_v52  ;;  %v4047_v32 = vadd.f32 %v11273_v2, %v14702_v3 }
 0x32f   : > { %v14798_v48 = vadd.f32 %v11379_v51, %v4039_v10  ;;  %v11382_v38 = vadd.f32 %v11381_v4, %v11380_v26  ;;  %12716 = vmatmul.mubr.bf16.gmra.mrb[16].mxu1 %v3190_v29  ;;  %v3194_v4 = vpack.c.bf16 %v3176_v30, %v3175_v43 }
 0x330   : > { %12719 = vmatprep.mubr.bf16.mxu1 %v3191_v49  ;;  %v4050_v28 = vadd.f32 %v11276_v11, %v14702_v3 }
 0x331   : > { %v14800_v34 = vadd.f32 %v11382_v38, %v4042_v59  ;;  %v3179_v38 = vld [vmem:[#allocation2 + $0x229] sm:$0xff] }
 0x332   : > { %v11277_v0 = vpop.f32.mrb[168].mxu1 }
 0x333   : > { %v11383_v18 = vpop.f32.mrb[196].mxu0  ;;  %v11278_v6 = vpop.f32.mrb[169].mxu1 }
 0x334   : > { %v11384_v56 = vpop.f32.mrb[197].mxu0  ;;  %v11279_v1 = vadd.f32 %v11278_v6, %v11277_v0  ;;  %v11280_v21 = vpop.f32.mrb[170].mxu1  ;;  %v13026_v0 = vld [vmem:[%s16559_s5 + $0x28] sm:$0xff]   ;;  %v3196_v6 = vpack.c.bf16 %v3180_v5, %v3179_v38 }
 0x335   : > { %v11385_v19 = vadd.f32 %v11384_v56, %v11383_v18  ;;  %v11386_v24 = vpop.f32.mrb[198].mxu0  ;;  %v11281_v63 = vpop.f32.mrb[171].mxu1  ;;  %11684 = vmatpush3.bf16.msra.mxu0 %v13026_v0 }
 0x336   : > { %v11387_v50 = vpop.f32.mrb[199].mxu0  ;;  %v11282_v62 = vadd.f32 %v11281_v63, %v11280_v21  ;;  %v4055_v57 = vadd.f32 %v11279_v1, %v14702_v3 }
 0x337   : > { %v14810_v22 = vadd.f32 %v11385_v19, %v4047_v32  ;;  %v11388_v54 = vadd.f32 %v11387_v50, %v11386_v24  ;;  %12720 = vmatmul.mubr.bf16.gmra.mrb[20].mxu1 %v3192_v33 }
 0x338   : > { %12723 = vmatprep.mubr.bf16.mxu1 %v3193_v55  ;;  %v4058_v29 = vadd.f32 %v11282_v62, %v14702_v3 }
 0x339   : > { %v14812_v7 = vadd.f32 %v11388_v54, %v4050_v28 }
 0x33a   : > { %v11283_v46 = vpop.f32.mrb[172].mxu1 }
 0x33b   : > { %v11389_v41 = vpop.f32.mrb[200].mxu0  ;;  %v11284_v15 = vpop.f32.mrb[173].mxu1 }
 0x33c   : > { %v11390_v31 = vpop.f32.mrb[201].mxu0  ;;  %v11285_v10 = vadd.f32 %v11284_v15, %v11283_v46  ;;  %v11286_v51 = vpop.f32.mrb[174].mxu1 }
 0x33d   : > { %v11391_v2 = vadd.f32 %v11390_v31, %v11389_v41  ;;  %v11392_v52 = vpop.f32.mrb[202].mxu0  ;;  %v11287_v26 = vpop.f32.mrb[175].mxu1 }
 0x33e   : > { %v11393_v13 = vpop.f32.mrb[203].mxu0  ;;  %v11288_v59 = vadd.f32 %v11287_v26, %v11286_v51  ;;  %v4063_v56 = vadd.f32 %v11285_v10, %v14702_v3 }
 0x33f   : > { %v14816_v49 = vadd.f32 %v11391_v2, %v4055_v57  ;;  %v11394_v11 = vadd.f32 %v11393_v13, %v11392_v52  ;;  %12724 = vmatmul.mubr.bf16.gmra.mrb[24].mxu1 %v3194_v4 }
 0x340   : > { %12727 = vmatprep.mubr.bf16.mxu1 %v14733_v14  ;;  %v4066_v63 = vadd.f32 %v11288_v59, %v14702_v3  ;;  %v13028_v59 = vld [vmem:[%s16559_s5 + $0x30] sm:$0xff]  }
 0x341   : > { %v14818_v61 = vadd.f32 %v11394_v11, %v4058_v29  ;;  %v13027_v29 = vld [vmem:[%s16559_s5 + $0x70] sm:$0xff]  }
 0x342   : > { %v11289_v18 = vpop.f32.mrb[176].mxu1  ;;  %11685 = vmatprep.subr.bf16.mxu0 %v13027_v29 }
 0x343   : > { %v11395_v36 = vpop.f32.mrb[204].mxu0  ;;  %v11290_v9 = vpop.f32.mrb[177].mxu1  ;;  %11686 = vmatpush3.bf16.msra.mxu0 %v13028_v59  ;;  %v13034_v59 = vld [vmem:[%s16559_s5 + $0xd0] sm:$0xff]  }
 0x344   : > { %v11396_v25 = vpop.f32.mrb[205].mxu0  ;;  %v11291_v32 = vadd.f32 %v11290_v9, %v11289_v18  ;;  %v11292_v1 = vpop.f32.mrb[178].mxu1 }
 0x345   : > { %v11397_v14 = vadd.f32 %v11396_v25, %v11395_v36  ;;  %v11398_v19 = vpop.f32.mrb[206].mxu0  ;;  %v11293_v21 = vpop.f32.mrb[179].mxu1 }
 0x346   : > { %v11399_v24 = vpop.f32.mrb[207].mxu0  ;;  %v11294_v33 = vadd.f32 %v11293_v21, %v11292_v1  ;;  %v4071_v43 = vadd.f32 %v11291_v32, %v14702_v3  ;;  %v13029_v21 = vld [vmem:[%s16559_s5 + $0xc0] sm:$0xff]  }
 0x347   : > { %v14829_v50 = vadd.f32 %v11397_v14, %v4063_v56  ;;  %v11400_v55 = vadd.f32 %v11399_v24, %v11398_v19  ;;  %12728 = vmatmul.mubr.bf16.gmra.mrb[28].mxu1 %v3196_v6  ;;  %v13030_v24 = vld [vmem:[%s16559_s5 + $0x80] sm:$0xff]   ;;  %11785 = vmatprep.subr.bf16.mxu1 %v13029_v21 }
 0x348   : > { %v4074_v51 = vadd.f32 %v11294_v33, %v14702_v3  ;;  %v13031_v33 = vld [vmem:[%s16559_s5 + $0xc8] sm:$0xff]   ;;  %11786 = vmatpush3.bf16.msra.mxu1 %v13030_v24 }
 0x349   : > { %v14831_v28 = vadd.f32 %v11400_v55, %v4066_v63  ;;  %11787 = vmatprep.subr.bf16.mxu1 %v13031_v33 }
 0x34a   : > { %v11295_v62 = vpop.f32.mrb[180].mxu1 }
 0x34b   : > { %v11401_v54 = vpop.f32.mrb[208].mxu0  ;;  %v11296_v46 = vpop.f32.mrb[181].mxu1 }
 0x34c   : > { %v11402_v41 = vpop.f32.mrb[209].mxu0  ;;  %v11297_v30 = vadd.f32 %v11296_v46, %v11295_v62  ;;  %v11298_v31 = vpop.f32.mrb[182].mxu1 }
 0x34d   : > { %v11403_v15 = vadd.f32 %v11402_v41, %v11401_v54  ;;  %v11404_v57 = vpop.f32.mrb[210].mxu0  ;;  %v11299_v10 = vpop.f32.mrb[183].mxu1  ;;  %v13032_v54 = vld [vmem:[%s16559_s5 + $0x88] sm:$0xff]  }
 0x34e   : > { %v11405_v2 = vpop.f32.mrb[211].mxu0  ;;  %v11300_v26 = vadd.f32 %v11299_v10, %v11298_v31  ;;  %v4079_v0 = vadd.f32 %v11297_v30, %v14702_v3  ;;  %11788 = vmatpush3.bf16.msra.mxu1 %v13032_v54 }
 0x34f   : > { %v14835_v52 = vadd.f32 %v11403_v15, %v4071_v43  ;;  %v11406_v13 = vadd.f32 %v11405_v2, %v11404_v57  ;;  %11789 = vmatprep.subr.bf16.mxu1 %v13034_v59  ;;  %v13042_v59 = vld [vmem:[%s16559_s5 + $0xa8] sm:$0xff]  }
 0x350   : > { %v4082_v32 = vadd.f32 %v11300_v26, %v14702_v3 }
 0x351   : > { %v14837_v4 = vadd.f32 %v11406_v13, %v4074_v51 }
 0x352   : > { %v11301_v11 = vpop.f32.mrb[184].mxu1 }
 0x353   : > { %v11407_v38 = vpop.f32.mrb[212].mxu0  ;;  %v11302_v5 = vpop.f32.mrb[185].mxu1 }
 0x354   : > { %v11408_v37 = vpop.f32.mrb[213].mxu0  ;;  %v11303_v18 = vadd.f32 %v11302_v5, %v11301_v11  ;;  %v11304_v9 = vpop.f32.mrb[186].mxu1  ;;  %v13036_v11 = vld [vmem:[%s16559_s5 + $0x90] sm:$0xff]   ;;  %v13033_v5 = vld [vmem:[%s16559_s5 + $0x78] sm:$0xff]  }
 0x355   : > { %v11409_v36 = vadd.f32 %v11408_v37, %v11407_v38  ;;  %v11410_v25 = vpop.f32.mrb[214].mxu0  ;;  %v11305_v6 = vpop.f32.mrb[187].mxu1  ;;  %v13035_v37 = vld [vmem:[%s16559_s5 + $0x38] sm:$0xff]   ;;  %11790 = vmatpush3.bf16.msra.mxu1 %v13036_v11  ;;  %11687 = vmatprep.subr.bf16.mxu0 %v13033_v5 }
 0x356   : > { %v11411_v56 = vpop.f32.mrb[215].mxu0  ;;  %v11306_v1 = vadd.f32 %v11305_v6, %v11304_v9  ;;  %v4087_v43 = vadd.f32 %v11303_v18, %v14702_v3  ;;  %11688 = vmatpush3.bf16.msra.mxu0 %v13035_v37  ;;  %v13038_v6 = vld [vmem:[%s16559_s5 + $0x98] sm:$0xff]  }
 0x357   : > { %v14847_v14 = vadd.f32 %v11409_v36, %v4079_v0  ;;  %v11412_v19 = vadd.f32 %v11411_v56, %v11410_v25  ;;  %v13037_v0 = vld [vmem:[%s16559_s5 + $0xd8] sm:$0xff]  }
 0x358   : > { %v4090_v51 = vadd.f32 %v11306_v1, %v14702_v3  ;;  %11791 = vmatprep.subr.bf16.mxu1 %v13037_v0 }
 0x359   : > { %v14855_v63 = vadd.f32 %v11412_v19, %v4082_v32  ;;  %11792 = vmatpush3.bf16.msra.mxu1 %v13038_v6 }
 0x35a   : > { %v11307_v55 = vpop.f32.mrb[188].mxu1 }
 0x35b   : > { %v11413_v62 = vpop.f32.mrb[216].mxu0  ;;  %v11308_v46 = vpop.f32.mrb[189].mxu1 }
 0x35c   : > { %v11414_v41 = vpop.f32.mrb[217].mxu0  ;;  %v11309_v30 = vadd.f32 %v11308_v46, %v11307_v55  ;;  %v11310_v31 = vpop.f32.mrb[190].mxu1 }
 0x35d   : > { %v11415_v15 = vadd.f32 %v11414_v41, %v11413_v62  ;;  %v11416_v57 = vpop.f32.mrb[218].mxu0  ;;  %v11311_v10 = vpop.f32.mrb[191].mxu1 }
 0x35e   : > { %v11417_v2 = vpop.f32.mrb[219].mxu0  ;;  %v11312_v13 = vadd.f32 %v11311_v10, %v11310_v31  ;;  %v4095_v56 = vadd.f32 %v11309_v30, %v14702_v3  ;;  %v13040_v30 = vld [vmem:[%s16559_s5 + $0xa0] sm:$0xff]  }
 0x35f   : > { %v14865_v26 = vadd.f32 %v11415_v15, %v4087_v43  ;;  %v11418_v29 = vadd.f32 %v11417_v2, %v11416_v57  ;;  %v13039_v43 = vld [vmem:[%s16559_s5 + $0xe0] sm:$0xff]   ;;  %v4810_v57 = vld [vmem:[#allocation2 + $0xf] sm:$0xff] }
 0x360   : > { %v4098_v24 = vadd.f32 %v11312_v13, %v14702_v3  ;;  %11793 = vmatprep.subr.bf16.mxu1 %v13039_v43  ;;  %v4809_v31 = vld [vmem:[#allocation2 + $0x7] sm:$0xff] }
 0x361   : > { %v14873_v38 = vadd.f32 %v11418_v29, %v4090_v51  ;;  %11794 = vmatpush3.bf16.msra.mxu1 %v13040_v30  ;;  %v13041_v2 = vld [vmem:[%s16559_s5 + $0xe8] sm:$0xff]   ;;  %v4841_v51 = vpack.c.bf16 %v4810_v57, %v4809_v31 }
 0x362   : > { %v11441_v36 = vpop.f32.mrb[192].mxu1  ;;  %11795 = vmatprep.subr.bf16.mxu1 %v13041_v2 }
 0x363   : > { %v11419_v18 = vpop.f32.mrb[220].mxu0  ;;  %v11442_v25 = vpop.f32.mrb[193].mxu1  ;;  %6145 = vmatmul.mubr.bf16.vlgmr.msra.gmra.mrb[32].mxu0 %v4841_v51 }
 0x364   : > { %v11420_v9 = vpop.f32.mrb[221].mxu0  ;;  %v11443_v1 = vadd.f32 %v11442_v25, %v11441_v36  ;;  %v11444_v21 = vpop.f32.mrb[194].mxu1 }
 0x365   : > { %v11421_v32 = vadd.f32 %v11420_v9, %v11419_v18  ;;  %v11422_v19 = vpop.f32.mrb[222].mxu0  ;;  %v11445_v55 = vpop.f32.mrb[195].mxu1  ;;  %11796 = vmatpush3.bf16.msra.mxu1 %v13042_v59 }
 0x366   : > { %v11423_v33 = vpop.f32.mrb[223].mxu0  ;;  %v4297_v54 = vadd.f32 %v11443_v1, %v14708_v27  ;;  %v11446_v41 = vadd.f32 %v11445_v55, %v11444_v21  ;;  %11797 = vmatprep.subr.bf16.mxu1 %v13043_v8  ;;  %v13044_v21 = vld [vmem:[%s16559_s5 + $0x140] sm:$0xff]  }
 0x367   : > { %v14889_v62 = vadd.f32 %v11421_v32, %v4095_v56  ;;  %v11424_v46 = vadd.f32 %v11423_v33, %v11422_v19  ;;  %v13045_v56 = vld [vmem:[%s16559_s5 + $0xb0] sm:$0xff]   ;;  %v13047_v33 = vld [vmem:[%s16559_s5 + $0xf8] sm:$0xff]   ;;  %11897 = vmatprep.subr.bf16.mxu0 %v13044_v21  ;;  %v13049_v21 = vld [vmem:[%s16559_s5 + $0x148] sm:$0xff]  }
 0x368   : > { %v4300_v3 = vadd.f32 %v11446_v41, %v14712_v44 }
 0x369   : > { %v14898_v15 = vadd.f32 %v11424_v46, %v4098_v24  ;;  %11798 = vmatpush3.bf16.msra.mxu1 %v13045_v56  ;;  %v13046_v24 = vld [vmem:[%s16559_s5 + $0x100] sm:$0xff]  }
 0x36a   : > { %v11447_v10 = vpop.f32.mrb[196].mxu1  ;;  %11799 = vmatprep.subr.bf16.mxu1 %v13047_v33  ;;  %11898 = vmatpush3.bf16.msra.mxu0 %v13046_v24  ;;  %v13050_v24 = vld [vmem:[%s16559_s5 + $0x108] sm:$0xff]  }
 0x36b   : > { %v11553_v27 = vpop.f32.mrb[224].mxu0  ;;  %v11448_v13 = vpop.f32.mrb[197].mxu1  ;;  %11899 = vmatprep.subr.bf16.mxu0 %v13049_v21 }
 0x36c   : > { %v11554_v29 = vpop.f32.mrb[225].mxu0  ;;  %v11449_v44 = vadd.f32 %v11448_v13, %v11447_v10  ;;  %v11450_v5 = vpop.f32.mrb[198].mxu1 }
 0x36d   : > { %v11555_v11 = vadd.f32 %v11554_v29, %v11553_v27  ;;  %v11556_v37 = vpop.f32.mrb[226].mxu0  ;;  %v11451_v0 = vpop.f32.mrb[199].mxu1 }
 0x36e   : > { %v11557_v18 = vpop.f32.mrb[227].mxu0  ;;  %v4305_v36 = vadd.f32 %v11449_v44, %v14724_v40  ;;  %v11452_v9 = vadd.f32 %v11451_v0, %v11450_v5  ;;  %11900 = vmatpush3.bf16.msra.mxu0 %v13050_v24 }
 0x36f   : > { %v11558_v25 = vadd.f32 %v11557_v18, %v11556_v37  ;;  %v14909_v6 = vadd.f32 %v11555_v11, %v4297_v54  ;;  %v13048_v54 = vld [vmem:[%s16559_s5 + $0xb8] sm:$0xff]  }
 0x370   : > { %v4308_v32 = vadd.f32 %v11452_v9, %v14728_v53  ;;  %11800 = vmatpush3.bf16.msra.mxu1 %v13048_v54 }
 0x371   : > { %v14918_v1 = vadd.f32 %v11558_v25, %v4300_v3 }
 0x372   : > { %v11453_v19 = vpop.f32.mrb[200].mxu1 }
 0x373   : > { %v11559_v40 = vpop.f32.mrb[228].mxu0  ;;  %v11454_v55 = vpop.f32.mrb[201].mxu1 }
 0x374   : > { %v11560_v53 = vpop.f32.mrb[229].mxu0  ;;  %v11455_v46 = vadd.f32 %v11454_v55, %v11453_v19  ;;  %v11456_v43 = vpop.f32.mrb[202].mxu1 }
 0x375   : > { %v11561_v41 = vadd.f32 %v11560_v53, %v11559_v40  ;;  %v11562_v30 = vpop.f32.mrb[230].mxu0  ;;  %v11457_v3 = vpop.f32.mrb[203].mxu1 }
 0x376   : > { %v11563_v31 = vpop.f32.mrb[231].mxu0  ;;  %v4313_v57 = vadd.f32 %v11455_v46, %v14736_v39  ;;  %v11458_v10 = vadd.f32 %v11457_v3, %v11456_v43 }
 0x377   : > { %v11564_v27 = vadd.f32 %v11563_v31, %v11562_v30  ;;  %v14933_v2 = vadd.f32 %v11561_v41, %v4305_v36 }
 0x378   : > { %v4316_v51 = vadd.f32 %v11458_v10, %v14740_v42 }
 0x379   : > { %v14936_v13 = vadd.f32 %v11564_v27, %v4308_v32 }
 0x37a   : > { %v11459_v29 = vpop.f32.mrb[204].mxu1 }
 0x37b   : > { %v11565_v59 = vpop.f32.mrb[232].mxu0  ;;  %v11460_v44 = vpop.f32.mrb[205].mxu1 }
 0x37c   : > { %v11566_v11 = vpop.f32.mrb[233].mxu0  ;;  %v11461_v5 = vadd.f32 %v11460_v44, %v11459_v29  ;;  %v11462_v0 = vpop.f32.mrb[206].mxu1 }
 0x37d   : > { %v11567_v37 = vadd.f32 %v11566_v11, %v11565_v59  ;;  %v11568_v18 = vpop.f32.mrb[234].mxu0  ;;  %v11463_v9 = vpop.f32.mrb[207].mxu1 }
 0x37e   : > { %v11569_v25 = vpop.f32.mrb[235].mxu0  ;;  %v4321_v39 = vadd.f32 %v11461_v5, %v14753_v16  ;;  %v11464_v8 = vadd.f32 %v11463_v9, %v11462_v0 }
 0x37f   : > { %v11570_v56 = vadd.f32 %v11569_v25, %v11568_v18  ;;  %v14939_v36 = vadd.f32 %v11567_v37, %v4313_v57 }
 0x380   : > { %v4324_v42 = vadd.f32 %v11464_v8, %v14756_v58 }
 0x381   : > { %v14942_v32 = vadd.f32 %v11570_v56, %v4316_v51 }
 0x382   : > { %v11465_v19 = vpop.f32.mrb[208].mxu1 }
 0x383   : > { %v11571_v40 = vpop.f32.mrb[236].mxu0  ;;  %v11466_v33 = vpop.f32.mrb[209].mxu1 }
 0x384   : > { %v11572_v16 = vpop.f32.mrb[237].mxu0  ;;  %v11467_v55 = vadd.f32 %v11466_v33, %v11465_v19  ;;  %v11468_v54 = vpop.f32.mrb[210].mxu1  ;;  %v13051_v19 = vld [vmem:[%s16559_s5 + $0x150] sm:$0xff]  }
 0x385   : > { %v11573_v53 = vadd.f32 %v11572_v16, %v11571_v40  ;;  %v11574_v46 = vpop.f32.mrb[238].mxu0  ;;  %v11469_v58 = vpop.f32.mrb[211].mxu1  ;;  %v13052_v40 = vld [vmem:[%s16559_s5 + $0x110] sm:$0xff]   ;;  %11901 = vmatprep.subr.bf16.mxu0 %v13051_v19 }
 0x386   : > { %v11575_v41 = vpop.f32.mrb[239].mxu0  ;;  %v4329_v43 = vadd.f32 %v11467_v55, %v14762_v35  ;;  %v11470_v30 = vadd.f32 %v11469_v58, %v11468_v54  ;;  %11902 = vmatpush3.bf16.msra.mxu0 %v13052_v40 }
 0x387   : > { %v11576_v3 = vadd.f32 %v11575_v41, %v11574_v46  ;;  %v14951_v31 = vadd.f32 %v11573_v53, %v4321_v39 }
 0x388   : > { %v4332_v57 = vadd.f32 %v11470_v30, %v14764_v47 }
 0x389   : > { %v14954_v10 = vadd.f32 %v11576_v3, %v4324_v42 }
 0x38a   : > { %v11471_v27 = vpop.f32.mrb[212].mxu1 }
 0x38b   : > { %v11577_v51 = vpop.f32.mrb[240].mxu0  ;;  %v11472_v29 = vpop.f32.mrb[213].mxu1 }
 0x38c   : > { %v11578_v59 = vpop.f32.mrb[241].mxu0  ;;  %v11473_v44 = vadd.f32 %v11472_v29, %v11471_v27  ;;  %v11474_v5 = vpop.f32.mrb[214].mxu1 }
 0x38d   : > { %v11579_v11 = vadd.f32 %v11578_v59, %v11577_v51  ;;  %v11580_v37 = vpop.f32.mrb[242].mxu0  ;;  %v11475_v0 = vpop.f32.mrb[215].mxu1 }
 0x38e   : > { %v11581_v18 = vpop.f32.mrb[243].mxu0  ;;  %v4337_v35 = vadd.f32 %v11473_v44, %v14774_v60  ;;  %v11476_v9 = vadd.f32 %v11475_v0, %v11474_v5 }
 0x38f   : > { %v11582_v25 = vadd.f32 %v11581_v18, %v11580_v37  ;;  %v14957_v39 = vadd.f32 %v11579_v11, %v4329_v43 }
 0x390   : > { %v4340_v47 = vadd.f32 %v11476_v9, %v14776_v20 }
 0x391   : > { %v14960_v8 = vadd.f32 %v11582_v25, %v4332_v57 }
 0x392   : > { %v11477_v56 = vpop.f32.mrb[216].mxu1 }
 0x393   : > { %v11583_v42 = vpop.f32.mrb[244].mxu0  ;;  %v11478_v21 = vpop.f32.mrb[217].mxu1 }
 0x394   : > { %v11584_v60 = vpop.f32.mrb[245].mxu0  ;;  %v11479_v24 = vadd.f32 %v11478_v21, %v11477_v56  ;;  %v11480_v16 = vpop.f32.mrb[218].mxu1  ;;  %v13053_v56 = vld [vmem:[%s16559_s5 + $0x158] sm:$0xff]  }
 0x395   : > { %v11585_v33 = vadd.f32 %v11584_v60, %v11583_v42  ;;  %v11586_v55 = vpop.f32.mrb[246].mxu0  ;;  %v11481_v20 = vpop.f32.mrb[219].mxu1  ;;  %v13054_v42 = vld [vmem:[%s16559_s5 + $0x118] sm:$0xff]   ;;  %11903 = vmatprep.subr.bf16.mxu0 %v13053_v56 }
 0x396   : > { %v11587_v53 = vpop.f32.mrb[247].mxu0  ;;  %v4345_v54 = vadd.f32 %v11479_v24, %v14780_v12  ;;  %v11482_v46 = vadd.f32 %v11481_v20, %v11480_v16  ;;  %11904 = vmatpush3.bf16.msra.mxu0 %v13054_v42 }
 0x397   : > { %v11588_v58 = vadd.f32 %v11587_v53, %v11586_v55  ;;  %v14969_v41 = vadd.f32 %v11585_v33, %v4337_v35 }
 0x398   : > { %v4348_v43 = vadd.f32 %v11482_v46, %v14782_v23 }
 0x399   : > { %v14972_v30 = vadd.f32 %v11588_v58, %v4340_v47 }
 0x39a   : > { %v11483_v3 = vpop.f32.mrb[220].mxu1 }
 0x39b   : > { %v11589_v57 = vpop.f32.mrb[248].mxu0  ;;  %v11484_v27 = vpop.f32.mrb[221].mxu1 }
 0x39c   : > { %v11590_v51 = vpop.f32.mrb[249].mxu0  ;;  %v11485_v29 = vadd.f32 %v11484_v27, %v11483_v3  ;;  %v11486_v44 = vpop.f32.mrb[222].mxu1 }
 0x39d   : > { %v11591_v59 = vadd.f32 %v11590_v51, %v11589_v57  ;;  %v11592_v11 = vpop.f32.mrb[250].mxu0  ;;  %v11487_v5 = vpop.f32.mrb[223].mxu1 }
 0x39e   : > { %v11593_v37 = vpop.f32.mrb[251].mxu0  ;;  %v4353_v12 = vadd.f32 %v11485_v29, %v14792_v45  ;;  %v11488_v0 = vadd.f32 %v11487_v5, %v11486_v44 }
 0x39f   : > { %v11594_v18 = vadd.f32 %v11593_v37, %v11592_v11  ;;  %v14975_v35 = vadd.f32 %v11591_v59, %v4345_v54 }
 0x3a0   : > { %v4356_v23 = vadd.f32 %v11488_v0, %v14794_v17  ;;  %v13056_v0 = vld [vmem:[%s16559_s5 + $0x120] sm:$0xff]  }
 0x3a1   : > { %v14978_v9 = vadd.f32 %v11594_v18, %v4348_v43 }
 0x3a2   : > { %v11489_v25 = vpop.f32.mrb[224].mxu1 }
 0x3a3   : > { %v11595_v47 = vpop.f32.mrb[252].mxu0  ;;  %v11490_v19 = vpop.f32.mrb[225].mxu1 }
 0x3a4   : > { %v11596_v45 = vpop.f32.mrb[253].mxu0  ;;  %v11491_v40 = vadd.f32 %v11490_v19, %v11489_v25  ;;  %v11492_v60 = vpop.f32.mrb[226].mxu1 }
 0x3a5   : > { %v11597_v21 = vadd.f32 %v11596_v45, %v11595_v47  ;;  %v11598_v24 = vpop.f32.mrb[254].mxu0  ;;  %v11493_v17 = vpop.f32.mrb[227].mxu1 }
 0x3a6   : > { %v11599_v33 = vpop.f32.mrb[255].mxu0  ;;  %v4361_v16 = vadd.f32 %v11491_v40, %v14798_v48  ;;  %v11494_v55 = vadd.f32 %v11493_v17, %v11492_v60  ;;  %v13055_v48 = vld [vmem:[%s16559_s5 + $0x160] sm:$0xff]  }
 0x3a7   : > { %v11600_v20 = vadd.f32 %v11599_v33, %v11598_v24  ;;  %v14987_v53 = vadd.f32 %v11597_v21, %v4353_v12  ;;  %11905 = vmatprep.subr.bf16.mxu0 %v13055_v48 }
 0x3a8   : > { %v4364_v54 = vadd.f32 %v11494_v55, %v14800_v34  ;;  %11906 = vmatpush3.bf16.msra.mxu0 %v13056_v0 }
 0x3a9   : > { %v14990_v46 = vadd.f32 %v11600_v20, %v4356_v23 }
 0x3aa   : > { %v11495_v58 = vpop.f32.mrb[228].mxu1 }
 0x3ab   : > { %v11601_v43 = vpop.f32.mrb[0].mxu0  ;;  %v11496_v3 = vpop.f32.mrb[229].mxu1 }
 0x3ac   : > { %v11602_v57 = vpop.f32.mrb[1].mxu0  ;;  %v11497_v27 = vadd.f32 %v11496_v3, %v11495_v58  ;;  %v11498_v29 = vpop.f32.mrb[230].mxu1 }
 0x3ad   : > { %v11603_v51 = vadd.f32 %v11602_v57, %v11601_v43  ;;  %v11604_v59 = vpop.f32.mrb[2].mxu0  ;;  %v11499_v44 = vpop.f32.mrb[231].mxu1 }
 0x3ae   : > { %v11605_v11 = vpop.f32.mrb[3].mxu0  ;;  %v4369_v5 = vadd.f32 %v11497_v27, %v14810_v22  ;;  %v11500_v37 = vadd.f32 %v11499_v44, %v11498_v29 }
 0x3af   : > { %v11606_v34 = vadd.f32 %v11605_v11, %v11604_v59  ;;  %v14996_v12 = vadd.f32 %v11603_v51, %v4361_v16 }
 0x3b0   : > { %v4372_v18 = vadd.f32 %v11500_v37, %v14812_v7 }
 0x3b1   : > { %v15002_v23 = vadd.f32 %v11606_v34, %v4364_v54 }
 0x3b2   : > { %v11501_v25 = vpop.f32.mrb[232].mxu1 }
 0x3b3   : > { %v11607_v47 = vpop.f32.mrb[4].mxu0  ;;  %v11502_v56 = vpop.f32.mrb[233].mxu1 }
 0x3b4   : > { %v11608_v42 = vpop.f32.mrb[5].mxu0  ;;  %v11503_v19 = vadd.f32 %v11502_v56, %v11501_v25  ;;  %v11504_v45 = vpop.f32.mrb[234].mxu1 }
 0x3b5   : > { %v11609_v22 = vadd.f32 %v11608_v42, %v11607_v47  ;;  %v11610_v40 = vpop.f32.mrb[6].mxu0  ;;  %v11505_v21 = vpop.f32.mrb[235].mxu1 }
 0x3b6   : > { %v11611_v60 = vpop.f32.mrb[7].mxu0  ;;  %v4377_v24 = vadd.f32 %v11503_v19, %v14816_v49  ;;  %v11506_v17 = vadd.f32 %v11505_v21, %v11504_v45  ;;  %v13057_v49 = vld [vmem:[%s16559_s5 + $0x168] sm:$0xff]  }
 0x3b7   : > { %v11612_v33 = vadd.f32 %v11611_v60, %v11610_v40  ;;  %v15005_v16 = vadd.f32 %v11609_v22, %v4369_v5  ;;  %v13058_v5 = vld [vmem:[%s16559_s5 + $0x128] sm:$0xff]   ;;  %11907 = vmatprep.subr.bf16.mxu0 %v13057_v49 }
 0x3b8   : > { %v4380_v7 = vadd.f32 %v11506_v17, %v14818_v61  ;;  %11908 = vmatpush3.bf16.msra.mxu0 %v13058_v5 }
 0x3b9   : > { %v15008_v55 = vadd.f32 %v11612_v33, %v4372_v18 }
 0x3ba   : > { %v11507_v20 = vpop.f32.mrb[236].mxu1 }
 0x3bb   : > { %v11613_v54 = vpop.f32.mrb[8].mxu0  ;;  %v11508_v58 = vpop.f32.mrb[237].mxu1 }
 0x3bc   : > { %v11614_v43 = vpop.f32.mrb[9].mxu0  ;;  %v11509_v3 = vadd.f32 %v11508_v58, %v11507_v20  ;;  %v11510_v27 = vpop.f32.mrb[238].mxu1 }
 0x3bd   : > { %v11615_v57 = vadd.f32 %v11614_v43, %v11613_v54  ;;  %v11616_v51 = vpop.f32.mrb[10].mxu0  ;;  %v11511_v29 = vpop.f32.mrb[239].mxu1 }
 0x3be   : > { %v11617_v59 = vpop.f32.mrb[11].mxu0  ;;  %v4385_v44 = vadd.f32 %v11509_v3, %v14829_v50  ;;  %v11512_v11 = vadd.f32 %v11511_v29, %v11510_v27 }
 0x3bf   : > { %v11618_v61 = vadd.f32 %v11617_v59, %v11616_v51  ;;  %v15014_v48 = vadd.f32 %v11615_v57, %v4377_v24 }
 0x3c0   : > { %v4388_v37 = vadd.f32 %v11512_v11, %v14831_v28 }
 0x3c1   : > { %v15020_v34 = vadd.f32 %v11618_v61, %v4380_v7 }
 0x3c2   : > { %v11513_v0 = vpop.f32.mrb[240].mxu1 }
 0x3c3   : > { %v11619_v18 = vpop.f32.mrb[12].mxu0  ;;  %v11514_v25 = vpop.f32.mrb[241].mxu1 }
 0x3c4   : > { %v11620_v47 = vpop.f32.mrb[13].mxu0  ;;  %v11515_v56 = vadd.f32 %v11514_v25, %v11513_v0  ;;  %v11516_v42 = vpop.f32.mrb[242].mxu1 }
 0x3c5   : > { %v11621_v50 = vadd.f32 %v11620_v47, %v11619_v18  ;;  %v11622_v19 = vpop.f32.mrb[14].mxu0  ;;  %v11517_v22 = vpop.f32.mrb[243].mxu1 }
 0x3c6   : > { %v11623_v45 = vpop.f32.mrb[15].mxu0  ;;  %v4393_v40 = vadd.f32 %v11515_v56, %v14835_v52  ;;  %v11518_v21 = vadd.f32 %v11517_v22, %v11516_v42  ;;  %v13059_v52 = vld [vmem:[%s16559_s5 + $0x170] sm:$0xff]  }
 0x3c7   : > { %v11624_v60 = vadd.f32 %v11623_v45, %v11622_v19  ;;  %v15023_v24 = vadd.f32 %v11621_v50, %v4385_v44  ;;  %v13060_v44 = vld [vmem:[%s16559_s5 + $0x130] sm:$0xff]   ;;  %11909 = vmatprep.subr.bf16.mxu0 %v13059_v52  ;;  %v13061_v19 = vld [vmem:[%s16559_s5 + $0x1c0] sm:$0xff]  }
 0x3c8   : > { %v4396_v28 = vadd.f32 %v11518_v21, %v14837_v4  ;;  %11910 = vmatpush3.bf16.msra.mxu0 %v13060_v44  ;;  %12009 = vmatprep.subr.bf16.mxu1 %v13061_v19 }
 0x3c9   : > { %v15026_v17 = vadd.f32 %v11624_v60, %v4388_v37 }
 0x3ca   : > { %v11519_v33 = vpop.f32.mrb[244].mxu1 }
 0x3cb   : > { %v11625_v7 = vpop.f32.mrb[16].mxu0  ;;  %v11520_v20 = vpop.f32.mrb[245].mxu1 }
 0x3cc   : > { %v11626_v54 = vpop.f32.mrb[17].mxu0  ;;  %v11521_v58 = vadd.f32 %v11520_v20, %v11519_v33  ;;  %v11522_v3 = vpop.f32.mrb[246].mxu1 }
 0x3cd   : > { %v11627_v43 = vadd.f32 %v11626_v54, %v11625_v7  ;;  %v11628_v57 = vpop.f32.mrb[18].mxu0  ;;  %v11523_v27 = vpop.f32.mrb[247].mxu1 }
 0x3ce   : > { %v11629_v51 = vpop.f32.mrb[19].mxu0  ;;  %v4401_v29 = vadd.f32 %v11521_v58, %v14847_v14  ;;  %v11524_v59 = vadd.f32 %v11523_v27, %v11522_v3 }
 0x3cf   : > { %v11630_v4 = vadd.f32 %v11629_v51, %v11628_v57  ;;  %v15032_v49 = vadd.f32 %v11627_v43, %v4393_v40 }
 0x3d0   : > { %v4404_v11 = vadd.f32 %v11524_v59, %v14855_v63  ;;  %v13067_v59 = vld [vmem:[%s16559_s5 + $0x138] sm:$0xff]  }
 0x3d1   : > { %v15038_v61 = vadd.f32 %v11630_v4, %v4396_v28 }
 0x3d2   : > { %v11525_v5 = vpop.f32.mrb[248].mxu1 }
 0x3d3   : > { %v11631_v37 = vpop.f32.mrb[20].mxu0  ;;  %v11526_v0 = vpop.f32.mrb[249].mxu1 }
 0x3d4   : > { %v11632_v18 = vpop.f32.mrb[21].mxu0  ;;  %v11527_v25 = vadd.f32 %v11526_v0, %v11525_v5  ;;  %v11528_v47 = vpop.f32.mrb[250].mxu1 }
 0x3d5   : > { %v11633_v14 = vadd.f32 %v11632_v18, %v11631_v37  ;;  %v11634_v56 = vpop.f32.mrb[22].mxu0  ;;  %v11529_v50 = vpop.f32.mrb[251].mxu1 }
 0x3d6   : > { %v11635_v42 = vpop.f32.mrb[23].mxu0  ;;  %v4409_v22 = vadd.f32 %v11527_v25, %v14865_v26  ;;  %v11530_v63 = vadd.f32 %v11529_v50, %v11528_v47  ;;  %v13065_v26 = vld [vmem:[%s16559_s5 + $0x178] sm:$0xff]  }
 0x3d7   : > { %v11636_v45 = vadd.f32 %v11635_v42, %v11634_v56  ;;  %v15044_v40 = vadd.f32 %v11633_v14, %v4401_v29  ;;  %11911 = vmatprep.subr.bf16.mxu0 %v13065_v26 }
 0x3d8   : > { %v4412_v21 = vadd.f32 %v11530_v63, %v14873_v38  ;;  %11912 = vmatpush3.bf16.msra.mxu0 %v13067_v59 }
 0x3d9   : > { %v15047_v60 = vadd.f32 %v11636_v45, %v4404_v11 }
 0x3da   : > { %v11531_v28 = vpop.f32.mrb[252].mxu1 }
 0x3db   : > { %v11637_v33 = vpop.f32.mrb[24].mxu0  ;;  %v11532_v7 = vpop.f32.mrb[253].mxu1 }
 0x3dc   : > { %v11638_v20 = vpop.f32.mrb[25].mxu0  ;;  %v11533_v54 = vadd.f32 %v11532_v7, %v11531_v28  ;;  %v11534_v43 = vpop.f32.mrb[254].mxu1 }
 0x3dd   : > { %v11639_v58 = vadd.f32 %v11638_v20, %v11637_v33  ;;  %v11640_v3 = vpop.f32.mrb[26].mxu0  ;;  %v11535_v57 = vpop.f32.mrb[255].mxu1 }
 0x3de   : > { %v11641_v27 = vpop.f32.mrb[27].mxu0  ;;  %v4417_v51 = vadd.f32 %v11533_v54, %v14889_v62  ;;  %v11536_v52 = vadd.f32 %v11535_v57, %v11534_v43  ;;  %v15075_v57 = vld [vmem:[%s16559_s5 + $0x200] sm:$0xff]  }
 0x3df   : > { %v11642_v38 = vadd.f32 %v11641_v27, %v11640_v3  ;;  %v15053_v29 = vadd.f32 %v11639_v58, %v4409_v22  ;;  %12731 = vmatprep.subr.bf16.mxu0 %v15075_v57 }
 0x3e0   : > { %v4420_v4 = vadd.f32 %v11536_v52, %v14898_v15  ;;  %v4938_v52 = vld [vmem:[#allocation2 + $0x11] sm:$0xff] }
 0x3e1   : > { %v15059_v44 = vadd.f32 %v11642_v38, %v4412_v21 }
 0x3e2   : > { %v12701_v5 = vpop.f32.mrb[0].mxu1 }
 0x3e3   : > { %v11643_v11 = vpop.f32.mrb[28].mxu0  ;;  %v4627_v37 = vadd.f32 %v12701_v5, %v14933_v2  ;;  %v4618_v62 = vpop.f32.mrb[1].mxu1 }
 0x3e4   : > { %v11644_v0 = vpop.f32.mrb[29].mxu0  ;;  %v4619_v25 = vadd.f32 %v4618_v62, %v14909_v6  ;;  %v12702_v47 = vpop.f32.mrb[2].mxu1 }
 0x3e5   : > { %v11645_v18 = vadd.f32 %v11644_v0, %v11643_v11  ;;  %v11646_v14 = vpop.f32.mrb[30].mxu0  ;;  %v4747_v56 = vmax.f32 %v4627_v37, 0.0  ;;  %v4630_v50 = vadd.f32 %v12702_v47, %v14936_v13  ;;  %v4621_v19 = vpop.f32.mrb[3].mxu1 }
 0x3e6   : > { %v11647_v42 = vpop.f32.mrb[31].mxu0  ;;  %v4745_v15 = vmax.f32 %v4619_v25, 0.0  ;;  %v4622_v63 = vadd.f32 %v4621_v19, %v14918_v1 }
 0x3e7   : > { %v11648_v22 = vadd.f32 %v11647_v42, %v11646_v14  ;;  %v15065_v45 = vadd.f32 %v11645_v18, %v4417_v51  ;;  %4779 = vst [vmem:[#allocation2 + $0x48] sm:$0xff] %v4747_v56  ;;  %v4748_v2 = vmax.f32 %v4630_v50, 0.0  ;;  %v4937_v51 = vld [vmem:[#allocation2 + $0x9] sm:$0xff] }
 0x3e8   : > { %4777 = vst [vmem:[#allocation2 + $0x28] sm:$0xff] %v4745_v15  ;;  %v4746_v21 = vmax.f32 %v4622_v63, 0.0  ;;  %v4969_v59 = vpack.c.bf16 %v4938_v52, %v4937_v51  ;;  %v13063_v14 = vld [vmem:[%s16559_s5 + $0x1c8] sm:$0xff]  }
 0x3e9   : > { %v15067_v28 = vadd.f32 %v11648_v22, %v4420_v4  ;;  %4780 = vst [vmem:[#allocation2 + $0x50] sm:$0xff] %v4748_v2  ;;  %v4907_v6 = vpack.c.bf16 %v4748_v2, %v4747_v56 }
 0x3ea   : > { %4778 = vst [vmem:[#allocation2 + $0x30] sm:$0xff] %v4746_v21  ;;  %v12705_v33 = vpop.f32.mrb[4].mxu1  ;;  %v4906_v7 = vpack.c.bf16 %v4746_v21, %v4745_v15 }
 0x3eb   : > { %v4643_v13 = vadd.f32 %v12705_v33, %v14951_v31  ;;  %v4634_v20 = vpop.f32.mrb[5].mxu1 }
 0x3ec   : > { %v4635_v54 = vadd.f32 %v4634_v20, %v14939_v36  ;;  %v12706_v58 = vpop.f32.mrb[6].mxu1  ;;  %6152 = vmatprep.mubr.bf16.mxu0 %v4906_v7  ;;  %v13068_v20 = vld [vmem:[%s16559_s5 + $0x190] sm:$0xff]  }
 0x3ed   : > { %v4751_v1 = vmax.f32 %v4643_v13, 0.0  ;;  %v4646_v43 = vadd.f32 %v12706_v58, %v14954_v10  ;;  %v4637_v3 = vpop.f32.mrb[7].mxu1 }
 0x3ee   : > { %v4749_v27 = vmax.f32 %v4635_v54, 0.0  ;;  %v4638_v26 = vadd.f32 %v4637_v3, %v14942_v32  ;;  %v13062_v32 = vld [vmem:[%s16559_s5 + $0x180] sm:$0xff]   ;;  %v13069_v3 = vld [vmem:[%s16559_s5 + $0x1d8] sm:$0xff]  }
 0x3ef   : > { %4783 = vst [vmem:[#allocation2 + $0x88] sm:$0xff] %v4751_v1  ;;  %v4752_v31 = vmax.f32 %v4646_v43, 0.0  ;;  %v5001_v38 = vld [vmem:[#allocation2 + $0x27] sm:$0xff] }
 0x3f0   : > { %4781 = vst [vmem:[#allocation2 + $0x68] sm:$0xff] %v4749_v27  ;;  %v4750_v36 = vmax.f32 %v4638_v26, 0.0  ;;  %v5004_v4 = vld [vmem:[#allocation2 + $0x4f] sm:$0xff]  ;;  %v5003_v25 = vld [vmem:[#allocation2 + $0x47] sm:$0xff] }
 0x3f1   : > { %4784 = vst [vmem:[#allocation2 + $0x90] sm:$0xff] %v4752_v31  ;;  %v5002_v10 = vld [vmem:[#allocation2 + $0x2f] sm:$0xff]  ;;  %v15079_v11 = vpack.c.bf16 %v4752_v31, %v4751_v1  ;;  %v15089_v50 = vpack.c.bf16 %v5004_v4, %v5003_v25 }
 0x3f2   : > { %4782 = vst [vmem:[#allocation2 + $0x70] sm:$0xff] %v4750_v36  ;;  %v12709_v5 = vpop.f32.mrb[8].mxu1  ;;  %v5033_v37 = vpack.c.bf16 %v5002_v10, %v5001_v38  ;;  %v4908_v0 = vpack.c.bf16 %v4750_v36, %v4749_v27  ;;  %v4939_v21 = vld [vmem:[#allocation2 + $0x29] sm:$0xff] }
 0x3f3   : > { %v4659_v62 = vadd.f32 %v12709_v5, %v14969_v41  ;;  %v4650_v18 = vpop.f32.mrb[9].mxu1  ;;  %v4941_v4 = vld [vmem:[#allocation2 + $0x49] sm:$0xff]  ;;  %v4942_v5 = vld [vmem:[#allocation2 + $0x51] sm:$0xff] }
 0x3f4   : > { %v4651_v47 = vadd.f32 %v4650_v18, %v14957_v39  ;;  %v12710_v56 = vpop.f32.mrb[10].mxu1  ;;  %6305 = vmatprep.mubr.bf16.mxu1 %v5033_v37  ;;  %6153 = vmatmul.mubr.bf16.gmra.mrb[36].mxu0 %v5033_v37  ;;  %v13064_v39 = vld [vmem:[%s16559_s5 + $0x188] sm:$0xff]  }
 0x3f5   : > { %v4755_v42 = vmax.f32 %v4659_v62, 0.0  ;;  %v4662_v19 = vadd.f32 %v12710_v56, %v14972_v30  ;;  %v4653_v15 = vpop.f32.mrb[11].mxu1  ;;  %6306 = vmatmul.mubr.bf16.vlgmr.msra.gmra.mrb[32].mxu1 %v4969_v59  ;;  %6160 = vmatprep.mubr.bf16.mxu0 %v4907_v6  ;;  %v13066_v30 = vld [vmem:[%s16559_s5 + $0x1d0] sm:$0xff]   ;;  %v13072_v62 = vld [vmem:[%s16559_s5 + $0x1a0] sm:$0xff]   ;;  %v13073_v56 = vld [vmem:[%s16559_s5 + $0x1e8] sm:$0xff]  }
 0x3f6   : > { %v4753_v41 = vmax.f32 %v4651_v47, 0.0  ;;  %v4654_v22 = vadd.f32 %v4653_v15, %v14960_v8  ;;  %6313 = vmatprep.mubr.bf16.mxu1 %v15089_v50  ;;  %12010 = vmatpush3.bf16.msra.mxu1 %v13062_v32  ;;  %v4940_v6 = vld [vmem:[#allocation2 + $0x31] sm:$0xff]  ;;  %v5007_v47 = vld [vmem:[#allocation2 + $0x87] sm:$0xff] }
 0x3f7   : > { %4787 = vst [vmem:[#allocation2 + $0xc8] sm:$0xff] %v4755_v42  ;;  %v4756_v63 = vmax.f32 %v4662_v19, 0.0  ;;  %12011 = vmatprep.subr.bf16.mxu1 %v13063_v14  ;;  %v15108_v1 = vpack.c.bf16 %v4940_v6, %v4939_v21  ;;  %v5005_v43 = vld [vmem:[#allocation2 + $0x67] sm:$0xff]  ;;  %v15135_v14 = vpack.c.bf16 %v4942_v5, %v4941_v4 }
 0x3f8   : > { %4785 = vst [vmem:[#allocation2 + $0xa8] sm:$0xff] %v4753_v41  ;;  %v4754_v2 = vmax.f32 %v4654_v22, 0.0 }
 0x3f9   : > { %4788 = vst [vmem:[#allocation2 + $0xd0] sm:$0xff] %v4756_v63  ;;  %v5006_v8 = vld [vmem:[#allocation2 + $0x6f] sm:$0xff]  ;;  %v15100_v33 = vpack.c.bf16 %v4756_v63, %v4755_v42 }
 0x3fa   : > { %4786 = vst [vmem:[#allocation2 + $0xb0] sm:$0xff] %v4754_v2  ;;  %v12713_v7 = vpop.f32.mrb[12].mxu1  ;;  %v15102_v13 = vpack.c.bf16 %v4754_v2, %v4753_v41  ;;  %12012 = vmatpush3.bf16.msra.mxu1 %v13064_v39  ;;  %v15115_v51 = vpack.c.bf16 %v5006_v8, %v5005_v43  ;;  %v4944_v21 = vld [vmem:[#allocation2 + $0x71] sm:$0xff] }
 0x3fb   : > { %v4675_v54 = vadd.f32 %v12713_v7, %v14987_v53  ;;  %v4666_v58 = vpop.f32.mrb[13].mxu1  ;;  %12013 = vmatprep.subr.bf16.mxu1 %v13066_v30 }
 0x3fc   : > { %v4667_v27 = vadd.f32 %v4666_v58, %v14975_v35  ;;  %v12714_v26 = vpop.f32.mrb[14].mxu1  ;;  %6161 = vmatmul.mubr.bf16.gmra.mrb[40].mxu0 %v15089_v50  ;;  %v13070_v35 = vld [vmem:[%s16559_s5 + $0x198] sm:$0xff]  }
 0x3fd   : > { %v4759_v52 = vmax.f32 %v4675_v54, 0.0  ;;  %v4678_v31 = vadd.f32 %v12714_v26, %v14990_v46  ;;  %v4669_v53 = vpop.f32.mrb[15].mxu1  ;;  %6314 = vmatmul.mubr.bf16.gmra.mrb[36].mxu1 %v15108_v1  ;;  %6168 = vmatprep.mubr.bf16.mxu0 %v4908_v0  ;;  %v13071_v46 = vld [vmem:[%s16559_s5 + $0x1e0] sm:$0xff]  }
 0x3fe   : > { %v4757_v36 = vmax.f32 %v4667_v27, 0.0  ;;  %v4670_v38 = vadd.f32 %v4669_v53, %v14978_v9  ;;  %6321 = vmatprep.mubr.bf16.mxu1 %v15115_v51  ;;  %12014 = vmatpush3.bf16.msra.mxu1 %v13068_v20  ;;  %v5008_v9 = vld [vmem:[#allocation2 + $0x8f] sm:$0xff]  ;;  %v13078_v27 = vld [vmem:[%s16559_s5 + $0x1f8] sm:$0xff]  }
 0x3ff   : > { %4791 = vst [vmem:[#allocation2 + $0x108] sm:$0xff] %v4759_v52  ;;  %v4760_v10 = vmax.f32 %v4678_v31, 0.0  ;;  %12015 = vmatprep.subr.bf16.mxu1 %v13069_v3  ;;  %v15142_v15 = vpack.c.bf16 %v5008_v9, %v5007_v47  ;;  %v13077_v20 = vld [vmem:[%s16559_s5 + $0x1b0] sm:$0xff]   ;;  %v5009_v3 = vld [vmem:[#allocation2 + $0xa7] sm:$0xff] }
 0x400   : > { %4789 = vst [vmem:[#allocation2 + $0xe8] sm:$0xff] %v4757_v36  ;;  %v4758_v59 = vmax.f32 %v4670_v38, 0.0  ;;  %v5012_v4 = vld [vmem:[#allocation2 + $0xcf] sm:$0xff] }
 0x401   : > { %4792 = vst [vmem:[#allocation2 + $0x110] sm:$0xff] %v4760_v10  ;;  %v15127_v37 = vpack.c.bf16 %v4760_v10, %v4759_v52 }
 0x402   : > { %4790 = vst [vmem:[#allocation2 + $0xf0] sm:$0xff] %v4758_v59  ;;  %v12717_v0 = vpop.f32.mrb[16].mxu1  ;;  %v15129_v32 = vpack.c.bf16 %v4758_v59, %v4757_v36  ;;  %12016 = vmatpush3.bf16.msra.mxu1 %v13070_v35  ;;  %v4946_v59 = vld [vmem:[#allocation2 + $0x91] sm:$0xff] }
 0x403   : > { %v4691_v18 = vadd.f32 %v12717_v0, %v15005_v16  ;;  %v4682_v25 = vpop.f32.mrb[17].mxu1  ;;  %12017 = vmatprep.subr.bf16.mxu1 %v13071_v46  ;;  %v4945_v46 = vld [vmem:[#allocation2 + $0x89] sm:$0xff] }
 0x404   : > { %v4683_v42 = vadd.f32 %v4682_v25, %v14996_v12  ;;  %v12718_v19 = vpop.f32.mrb[18].mxu1  ;;  %6169 = vmatmul.mubr.bf16.gmra.mrb[44].mxu0 %v15115_v51  ;;  %v13074_v12 = vld [vmem:[%s16559_s5 + $0x1a8] sm:$0xff]  }
 0x405   : > { %v4763_v41 = vmax.f32 %v4691_v18, 0.0  ;;  %v4694_v22 = vadd.f32 %v12718_v19, %v15008_v55  ;;  %v4685_v16 = vpop.f32.mrb[19].mxu1  ;;  %6322 = vmatmul.mubr.bf16.gmra.mrb[40].mxu1 %v15135_v14  ;;  %6176 = vmatprep.mubr.bf16.mxu0 %v15079_v11  ;;  %v13075_v55 = vld [vmem:[%s16559_s5 + $0x1f0] sm:$0xff]   ;;  %v5011_v18 = vld [vmem:[#allocation2 + $0xc7] sm:$0xff] }
 0x406   : > { %v4761_v39 = vmax.f32 %v4683_v42, 0.0  ;;  %v4686_v63 = vadd.f32 %v4685_v16, %v15002_v23  ;;  %6329 = vmatprep.mubr.bf16.mxu1 %v15142_v15  ;;  %12018 = vmatpush3.bf16.msra.mxu1 %v13072_v62  ;;  %v4943_v11 = vld [vmem:[#allocation2 + $0x69] sm:$0xff]  ;;  %v15185_v62 = vpack.c.bf16 %v4946_v59, %v4945_v46 }
 0x407   : > { %4795 = vst [vmem:[#allocation2 + $0x148] sm:$0xff] %v4763_v41  ;;  %v4764_v30 = vmax.f32 %v4694_v22, 0.0  ;;  %12019 = vmatprep.subr.bf16.mxu1 %v13073_v56  ;;  %v5010_v23 = vld [vmem:[#allocation2 + $0xaf] sm:$0xff]  ;;  %v15163_v43 = vpack.c.bf16 %v4944_v21, %v4943_v11  ;;  %v15189_v56 = vpack.c.bf16 %v5012_v4, %v5011_v18  ;;  %v5013_v11 = vld [vmem:[#allocation2 + $0xe7] sm:$0xff] }
 0x408   : > { %4793 = vst [vmem:[#allocation2 + $0x128] sm:$0xff] %v4761_v39  ;;  %v4762_v2 = vmax.f32 %v4686_v63, 0.0  ;;  %v15170_v31 = vpack.c.bf16 %v5010_v23, %v5009_v3  ;;  %v4948_v63 = vld [vmem:[#allocation2 + $0xb1] sm:$0xff]  ;;  %v4953_v46 = vld [vmem:[#allocation2 + $0x109] sm:$0xff] }
 0x409   : > { %4796 = vst [vmem:[#allocation2 + $0x150] sm:$0xff] %v4764_v30  ;;  %v15155_v6 = vpack.c.bf16 %v4764_v30, %v4763_v41 }
 0x40a   : > { %4794 = vst [vmem:[#allocation2 + $0x130] sm:$0xff] %v4762_v2  ;;  %v12721_v8 = vpop.f32.mrb[20].mxu1  ;;  %v15157_v7 = vpack.c.bf16 %v4762_v2, %v4761_v39  ;;  %12020 = vmatpush3.bf16.msra.mxu1 %v13074_v12  ;;  %v4947_v39 = vld [vmem:[#allocation2 + $0xa9] sm:$0xff] }
 0x40b   : > { %v4707_v54 = vadd.f32 %v12721_v8, %v15023_v24  ;;  %v4698_v58 = vpop.f32.mrb[21].mxu1  ;;  %12021 = vmatprep.subr.bf16.mxu1 %v13075_v55  ;;  %v5014_v12 = vld [vmem:[#allocation2 + $0xef] sm:$0xff] }
 0x40c   : > { %v4699_v26 = vadd.f32 %v4698_v58, %v15014_v48  ;;  %v12722_v52 = vpop.f32.mrb[22].mxu1  ;;  %6177 = vmatmul.mubr.bf16.gmra.mrb[48].mxu0 %v15142_v15  ;;  %v13079_v48 = vld [vmem:[%s16559_s5 + $0x1b8] sm:$0xff]   ;;  %v15205_v8 = vpack.c.bf16 %v5014_v12, %v5013_v11 }
 0x40d   : > { %v4767_v53 = vmax.f32 %v4707_v54, 0.0  ;;  %v4710_v36 = vadd.f32 %v12722_v52, %v15026_v17  ;;  %v4701_v24 = vpop.f32.mrb[23].mxu1  ;;  %6330 = vmatmul.mubr.bf16.gmra.mrb[44].mxu1 %v15163_v43  ;;  %6184 = vmatprep.mubr.bf16.mxu0 %v15102_v13  ;;  %v4950_v52 = vld [vmem:[#allocation2 + $0xd1] sm:$0xff] }
 0x40e   : > { %v4765_v38 = vmax.f32 %v4699_v26, 0.0  ;;  %v4702_v35 = vadd.f32 %v4701_v24, %v15020_v34  ;;  %6337 = vmatprep.mubr.bf16.mxu1 %v15170_v31  ;;  %12022 = vmatpush3.bf16.msra.mxu1 %v13077_v20  ;;  %v4949_v26 = vld [vmem:[#allocation2 + $0xc9] sm:$0xff] }
 0x40f   : > { %4799 = vst [vmem:[#allocation2 + $0x188] sm:$0xff] %v4767_v53  ;;  %v4768_v10 = vmax.f32 %v4710_v36, 0.0  ;;  %12023 = vmatprep.subr.bf16.mxu1 %v13078_v27  ;;  %v15214_v36 = vpack.c.bf16 %v4950_v52, %v4949_v26  ;;  %v5015_v24 = vld [vmem:[#allocation2 + $0x107] sm:$0xff] }
 0x410   : > { %4797 = vst [vmem:[#allocation2 + $0x168] sm:$0xff] %v4765_v38  ;;  %v4766_v17 = vmax.f32 %v4702_v35, 0.0  ;;  %v5020_v59 = vld [vmem:[#allocation2 + $0x14f] sm:$0xff] }
 0x411   : > { %4800 = vst [vmem:[#allocation2 + $0x190] sm:$0xff] %v4768_v10  ;;  %v15180_v13 = vpack.c.bf16 %v4768_v10, %v4767_v53  ;;  %v5016_v53 = vld [vmem:[#allocation2 + $0x10f] sm:$0xff]  ;;  %v5017_v10 = vld [vmem:[#allocation2 + $0x127] sm:$0xff] }
 0x412   : > { %4798 = vst [vmem:[#allocation2 + $0x170] sm:$0xff] %v4766_v17  ;;  %v12725_v34 = vpop.f32.mrb[24].mxu1  ;;  %v15182_v5 = vpack.c.bf16 %v4766_v17, %v4765_v38  ;;  %12024 = vmatpush3.bf16.msra.mxu1 %v13079_v48  ;;  %v4952_v38 = vld [vmem:[#allocation2 + $0xf1] sm:$0xff] }
 0x413   : > { %v4723_v9 = vadd.f32 %v12725_v34, %v15044_v40  ;;  %v4714_v0 = vpop.f32.mrb[25].mxu1  ;;  %v5018_v35 = vld [vmem:[#allocation2 + $0x12f] sm:$0xff]  ;;  %v5019_v34 = vld [vmem:[#allocation2 + $0x147] sm:$0xff] }
 0x414   : > { %v4715_v25 = vadd.f32 %v4714_v0, %v15032_v49  ;;  %v12726_v47 = vpop.f32.mrb[26].mxu1  ;;  %6185 = vmatmul.mubr.bf16.gmra.mrb[52].mxu0 %v15170_v31  ;;  %v15225_v17 = vpack.c.bf16 %v5018_v35, %v5017_v10  ;;  %v4955_v0 = vld [vmem:[#allocation2 + $0x129] sm:$0xff] }
 0x415   : > { %v4771_v42 = vmax.f32 %v4723_v9, 0.0  ;;  %v4726_v19 = vadd.f32 %v12726_v47, %v15047_v60  ;;  %v4717_v41 = vpop.f32.mrb[27].mxu1  ;;  %6338 = vmatmul.mubr.bf16.gmra.mrb[48].mxu1 %v15185_v62  ;;  %6192 = vmatprep.mubr.bf16.mxu0 %v15100_v33  ;;  %v15233_v9 = vpack.c.bf16 %v5020_v59, %v5019_v34  ;;  %v5065_v34 = vld [vmem:[#allocation2 + $0x28] sm:$0xff] }
 0x416   : > { %v4769_v40 = vmax.f32 %v4715_v25, 0.0  ;;  %v4718_v22 = vadd.f32 %v4717_v41, %v15038_v61  ;;  %6345 = vmatprep.mubr.bf16.mxu1 %v15189_v56  ;;  %v15201_v61 = vpack.c.bf16 %v4948_v63, %v4947_v39  ;;  %v4958_v41 = vld [vmem:[#allocation2 + $0x151] sm:$0xff]  ;;  %v5023_v12 = vld [vmem:[#allocation2 + $0x187] sm:$0xff] }
 0x417   : > { %4803 = vst [vmem:[#allocation2 + $0x1c8] sm:$0xff] %v4771_v42  ;;  %v4772_v49 = vmax.f32 %v4726_v19, 0.0  ;;  %v5021_v47 = vld [vmem:[#allocation2 + $0x167] sm:$0xff] }
 0x418   : > { %4801 = vst [vmem:[#allocation2 + $0x1a8] sm:$0xff] %v4769_v40  ;;  %v4770_v16 = vmax.f32 %v4718_v22, 0.0  ;;  %v5024_v22 = vld [vmem:[#allocation2 + $0x18f] sm:$0xff] }
 0x419   : > { %4804 = vst [vmem:[#allocation2 + $0x1d0] sm:$0xff] %v4772_v49  ;;  %v15196_v30 = vpack.c.bf16 %v4772_v49, %v4771_v42  ;;  %v5022_v18 = vld [vmem:[#allocation2 + $0x16f] sm:$0xff] }
 0x41a   : > { %4802 = vst [vmem:[#allocation2 + $0x1b0] sm:$0xff] %v4770_v16  ;;  %v12729_v60 = vpop.f32.mrb[28].mxu1  ;;  %v15198_v55 = vpack.c.bf16 %v4770_v16, %v4769_v40  ;;  %v15241_v42 = vpack.c.bf16 %v5022_v18, %v5021_v47  ;;  %v5257_v47 = vld [vmem:[#allocation2 + $0x48] sm:$0xff] }
 0x41b   : > { %v4739_v33 = vadd.f32 %v12729_v60, %v15065_v45  ;;  %v4730_v2 = vpop.f32.mrb[29].mxu1 }
 0x41c   : > { %v4731_v21 = vadd.f32 %v4730_v2, %v15053_v29  ;;  %v12730_v23 = vpop.f32.mrb[30].mxu1  ;;  %6193 = vmatmul.mubr.bf16.gmra.mrb[56].mxu0 %v15189_v56  ;;  %v4960_v2 = vld [vmem:[#allocation2 + $0x171] sm:$0xff] }
 0x41d   : > { %v4775_v20 = vmax.f32 %v4739_v33, 0.0  ;;  %v4742_v54 = vadd.f32 %v12730_v23, %v15067_v28  ;;  %v4733_v58 = vpop.f32.mrb[31].mxu1  ;;  %6346 = vmatmul.mubr.bf16.gmra.mrb[52].mxu1 %v15201_v61  ;;  %6200 = vmatprep.mubr.bf16.mxu0 %v15129_v32  ;;  %v15217_v32 = vpack.c.bf16 %v5016_v53, %v5015_v24  ;;  %v15253_v33 = vpack.c.bf16 %v5024_v22, %v5023_v12  ;;  %v13082_v22 = vld [vmem:[%s16559_s5 + $0x218] sm:$0xff]   ;;  %v13084_v12 = vld [vmem:[%s16559_s5 + $0x228] sm:$0xff]  }
 0x41e   : > { %v4773_v45 = vmax.f32 %v4731_v21, 0.0  ;;  %v4734_v3 = vadd.f32 %v4733_v58, %v15059_v44  ;;  %6353 = vmatprep.mubr.bf16.mxu1 %v15205_v8  ;;  %v4951_v44 = vld [vmem:[#allocation2 + $0xe9] sm:$0xff] }
 0x41f   : > { %4807 = vst [vmem:[#allocation2 + $0x208] sm:$0xff] %v4775_v20  ;;  %v4776_v29 = vmax.f32 %v4742_v54, 0.0  ;;  %v15222_v48 = vpack.c.bf16 %v4952_v38, %v4951_v44  ;;  %v5025_v23 = vld [vmem:[#allocation2 + $0x1a7] sm:$0xff] }
 0x420   : > { %4805 = vst [vmem:[#allocation2 + $0x1e8] sm:$0xff] %v4773_v45  ;;  %v4774_v27 = vmax.f32 %v4734_v3, 0.0  ;;  %v4961_v54 = vld [vmem:[#allocation2 + $0x189] sm:$0xff] }
 0x421   : > { %4808 = vst [vmem:[#allocation2 + $0x210] sm:$0xff] %v4776_v29  ;;  %v5026_v11 = vld [vmem:[#allocation2 + $0x1af] sm:$0xff]  ;;  %v5027_v3 = vld [vmem:[#allocation2 + $0x1c7] sm:$0xff] }
 0x422   : > { %4806 = vst [vmem:[#allocation2 + $0x1f0] sm:$0xff] %v4774_v27  ;;  %v15212_v28 = vpack.c.bf16 %v4774_v27, %v4773_v45  ;;  %v15261_v20 = vpack.c.bf16 %v5026_v11, %v5025_v23  ;;  %v5028_v58 = vld [vmem:[#allocation2 + $0x1cf] sm:$0xff]  ;;  %v13086_v11 = vld [vmem:[%s16559_s5 + $0x238] sm:$0xff]  }
 0x423   : > { %v15269_v29 = vpack.c.bf16 %v5028_v58, %v5027_v3  ;;  %v4963_v27 = vld [vmem:[#allocation2 + $0x1a9] sm:$0xff] }
 0x424   : > { %6201 = vmatmul.mubr.bf16.gmra.mrb[60].mxu0 %v15205_v8  ;;  %v4965_v44 = vld [vmem:[#allocation2 + $0x1c9] sm:$0xff] }
 0x425   : > { %6354 = vmatmul.mubr.bf16.gmra.mrb[56].mxu1 %v15214_v36  ;;  %6208 = vmatprep.mubr.bf16.mxu0 %v15127_v37  ;;  %v4954_v37 = vld [vmem:[#allocation2 + $0x111] sm:$0xff]  ;;  %v5267_v58 = vld [vmem:[#allocation2 + $0xe8] sm:$0xff] }
 0x426   : > { %6361 = vmatprep.mubr.bf16.mxu1 %v15217_v32  ;;  %v15230_v4 = vpack.c.bf16 %v4954_v37, %v4953_v46  ;;  %v5031_v10 = vld [vmem:[#allocation2 + $0x207] sm:$0xff]  ;;  %v5066_v37 = vld [vmem:[#allocation2 + $0x30] sm:$0xff] }
 0x427   : > { %v5029_v53 = vld [vmem:[#allocation2 + $0x1e7] sm:$0xff] }
 0x428   : > { %v5032_v38 = vld [vmem:[#allocation2 + $0x20f] sm:$0xff] }
 0x429   : > { %v5030_v26 = vld [vmem:[#allocation2 + $0x1ef] sm:$0xff]  ;;  %v15285_v46 = vpack.c.bf16 %v5032_v38, %v5031_v10 }
 0x42a   : > { %v15277_v24 = vpack.c.bf16 %v5030_v26, %v5029_v53  ;;  %v4968_v59 = vld [vmem:[#allocation2 + $0x1f1] sm:$0xff] }
 0x42c   : > { %6209 = vmatmul.mubr.bf16.gmra.mrb[64].mxu0 %v15217_v32 }
 0x42d   : > { %6362 = vmatmul.mubr.bf16.gmra.mrb[60].mxu1 %v15222_v48  ;;  %6216 = vmatprep.mubr.bf16.mxu0 %v15157_v7  ;;  %v4956_v7 = vld [vmem:[#allocation2 + $0x131] sm:$0xff] }
 0x42e   : > { %6369 = vmatprep.mubr.bf16.mxu1 %v15225_v17  ;;  %v15238_v25 = vpack.c.bf16 %v4956_v7, %v4955_v0  ;;  %v5258_v0 = vld [vmem:[#allocation2 + $0x50] sm:$0xff]  ;;  %v5097_v7 = vpack.c.bf16 %v5066_v37, %v5065_v34 }
 0x434   : > { %6217 = vmatmul.mubr.bf16.gmra.mrb[68].mxu0 %v15225_v17 }
 0x435   : > { %6370 = vmatmul.mubr.bf16.gmra.mrb[64].mxu1 %v15230_v4  ;;  %6224 = vmatprep.mubr.bf16.mxu0 %v15155_v6  ;;  %v4957_v6 = vld [vmem:[#allocation2 + $0x149] sm:$0xff] }
 0x436   : > { %6377 = vmatprep.mubr.bf16.mxu1 %v15233_v9  ;;  %v11689_v19 = vpop.f32.mrb[32].mxu0  ;;  %v15248_v63 = vpack.c.bf16 %v4958_v41, %v4957_v6  ;;  %v5289_v6 = vpack.c.bf16 %v5258_v0, %v5257_v47  ;;  %v5260_v41 = vld [vmem:[#allocation2 + $0x70] sm:$0xff]  ;;  %v5281_v47 = vld [vmem:[#allocation2 + $0x1c8] sm:$0xff] }
 0x437   : > { %v11690_v40 = vpop.f32.mrb[33].mxu0 }
 0x438   : > { %v15246_v49 = vadd.f32 %v11690_v40, %v11689_v19  ;;  %v11692_v16 = vpop.f32.mrb[34].mxu0  ;;  %v13080_v19 = vld [vmem:[%s16559_s5 + $0x208] sm:$0xff]  }
 0x439   : > { %v11693_v39 = vpop.f32.mrb[35].mxu0  ;;  %v5259_v40 = vld [vmem:[#allocation2 + $0x68] sm:$0xff] }
 0x43a   : > { %v15250_v60 = vadd.f32 %v11693_v39, %v11692_v16  ;;  %v5290_v16 = vpack.c.bf16 %v5260_v41, %v5259_v40  ;;  %v5261_v39 = vld [vmem:[#allocation2 + $0x88] sm:$0xff]  ;;  %v13088_v40 = vld [vmem:[%s16561_s7] sm:$0xff]  }
 0x43c   : > { %6225 = vmatmul.mubr.bf16.gmra.mrb[72].mxu0 %v15233_v9 }
 0x43d   : > { %6378 = vmatmul.mubr.bf16.gmra.mrb[68].mxu1 %v15238_v25  ;;  %6232 = vmatprep.mubr.bf16.mxu0 %v15182_v5  ;;  %v4959_v5 = vld [vmem:[#allocation2 + $0x169] sm:$0xff] }
 0x43e   : > { %6385 = vmatprep.mubr.bf16.mxu1 %v15241_v42  ;;  %v15258_v21 = vpack.c.bf16 %v4960_v2, %v4959_v5  ;;  %v5263_v2 = vld [vmem:[#allocation2 + $0xa8] sm:$0xff] }
 0x444   : > { %6233 = vmatmul.mubr.bf16.gmra.mrb[76].mxu0 %v15241_v42 }
 0x445   : > { %6386 = vmatmul.mubr.bf16.gmra.mrb[72].mxu1 %v15248_v63  ;;  %6240 = vmatprep.mubr.bf16.mxu0 %v15180_v13  ;;  %v4962_v13 = vld [vmem:[#allocation2 + $0x191] sm:$0xff] }
 0x446   : > { %6393 = vmatprep.mubr.bf16.mxu1 %v15253_v33  ;;  %v15266_v45 = vpack.c.bf16 %v4962_v13, %v4961_v54  ;;  %v5268_v13 = vld [vmem:[#allocation2 + $0xf0] sm:$0xff] }
 0x447   : > { %v5294_v3 = vpack.c.bf16 %v5268_v13, %v5267_v58 }
 0x44c   : > { %6241 = vmatmul.mubr.bf16.gmra.mrb[80].mxu0 %v15253_v33 }
 0x44d   : > { %6394 = vmatmul.mubr.bf16.gmra.mrb[76].mxu1 %v15258_v21  ;;  %6248 = vmatprep.mubr.bf16.mxu0 %v15198_v55  ;;  %v4964_v55 = vld [vmem:[#allocation2 + $0x1b1] sm:$0xff] }
 0x44e   : > { %6401 = vmatprep.mubr.bf16.mxu1 %v15261_v20  ;;  %v15274_v52 = vpack.c.bf16 %v4964_v55, %v4963_v27 }
 0x454   : > { %6249 = vmatmul.mubr.bf16.gmra.mrb[84].mxu0 %v15261_v20 }
 0x455   : > { %6402 = vmatmul.mubr.bf16.gmra.mrb[80].mxu1 %v15266_v45  ;;  %6256 = vmatprep.mubr.bf16.mxu0 %v15196_v30  ;;  %v4966_v30 = vld [vmem:[#allocation2 + $0x1d1] sm:$0xff] }
 0x456   : > { %6409 = vmatprep.mubr.bf16.mxu1 %v15269_v29  ;;  %v15282_v35 = vpack.c.bf16 %v4966_v30, %v4965_v44 }
 0x45c   : > { %6257 = vmatmul.mubr.bf16.gmra.mrb[88].mxu0 %v15269_v29 }
 0x45d   : > { %6410 = vmatmul.mubr.bf16.gmra.mrb[84].mxu1 %v15274_v52  ;;  %6264 = vmatprep.mubr.bf16.mxu0 %v15212_v28  ;;  %v4967_v28 = vld [vmem:[#allocation2 + $0x1e9] sm:$0xff] }
 0x45e   : > { %6417 = vmatprep.mubr.bf16.mxu1 %v15277_v24  ;;  %v15290_v18 = vpack.c.bf16 %v4968_v59, %v4967_v28  ;;  %v5282_v28 = vld [vmem:[#allocation2 + $0x1d0] sm:$0xff] }
 0x464   : > { %6265 = vmatmul.mubr.bf16.gmra.mrb[92].mxu0 %v15277_v24 }
 0x465   : > { %6418 = vmatmul.mubr.bf16.gmra.mrb[88].mxu1 %v15282_v35  ;;  %6466 = vmatprep.mubr.bf16.mxu0 %v15108_v1  ;;  %v13081_v1 = vld [vmem:[%s16559_s5 + $0x210] sm:$0xff]  }
 0x466   : > { %6425 = vmatprep.mubr.bf16.mxu1 %v15285_v46 }
 0x46c   : > { %6467 = vmatmul.mubr.bf16.vlgmr.msra.gmra.mrb[96].mxu0 %v5097_v7 }
 0x46d   : > { %6426 = vmatmul.mubr.bf16.gmra.mrb[92].mxu1 %v15290_v18  ;;  %6474 = vmatprep.mubr.bf16.mxu0 %v15135_v14  ;;  %v5262_v14 = vld [vmem:[#allocation2 + $0x90] sm:$0xff] }
 0x46e   : > { %6627 = vmatprep.mubr.bf16.mxu1 %v5289_v6  ;;  %12732 = vmatpush3.bf16.msra.mxu0 %v15075_v57  ;;  %v13083_v57 = vld [vmem:[%s16559_s5 + $0x220] sm:$0xff]   ;;  %v5291_v5 = vpack.c.bf16 %v5262_v14, %v5261_v39 }
 0x46f   : > { %12733 = vmatprep.subr.bf16.mxu0 %v13080_v19 }
 0x472   : > { %12734 = vmatpush3.bf16.msra.mxu0 %v13080_v19 }
 0x473   : > { %12735 = vmatprep.subr.bf16.mxu0 %v13081_v1 }
 0x474   : > { %6475 = vmatmul.mubr.bf16.gmra.mrb[100].mxu0 %v5289_v6 }
 0x475   : > { %6628 = vmatmul.mubr.bf16.vlgmr.msra.gmra.mrb[96].mxu1 %v15089_v50  ;;  %6482 = vmatprep.mubr.bf16.mxu0 %v15163_v43  ;;  %v13085_v50 = vld [vmem:[%s16559_s5 + $0x230] sm:$0xff]  }
 0x476   : > { %6635 = vmatprep.mubr.bf16.mxu1 %v5290_v16  ;;  %12736 = vmatpush3.bf16.msra.mxu0 %v13081_v1  ;;  %v5264_v43 = vld [vmem:[#allocation2 + $0xb0] sm:$0xff]  ;;  %v5301_v1 = vpack.c.bf16 %v5282_v28, %v5281_v47 }
 0x477   : > { %12737 = vmatprep.subr.bf16.mxu0 %v13082_v22  ;;  %v5292_v23 = vpack.c.bf16 %v5264_v43, %v5263_v2  ;;  %v5321_v28 = vld [vmem:[#allocation2 + $0x49] sm:$0xff] }
 0x47a   : > { %12738 = vmatpush3.bf16.msra.mxu0 %v13082_v22 }
 0x47b   : > { %12739 = vmatprep.subr.bf16.mxu0 %v13083_v57 }
 0x47c   : > { %6483 = vmatmul.mubr.bf16.gmra.mrb[104].mxu0 %v5290_v16 }
 0x47d   : > { %6636 = vmatmul.mubr.bf16.gmra.mrb[100].mxu1 %v15115_v51  ;;  %6490 = vmatprep.mubr.bf16.mxu0 %v15185_v62  ;;  %v5266_v51 = vld [vmem:[#allocation2 + $0xd0] sm:$0xff]  ;;  %v5265_v62 = vld [vmem:[#allocation2 + $0xc8] sm:$0xff] }
 0x47e   : > { %6643 = vmatprep.mubr.bf16.mxu1 %v5291_v5  ;;  %12740 = vmatpush3.bf16.msra.mxu0 %v13083_v57  ;;  %v5293_v54 = vpack.c.bf16 %v5266_v51, %v5265_v62 }
 0x47f   : > { %12741 = vmatprep.subr.bf16.mxu0 %v13084_v12 }
 0x482   : > { %12742 = vmatpush3.bf16.msra.mxu0 %v13084_v12 }
 0x483   : > { %12743 = vmatprep.subr.bf16.mxu0 %v13085_v50 }
 0x484   : > { %6491 = vmatmul.mubr.bf16.gmra.mrb[108].mxu0 %v5291_v5 }
 0x485   : > { %6644 = vmatmul.mubr.bf16.gmra.mrb[104].mxu1 %v15142_v15  ;;  %6498 = vmatprep.mubr.bf16.mxu0 %v15201_v61  ;;  %v5270_v15 = vld [vmem:[#allocation2 + $0x110] sm:$0xff]  ;;  %v5269_v61 = vld [vmem:[#allocation2 + $0x108] sm:$0xff] }
 0x486   : > { %6651 = vmatprep.mubr.bf16.mxu1 %v5292_v23  ;;  %12744 = vmatpush3.bf16.msra.mxu0 %v13085_v50  ;;  %v5295_v27 = vpack.c.bf16 %v5270_v15, %v5269_v61 }
 0x487   : > { %12745 = vmatprep.subr.bf16.mxu0 %v13086_v11 }
 0x48a   : > { %12746 = vmatpush3.bf16.msra.mxu0 %v13086_v11 }
 0x48c   : > { %6499 = vmatmul.mubr.bf16.gmra.mrb[112].mxu0 %v5292_v23  ;;  %v5283_v23 = vld [vmem:[#allocation2 + $0x1e8] sm:$0xff] }
 0x48d   : > { %6652 = vmatmul.mubr.bf16.gmra.mrb[108].mxu1 %v15170_v31  ;;  %6506 = vmatprep.mubr.bf16.mxu0 %v15214_v36  ;;  %v5272_v31 = vld [vmem:[#allocation2 + $0x130] sm:$0xff]  ;;  %v5271_v36 = vld [vmem:[#allocation2 + $0x128] sm:$0xff] }
 0x48e   : > { %6659 = vmatprep.mubr.bf16.mxu1 %v5293_v54  ;;  %v5296_v55 = vpack.c.bf16 %v5272_v31, %v5271_v36  ;;  %v5160_v31 = vld [vmem:[#allocation2 + $0x211] sm:$0xff] }
 0x494   : > { %6507 = vmatmul.mubr.bf16.gmra.mrb[116].mxu0 %v5293_v54 }
 0x495   : > { %6660 = vmatmul.mubr.bf16.gmra.mrb[112].mxu1 %v15189_v56  ;;  %6514 = vmatprep.mubr.bf16.mxu0 %v15222_v48  ;;  %v5274_v56 = vld [vmem:[#allocation2 + $0x150] sm:$0xff]  ;;  %v5273_v48 = vld [vmem:[#allocation2 + $0x148] sm:$0xff] }
 0x496   : > { %6667 = vmatprep.mubr.bf16.mxu1 %v5294_v3  ;;  %v5297_v26 = vpack.c.bf16 %v5274_v56, %v5273_v48  ;;  %v5286_v48 = vld [vmem:[#allocation2 + $0x210] sm:$0xff] }
 0x49c   : > { %6515 = vmatmul.mubr.bf16.gmra.mrb[120].mxu0 %v5294_v3 }
 0x49d   : > { %6668 = vmatmul.mubr.bf16.gmra.mrb[116].mxu1 %v15205_v8  ;;  %6522 = vmatprep.mubr.bf16.mxu0 %v15230_v4  ;;  %v5276_v8 = vld [vmem:[#allocation2 + $0x170] sm:$0xff]  ;;  %v5275_v4 = vld [vmem:[#allocation2 + $0x168] sm:$0xff] }
 0x49e   : > { %6675 = vmatprep.mubr.bf16.mxu1 %v5295_v27  ;;  %v5298_v53 = vpack.c.bf16 %v5276_v8, %v5275_v4 }
 0x4a4   : > { %6523 = vmatmul.mubr.bf16.gmra.mrb[124].mxu0 %v5295_v27  ;;  %v5159_v27 = vld [vmem:[#allocation2 + $0x209] sm:$0xff] }
 0x4a5   : > { %6676 = vmatmul.mubr.bf16.gmra.mrb[120].mxu1 %v15217_v32  ;;  %6530 = vmatprep.mubr.bf16.mxu0 %v15238_v25  ;;  %v5278_v32 = vld [vmem:[#allocation2 + $0x190] sm:$0xff]  ;;  %v5277_v25 = vld [vmem:[#allocation2 + $0x188] sm:$0xff] }
 0x4a6   : > { %6683 = vmatprep.mubr.bf16.mxu1 %v5296_v55  ;;  %v5299_v44 = vpack.c.bf16 %v5278_v32, %v5277_v25  ;;  %v5285_v25 = vld [vmem:[#allocation2 + $0x208] sm:$0xff] }
 0x4ac   : > { %6531 = vmatmul.mubr.bf16.gmra.mrb[128].mxu0 %v5296_v55 }
 0x4ad   : > { %6684 = vmatmul.mubr.bf16.gmra.mrb[124].mxu1 %v15225_v17  ;;  %6538 = vmatprep.mubr.bf16.mxu0 %v15248_v63  ;;  %v5280_v17 = vld [vmem:[#allocation2 + $0x1b0] sm:$0xff]  ;;  %v5279_v63 = vld [vmem:[#allocation2 + $0x1a8] sm:$0xff] }
 0x4ae   : > { %6691 = vmatprep.mubr.bf16.mxu1 %v5297_v26  ;;  %v5300_v30 = vpack.c.bf16 %v5280_v17, %v5279_v63  ;;  %v5303_v63 = vpack.c.bf16 %v5286_v48, %v5285_v25  ;;  %v5328_v25 = vld [vmem:[#allocation2 + $0xb1] sm:$0xff] }
 0x4b4   : > { %6539 = vmatmul.mubr.bf16.gmra.mrb[132].mxu0 %v5297_v26 }
 0x4b5   : > { %6692 = vmatmul.mubr.bf16.gmra.mrb[128].mxu1 %v15233_v9  ;;  %6546 = vmatprep.mubr.bf16.mxu0 %v15258_v21  ;;  %v15341_v9 = vld [vmem:[%s16560_s6] ss:$0 sm:$0xff] }
 0x4b6   : > { %6699 = vmatprep.mubr.bf16.mxu1 %v5298_v53  ;;  %v6147_v59 = vadd.f32 %v15246_v49, %v15341_v9  ;;  %v6150_v19 = vadd.f32 %v15250_v60, %v15341_v9  ;;  %v13087_v49 = vld [vmem:[%s16561_s7 + $0x40] sm:$0xff]  }
 0x4b7   : > { %12145 = vmatprep.subr.bf16.mxu1 %v13087_v49 }
 0x4b8   : > { %12146 = vmatpush3.bf16.msra.mxu1 %v13088_v40 }
 0x4bc   : > { %6547 = vmatmul.mubr.bf16.gmra.mrb[136].mxu0 %v5298_v53 }
 0x4bd   : > { %6700 = vmatmul.mubr.bf16.gmra.mrb[132].mxu1 %v15241_v42  ;;  %6554 = vmatprep.mubr.bf16.mxu0 %v15266_v45 }
 0x4be   : > { %6707 = vmatprep.mubr.bf16.mxu1 %v5299_v44 }
 0x4c4   : > { %6555 = vmatmul.mubr.bf16.gmra.mrb[140].mxu0 %v5299_v44 }
 0x4c5   : > { %6708 = vmatmul.mubr.bf16.gmra.mrb[136].mxu1 %v15253_v33  ;;  %6562 = vmatprep.mubr.bf16.mxu0 %v15274_v52 }
 0x4c6   : > { %6715 = vmatprep.mubr.bf16.mxu1 %v5300_v30 }
 0x4c7   : > { %v11695_v21 = vpop.f32.mrb[36].mxu0 }
 0x4c8   : > { %v11801_v38 = vpop.f32.mrb[32].mxu1  ;;  %v11696_v42 = vpop.f32.mrb[37].mxu0 }
 0x4c9   : > { %v11697_v10 = vadd.f32 %v11696_v42, %v11695_v21  ;;  %v11802_v45 = vpop.f32.mrb[33].mxu1  ;;  %v11698_v37 = vpop.f32.mrb[38].mxu0  ;;  %v13089_v21 = vld [vmem:[%s16561_s7 + $0x48] sm:$0xff]  }
 0x4ca   : > { %v11803_v34 = vadd.f32 %v11802_v45, %v11801_v38  ;;  %v11804_v33 = vpop.f32.mrb[34].mxu1  ;;  %v11699_v0 = vpop.f32.mrb[39].mxu0  ;;  %v13090_v38 = vld [vmem:[%s16561_s7 + $0x8] sm:$0xff]   ;;  %12147 = vmatprep.subr.bf16.mxu1 %v13089_v21  ;;  %v5330_v21 = vld [vmem:[#allocation2 + $0xd1] sm:$0xff] }
 0x4cb   : > { %v11700_v52 = vadd.f32 %v11699_v0, %v11698_v37  ;;  %v11805_v7 = vpop.f32.mrb[35].mxu1  ;;  %v6155_v12 = vadd.f32 %v11697_v10, %v15341_v9  ;;  %12148 = vmatpush3.bf16.msra.mxu1 %v13090_v38 }
 0x4cc   : > { %v11806_v6 = vadd.f32 %v11805_v7, %v11804_v33  ;;  %6563 = vmatmul.mubr.bf16.gmra.mrb[144].mxu0 %v5300_v30  ;;  %v15347_v41 = vadd.f32 %v11803_v34, %v6147_v59  ;;  %v5322_v59 = vld [vmem:[#allocation2 + $0x51] sm:$0xff] }
 0x4cd   : > { %6716 = vmatmul.mubr.bf16.gmra.mrb[140].mxu1 %v15261_v20  ;;  %6570 = vmatprep.mubr.bf16.mxu0 %v15282_v35  ;;  %v5284_v35 = vld [vmem:[#allocation2 + $0x1f0] sm:$0xff]  ;;  %v6158_v51 = vadd.f32 %v11700_v52, %v15341_v9  ;;  %v5353_v40 = vpack.c.bf16 %v5322_v59, %v5321_v28 }
 0x4ce   : > { %6723 = vmatprep.mubr.bf16.mxu1 %v5301_v1  ;;  %v15357_v22 = vadd.f32 %v11806_v6, %v6150_v19  ;;  %v5302_v54 = vpack.c.bf16 %v5284_v35, %v5283_v23  ;;  %v13169_v19 = vld [vmem:[#allocation2] sm:$0xff] }
 0x4cf   : > { %v11701_v60 = vpop.f32.mrb[40].mxu0  ;;  %v15384_v6 = vpack.c.bf16 %v13169_v19, %v13169_v19 }
 0x4d0   : > { %v11807_v16 = vpop.f32.mrb[36].mxu1  ;;  %v11702_v57 = vpop.f32.mrb[41].mxu0 }
 0x4d1   : > { %v11703_v14 = vadd.f32 %v11702_v57, %v11701_v60  ;;  %v11808_v20 = vpop.f32.mrb[37].mxu1  ;;  %v11704_v39 = vpop.f32.mrb[42].mxu0 }
 0x4d2   : > { %v11809_v5 = vadd.f32 %v11808_v20, %v11807_v16  ;;  %v11810_v50 = vpop.f32.mrb[38].mxu1  ;;  %v11705_v43 = vpop.f32.mrb[43].mxu0  ;;  %v5224_v20 = vld [vmem:[#allocation2 + $0x22f] sm:$0xff] }
 0x4d3   : > { %v11706_v2 = vadd.f32 %v11705_v43, %v11704_v39  ;;  %v11811_v11 = vpop.f32.mrb[39].mxu1  ;;  %v6163_v26 = vadd.f32 %v11703_v14, %v15341_v9  ;;  %v5223_v14 = vld [vmem:[#allocation2 + $0x227] sm:$0xff] }
 0x4d4   : > { %v11812_v62 = vadd.f32 %v11811_v11, %v11810_v50  ;;  %6571 = vmatmul.mubr.bf16.gmra.mrb[148].mxu0 %v5301_v1  ;;  %v15361_v13 = vadd.f32 %v11809_v5, %v6155_v12  ;;  %v5323_v12 = vld [vmem:[#allocation2 + $0x69] sm:$0xff]  ;;  %v5324_v5 = vld [vmem:[#allocation2 + $0x71] sm:$0xff] }
 0x4d5   : > { %6724 = vmatmul.mubr.bf16.gmra.mrb[144].mxu1 %v15269_v29  ;;  %6578 = vmatprep.mubr.bf16.mxu0 %v15290_v18  ;;  %v15368_v18 = vpack.c.bf16 %v5160_v31, %v5159_v27  ;;  %v6166_v44 = vadd.f32 %v11706_v2, %v15341_v9  ;;  %v5325_v2 = vld [vmem:[#allocation2 + $0x89] sm:$0xff]  ;;  %v5326_v11 = vld [vmem:[#allocation2 + $0x91] sm:$0xff]  ;;  %v5354_v27 = vpack.c.bf16 %v5324_v5, %v5323_v12 }
 0x4d6   : > { %6731 = vmatprep.mubr.bf16.mxu1 %v5302_v54  ;;  %v15365_v58 = vadd.f32 %v11812_v62, %v6158_v51 }
 0x4d7   : > { %v11707_v3 = vpop.f32.mrb[44].mxu0 }
 0x4d8   : > { %v11813_v15 = vpop.f32.mrb[40].mxu1  ;;  %v11708_v61 = vpop.f32.mrb[45].mxu0 }
 0x4d9   : > { %v11709_v36 = vadd.f32 %v11708_v61, %v11707_v3  ;;  %v11814_v55 = vpop.f32.mrb[41].mxu1  ;;  %v11710_v56 = vpop.f32.mrb[46].mxu0 }
 0x4da   : > { %v11815_v8 = vadd.f32 %v11814_v55, %v11813_v15  ;;  %v11816_v4 = vpop.f32.mrb[42].mxu1  ;;  %v11711_v53 = vpop.f32.mrb[47].mxu0  ;;  %v5355_v55 = vpack.c.bf16 %v5326_v11, %v5325_v2 }
 0x4db   : > { %v11712_v29 = vadd.f32 %v11711_v53, %v11710_v56  ;;  %v11817_v32 = vpop.f32.mrb[43].mxu1  ;;  %v6171_v0 = vadd.f32 %v11709_v36, %v15341_v9 }
 0x4dc   : > { %v11818_v17 = vadd.f32 %v11817_v32, %v11816_v4  ;;  %6579 = vmatmul.mubr.bf16.gmra.mrb[152].mxu0 %v5302_v54  ;;  %v15371_v30 = vadd.f32 %v11815_v8, %v6163_v26  ;;  %v5240_v54 = vpack.c.bf16 %v5224_v20, %v5223_v14  ;;  %v13091_v8 = vld [vmem:[%s16561_s7 + $0x50] sm:$0xff]  }
 0x4dd   : > { %6732 = vmatmul.mubr.bf16.gmra.mrb[148].mxu1 %v15277_v24  ;;  %6586 = vmatprep.mubr.bf16.mxu0 %v15368_v18  ;;  %v6174_v60 = vadd.f32 %v11712_v29, %v15341_v9  ;;  %v13092_v4 = vld [vmem:[%s16561_s7 + $0x10] sm:$0xff]  }
 0x4de   : > { %6739 = vmatprep.mubr.bf16.mxu1 %v5303_v63  ;;  %v15381_v42 = vadd.f32 %v11818_v17, %v6166_v44  ;;  %v5327_v32 = vld [vmem:[#allocation2 + $0xa9] sm:$0xff]  ;;  %12149 = vmatprep.subr.bf16.mxu1 %v13091_v8 }
 0x4df   : > { %v11713_v10 = vpop.f32.mrb[48].mxu0  ;;  %12150 = vmatpush3.bf16.msra.mxu1 %v13092_v4  ;;  %v5333_v20 = vld [vmem:[#allocation2 + $0x109] sm:$0xff] }
 0x4e0   : > { %v11819_v45 = vpop.f32.mrb[44].mxu1  ;;  %v11714_v37 = vpop.f32.mrb[49].mxu0 }
 0x4e1   : > { %v11715_v24 = vadd.f32 %v11714_v37, %v11713_v10  ;;  %v11820_v34 = vpop.f32.mrb[45].mxu1  ;;  %v11716_v33 = vpop.f32.mrb[50].mxu0 }
 0x4e2   : > { %v11821_v52 = vadd.f32 %v11820_v34, %v11819_v45  ;;  %v11822_v7 = vpop.f32.mrb[46].mxu1  ;;  %v11717_v47 = vpop.f32.mrb[51].mxu0  ;;  %v5356_v34 = vpack.c.bf16 %v5328_v25, %v5327_v32  ;;  %v5338_v32 = vld [vmem:[#allocation2 + $0x151] sm:$0xff] }
 0x4e3   : > { %v11718_v1 = vadd.f32 %v11717_v47, %v11716_v33  ;;  %v11823_v49 = vpop.f32.mrb[47].mxu1 }
 0x4e4   : > { %v11824_v16 = vadd.f32 %v11823_v49, %v11822_v7  ;;  %6587 = vmatmul.mubr.bf16.gmra.mrb[156].mxu0 %v5303_v63  ;;  %v15387_v57 = vadd.f32 %v11821_v52, %v6171_v0  ;;  %v5329_v63 = vld [vmem:[#allocation2 + $0xc9] sm:$0xff] }
 0x4e5   : > { %6740 = vmatmul.mubr.bf16.gmra.mrb[152].mxu1 %v15285_v46  ;;  %12747 = vmatprep.mubr.bf16.mxu0 %v5353_v40  ;;  %v6179_v46 = vadd.f32 %v11715_v24, %v15341_v9  ;;  %v6182_v56 = vadd.f32 %v11718_v1, %v15341_v9  ;;  %v5357_v52 = vpack.c.bf16 %v5330_v21, %v5329_v63  ;;  %v5331_v40 = vld [vmem:[#allocation2 + $0xe9] sm:$0xff] }
 0x4e6   : > { %6747 = vmatprep.mubr.bf16.mxu1 %v15384_v6  ;;  %v15391_v39 = vadd.f32 %v11824_v16, %v6174_v60  ;;  %v5332_v60 = vld [vmem:[#allocation2 + $0xf1] sm:$0xff] }
 0x4e7   : > { %v11719_v35 = vpop.f32.mrb[52].mxu0 }
 0x4e8   : > { %v11825_v50 = vpop.f32.mrb[48].mxu1  ;;  %v11720_v43 = vpop.f32.mrb[53].mxu0 }
 0x4e9   : > { %v11721_v23 = vadd.f32 %v11720_v43, %v11719_v35  ;;  %v11826_v51 = vpop.f32.mrb[49].mxu1  ;;  %v11722_v62 = vpop.f32.mrb[54].mxu0  ;;  %v5334_v35 = vld [vmem:[#allocation2 + $0x111] sm:$0xff] }
 0x4ea   : > { %v11827_v3 = vadd.f32 %v11826_v51, %v11825_v50  ;;  %v11828_v15 = vpop.f32.mrb[50].mxu1  ;;  %v11723_v61 = vpop.f32.mrb[55].mxu0  ;;  %v5358_v51 = vpack.c.bf16 %v5332_v60, %v5331_v40  ;;  %v5341_v60 = vld [vmem:[#allocation2 + $0x189] sm:$0xff] }
 0x4eb   : > { %v11724_v31 = vadd.f32 %v11723_v61, %v11722_v62  ;;  %v11829_v36 = vpop.f32.mrb[51].mxu1  ;;  %v6187_v37 = vadd.f32 %v11721_v23, %v15341_v9 }
 0x4ec   : > { %v11830_v48 = vadd.f32 %v11829_v36, %v11828_v15  ;;  %12748 = vmatmul.mubr.bf16.vlgmr.msra.gmra.mrb[160].mxu0 %v5354_v27  ;;  %v15395_v26 = vadd.f32 %v11827_v3, %v6179_v46  ;;  %v5359_v46 = vpack.c.bf16 %v5334_v35, %v5333_v20  ;;  %v13093_v27 = vld [vmem:[%s16561_s7 + $0x58] sm:$0xff]  }
 0x4ed   : > { %6748 = vmatmul.mubr.bf16.gmra.mrb[156].mxu1 %v5240_v54  ;;  %12751 = vmatprep.mubr.bf16.mxu0 %v5355_v55  ;;  %v6190_v7 = vadd.f32 %v11724_v31, %v15341_v9  ;;  %v13094_v31 = vld [vmem:[%s16561_s7 + $0x18] sm:$0xff]  }
 0x4ee   : > { %v15403_v53 = vadd.f32 %v11830_v48, %v6182_v56  ;;  %v5335_v56 = vld [vmem:[#allocation2 + $0x129] sm:$0xff]  ;;  %v5336_v48 = vld [vmem:[#allocation2 + $0x131] sm:$0xff]  ;;  %12151 = vmatprep.subr.bf16.mxu1 %v13093_v27  ;;  %8316 = vmatprep.mubr.bf16.mxu1 %v15384_v6 }
 0x4ef   : > { %v11725_v29 = vpop.f32.mrb[56].mxu0  ;;  %12152 = vmatpush3.bf16.msra.mxu1 %v13094_v31  ;;  %v13115_v6 = vld [vmem:[%s16561_s7 + $0xf0] sm:$0xff]  }
 0x4f0   : > { %v11831_v44 = vpop.f32.mrb[52].mxu1  ;;  %v11726_v17 = vpop.f32.mrb[57].mxu0 }
 0x4f1   : > { %v11727_v38 = vadd.f32 %v11726_v17, %v11725_v29  ;;  %v11832_v10 = vpop.f32.mrb[53].mxu1  ;;  %v11728_v45 = vpop.f32.mrb[58].mxu0  ;;  %v5337_v29 = vld [vmem:[#allocation2 + $0x149] sm:$0xff] }
 0x4f2   : > { %v11833_v28 = vadd.f32 %v11832_v10, %v11831_v44  ;;  %v11834_v59 = vpop.f32.mrb[54].mxu1  ;;  %v11729_v24 = vpop.f32.mrb[59].mxu0 }
 0x4f3   : > { %v11730_v33 = vadd.f32 %v11729_v24, %v11728_v45  ;;  %v11835_v0 = vpop.f32.mrb[55].mxu1  ;;  %v6195_v43 = vadd.f32 %v11727_v38, %v15341_v9  ;;  %v5360_v45 = vpack.c.bf16 %v5336_v48, %v5335_v56  ;;  %v5344_v56 = vld [vmem:[#allocation2 + $0x1b1] sm:$0xff] }
 0x4f4   : > { %v11836_v47 = vadd.f32 %v11835_v0, %v11834_v59  ;;  %12752 = vmatmul.mubr.bf16.gmra.mrb[164].mxu0 %v5356_v34  ;;  %v15407_v19 = vadd.f32 %v11833_v28, %v6187_v37  ;;  %v5361_v59 = vpack.c.bf16 %v5338_v32, %v5337_v29  ;;  %v5346_v29 = vld [vmem:[#allocation2 + $0x1d1] sm:$0xff] }
 0x4f5   : > { %12755 = vmatprep.mubr.bf16.mxu0 %v5357_v52  ;;  %v6198_v3 = vadd.f32 %v11730_v33, %v15341_v9 }
 0x4f6   : > { %v15409_v1 = vadd.f32 %v11836_v47, %v6190_v7  ;;  %v5339_v7 = vld [vmem:[#allocation2 + $0x169] sm:$0xff]  ;;  %v5340_v47 = vld [vmem:[#allocation2 + $0x171] sm:$0xff] }
 0x4f7   : > { %v11731_v49 = vpop.f32.mrb[60].mxu0 }
 0x4f8   : > { %v11837_v16 = vpop.f32.mrb[56].mxu1  ;;  %v11732_v14 = vpop.f32.mrb[61].mxu0 }
 0x4f9   : > { %v11733_v12 = vadd.f32 %v11732_v14, %v11731_v49  ;;  %v11838_v5 = vpop.f32.mrb[57].mxu1  ;;  %v11734_v50 = vpop.f32.mrb[62].mxu0 }
 0x4fa   : > { %v11839_v2 = vadd.f32 %v11838_v5, %v11837_v16  ;;  %v11840_v11 = vpop.f32.mrb[58].mxu1  ;;  %v11735_v23 = vpop.f32.mrb[63].mxu0  ;;  %v5342_v16 = vld [vmem:[#allocation2 + $0x191] sm:$0xff] }
 0x4fb   : > { %v11736_v62 = vadd.f32 %v11735_v23, %v11734_v50  ;;  %v11841_v54 = vpop.f32.mrb[59].mxu1  ;;  %v6203_v63 = vadd.f32 %v11733_v12, %v15341_v9 }
 0x4fc   : > { %v11842_v15 = vadd.f32 %v11841_v54, %v11840_v11  ;;  %12756 = vmatmul.mubr.bf16.gmra.mrb[168].mxu0 %v5358_v51  ;;  %v15413_v61 = vadd.f32 %v11839_v2, %v6195_v43  ;;  %v5362_v2 = vpack.c.bf16 %v5340_v47, %v5339_v7  ;;  %v5363_v51 = vpack.c.bf16 %v5342_v16, %v5341_v60  ;;  %v5347_v47 = vld [vmem:[#allocation2 + $0x1e9] sm:$0xff] }
 0x4fd   : > { %12759 = vmatprep.mubr.bf16.mxu0 %v5359_v46  ;;  %v6206_v24 = vadd.f32 %v11736_v62, %v15341_v9 }
 0x4fe   : > { %v15421_v36 = vadd.f32 %v11842_v15, %v6198_v3  ;;  %v13095_v3 = vld [vmem:[%s16561_s7 + $0x60] sm:$0xff]  }
 0x4ff   : > { %v11737_v55 = vpop.f32.mrb[64].mxu0  ;;  %v13096_v15 = vld [vmem:[%s16561_s7 + $0x20] sm:$0xff]   ;;  %12153 = vmatprep.subr.bf16.mxu1 %v13095_v3  ;;  %v5352_v3 = vld [vmem:[#allocation2 + $0x231] sm:$0xff] }
 0x500   : > { %v11843_v8 = vpop.f32.mrb[60].mxu1  ;;  %v11738_v4 = vpop.f32.mrb[65].mxu0  ;;  %12154 = vmatpush3.bf16.msra.mxu1 %v13096_v15  ;;  %v13097_v15 = vld [vmem:[%s16561_s7 + $0x68] sm:$0xff]  }
 0x501   : > { %v11739_v25 = vadd.f32 %v11738_v4, %v11737_v55  ;;  %v11844_v44 = vpop.f32.mrb[61].mxu1  ;;  %v11740_v17 = vpop.f32.mrb[66].mxu0  ;;  %v5343_v55 = vld [vmem:[#allocation2 + $0x1a9] sm:$0xff]  ;;  %12155 = vmatprep.subr.bf16.mxu1 %v13097_v15 }
 0x502   : > { %v11845_v21 = vadd.f32 %v11844_v44, %v11843_v8  ;;  %v11846_v38 = vpop.f32.mrb[62].mxu1  ;;  %v11741_v10 = vpop.f32.mrb[67].mxu0  ;;  %v5345_v4 = vld [vmem:[#allocation2 + $0x1c9] sm:$0xff] }
 0x503   : > { %v11742_v37 = vadd.f32 %v11741_v10, %v11740_v17  ;;  %v11847_v28 = vpop.f32.mrb[63].mxu1  ;;  %v6211_v12 = vadd.f32 %v11739_v25, %v15341_v9  ;;  %v5364_v10 = vpack.c.bf16 %v5344_v56, %v5343_v55 }
 0x504   : > { %v11848_v34 = vadd.f32 %v11847_v28, %v11846_v38  ;;  %12760 = vmatmul.mubr.bf16.gmra.mrb[172].mxu0 %v5360_v45  ;;  %v15425_v33 = vadd.f32 %v11845_v21, %v6203_v63  ;;  %v5365_v28 = vpack.c.bf16 %v5346_v29, %v5345_v4 }
 0x505   : > { %12763 = vmatprep.mubr.bf16.mxu0 %v5361_v59  ;;  %v6214_v62 = vadd.f32 %v11742_v37, %v15341_v9 }
 0x506   : > { %v15427_v0 = vadd.f32 %v11848_v34, %v6206_v24 }
 0x507   : > { %v11743_v52 = vpop.f32.mrb[68].mxu0 }
 0x508   : > { %v11849_v49 = vpop.f32.mrb[64].mxu1  ;;  %v11744_v40 = vpop.f32.mrb[69].mxu0 }
 0x509   : > { %v11745_v14 = vadd.f32 %v11744_v40, %v11743_v52  ;;  %v11850_v20 = vpop.f32.mrb[65].mxu1  ;;  %v11746_v35 = vpop.f32.mrb[70].mxu0 }
 0x50a   : > { %v11851_v5 = vadd.f32 %v11850_v20, %v11849_v49  ;;  %v11852_v50 = vpop.f32.mrb[66].mxu1  ;;  %v11747_v43 = vpop.f32.mrb[71].mxu0  ;;  %v5348_v49 = vld [vmem:[#allocation2 + $0x1f1] sm:$0xff] }
 0x50b   : > { %v11748_v11 = vadd.f32 %v11747_v43, %v11746_v35  ;;  %v11853_v23 = vpop.f32.mrb[67].mxu1  ;;  %v6219_v17 = vadd.f32 %v11745_v14, %v15341_v9  ;;  %v5366_v43 = vpack.c.bf16 %v5348_v49, %v5347_v47 }
 0x50c   : > { %v11854_v54 = vadd.f32 %v11853_v23, %v11852_v50  ;;  %12764 = vmatmul.mubr.bf16.gmra.mrb[176].mxu0 %v5362_v2  ;;  %v15431_v46 = vadd.f32 %v11851_v5, %v6211_v12 }
 0x50d   : > { %12767 = vmatprep.mubr.bf16.mxu0 %v5363_v51  ;;  %v6222_v59 = vadd.f32 %v11748_v11, %v15341_v9 }
 0x50e   : > { %v15439_v27 = vadd.f32 %v11854_v54, %v6214_v62  ;;  %v5351_v54 = vld [vmem:[#allocation2 + $0x229] sm:$0xff] }
 0x50f   : > { %v11749_v31 = vpop.f32.mrb[72].mxu0  ;;  %v5368_v4 = vpack.c.bf16 %v5352_v3, %v5351_v54 }
 0x510   : > { %v11855_v48 = vpop.f32.mrb[68].mxu1  ;;  %v11750_v8 = vpop.f32.mrb[73].mxu0 }
 0x511   : > { %v11751_v32 = vadd.f32 %v11750_v8, %v11749_v31  ;;  %v11856_v25 = vpop.f32.mrb[69].mxu1  ;;  %v11752_v44 = vpop.f32.mrb[74].mxu0  ;;  %v13098_v31 = vld [vmem:[%s16561_s7 + $0x28] sm:$0xff]  }
 0x512   : > { %v11857_v63 = vadd.f32 %v11856_v25, %v11855_v48  ;;  %v11858_v21 = vpop.f32.mrb[70].mxu1  ;;  %v11753_v38 = vpop.f32.mrb[75].mxu0  ;;  %12156 = vmatpush3.bf16.msra.mxu1 %v13098_v31 }
 0x513   : > { %v11754_v45 = vadd.f32 %v11753_v38, %v11752_v44  ;;  %v11859_v37 = vpop.f32.mrb[71].mxu1  ;;  %v6227_v35 = vadd.f32 %v11751_v32, %v15341_v9 }
 0x514   : > { %v11860_v24 = vadd.f32 %v11859_v37, %v11858_v21  ;;  %12768 = vmatmul.mubr.bf16.gmra.mrb[180].mxu0 %v5364_v10  ;;  %v15443_v34 = vadd.f32 %v11857_v63, %v6219_v17 }
 0x515   : > { %12771 = vmatprep.mubr.bf16.mxu0 %v5365_v28  ;;  %v6230_v51 = vadd.f32 %v11754_v45, %v15341_v9 }
 0x516   : > { %v15445_v52 = vadd.f32 %v11860_v24, %v6222_v59 }
 0x517   : > { %v11755_v7 = vpop.f32.mrb[76].mxu0 }
 0x518   : > { %v11861_v40 = vpop.f32.mrb[72].mxu1  ;;  %v11756_v60 = vpop.f32.mrb[77].mxu0 }
 0x519   : > { %v11757_v16 = vadd.f32 %v11756_v60, %v11755_v7  ;;  %v11862_v14 = vpop.f32.mrb[73].mxu1  ;;  %v11758_v20 = vpop.f32.mrb[78].mxu0 }
 0x51a   : > { %v11863_v12 = vadd.f32 %v11862_v14, %v11861_v40  ;;  %v11864_v5 = vpop.f32.mrb[74].mxu1  ;;  %v11759_v50 = vpop.f32.mrb[79].mxu0 }
 0x51b   : > { %v11760_v2 = vadd.f32 %v11759_v50, %v11758_v20  ;;  %v11865_v11 = vpop.f32.mrb[75].mxu1  ;;  %v6235_v25 = vadd.f32 %v11757_v16, %v15341_v9 }
 0x51c   : > { %v15448_v23 = vadd.f32 %v11863_v12, %v6227_v35  ;;  %v11866_v62 = vadd.f32 %v11865_v11, %v11864_v5  ;;  %12772 = vmatmul.mubr.bf16.gmra.mrb[184].mxu0 %v5366_v43  ;;  %v13100_v11 = vld [vmem:[%s16561_s7 + $0x30] sm:$0xff]  }
 0x51d   : > { %12775 = vmatprep.mubr.bf16.mxu0 %v15368_v18  ;;  %v6238_v10 = vadd.f32 %v11760_v2, %v15341_v9  ;;  %v13099_v2 = vld [vmem:[%s16561_s7 + $0x70] sm:$0xff]  }
 0x51e   : > { %v15458_v55 = vadd.f32 %v11866_v62, %v6230_v51  ;;  %12157 = vmatprep.subr.bf16.mxu1 %v13099_v2 }
 0x51f   : > { %v11761_v56 = vpop.f32.mrb[80].mxu0  ;;  %12158 = vmatpush3.bf16.msra.mxu1 %v13100_v11 }
 0x520   : > { %v11867_v48 = vpop.f32.mrb[76].mxu1  ;;  %v11762_v8 = vpop.f32.mrb[81].mxu0 }
 0x521   : > { %v11763_v29 = vadd.f32 %v11762_v8, %v11761_v56  ;;  %v11868_v32 = vpop.f32.mrb[77].mxu1  ;;  %v11764_v18 = vpop.f32.mrb[82].mxu0 }
 0x522   : > { %v11869_v44 = vadd.f32 %v11868_v32, %v11867_v48  ;;  %v11870_v17 = vpop.f32.mrb[78].mxu1  ;;  %v11765_v63 = vpop.f32.mrb[83].mxu0 }
 0x523   : > { %v11766_v21 = vadd.f32 %v11765_v63, %v11764_v18  ;;  %v11871_v38 = vpop.f32.mrb[79].mxu1  ;;  %v6243_v60 = vadd.f32 %v11763_v29, %v15341_v9 }
 0x524   : > { %v15462_v45 = vadd.f32 %v11869_v44, %v6235_v25  ;;  %v11872_v37 = vadd.f32 %v11871_v38, %v11870_v17  ;;  %12776 = vmatmul.mubr.bf16.gmra.mrb[188].mxu0 %v5368_v4  ;;  %v13101_v25 = vld [vmem:[%s16561_s7 + $0xc0] sm:$0xff]   ;;  %v13103_v38 = vld [vmem:[%s16561_s7 + $0xc8] sm:$0xff]  }
 0x525   : > { %v6246_v5 = vadd.f32 %v11766_v21, %v15341_v9  ;;  %v13102_v21 = vld [vmem:[%s16561_s7 + $0x80] sm:$0xff]   ;;  %12257 = vmatprep.subr.bf16.mxu0 %v13101_v25 }
 0x526   : > { %v15464_v28 = vadd.f32 %v11872_v37, %v6238_v10  ;;  %12258 = vmatpush3.bf16.msra.mxu0 %v13102_v21 }
 0x527   : > { %v11767_v59 = vpop.f32.mrb[84].mxu0  ;;  %12259 = vmatprep.subr.bf16.mxu0 %v13103_v38 }
 0x528   : > { %v11873_v24 = vpop.f32.mrb[80].mxu1  ;;  %v11768_v7 = vpop.f32.mrb[85].mxu0 }
 0x529   : > { %v11769_v47 = vadd.f32 %v11768_v7, %v11767_v59  ;;  %v11874_v49 = vpop.f32.mrb[81].mxu1  ;;  %v11770_v40 = vpop.f32.mrb[86].mxu0  ;;  %v13104_v7 = vld [vmem:[%s16561_s7 + $0x88] sm:$0xff]  }
 0x52a   : > { %v11875_v16 = vadd.f32 %v11874_v49, %v11873_v24  ;;  %v11876_v14 = vpop.f32.mrb[82].mxu1  ;;  %v11771_v20 = vpop.f32.mrb[87].mxu0  ;;  %12260 = vmatpush3.bf16.msra.mxu0 %v13104_v7 }
 0x52b   : > { %v11772_v35 = vadd.f32 %v11771_v20, %v11770_v40  ;;  %v11877_v12 = vpop.f32.mrb[83].mxu1  ;;  %v6251_v48 = vadd.f32 %v11769_v47, %v15341_v9 }
 0x52c   : > { %v15468_v50 = vadd.f32 %v11875_v16, %v6243_v60  ;;  %v11878_v43 = vadd.f32 %v11877_v12, %v11876_v14 }
 0x52d   : > { %v6254_v44 = vadd.f32 %v11772_v35, %v15341_v9 }
 0x52e   : > { %v15476_v51 = vadd.f32 %v11878_v43, %v6246_v5  ;;  %v13106_v5 = vld [vmem:[%s16561_s7 + $0xd0] sm:$0xff]  }
 0x52f   : > { %v11773_v62 = vpop.f32.mrb[88].mxu0  ;;  %12261 = vmatprep.subr.bf16.mxu0 %v13106_v5 }
 0x530   : > { %v11879_v54 = vpop.f32.mrb[84].mxu1  ;;  %v11774_v3 = vpop.f32.mrb[89].mxu0 }
 0x531   : > { %v11775_v15 = vadd.f32 %v11774_v3, %v11773_v62  ;;  %v11880_v31 = vpop.f32.mrb[85].mxu1  ;;  %v11776_v56 = vpop.f32.mrb[90].mxu0  ;;  %v13108_v62 = vld [vmem:[%s16561_s7 + $0x90] sm:$0xff]   ;;  %v13107_v3 = vld [vmem:[%s16561_s7 + $0x38] sm:$0xff]  }
 0x532   : > { %v11881_v8 = vadd.f32 %v11880_v31, %v11879_v54  ;;  %v11882_v4 = vpop.f32.mrb[86].mxu1  ;;  %v11777_v29 = vpop.f32.mrb[91].mxu0  ;;  %v13105_v54 = vld [vmem:[%s16561_s7 + $0x78] sm:$0xff]   ;;  %12262 = vmatpush3.bf16.msra.mxu0 %v13108_v62 }
 0x533   : > { %v11778_v32 = vadd.f32 %v11777_v29, %v11776_v56  ;;  %v11883_v18 = vpop.f32.mrb[87].mxu1  ;;  %v6259_v60 = vadd.f32 %v11775_v15, %v15341_v9  ;;  %v13109_v15 = vld [vmem:[%s16561_s7 + $0xd8] sm:$0xff]   ;;  %12159 = vmatprep.subr.bf16.mxu1 %v13105_v54 }
 0x534   : > { %v15483_v17 = vadd.f32 %v11881_v8, %v6251_v48  ;;  %v11884_v63 = vadd.f32 %v11883_v18, %v11882_v4  ;;  %12263 = vmatprep.subr.bf16.mxu0 %v13109_v15  ;;  %12160 = vmatpush3.bf16.msra.mxu1 %v13107_v3  ;;  %v13110_v4 = vld [vmem:[%s16561_s7 + $0x98] sm:$0xff]  }
 0x535   : > { %v6262_v43 = vadd.f32 %v11778_v32, %v15341_v9 }
 0x536   : > { %v15491_v10 = vadd.f32 %v11884_v63, %v6254_v44  ;;  %12264 = vmatpush3.bf16.msra.mxu0 %v13110_v4 }
 0x537   : > { %v11779_v37 = vpop.f32.mrb[92].mxu0 }
 0x538   : > { %v11885_v59 = vpop.f32.mrb[88].mxu1  ;;  %v11780_v24 = vpop.f32.mrb[93].mxu0 }
 0x539   : > { %v11781_v47 = vadd.f32 %v11780_v24, %v11779_v37  ;;  %v11886_v49 = vpop.f32.mrb[89].mxu1  ;;  %v11782_v40 = vpop.f32.mrb[94].mxu0  ;;  %v13111_v24 = vld [vmem:[%s16561_s7 + $0xe0] sm:$0xff]  }
 0x53a   : > { %v11887_v16 = vadd.f32 %v11886_v49, %v11885_v59  ;;  %v11888_v14 = vpop.f32.mrb[90].mxu1  ;;  %v11783_v20 = vpop.f32.mrb[95].mxu0  ;;  %12265 = vmatprep.subr.bf16.mxu0 %v13111_v24 }
 0x53b   : > { %v11784_v35 = vadd.f32 %v11783_v20, %v11782_v40  ;;  %v11889_v12 = vpop.f32.mrb[91].mxu1  ;;  %v6267_v25 = vadd.f32 %v11781_v47, %v15341_v9  ;;  %v13112_v47 = vld [vmem:[%s16561_s7 + $0xa0] sm:$0xff]  }
 0x53c   : > { %v15501_v2 = vadd.f32 %v11887_v16, %v6259_v60  ;;  %v11890_v11 = vadd.f32 %v11889_v12, %v11888_v14  ;;  %12266 = vmatpush3.bf16.msra.mxu0 %v13112_v47  ;;  %v6982_v14 = vld [vmem:[#allocation2 + $0xf] sm:$0xff] }
 0x53d   : > { %v6270_v7 = vadd.f32 %v11784_v35, %v15341_v9  ;;  %v13113_v9 = vld [vmem:[%s16561_s7 + $0xe8] sm:$0xff]  }
 0x53e   : > { %v15515_v31 = vadd.f32 %v11890_v11, %v6262_v43  ;;  %12267 = vmatprep.subr.bf16.mxu0 %v13113_v9 }
 0x53f   : > { %v11913_v56 = vpop.f32.mrb[96].mxu0 }
 0x540   : > { %v11891_v48 = vpop.f32.mrb[92].mxu1  ;;  %v11914_v8 = vpop.f32.mrb[97].mxu0 }
 0x541   : > { %v11892_v29 = vpop.f32.mrb[93].mxu1  ;;  %v11915_v32 = vadd.f32 %v11914_v8, %v11913_v56  ;;  %v11916_v18 = vpop.f32.mrb[98].mxu0 }
 0x542   : > { %v11893_v44 = vadd.f32 %v11892_v29, %v11891_v48  ;;  %v11894_v63 = vpop.f32.mrb[94].mxu1  ;;  %v11917_v21 = vpop.f32.mrb[99].mxu0 }
 0x543   : > { %v6469_v38 = vadd.f32 %v11915_v32, %v15347_v41  ;;  %v11895_v37 = vpop.f32.mrb[95].mxu1  ;;  %v11918_v59 = vadd.f32 %v11917_v21, %v11916_v18  ;;  %v6981_v41 = vld [vmem:[#allocation2 + $0x7] sm:$0xff]  ;;  %v13117_v32 = vld [vmem:[%s16561_s7 + $0xb0] sm:$0xff]   ;;  %v13119_v21 = vld [vmem:[%s16561_s7 + $0xf8] sm:$0xff]  }
 0x544   : > { %v15526_v49 = vadd.f32 %v11893_v44, %v6267_v25  ;;  %v11896_v40 = vadd.f32 %v11895_v37, %v11894_v63  ;;  %v7013_v35 = vpack.c.bf16 %v6982_v14, %v6981_v41  ;;  %v13116_v44 = vld [vmem:[%s16561_s7 + $0x140] sm:$0xff]  }
 0x545   : > { %v6472_v60 = vadd.f32 %v11918_v59, %v15357_v22  ;;  %v13114_v22 = vld [vmem:[%s16561_s7 + $0xa8] sm:$0xff]   ;;  %v13118_v63 = vld [vmem:[%s16561_s7 + $0x100] sm:$0xff]   ;;  %12369 = vmatprep.subr.bf16.mxu1 %v13116_v44 }
 0x546   : > { %v15532_v16 = vadd.f32 %v11896_v40, %v6270_v7  ;;  %8317 = vmatmul.mubr.bf16.vlgmr.msra.gmra.mrb[160].mxu1 %v7013_v35  ;;  %12268 = vmatpush3.bf16.msra.mxu0 %v13114_v22  ;;  %v13121_v44 = vld [vmem:[%s16561_s7 + $0x148] sm:$0xff]  }
 0x547   : > { %v11919_v20 = vpop.f32.mrb[100].mxu0  ;;  %12269 = vmatprep.subr.bf16.mxu0 %v13115_v6  ;;  %12370 = vmatpush3.bf16.msra.mxu1 %v13118_v63  ;;  %v13122_v63 = vld [vmem:[%s16561_s7 + $0x108] sm:$0xff]  }
 0x548   : > { %v12025_v12 = vpop.f32.mrb[96].mxu1  ;;  %v11920_v5 = vpop.f32.mrb[101].mxu0  ;;  %12371 = vmatprep.subr.bf16.mxu1 %v13121_v44 }
 0x549   : > { %v11921_v43 = vadd.f32 %v11920_v5, %v11919_v20  ;;  %v12026_v11 = vpop.f32.mrb[97].mxu1  ;;  %v11922_v62 = vpop.f32.mrb[102].mxu0 }
 0x54a   : > { %v12027_v54 = vadd.f32 %v12026_v11, %v12025_v12  ;;  %v12028_v3 = vpop.f32.mrb[98].mxu1  ;;  %v11923_v15 = vpop.f32.mrb[103].mxu0  ;;  %12270 = vmatpush3.bf16.msra.mxu0 %v13117_v32 }
 0x54b   : > { %v6477_v56 = vadd.f32 %v11921_v43, %v15361_v13  ;;  %v11924_v48 = vadd.f32 %v11923_v15, %v11922_v62  ;;  %v12029_v8 = vpop.f32.mrb[99].mxu1  ;;  %12271 = vmatprep.subr.bf16.mxu0 %v13119_v21  ;;  %12372 = vmatpush3.bf16.msra.mxu1 %v13122_v63 }
 0x54c   : > { %v12030_v4 = vadd.f32 %v12029_v8, %v12028_v3  ;;  %v15545_v29 = vadd.f32 %v12027_v54, %v6469_v38 }
 0x54d   : > { %v6480_v18 = vadd.f32 %v11924_v48, %v15365_v58  ;;  %v13120_v58 = vld [vmem:[%s16561_s7 + $0xb8] sm:$0xff]  }
 0x54e   : > { %v15551_v25 = vadd.f32 %v12030_v4, %v6472_v60  ;;  %12272 = vmatpush3.bf16.msra.mxu0 %v13120_v58 }
 0x54f   : > { %v11925_v13 = vpop.f32.mrb[104].mxu0 }
 0x550   : > { %v12031_v38 = vpop.f32.mrb[100].mxu1  ;;  %v11926_v37 = vpop.f32.mrb[105].mxu0 }
 0x551   : > { %v11927_v59 = vadd.f32 %v11926_v37, %v11925_v13  ;;  %v12032_v24 = vpop.f32.mrb[101].mxu1  ;;  %v11928_v7 = vpop.f32.mrb[106].mxu0 }
 0x552   : > { %v12033_v40 = vadd.f32 %v12032_v24, %v12031_v38  ;;  %v12034_v47 = vpop.f32.mrb[102].mxu1  ;;  %v11929_v60 = vpop.f32.mrb[107].mxu0 }
 0x553   : > { %v6485_v41 = vadd.f32 %v11927_v59, %v15371_v30  ;;  %v11930_v14 = vadd.f32 %v11929_v60, %v11928_v7  ;;  %v12035_v20 = vpop.f32.mrb[103].mxu1 }
 0x554   : > { %v12036_v9 = vadd.f32 %v12035_v20, %v12034_v47  ;;  %v15566_v35 = vadd.f32 %v12033_v40, %v6477_v56 }
 0x555   : > { %v6488_v12 = vadd.f32 %v11930_v14, %v15381_v42 }
 0x556   : > { %v15569_v5 = vadd.f32 %v12036_v9, %v6480_v18 }
 0x557   : > { %v11931_v22 = vpop.f32.mrb[108].mxu0 }
 0x558   : > { %v12037_v43 = vpop.f32.mrb[104].mxu1  ;;  %v11932_v11 = vpop.f32.mrb[109].mxu0 }
 0x559   : > { %v11933_v62 = vadd.f32 %v11932_v11, %v11931_v22  ;;  %v12038_v54 = vpop.f32.mrb[105].mxu1  ;;  %v11934_v3 = vpop.f32.mrb[110].mxu0 }
 0x55a   : > { %v12039_v15 = vadd.f32 %v12038_v54, %v12037_v43  ;;  %v12040_v48 = vpop.f32.mrb[106].mxu1  ;;  %v11935_v8 = vpop.f32.mrb[111].mxu0 }
 0x55b   : > { %v6493_v30 = vadd.f32 %v11933_v62, %v15387_v57  ;;  %v11936_v6 = vadd.f32 %v11935_v8, %v11934_v3  ;;  %v12041_v4 = vpop.f32.mrb[107].mxu1 }
 0x55c   : > { %v12042_v32 = vadd.f32 %v12041_v4, %v12040_v48  ;;  %v15572_v56 = vadd.f32 %v12039_v15, %v6485_v41 }
 0x55d   : > { %v6496_v42 = vadd.f32 %v11936_v6, %v15391_v39 }
 0x55e   : > { %v15575_v18 = vadd.f32 %v12042_v32, %v6488_v12 }
 0x55f   : > { %v11937_v13 = vpop.f32.mrb[112].mxu0 }
 0x560   : > { %v12043_v21 = vpop.f32.mrb[108].mxu1  ;;  %v11938_v57 = vpop.f32.mrb[113].mxu0 }
 0x561   : > { %v11939_v38 = vadd.f32 %v11938_v57, %v11937_v13  ;;  %v12044_v37 = vpop.f32.mrb[109].mxu1  ;;  %v11940_v58 = vpop.f32.mrb[114].mxu0  ;;  %v13124_v13 = vld [vmem:[%s16561_s7 + $0x110] sm:$0xff]  }
 0x562   : > { %v12045_v59 = vadd.f32 %v12044_v37, %v12043_v21  ;;  %v12046_v24 = vpop.f32.mrb[110].mxu1  ;;  %v11941_v39 = vpop.f32.mrb[115].mxu0 }
 0x563   : > { %v6501_v7 = vadd.f32 %v11939_v38, %v15395_v26  ;;  %v11942_v40 = vadd.f32 %v11941_v39, %v11940_v58  ;;  %v12047_v47 = vpop.f32.mrb[111].mxu1 }
 0x564   : > { %v12048_v60 = vadd.f32 %v12047_v47, %v12046_v24  ;;  %v15584_v41 = vadd.f32 %v12045_v59, %v6493_v30 }
 0x565   : > { %v6504_v14 = vadd.f32 %v11942_v40, %v15403_v53 }
 0x566   : > { %v15587_v20 = vadd.f32 %v12048_v60, %v6496_v42  ;;  %v13123_v42 = vld [vmem:[%s16561_s7 + $0x150] sm:$0xff]  }
 0x567   : > { %v11943_v9 = vpop.f32.mrb[116].mxu0  ;;  %12373 = vmatprep.subr.bf16.mxu1 %v13123_v42 }
 0x568   : > { %v12049_v12 = vpop.f32.mrb[112].mxu1  ;;  %v11944_v22 = vpop.f32.mrb[117].mxu0  ;;  %12374 = vmatpush3.bf16.msra.mxu1 %v13124_v13 }
 0x569   : > { %v11945_v43 = vadd.f32 %v11944_v22, %v11943_v9  ;;  %v12050_v11 = vpop.f32.mrb[113].mxu1  ;;  %v11946_v62 = vpop.f32.mrb[118].mxu0 }
 0x56a   : > { %v12051_v54 = vadd.f32 %v12050_v11, %v12049_v12  ;;  %v12052_v3 = vpop.f32.mrb[114].mxu1  ;;  %v11947_v15 = vpop.f32.mrb[119].mxu0 }
 0x56b   : > { %v6509_v26 = vadd.f32 %v11945_v43, %v15407_v19  ;;  %v11948_v48 = vadd.f32 %v11947_v15, %v11946_v62  ;;  %v12053_v8 = vpop.f32.mrb[115].mxu1 }
 0x56c   : > { %v12054_v6 = vadd.f32 %v12053_v8, %v12052_v3  ;;  %v15590_v30 = vadd.f32 %v12051_v54, %v6501_v7 }
 0x56d   : > { %v6512_v53 = vadd.f32 %v11948_v48, %v15409_v1 }
 0x56e   : > { %v15593_v4 = vadd.f32 %v12054_v6, %v6504_v14 }
 0x56f   : > { %v11949_v32 = vpop.f32.mrb[120].mxu0 }
 0x570   : > { %v12055_v44 = vpop.f32.mrb[116].mxu1  ;;  %v11950_v19 = vpop.f32.mrb[121].mxu0 }
 0x571   : > { %v11951_v63 = vadd.f32 %v11950_v19, %v11949_v32  ;;  %v12056_v21 = vpop.f32.mrb[117].mxu1  ;;  %v11952_v57 = vpop.f32.mrb[122].mxu0  ;;  %v13126_v32 = vld [vmem:[%s16561_s7 + $0x118] sm:$0xff]  }
 0x572   : > { %v12057_v38 = vadd.f32 %v12056_v21, %v12055_v44  ;;  %v12058_v37 = vpop.f32.mrb[118].mxu1  ;;  %v11953_v1 = vpop.f32.mrb[123].mxu0 }
 0x573   : > { %v6517_v58 = vadd.f32 %v11951_v63, %v15413_v61  ;;  %v11954_v59 = vadd.f32 %v11953_v1, %v11952_v57  ;;  %v12059_v24 = vpop.f32.mrb[119].mxu1 }
 0x574   : > { %v12060_v39 = vadd.f32 %v12059_v24, %v12058_v37  ;;  %v15602_v7 = vadd.f32 %v12057_v38, %v6509_v26 }
 0x575   : > { %v6520_v40 = vadd.f32 %v11954_v59, %v15421_v36 }
 0x576   : > { %v15605_v47 = vadd.f32 %v12060_v39, %v6512_v53  ;;  %v13125_v53 = vld [vmem:[%s16561_s7 + $0x158] sm:$0xff]  }
 0x577   : > { %v11955_v60 = vpop.f32.mrb[124].mxu0  ;;  %12375 = vmatprep.subr.bf16.mxu1 %v13125_v53 }
 0x578   : > { %v12061_v14 = vpop.f32.mrb[120].mxu1  ;;  %v11956_v9 = vpop.f32.mrb[125].mxu0  ;;  %12376 = vmatpush3.bf16.msra.mxu1 %v13126_v32 }
 0x579   : > { %v11957_v12 = vadd.f32 %v11956_v9, %v11955_v60  ;;  %v12062_v22 = vpop.f32.mrb[121].mxu1  ;;  %v11958_v43 = vpop.f32.mrb[126].mxu0 }
 0x57a   : > { %v12063_v11 = vadd.f32 %v12062_v22, %v12061_v14  ;;  %v12064_v62 = vpop.f32.mrb[122].mxu1  ;;  %v11959_v54 = vpop.f32.mrb[127].mxu0 }
 0x57b   : > { %v6525_v61 = vadd.f32 %v11957_v12, %v15425_v33  ;;  %v11960_v3 = vadd.f32 %v11959_v54, %v11958_v43  ;;  %v12065_v15 = vpop.f32.mrb[123].mxu1 }
 0x57c   : > { %v12066_v48 = vadd.f32 %v12065_v15, %v12064_v62  ;;  %v15608_v26 = vadd.f32 %v12063_v11, %v6517_v58 }
 0x57d   : > { %v6528_v36 = vadd.f32 %v11960_v3, %v15427_v0 }
 0x57e   : > { %v15611_v8 = vadd.f32 %v12066_v48, %v6520_v40 }
 0x57f   : > { %v11961_v6 = vpop.f32.mrb[128].mxu0 }
 0x580   : > { %v12067_v42 = vpop.f32.mrb[124].mxu1  ;;  %v11962_v33 = vpop.f32.mrb[129].mxu0 }
 0x581   : > { %v11963_v13 = vadd.f32 %v11962_v33, %v11961_v6  ;;  %v12068_v44 = vpop.f32.mrb[125].mxu1  ;;  %v11964_v19 = vpop.f32.mrb[130].mxu0 }
 0x582   : > { %v12069_v63 = vadd.f32 %v12068_v44, %v12067_v42  ;;  %v12070_v21 = vpop.f32.mrb[126].mxu1  ;;  %v11965_v0 = vpop.f32.mrb[131].mxu0 }
 0x583   : > { %v6533_v57 = vadd.f32 %v11963_v13, %v15431_v46  ;;  %v11966_v38 = vadd.f32 %v11965_v0, %v11964_v19  ;;  %v12071_v37 = vpop.f32.mrb[127].mxu1  ;;  %v13127_v46 = vld [vmem:[%s16561_s7 + $0x160] sm:$0xff]  }
 0x584   : > { %v12072_v1 = vadd.f32 %v12071_v37, %v12070_v21  ;;  %v15620_v58 = vadd.f32 %v12069_v63, %v6525_v61  ;;  %12377 = vmatprep.subr.bf16.mxu1 %v13127_v46 }
 0x585   : > { %v6536_v59 = vadd.f32 %v11966_v38, %v15439_v27  ;;  %v13128_v27 = vld [vmem:[%s16561_s7 + $0x120] sm:$0xff]  }
 0x586   : > { %v15623_v24 = vadd.f32 %v12072_v1, %v6528_v36  ;;  %12378 = vmatpush3.bf16.msra.mxu1 %v13128_v27 }
 0x587   : > { %v11967_v39 = vpop.f32.mrb[132].mxu0 }
 0x588   : > { %v12073_v40 = vpop.f32.mrb[128].mxu1  ;;  %v11968_v60 = vpop.f32.mrb[133].mxu0 }
 0x589   : > { %v11969_v14 = vadd.f32 %v11968_v60, %v11967_v39  ;;  %v12074_v9 = vpop.f32.mrb[129].mxu1  ;;  %v11970_v12 = vpop.f32.mrb[134].mxu0 }
 0x58a   : > { %v12075_v22 = vadd.f32 %v12074_v9, %v12073_v40  ;;  %v12076_v43 = vpop.f32.mrb[130].mxu1  ;;  %v11971_v11 = vpop.f32.mrb[135].mxu0 }
 0x58b   : > { %v6541_v62 = vadd.f32 %v11969_v14, %v15443_v34  ;;  %v11972_v54 = vadd.f32 %v11971_v11, %v11970_v12  ;;  %v12077_v61 = vpop.f32.mrb[131].mxu1 }
 0x58c   : > { %v12078_v3 = vadd.f32 %v12077_v61, %v12076_v43  ;;  %v15632_v15 = vadd.f32 %v12075_v22, %v6533_v57 }
 0x58d   : > { %v6544_v48 = vadd.f32 %v11972_v54, %v15445_v52 }
 0x58e   : > { %v15635_v36 = vadd.f32 %v12078_v3, %v6536_v59 }
 0x58f   : > { %v11973_v6 = vpop.f32.mrb[136].mxu0 }
 0x590   : > { %v12079_v53 = vpop.f32.mrb[132].mxu1  ;;  %v11974_v32 = vpop.f32.mrb[137].mxu0 }
 0x591   : > { %v11975_v42 = vadd.f32 %v11974_v32, %v11973_v6  ;;  %v12080_v34 = vpop.f32.mrb[133].mxu1  ;;  %v11976_v33 = vpop.f32.mrb[138].mxu0 }
 0x592   : > { %v12081_v13 = vadd.f32 %v12080_v34, %v12079_v53  ;;  %v12082_v44 = vpop.f32.mrb[134].mxu1  ;;  %v11977_v19 = vpop.f32.mrb[139].mxu0 }
 0x593   : > { %v6549_v63 = vadd.f32 %v11975_v42, %v15448_v23  ;;  %v11978_v21 = vadd.f32 %v11977_v19, %v11976_v33  ;;  %v12083_v0 = vpop.f32.mrb[135].mxu1  ;;  %v13129_v23 = vld [vmem:[%s16561_s7 + $0x168] sm:$0xff]  }
 0x594   : > { %v12084_v57 = vadd.f32 %v12083_v0, %v12082_v44  ;;  %v15638_v38 = vadd.f32 %v12081_v13, %v6541_v62  ;;  %12379 = vmatprep.subr.bf16.mxu1 %v13129_v23 }
 0x595   : > { %v6552_v52 = vadd.f32 %v11978_v21, %v15458_v55  ;;  %v13130_v55 = vld [vmem:[%s16561_s7 + $0x128] sm:$0xff]  }
 0x596   : > { %v15641_v37 = vadd.f32 %v12084_v57, %v6544_v48  ;;  %12380 = vmatpush3.bf16.msra.mxu1 %v13130_v55 }
 0x597   : > { %v11979_v1 = vpop.f32.mrb[140].mxu0 }
 0x598   : > { %v12085_v59 = vpop.f32.mrb[136].mxu1  ;;  %v11980_v39 = vpop.f32.mrb[141].mxu0 }
 0x599   : > { %v11981_v40 = vadd.f32 %v11980_v39, %v11979_v1  ;;  %v12086_v60 = vpop.f32.mrb[137].mxu1  ;;  %v11982_v14 = vpop.f32.mrb[142].mxu0 }
 0x59a   : > { %v12087_v9 = vadd.f32 %v12086_v60, %v12085_v59  ;;  %v12088_v12 = vpop.f32.mrb[138].mxu1  ;;  %v11983_v22 = vpop.f32.mrb[143].mxu0 }
 0x59b   : > { %v6557_v43 = vadd.f32 %v11981_v40, %v15462_v45  ;;  %v11984_v11 = vadd.f32 %v11983_v22, %v11982_v14  ;;  %v12089_v46 = vpop.f32.mrb[139].mxu1 }
 0x59c   : > { %v12090_v62 = vadd.f32 %v12089_v46, %v12088_v12  ;;  %v15650_v54 = vadd.f32 %v12087_v9, %v6549_v63 }
 0x59d   : > { %v6560_v61 = vadd.f32 %v11984_v11, %v15464_v28 }
 0x59e   : > { %v15653_v27 = vadd.f32 %v12090_v62, %v6552_v52 }
 0x59f   : > { %v11985_v3 = vpop.f32.mrb[144].mxu0 }
 0x5a0   : > { %v12091_v48 = vpop.f32.mrb[140].mxu1  ;;  %v11986_v6 = vpop.f32.mrb[145].mxu0 }
 0x5a1   : > { %v11987_v53 = vadd.f32 %v11986_v6, %v11985_v3  ;;  %v12092_v45 = vpop.f32.mrb[141].mxu1  ;;  %v11988_v32 = vpop.f32.mrb[146].mxu0 }
 0x5a2   : > { %v12093_v42 = vadd.f32 %v12092_v45, %v12091_v48  ;;  %v12094_v34 = vpop.f32.mrb[142].mxu1  ;;  %v11989_v33 = vpop.f32.mrb[147].mxu0 }
 0x5a3   : > { %v6565_v13 = vadd.f32 %v11987_v53, %v15468_v50  ;;  %v11990_v44 = vadd.f32 %v11989_v33, %v11988_v32  ;;  %v12095_v19 = vpop.f32.mrb[143].mxu1  ;;  %v13131_v50 = vld [vmem:[%s16561_s7 + $0x170] sm:$0xff]  }
 0x5a4   : > { %v12096_v63 = vadd.f32 %v12095_v19, %v12094_v34  ;;  %v15656_v21 = vadd.f32 %v12093_v42, %v6557_v43  ;;  %12381 = vmatprep.subr.bf16.mxu1 %v13131_v50  ;;  %v13133_v42 = vld [vmem:[%s16561_s7 + $0x1c0] sm:$0xff]  }
 0x5a5   : > { %v6568_v28 = vadd.f32 %v11990_v44, %v15476_v51  ;;  %v13132_v51 = vld [vmem:[%s16561_s7 + $0x130] sm:$0xff]   ;;  %12481 = vmatprep.subr.bf16.mxu0 %v13133_v42 }
 0x5a6   : > { %v15659_v0 = vadd.f32 %v12096_v63, %v6560_v61  ;;  %12382 = vmatpush3.bf16.msra.mxu1 %v13132_v51 }
 0x5a7   : > { %v11991_v57 = vpop.f32.mrb[148].mxu0 }
 0x5a8   : > { %v12097_v52 = vpop.f32.mrb[144].mxu1  ;;  %v11992_v1 = vpop.f32.mrb[149].mxu0 }
 0x5a9   : > { %v11993_v59 = vadd.f32 %v11992_v1, %v11991_v57  ;;  %v12098_v39 = vpop.f32.mrb[145].mxu1  ;;  %v11994_v40 = vpop.f32.mrb[150].mxu0 }
 0x5aa   : > { %v12099_v60 = vadd.f32 %v12098_v39, %v12097_v52  ;;  %v12100_v14 = vpop.f32.mrb[146].mxu1  ;;  %v11995_v9 = vpop.f32.mrb[151].mxu0 }
 0x5ab   : > { %v6573_v12 = vadd.f32 %v11993_v59, %v15483_v17  ;;  %v11996_v22 = vadd.f32 %v11995_v9, %v11994_v40  ;;  %v12101_v23 = vpop.f32.mrb[147].mxu1 }
 0x5ac   : > { %v12102_v43 = vadd.f32 %v12101_v23, %v12100_v14  ;;  %v15668_v11 = vadd.f32 %v12099_v60, %v6565_v13 }
 0x5ad   : > { %v6576_v46 = vadd.f32 %v11996_v22, %v15491_v10 }
 0x5ae   : > { %v15671_v55 = vadd.f32 %v12102_v43, %v6568_v28 }
 0x5af   : > { %v11997_v62 = vpop.f32.mrb[152].mxu0 }
 0x5b0   : > { %v12103_v61 = vpop.f32.mrb[148].mxu1  ;;  %v11998_v3 = vpop.f32.mrb[153].mxu0 }
 0x5b1   : > { %v11999_v48 = vadd.f32 %v11998_v3, %v11997_v62  ;;  %v12104_v17 = vpop.f32.mrb[149].mxu1  ;;  %v12000_v6 = vpop.f32.mrb[154].mxu0 }
 0x5b2   : > { %v12105_v53 = vadd.f32 %v12104_v17, %v12103_v61  ;;  %v12106_v45 = vpop.f32.mrb[150].mxu1  ;;  %v12001_v32 = vpop.f32.mrb[155].mxu0 }
 0x5b3   : > { %v6581_v34 = vadd.f32 %v11999_v48, %v15501_v2  ;;  %v12002_v33 = vadd.f32 %v12001_v32, %v12000_v6  ;;  %v12107_v10 = vpop.f32.mrb[151].mxu1  ;;  %v13137_v2 = vld [vmem:[%s16561_s7 + $0x178] sm:$0xff]  }
 0x5b4   : > { %v12108_v13 = vadd.f32 %v12107_v10, %v12106_v45  ;;  %v15677_v44 = vadd.f32 %v12105_v53, %v6573_v12  ;;  %12383 = vmatprep.subr.bf16.mxu1 %v13137_v2 }
 0x5b5   : > { %v6584_v19 = vadd.f32 %v12002_v33, %v15515_v31  ;;  %v13139_v31 = vld [vmem:[%s16561_s7 + $0x138] sm:$0xff]  }
 0x5b6   : > { %v15680_v63 = vadd.f32 %v12108_v13, %v6576_v46  ;;  %12384 = vmatpush3.bf16.msra.mxu1 %v13139_v31 }
 0x5b7   : > { %v12003_v28 = vpop.f32.mrb[156].mxu0 }
 0x5b8   : > { %v12109_v57 = vpop.f32.mrb[152].mxu1  ;;  %v12004_v52 = vpop.f32.mrb[157].mxu0 }
 0x5b9   : > { %v12005_v1 = vadd.f32 %v12004_v52, %v12003_v28  ;;  %v12110_v59 = vpop.f32.mrb[153].mxu1  ;;  %v12006_v39 = vpop.f32.mrb[158].mxu0 }
 0x5ba   : > { %v12111_v40 = vadd.f32 %v12110_v59, %v12109_v57  ;;  %v12112_v60 = vpop.f32.mrb[154].mxu1  ;;  %v12007_v14 = vpop.f32.mrb[159].mxu0 }
 0x5bb   : > { %v6589_v9 = vadd.f32 %v12005_v1, %v15526_v49  ;;  %v12008_v50 = vadd.f32 %v12007_v14, %v12006_v39  ;;  %v12113_v12 = vpop.f32.mrb[155].mxu1  ;;  %v15708_v14 = vld [vmem:[%s16561_s7 + $0x200] sm:$0xff]  }
 0x5bc   : > { %v12114_v22 = vadd.f32 %v12113_v12, %v12112_v60  ;;  %v15689_v23 = vadd.f32 %v12111_v40, %v6581_v34  ;;  %v7110_v12 = vld [vmem:[#allocation2 + $0x11] sm:$0xff]  ;;  %12779 = vmatprep.subr.bf16.mxu1 %v15708_v14 }
 0x5bd   : > { %v6592_v51 = vadd.f32 %v12008_v50, %v15532_v16  ;;  %v7109_v50 = vld [vmem:[#allocation2 + $0x9] sm:$0xff] }
 0x5be   : > { %v15692_v43 = vadd.f32 %v12114_v22, %v6584_v19  ;;  %v7141_v22 = vpack.c.bf16 %v7110_v12, %v7109_v50 }
 0x5bf   : > { %v12749_v46 = vpop.f32.mrb[160].mxu0 }
 0x5c0   : > { %v12115_v62 = vpop.f32.mrb[156].mxu1  ;;  %v6799_v61 = vadd.f32 %v12749_v46, %v15566_v35  ;;  %v6790_v49 = vpop.f32.mrb[161].mxu0 }
 0x5c1   : > { %v12116_v3 = vpop.f32.mrb[157].mxu1  ;;  %v6791_v48 = vadd.f32 %v6790_v49, %v15545_v29  ;;  %v12750_v17 = vpop.f32.mrb[162].mxu0 }
 0x5c2   : > { %v6919_v6 = vmax.f32 %v6799_v61, 0.0  ;;  %v12117_v53 = vadd.f32 %v12116_v3, %v12115_v62  ;;  %v12118_v45 = vpop.f32.mrb[158].mxu1  ;;  %v6802_v32 = vadd.f32 %v12750_v17, %v15569_v5  ;;  %v6793_v42 = vpop.f32.mrb[163].mxu0 }
 0x5c3   : > { %v6917_v34 = vmax.f32 %v6791_v48, 0.0  ;;  %v12119_v16 = vpop.f32.mrb[159].mxu1  ;;  %v6794_v33 = vadd.f32 %v6793_v42, %v15551_v25 }
 0x5c4   : > { %6951 = vst [vmem:[#allocation2 + $0x48] sm:$0xff] %v6919_v6  ;;  %v6920_v10 = vmax.f32 %v6802_v32, 0.0  ;;  %v12120_v13 = vadd.f32 %v12119_v16, %v12118_v45  ;;  %v15698_v19 = vadd.f32 %v12117_v53, %v6589_v9 }
 0x5c5   : > { %6949 = vst [vmem:[#allocation2 + $0x28] sm:$0xff] %v6917_v34  ;;  %v6918_v35 = vmax.f32 %v6794_v33, 0.0 }
 0x5c6   : > { %6952 = vst [vmem:[#allocation2 + $0x50] sm:$0xff] %v6920_v10  ;;  %v7079_v29 = vpack.c.bf16 %v6920_v10, %v6919_v6  ;;  %v15700_v28 = vadd.f32 %v12120_v13, %v6592_v51  ;;  %v13135_v6 = vld [vmem:[%s16561_s7 + $0x1c8] sm:$0xff]  }
 0x5c7   : > { %6950 = vst [vmem:[#allocation2 + $0x30] sm:$0xff] %v6918_v35  ;;  %v12753_v57 = vpop.f32.mrb[164].mxu0  ;;  %v7078_v52 = vpack.c.bf16 %v6918_v35, %v6917_v34 }
 0x5c8   : > { %v6815_v5 = vadd.f32 %v12753_v57, %v15584_v41  ;;  %v6806_v1 = vpop.f32.mrb[165].mxu0 }
 0x5c9   : > { %v6807_v59 = vadd.f32 %v6806_v1, %v15572_v56  ;;  %v12754_v25 = vpop.f32.mrb[166].mxu0  ;;  %8324 = vmatprep.mubr.bf16.mxu1 %v7078_v52  ;;  %v13140_v1 = vld [vmem:[%s16561_s7 + $0x190] sm:$0xff]  }
 0x5ca   : > { %v6923_v39 = vmax.f32 %v6815_v5, 0.0  ;;  %v6818_v40 = vadd.f32 %v12754_v25, %v15587_v20  ;;  %v6809_v60 = vpop.f32.mrb[167].mxu0 }
 0x5cb   : > { %v6921_v2 = vmax.f32 %v6807_v59, 0.0  ;;  %v6810_v9 = vadd.f32 %v6809_v60, %v15575_v18  ;;  %v13134_v18 = vld [vmem:[%s16561_s7 + $0x180] sm:$0xff]   ;;  %v13141_v60 = vld [vmem:[%s16561_s7 + $0x1d8] sm:$0xff]  }
 0x5cc   : > { %6955 = vst [vmem:[#allocation2 + $0x88] sm:$0xff] %v6923_v39  ;;  %v6924_v41 = vmax.f32 %v6818_v40, 0.0  ;;  %v7173_v31 = vld [vmem:[#allocation2 + $0x27] sm:$0xff] }
 0x5cd   : > { %6953 = vst [vmem:[#allocation2 + $0x68] sm:$0xff] %v6921_v2  ;;  %v6922_v56 = vmax.f32 %v6810_v9, 0.0  ;;  %v7176_v51 = vld [vmem:[#allocation2 + $0x4f] sm:$0xff]  ;;  %v7175_v17 = vld [vmem:[#allocation2 + $0x47] sm:$0xff] }
 0x5ce   : > { %6956 = vst [vmem:[#allocation2 + $0x90] sm:$0xff] %v6924_v41  ;;  %v7174_v20 = vld [vmem:[#allocation2 + $0x2f] sm:$0xff]  ;;  %v15712_v46 = vpack.c.bf16 %v6924_v41, %v6923_v39  ;;  %v15722_v32 = vpack.c.bf16 %v7176_v51, %v7175_v17 }
 0x5cf   : > { %6954 = vst [vmem:[#allocation2 + $0x70] sm:$0xff] %v6922_v56  ;;  %v12757_v62 = vpop.f32.mrb[168].mxu0  ;;  %v7205_v61 = vpack.c.bf16 %v7174_v20, %v7173_v31  ;;  %v7080_v49 = vpack.c.bf16 %v6922_v56, %v6921_v2  ;;  %v7111_v35 = vld [vmem:[#allocation2 + $0x29] sm:$0xff] }
 0x5d0   : > { %v6831_v3 = vadd.f32 %v12757_v62, %v15602_v7  ;;  %v6822_v48 = vpop.f32.mrb[169].mxu0  ;;  %v7113_v51 = vld [vmem:[#allocation2 + $0x49] sm:$0xff]  ;;  %v7114_v62 = vld [vmem:[#allocation2 + $0x51] sm:$0xff] }
 0x5d1   : > { %v6823_v53 = vadd.f32 %v6822_v48, %v15590_v30  ;;  %v12758_v45 = vpop.f32.mrb[170].mxu0  ;;  %8477 = vmatprep.mubr.bf16.mxu0 %v7205_v61  ;;  %8325 = vmatmul.mubr.bf16.gmra.mrb[164].mxu1 %v7205_v61  ;;  %v13136_v30 = vld [vmem:[%s16561_s7 + $0x188] sm:$0xff]  }
 0x5d2   : > { %v6927_v42 = vmax.f32 %v6831_v3, 0.0  ;;  %v6834_v34 = vadd.f32 %v12758_v45, %v15605_v47  ;;  %v6825_v16 = vpop.f32.mrb[171].mxu0  ;;  %8478 = vmatmul.mubr.bf16.vlgmr.msra.gmra.mrb[192].mxu0 %v7141_v22  ;;  %8332 = vmatprep.mubr.bf16.mxu1 %v7079_v29  ;;  %v13138_v47 = vld [vmem:[%s16561_s7 + $0x1d0] sm:$0xff]   ;;  %v13144_v3 = vld [vmem:[%s16561_s7 + $0x1a0] sm:$0xff]   ;;  %v13145_v45 = vld [vmem:[%s16561_s7 + $0x1e8] sm:$0xff]  }
 0x5d3   : > { %v6925_v7 = vmax.f32 %v6823_v53, 0.0  ;;  %v6826_v33 = vadd.f32 %v6825_v16, %v15593_v4  ;;  %8485 = vmatprep.mubr.bf16.mxu0 %v15722_v32  ;;  %12482 = vmatpush3.bf16.msra.mxu0 %v13134_v18  ;;  %v7112_v29 = vld [vmem:[#allocation2 + $0x31] sm:$0xff]  ;;  %v7179_v53 = vld [vmem:[#allocation2 + $0x87] sm:$0xff] }
 0x5d4   : > { %6959 = vst [vmem:[#allocation2 + $0xc8] sm:$0xff] %v6927_v42  ;;  %v6928_v10 = vmax.f32 %v6834_v34, 0.0  ;;  %12483 = vmatprep.subr.bf16.mxu0 %v13135_v6  ;;  %v15741_v39 = vpack.c.bf16 %v7112_v29, %v7111_v35  ;;  %v7177_v40 = vld [vmem:[#allocation2 + $0x67] sm:$0xff]  ;;  %v15768_v6 = vpack.c.bf16 %v7114_v62, %v7113_v51 }
 0x5d5   : > { %6957 = vst [vmem:[#allocation2 + $0xa8] sm:$0xff] %v6925_v7  ;;  %v6926_v13 = vmax.f32 %v6826_v33, 0.0 }
 0x5d6   : > { %6960 = vst [vmem:[#allocation2 + $0xd0] sm:$0xff] %v6928_v10  ;;  %v7178_v4 = vld [vmem:[#allocation2 + $0x6f] sm:$0xff]  ;;  %v15733_v57 = vpack.c.bf16 %v6928_v10, %v6927_v42 }
 0x5d7   : > { %6958 = vst [vmem:[#allocation2 + $0xb0] sm:$0xff] %v6926_v13  ;;  %v12761_v52 = vpop.f32.mrb[172].mxu0  ;;  %v15735_v5 = vpack.c.bf16 %v6926_v13, %v6925_v7  ;;  %12484 = vmatpush3.bf16.msra.mxu0 %v13136_v30  ;;  %v15748_v50 = vpack.c.bf16 %v7178_v4, %v7177_v40  ;;  %v7116_v35 = vld [vmem:[#allocation2 + $0x71] sm:$0xff] }
 0x5d8   : > { %v6847_v59 = vadd.f32 %v12761_v52, %v15620_v58  ;;  %v6838_v25 = vpop.f32.mrb[173].mxu0  ;;  %12485 = vmatprep.subr.bf16.mxu0 %v13138_v47 }
 0x5d9   : > { %v6839_v2 = vadd.f32 %v6838_v25, %v15608_v26  ;;  %v12762_v9 = vpop.f32.mrb[174].mxu0  ;;  %8333 = vmatmul.mubr.bf16.gmra.mrb[168].mxu1 %v15722_v32  ;;  %v13142_v26 = vld [vmem:[%s16561_s7 + $0x198] sm:$0xff]  }
 0x5da   : > { %v6931_v12 = vmax.f32 %v6847_v59, 0.0  ;;  %v6850_v41 = vadd.f32 %v12762_v9, %v15623_v24  ;;  %v6841_v58 = vpop.f32.mrb[175].mxu0  ;;  %8486 = vmatmul.mubr.bf16.gmra.mrb[196].mxu0 %v15741_v39  ;;  %8340 = vmatprep.mubr.bf16.mxu1 %v7080_v49  ;;  %v13143_v24 = vld [vmem:[%s16561_s7 + $0x1e0] sm:$0xff]  }
 0x5db   : > { %v6929_v56 = vmax.f32 %v6839_v2, 0.0  ;;  %v6842_v31 = vadd.f32 %v6841_v58, %v15611_v8  ;;  %8493 = vmatprep.mubr.bf16.mxu0 %v15748_v50  ;;  %12486 = vmatpush3.bf16.msra.mxu0 %v13140_v1  ;;  %v7180_v8 = vld [vmem:[#allocation2 + $0x8f] sm:$0xff]  ;;  %v13150_v2 = vld [vmem:[%s16561_s7 + $0x1f8] sm:$0xff]  }
 0x5dc   : > { %6963 = vst [vmem:[#allocation2 + $0x108] sm:$0xff] %v6931_v12  ;;  %v6932_v20 = vmax.f32 %v6850_v41, 0.0  ;;  %12487 = vmatprep.subr.bf16.mxu0 %v13141_v60  ;;  %v15775_v16 = vpack.c.bf16 %v7180_v8, %v7179_v53  ;;  %v13149_v1 = vld [vmem:[%s16561_s7 + $0x1b0] sm:$0xff]   ;;  %v7181_v60 = vld [vmem:[#allocation2 + $0xa7] sm:$0xff] }
 0x5dd   : > { %6961 = vst [vmem:[#allocation2 + $0xe8] sm:$0xff] %v6929_v56  ;;  %v6930_v22 = vmax.f32 %v6842_v31, 0.0  ;;  %v7184_v51 = vld [vmem:[#allocation2 + $0xcf] sm:$0xff] }
 0x5de   : > { %6964 = vst [vmem:[#allocation2 + $0x110] sm:$0xff] %v6932_v20  ;;  %v15760_v61 = vpack.c.bf16 %v6932_v20, %v6931_v12 }
 0x5df   : > { %6962 = vst [vmem:[#allocation2 + $0xf0] sm:$0xff] %v6930_v22  ;;  %v12765_v49 = vpop.f32.mrb[176].mxu0  ;;  %v15762_v18 = vpack.c.bf16 %v6930_v22, %v6929_v56  ;;  %12488 = vmatpush3.bf16.msra.mxu0 %v13142_v26  ;;  %v7118_v22 = vld [vmem:[#allocation2 + $0x91] sm:$0xff] }
 0x5e0   : > { %v6863_v48 = vadd.f32 %v12765_v49, %v15638_v38  ;;  %v6854_v17 = vpop.f32.mrb[177].mxu0  ;;  %12489 = vmatprep.subr.bf16.mxu0 %v13143_v24  ;;  %v7117_v24 = vld [vmem:[#allocation2 + $0x89] sm:$0xff] }
 0x5e1   : > { %v6855_v42 = vadd.f32 %v6854_v17, %v15632_v15  ;;  %v12766_v34 = vpop.f32.mrb[178].mxu0  ;;  %8341 = vmatmul.mubr.bf16.gmra.mrb[172].mxu1 %v15748_v50  ;;  %v13146_v15 = vld [vmem:[%s16561_s7 + $0x1a8] sm:$0xff]  }
 0x5e2   : > { %v6935_v7 = vmax.f32 %v6863_v48, 0.0  ;;  %v6866_v33 = vadd.f32 %v12766_v34, %v15641_v37  ;;  %v6857_v38 = vpop.f32.mrb[179].mxu0  ;;  %8494 = vmatmul.mubr.bf16.gmra.mrb[200].mxu0 %v15768_v6  ;;  %8348 = vmatprep.mubr.bf16.mxu1 %v15712_v46  ;;  %v13147_v37 = vld [vmem:[%s16561_s7 + $0x1f0] sm:$0xff]   ;;  %v7183_v48 = vld [vmem:[#allocation2 + $0xc7] sm:$0xff] }
 0x5e3   : > { %v6933_v30 = vmax.f32 %v6855_v42, 0.0  ;;  %v6858_v10 = vadd.f32 %v6857_v38, %v15635_v36  ;;  %8501 = vmatprep.mubr.bf16.mxu0 %v15775_v16  ;;  %12490 = vmatpush3.bf16.msra.mxu0 %v13144_v3  ;;  %v7115_v46 = vld [vmem:[#allocation2 + $0x69] sm:$0xff]  ;;  %v15818_v3 = vpack.c.bf16 %v7118_v22, %v7117_v24 }
 0x5e4   : > { %6967 = vst [vmem:[#allocation2 + $0x148] sm:$0xff] %v6935_v7  ;;  %v6936_v47 = vmax.f32 %v6866_v33, 0.0  ;;  %12491 = vmatprep.subr.bf16.mxu0 %v13145_v45  ;;  %v7182_v36 = vld [vmem:[#allocation2 + $0xaf] sm:$0xff]  ;;  %v15796_v40 = vpack.c.bf16 %v7116_v35, %v7115_v46  ;;  %v15822_v45 = vpack.c.bf16 %v7184_v51, %v7183_v48  ;;  %v7185_v46 = vld [vmem:[#allocation2 + $0xe7] sm:$0xff] }
 0x5e5   : > { %6965 = vst [vmem:[#allocation2 + $0x128] sm:$0xff] %v6933_v30  ;;  %v6934_v13 = vmax.f32 %v6858_v10, 0.0  ;;  %v15803_v41 = vpack.c.bf16 %v7182_v36, %v7181_v60  ;;  %v7120_v10 = vld [vmem:[#allocation2 + $0xb1] sm:$0xff]  ;;  %v7125_v24 = vld [vmem:[#allocation2 + $0x109] sm:$0xff] }
 0x5e6   : > { %6968 = vst [vmem:[#allocation2 + $0x150] sm:$0xff] %v6936_v47  ;;  %v15788_v29 = vpack.c.bf16 %v6936_v47, %v6935_v7 }
 0x5e7   : > { %6966 = vst [vmem:[#allocation2 + $0x130] sm:$0xff] %v6934_v13  ;;  %v12769_v4 = vpop.f32.mrb[180].mxu0  ;;  %v15790_v52 = vpack.c.bf16 %v6934_v13, %v6933_v30  ;;  %12492 = vmatpush3.bf16.msra.mxu0 %v13146_v15  ;;  %v7119_v30 = vld [vmem:[#allocation2 + $0xa9] sm:$0xff] }
 0x5e8   : > { %v6879_v59 = vadd.f32 %v12769_v4, %v15656_v21  ;;  %v6870_v25 = vpop.f32.mrb[181].mxu0  ;;  %12493 = vmatprep.subr.bf16.mxu0 %v13147_v37  ;;  %v7186_v15 = vld [vmem:[#allocation2 + $0xef] sm:$0xff] }
 0x5e9   : > { %v6871_v9 = vadd.f32 %v6870_v25, %v15650_v54  ;;  %v12770_v12 = vpop.f32.mrb[182].mxu0  ;;  %8349 = vmatmul.mubr.bf16.gmra.mrb[176].mxu1 %v15775_v16  ;;  %v13151_v54 = vld [vmem:[%s16561_s7 + $0x1b8] sm:$0xff]   ;;  %v15838_v4 = vpack.c.bf16 %v7186_v15, %v7185_v46 }
 0x5ea   : > { %v6939_v58 = vmax.f32 %v6879_v59, 0.0  ;;  %v6882_v56 = vadd.f32 %v12770_v12, %v15659_v0  ;;  %v6873_v21 = vpop.f32.mrb[183].mxu0  ;;  %8502 = vmatmul.mubr.bf16.gmra.mrb[204].mxu0 %v15796_v40  ;;  %8356 = vmatprep.mubr.bf16.mxu1 %v15735_v5  ;;  %v7122_v12 = vld [vmem:[#allocation2 + $0xd1] sm:$0xff] }
 0x5eb   : > { %v6937_v31 = vmax.f32 %v6871_v9, 0.0  ;;  %v6874_v26 = vadd.f32 %v6873_v21, %v15653_v27  ;;  %8509 = vmatprep.mubr.bf16.mxu0 %v15803_v41  ;;  %12494 = vmatpush3.bf16.msra.mxu0 %v13149_v1  ;;  %v7121_v9 = vld [vmem:[#allocation2 + $0xc9] sm:$0xff] }
 0x5ec   : > { %6971 = vst [vmem:[#allocation2 + $0x188] sm:$0xff] %v6939_v58  ;;  %v6940_v20 = vmax.f32 %v6882_v56, 0.0  ;;  %12495 = vmatprep.subr.bf16.mxu0 %v13150_v2  ;;  %v15847_v56 = vpack.c.bf16 %v7122_v12, %v7121_v9  ;;  %v7187_v21 = vld [vmem:[#allocation2 + $0x107] sm:$0xff] }
 0x5ed   : > { %6969 = vst [vmem:[#allocation2 + $0x168] sm:$0xff] %v6937_v31  ;;  %v6938_v0 = vmax.f32 %v6874_v26, 0.0  ;;  %v7192_v22 = vld [vmem:[#allocation2 + $0x14f] sm:$0xff] }
 0x5ee   : > { %6972 = vst [vmem:[#allocation2 + $0x190] sm:$0xff] %v6940_v20  ;;  %v15813_v5 = vpack.c.bf16 %v6940_v20, %v6939_v58  ;;  %v7188_v58 = vld [vmem:[#allocation2 + $0x10f] sm:$0xff]  ;;  %v7189_v20 = vld [vmem:[#allocation2 + $0x127] sm:$0xff] }
 0x5ef   : > { %6970 = vst [vmem:[#allocation2 + $0x170] sm:$0xff] %v6938_v0  ;;  %v12773_v27 = vpop.f32.mrb[184].mxu0  ;;  %v15815_v62 = vpack.c.bf16 %v6938_v0, %v6937_v31  ;;  %12496 = vmatpush3.bf16.msra.mxu0 %v13151_v54  ;;  %v7124_v31 = vld [vmem:[#allocation2 + $0xf1] sm:$0xff] }
 0x5f0   : > { %v6895_v8 = vadd.f32 %v12773_v27, %v15677_v44  ;;  %v6886_v49 = vpop.f32.mrb[185].mxu0  ;;  %v7190_v26 = vld [vmem:[#allocation2 + $0x12f] sm:$0xff]  ;;  %v7191_v27 = vld [vmem:[#allocation2 + $0x147] sm:$0xff] }
 0x5f1   : > { %v6887_v17 = vadd.f32 %v6886_v49, %v15668_v11  ;;  %v12774_v53 = vpop.f32.mrb[186].mxu0  ;;  %8357 = vmatmul.mubr.bf16.gmra.mrb[180].mxu1 %v15803_v41  ;;  %v15858_v0 = vpack.c.bf16 %v7190_v26, %v7189_v20  ;;  %v7127_v49 = vld [vmem:[#allocation2 + $0x129] sm:$0xff] }
 0x5f2   : > { %v6943_v42 = vmax.f32 %v6895_v8, 0.0  ;;  %v6898_v34 = vadd.f32 %v12774_v53, %v15680_v63  ;;  %v6889_v7 = vpop.f32.mrb[187].mxu0  ;;  %8510 = vmatmul.mubr.bf16.gmra.mrb[208].mxu0 %v15818_v3  ;;  %8364 = vmatprep.mubr.bf16.mxu1 %v15733_v57  ;;  %v15866_v8 = vpack.c.bf16 %v7192_v22, %v7191_v27  ;;  %v7237_v27 = vld [vmem:[#allocation2 + $0x28] sm:$0xff] }
 0x5f3   : > { %v6941_v44 = vmax.f32 %v6887_v17, 0.0  ;;  %v6890_v33 = vadd.f32 %v6889_v7, %v15671_v55  ;;  %8517 = vmatprep.mubr.bf16.mxu0 %v15822_v45  ;;  %v15834_v55 = vpack.c.bf16 %v7120_v10, %v7119_v30  ;;  %v7130_v7 = vld [vmem:[#allocation2 + $0x151] sm:$0xff]  ;;  %v7195_v15 = vld [vmem:[#allocation2 + $0x187] sm:$0xff] }
 0x5f4   : > { %6975 = vst [vmem:[#allocation2 + $0x1c8] sm:$0xff] %v6943_v42  ;;  %v6944_v11 = vmax.f32 %v6898_v34, 0.0  ;;  %v7193_v53 = vld [vmem:[#allocation2 + $0x167] sm:$0xff] }
 0x5f5   : > { %6973 = vst [vmem:[#allocation2 + $0x1a8] sm:$0xff] %v6941_v44  ;;  %v6942_v38 = vmax.f32 %v6890_v33, 0.0  ;;  %v7196_v33 = vld [vmem:[#allocation2 + $0x18f] sm:$0xff] }
 0x5f6   : > { %6976 = vst [vmem:[#allocation2 + $0x1d0] sm:$0xff] %v6944_v11  ;;  %v15829_v47 = vpack.c.bf16 %v6944_v11, %v6943_v42  ;;  %v7194_v48 = vld [vmem:[#allocation2 + $0x16f] sm:$0xff] }
 0x5f7   : > { %6974 = vst [vmem:[#allocation2 + $0x1b0] sm:$0xff] %v6942_v38  ;;  %v12777_v63 = vpop.f32.mrb[188].mxu0  ;;  %v15831_v37 = vpack.c.bf16 %v6942_v38, %v6941_v44  ;;  %v15874_v42 = vpack.c.bf16 %v7194_v48, %v7193_v53  ;;  %v7429_v53 = vld [vmem:[#allocation2 + $0x48] sm:$0xff] }
 0x5f8   : > { %v6911_v57 = vadd.f32 %v12777_v63, %v15698_v19  ;;  %v6902_v13 = vpop.f32.mrb[189].mxu0 }
 0x5f9   : > { %v6903_v35 = vadd.f32 %v6902_v13, %v15689_v23  ;;  %v12778_v36 = vpop.f32.mrb[190].mxu0  ;;  %8365 = vmatmul.mubr.bf16.gmra.mrb[184].mxu1 %v15822_v45  ;;  %v7132_v13 = vld [vmem:[#allocation2 + $0x171] sm:$0xff] }
 0x5fa   : > { %v6947_v1 = vmax.f32 %v6911_v57, 0.0  ;;  %v6914_v59 = vadd.f32 %v12778_v36, %v15700_v28  ;;  %v6905_v25 = vpop.f32.mrb[191].mxu0  ;;  %8518 = vmatmul.mubr.bf16.gmra.mrb[212].mxu0 %v15834_v55  ;;  %8372 = vmatprep.mubr.bf16.mxu1 %v15762_v18  ;;  %v15850_v18 = vpack.c.bf16 %v7188_v58, %v7187_v21  ;;  %v15886_v57 = vpack.c.bf16 %v7196_v33, %v7195_v15  ;;  %v7432_v33 = vld [vmem:[#allocation2 + $0x70] sm:$0xff] }
 0x5fb   : > { %v6945_v19 = vmax.f32 %v6903_v35, 0.0  ;;  %v6906_v60 = vadd.f32 %v6905_v25, %v15692_v43  ;;  %8525 = vmatprep.mubr.bf16.mxu0 %v15838_v4  ;;  %v7123_v43 = vld [vmem:[#allocation2 + $0xe9] sm:$0xff] }
 0x5fc   : > { %6979 = vst [vmem:[#allocation2 + $0x208] sm:$0xff] %v6947_v1  ;;  %v6948_v23 = vmax.f32 %v6914_v59, 0.0  ;;  %v15855_v54 = vpack.c.bf16 %v7124_v31, %v7123_v43  ;;  %v7197_v36 = vld [vmem:[#allocation2 + $0x1a7] sm:$0xff]  ;;  %v7434_v15 = vld [vmem:[#allocation2 + $0x90] sm:$0xff] }
 0x5fd   : > { %6977 = vst [vmem:[#allocation2 + $0x1e8] sm:$0xff] %v6945_v19  ;;  %v6946_v2 = vmax.f32 %v6906_v60, 0.0  ;;  %v7133_v59 = vld [vmem:[#allocation2 + $0x189] sm:$0xff] }
 0x5fe   : > { %6980 = vst [vmem:[#allocation2 + $0x210] sm:$0xff] %v6948_v23  ;;  %v7198_v46 = vld [vmem:[#allocation2 + $0x1af] sm:$0xff]  ;;  %v7199_v60 = vld [vmem:[#allocation2 + $0x1c7] sm:$0xff] }
 0x5ff   : > { %6978 = vst [vmem:[#allocation2 + $0x1f0] sm:$0xff] %v6946_v2  ;;  %v15845_v28 = vpack.c.bf16 %v6946_v2, %v6945_v19  ;;  %v15894_v1 = vpack.c.bf16 %v7198_v46, %v7197_v36  ;;  %v7200_v25 = vld [vmem:[#allocation2 + $0x1cf] sm:$0xff] }
 0x600   : > { %v15902_v23 = vpack.c.bf16 %v7200_v25, %v7199_v60  ;;  %v7135_v2 = vld [vmem:[#allocation2 + $0x1a9] sm:$0xff] }
 0x601   : > { %8373 = vmatmul.mubr.bf16.gmra.mrb[188].mxu1 %v15838_v4  ;;  %v7137_v43 = vld [vmem:[#allocation2 + $0x1c9] sm:$0xff] }
 0x602   : > { %8526 = vmatmul.mubr.bf16.gmra.mrb[216].mxu0 %v15847_v56  ;;  %8380 = vmatprep.mubr.bf16.mxu1 %v15760_v61  ;;  %v7126_v61 = vld [vmem:[#allocation2 + $0x111] sm:$0xff]  ;;  %v7435_v36 = vld [vmem:[#allocation2 + $0xa8] sm:$0xff] }
 0x603   : > { %8533 = vmatprep.mubr.bf16.mxu0 %v15850_v18  ;;  %v15863_v51 = vpack.c.bf16 %v7126_v61, %v7125_v24  ;;  %v7203_v20 = vld [vmem:[#allocation2 + $0x207] sm:$0xff]  ;;  %v7238_v61 = vld [vmem:[#allocation2 + $0x30] sm:$0xff] }
 0x604   : > { %v7201_v58 = vld [vmem:[#allocation2 + $0x1e7] sm:$0xff]  ;;  %v7440_v60 = vld [vmem:[#allocation2 + $0xf0] sm:$0xff] }
 0x605   : > { %v7204_v31 = vld [vmem:[#allocation2 + $0x20f] sm:$0xff] }
 0x606   : > { %v7202_v9 = vld [vmem:[#allocation2 + $0x1ef] sm:$0xff]  ;;  %v15918_v24 = vpack.c.bf16 %v7204_v31, %v7203_v20 }
 0x607   : > { %v15910_v21 = vpack.c.bf16 %v7202_v9, %v7201_v58  ;;  %v7140_v22 = vld [vmem:[#allocation2 + $0x1f1] sm:$0xff] }
 0x609   : > { %8381 = vmatmul.mubr.bf16.gmra.mrb[192].mxu1 %v15850_v18 }
 0x60a   : > { %8534 = vmatmul.mubr.bf16.gmra.mrb[220].mxu0 %v15855_v54  ;;  %8388 = vmatprep.mubr.bf16.mxu1 %v15790_v52  ;;  %v7128_v52 = vld [vmem:[#allocation2 + $0x131] sm:$0xff] }
 0x60b   : > { %8541 = vmatprep.mubr.bf16.mxu0 %v15858_v0  ;;  %v15871_v17 = vpack.c.bf16 %v7128_v52, %v7127_v49  ;;  %v7430_v49 = vld [vmem:[#allocation2 + $0x50] sm:$0xff]  ;;  %v7269_v52 = vpack.c.bf16 %v7238_v61, %v7237_v27 }
 0x60c   : > { %v7454_v27 = vld [vmem:[#allocation2 + $0x1d0] sm:$0xff] }
 0x611   : > { %8389 = vmatmul.mubr.bf16.gmra.mrb[196].mxu1 %v15858_v0 }
 0x612   : > { %8542 = vmatmul.mubr.bf16.gmra.mrb[224].mxu0 %v15863_v51  ;;  %8396 = vmatprep.mubr.bf16.mxu1 %v15788_v29  ;;  %v7129_v29 = vld [vmem:[#allocation2 + $0x149] sm:$0xff] }
 0x613   : > { %8549 = vmatprep.mubr.bf16.mxu0 %v15866_v8  ;;  %v15881_v10 = vpack.c.bf16 %v7130_v7, %v7129_v29  ;;  %v7461_v29 = vpack.c.bf16 %v7430_v49, %v7429_v53 }
 0x619   : > { %8397 = vmatmul.mubr.bf16.gmra.mrb[200].mxu1 %v15866_v8  ;;  %v12161_v34 = vpop.f32.mrb[160].mxu1 }
 0x61a   : > { %8550 = vmatmul.mubr.bf16.gmra.mrb[228].mxu0 %v15871_v17  ;;  %8404 = vmatprep.mubr.bf16.mxu1 %v15815_v62  ;;  %v12162_v44 = vpop.f32.mrb[161].mxu1  ;;  %v7131_v62 = vld [vmem:[#allocation2 + $0x169] sm:$0xff] }
 0x61b   : > { %8557 = vmatprep.mubr.bf16.mxu0 %v15874_v42  ;;  %v15879_v11 = vadd.f32 %v12162_v44, %v12161_v34  ;;  %v12164_v38 = vpop.f32.mrb[162].mxu1  ;;  %v15891_v35 = vpack.c.bf16 %v7132_v13, %v7131_v62  ;;  %v13152_v34 = vld [vmem:[%s16561_s7 + $0x208] sm:$0xff]   ;;  %v13153_v44 = vld [vmem:[%s16561_s7 + $0x210] sm:$0xff]  }
 0x61c   : > { %v12165_v30 = vpop.f32.mrb[163].mxu1  ;;  %v7433_v62 = vld [vmem:[#allocation2 + $0x88] sm:$0xff] }
 0x61d   : > { %v15883_v63 = vadd.f32 %v12165_v30, %v12164_v38  ;;  %v7431_v38 = vld [vmem:[#allocation2 + $0x68] sm:$0xff]  ;;  %v7463_v46 = vpack.c.bf16 %v7434_v15, %v7433_v62 }
 0x61e   : > { %v7462_v30 = vpack.c.bf16 %v7432_v33, %v7431_v38  ;;  %v13156_v13 = vld [vmem:[%s16561_s7 + $0x228] sm:$0xff]  }
 0x621   : > { %8405 = vmatmul.mubr.bf16.gmra.mrb[204].mxu1 %v15874_v42 }
 0x622   : > { %8558 = vmatmul.mubr.bf16.gmra.mrb[232].mxu0 %v15881_v10  ;;  %8412 = vmatprep.mubr.bf16.mxu1 %v15813_v5  ;;  %v7134_v5 = vld [vmem:[#allocation2 + $0x191] sm:$0xff] }
 0x623   : > { %8565 = vmatprep.mubr.bf16.mxu0 %v15886_v57  ;;  %v15899_v19 = vpack.c.bf16 %v7134_v5, %v7133_v59  ;;  %v13158_v59 = vld [vmem:[%s16561_s7 + $0x238] sm:$0xff]  }
 0x629   : > { %8413 = vmatmul.mubr.bf16.gmra.mrb[208].mxu1 %v15886_v57 }
 0x62a   : > { %8566 = vmatmul.mubr.bf16.gmra.mrb[236].mxu0 %v15891_v35  ;;  %8420 = vmatprep.mubr.bf16.mxu1 %v15831_v37  ;;  %v7136_v37 = vld [vmem:[#allocation2 + $0x1b1] sm:$0xff] }
 0x62b   : > { %8573 = vmatprep.mubr.bf16.mxu0 %v15894_v1  ;;  %v15907_v12 = vpack.c.bf16 %v7136_v37, %v7135_v2  ;;  %v7439_v2 = vld [vmem:[#allocation2 + $0xe8] sm:$0xff] }
 0x62c   : > { %v7466_v37 = vpack.c.bf16 %v7440_v60, %v7439_v2 }
 0x631   : > { %8421 = vmatmul.mubr.bf16.gmra.mrb[212].mxu1 %v15894_v1 }
 0x632   : > { %8574 = vmatmul.mubr.bf16.gmra.mrb[240].mxu0 %v15899_v19  ;;  %8428 = vmatprep.mubr.bf16.mxu1 %v15829_v47  ;;  %v7138_v47 = vld [vmem:[#allocation2 + $0x1d1] sm:$0xff] }
 0x633   : > { %8581 = vmatprep.mubr.bf16.mxu0 %v15902_v23  ;;  %v15915_v26 = vpack.c.bf16 %v7138_v47, %v7137_v43 }
 0x639   : > { %8429 = vmatmul.mubr.bf16.gmra.mrb[216].mxu1 %v15902_v23 }
 0x63a   : > { %8582 = vmatmul.mubr.bf16.gmra.mrb[244].mxu0 %v15907_v12  ;;  %8436 = vmatprep.mubr.bf16.mxu1 %v15845_v28  ;;  %v7139_v28 = vld [vmem:[#allocation2 + $0x1e9] sm:$0xff] }
 0x63b   : > { %8589 = vmatprep.mubr.bf16.mxu0 %v15910_v21  ;;  %v15923_v48 = vpack.c.bf16 %v7140_v22, %v7139_v28 }
 0x641   : > { %8437 = vmatmul.mubr.bf16.gmra.mrb[220].mxu1 %v15910_v21 }
 0x642   : > { %8590 = vmatmul.mubr.bf16.gmra.mrb[248].mxu0 %v15915_v26  ;;  %8638 = vmatprep.mubr.bf16.mxu1 %v15741_v39  ;;  %v13170_v39 = vld [vmem:[#allocation2] sm:$0xff] }
 0x643   : > { %8597 = vmatprep.mubr.bf16.mxu0 %v15918_v24  ;;  %v15930_v7 = vpack.c.bf16 %v13170_v39, %v13170_v39 }
 0x645   : > { %9910 = vmatprep.subr.bf16.mxu0 %v15930_v7 }
 0x649   : > { %8639 = vmatmul.mubr.bf16.vlgmr.msra.gmra.mrb[224].mxu1 %v7269_v52 }
 0x64a   : > { %8598 = vmatmul.mubr.bf16.gmra.mrb[252].mxu0 %v15923_v48  ;;  %8646 = vmatprep.mubr.bf16.mxu1 %v15768_v6  ;;  %v13154_v6 = vld [vmem:[%s16561_s7 + $0x218] sm:$0xff]  }
 0x64b   : > { %8799 = vmatprep.mubr.bf16.mxu0 %v7461_v29  ;;  %12780 = vmatpush3.bf16.msra.mxu1 %v15708_v14  ;;  %v13155_v14 = vld [vmem:[%s16561_s7 + $0x220] sm:$0xff]  }
 0x64c   : > { %12781 = vmatprep.subr.bf16.mxu1 %v13152_v34 }
 0x64f   : > { %12782 = vmatpush3.bf16.msra.mxu1 %v13152_v34 }
 0x650   : > { %12783 = vmatprep.subr.bf16.mxu1 %v13153_v44 }
 0x651   : > { %8647 = vmatmul.mubr.bf16.gmra.mrb[228].mxu1 %v7461_v29  ;;  %v7453_v29 = vld [vmem:[#allocation2 + $0x1c8] sm:$0xff] }
 0x652   : > { %8800 = vmatmul.mubr.bf16.vlgmr.msra.gmra.mrb[0].mxu0 %v15722_v32  ;;  %8654 = vmatprep.mubr.bf16.mxu1 %v15796_v40  ;;  %v13157_v32 = vld [vmem:[%s16561_s7 + $0x230] sm:$0xff]   ;;  %v7473_v38 = vpack.c.bf16 %v7454_v27, %v7453_v29 }
 0x653   : > { %8807 = vmatprep.mubr.bf16.mxu0 %v7462_v30  ;;  %12784 = vmatpush3.bf16.msra.mxu1 %v13153_v44  ;;  %v7436_v40 = vld [vmem:[#allocation2 + $0xb0] sm:$0xff] }
 0x654   : > { %12785 = vmatprep.subr.bf16.mxu1 %v13154_v6  ;;  %v7464_v5 = vpack.c.bf16 %v7436_v40, %v7435_v36 }
 0x657   : > { %12786 = vmatpush3.bf16.msra.mxu1 %v13154_v6 }
 0x658   : > { %12787 = vmatprep.subr.bf16.mxu1 %v13155_v14 }
 0x659   : > { %8655 = vmatmul.mubr.bf16.gmra.mrb[232].mxu1 %v7462_v30 }
 0x65a   : > { %8808 = vmatmul.mubr.bf16.gmra.mrb[4].mxu0 %v15748_v50  ;;  %8662 = vmatprep.mubr.bf16.mxu1 %v15818_v3  ;;  %v7438_v50 = vld [vmem:[#allocation2 + $0xd0] sm:$0xff]  ;;  %v7437_v3 = vld [vmem:[#allocation2 + $0xc8] sm:$0xff] }
 0x65b   : > { %8815 = vmatprep.mubr.bf16.mxu0 %v7463_v46  ;;  %12788 = vmatpush3.bf16.msra.mxu1 %v13155_v14  ;;  %v7465_v25 = vpack.c.bf16 %v7438_v50, %v7437_v3 }
 0x65c   : > { %12789 = vmatprep.subr.bf16.mxu1 %v13156_v13 }
 0x65f   : > { %12790 = vmatpush3.bf16.msra.mxu1 %v13156_v13 }
 0x660   : > { %12791 = vmatprep.subr.bf16.mxu1 %v13157_v32 }
 0x661   : > { %8663 = vmatmul.mubr.bf16.gmra.mrb[236].mxu1 %v7463_v46  ;;  %v7456_v46 = vld [vmem:[#allocation2 + $0x1f0] sm:$0xff] }
 0x662   : > { %8816 = vmatmul.mubr.bf16.gmra.mrb[8].mxu0 %v15775_v16  ;;  %8670 = vmatprep.mubr.bf16.mxu1 %v15834_v55  ;;  %v7442_v16 = vld [vmem:[#allocation2 + $0x110] sm:$0xff]  ;;  %v7441_v55 = vld [vmem:[#allocation2 + $0x108] sm:$0xff] }
 0x663   : > { %8823 = vmatprep.mubr.bf16.mxu0 %v7464_v5  ;;  %12792 = vmatpush3.bf16.msra.mxu1 %v13157_v32  ;;  %v7467_v9 = vpack.c.bf16 %v7442_v16, %v7441_v55  ;;  %v7331_v55 = vld [vmem:[#allocation2 + $0x209] sm:$0xff] }
 0x664   : > { %12793 = vmatprep.subr.bf16.mxu1 %v13158_v59 }
 0x667   : > { %12794 = vmatpush3.bf16.msra.mxu1 %v13158_v59 }
 0x669   : > { %8671 = vmatmul.mubr.bf16.gmra.mrb[240].mxu1 %v7464_v5 }
 0x66a   : > { %8824 = vmatmul.mubr.bf16.gmra.mrb[12].mxu0 %v15803_v41  ;;  %8678 = vmatprep.mubr.bf16.mxu1 %v15847_v56  ;;  %v7444_v41 = vld [vmem:[#allocation2 + $0x130] sm:$0xff]  ;;  %v7443_v56 = vld [vmem:[#allocation2 + $0x128] sm:$0xff] }
 0x66b   : > { %8831 = vmatprep.mubr.bf16.mxu0 %v7465_v25  ;;  %v7468_v58 = vpack.c.bf16 %v7444_v41, %v7443_v56 }
 0x671   : > { %8679 = vmatmul.mubr.bf16.gmra.mrb[244].mxu1 %v7465_v25 }
 0x672   : > { %8832 = vmatmul.mubr.bf16.gmra.mrb[16].mxu0 %v15822_v45  ;;  %8686 = vmatprep.mubr.bf16.mxu1 %v15855_v54  ;;  %v7446_v45 = vld [vmem:[#allocation2 + $0x150] sm:$0xff]  ;;  %v7445_v54 = vld [vmem:[#allocation2 + $0x148] sm:$0xff] }
 0x673   : > { %8839 = vmatprep.mubr.bf16.mxu0 %v7466_v37  ;;  %v7469_v43 = vpack.c.bf16 %v7446_v45, %v7445_v54  ;;  %v7458_v45 = vld [vmem:[#allocation2 + $0x210] sm:$0xff] }
 0x679   : > { %8687 = vmatmul.mubr.bf16.gmra.mrb[248].mxu1 %v7466_v37 }
 0x67a   : > { %8840 = vmatmul.mubr.bf16.gmra.mrb[20].mxu0 %v15838_v4  ;;  %8694 = vmatprep.mubr.bf16.mxu1 %v15863_v51  ;;  %v7448_v4 = vld [vmem:[#allocation2 + $0x170] sm:$0xff]  ;;  %v7447_v51 = vld [vmem:[#allocation2 + $0x168] sm:$0xff] }
 0x67b   : > { %8847 = vmatprep.mubr.bf16.mxu0 %v7467_v9  ;;  %v7470_v47 = vpack.c.bf16 %v7448_v4, %v7447_v51 }
 0x681   : > { %8695 = vmatmul.mubr.bf16.gmra.mrb[252].mxu1 %v7467_v9  ;;  %v7332_v9 = vld [vmem:[#allocation2 + $0x211] sm:$0xff] }
 0x682   : > { %8848 = vmatmul.mubr.bf16.gmra.mrb[24].mxu0 %v15850_v18  ;;  %8702 = vmatprep.mubr.bf16.mxu1 %v15871_v17  ;;  %v7450_v18 = vld [vmem:[#allocation2 + $0x190] sm:$0xff]  ;;  %v7449_v17 = vld [vmem:[#allocation2 + $0x188] sm:$0xff] }
 0x683   : > { %8855 = vmatprep.mubr.bf16.mxu0 %v7468_v58  ;;  %v7471_v31 = vpack.c.bf16 %v7450_v18, %v7449_v17  ;;  %v7457_v18 = vld [vmem:[#allocation2 + $0x208] sm:$0xff] }
 0x689   : > { %8703 = vmatmul.mubr.bf16.gmra.mrb[0].mxu1 %v7468_v58 }
 0x68a   : > { %8856 = vmatmul.mubr.bf16.gmra.mrb[28].mxu0 %v15858_v0  ;;  %8710 = vmatprep.mubr.bf16.mxu1 %v15881_v10  ;;  %v7452_v0 = vld [vmem:[#allocation2 + $0x1b0] sm:$0xff]  ;;  %v7451_v10 = vld [vmem:[#allocation2 + $0x1a8] sm:$0xff] }
 0x68b   : > { %8863 = vmatprep.mubr.bf16.mxu0 %v7469_v43  ;;  %v7472_v20 = vpack.c.bf16 %v7452_v0, %v7451_v10  ;;  %v7475_v10 = vpack.c.bf16 %v7458_v45, %v7457_v18  ;;  %v7499_v45 = vld [vmem:[#allocation2 + $0xa9] sm:$0xff] }
 0x691   : > { %8711 = vmatmul.mubr.bf16.gmra.mrb[4].mxu1 %v7469_v43 }
 0x692   : > { %8864 = vmatmul.mubr.bf16.gmra.mrb[32].mxu0 %v15866_v8  ;;  %8718 = vmatprep.mubr.bf16.mxu1 %v15891_v35  ;;  %v15977_v8 = vld [vmem:[%s16562_s8] ss:$0 sm:$0xff] }
 0x693   : > { %8871 = vmatprep.mubr.bf16.mxu0 %v7470_v47  ;;  %v8319_v49 = vadd.f32 %v15879_v11, %v15977_v8  ;;  %v8322_v39 = vadd.f32 %v15883_v63, %v15977_v8 }
 0x699   : > { %8719 = vmatmul.mubr.bf16.gmra.mrb[8].mxu1 %v7470_v47 }
 0x69a   : > { %8872 = vmatmul.mubr.bf16.gmra.mrb[36].mxu0 %v15874_v42  ;;  %8726 = vmatprep.mubr.bf16.mxu1 %v15899_v19 }
 0x69b   : > { %8879 = vmatprep.mubr.bf16.mxu0 %v7471_v31 }
 0x6a1   : > { %8727 = vmatmul.mubr.bf16.gmra.mrb[12].mxu1 %v7471_v31 }
 0x6a2   : > { %8880 = vmatmul.mubr.bf16.gmra.mrb[40].mxu0 %v15886_v57  ;;  %8734 = vmatprep.mubr.bf16.mxu1 %v15907_v12 }
 0x6a3   : > { %8887 = vmatprep.mubr.bf16.mxu0 %v7472_v20 }
 0x6a4   : > { %v12167_v35 = vpop.f32.mrb[164].mxu1 }
 0x6a5   : > { %v12273_v61 = vpop.f32.mrb[192].mxu0  ;;  %v12168_v42 = vpop.f32.mrb[165].mxu1 }
 0x6a6   : > { %v12169_v28 = vadd.f32 %v12168_v42, %v12167_v35  ;;  %v12274_v19 = vpop.f32.mrb[193].mxu0  ;;  %v12170_v22 = vpop.f32.mrb[166].mxu1 }
 0x6a7   : > { %v12275_v52 = vadd.f32 %v12274_v19, %v12273_v61  ;;  %v12276_v57 = vpop.f32.mrb[194].mxu0  ;;  %v12171_v53 = vpop.f32.mrb[167].mxu1  ;;  %v7494_v19 = vld [vmem:[#allocation2 + $0x51] sm:$0xff] }
 0x6a8   : > { %v12172_v12 = vadd.f32 %v12171_v53, %v12170_v22  ;;  %v12277_v34 = vpop.f32.mrb[195].mxu0  ;;  %v8327_v63 = vadd.f32 %v12169_v28, %v15977_v8  ;;  %v7493_v28 = vld [vmem:[#allocation2 + $0x49] sm:$0xff] }
 0x6a9   : > { %v15983_v44 = vadd.f32 %v12275_v52, %v8319_v49  ;;  %v12278_v33 = vadd.f32 %v12277_v34, %v12276_v57  ;;  %8735 = vmatmul.mubr.bf16.gmra.mrb[16].mxu1 %v7472_v20  ;;  %v7525_v29 = vpack.c.bf16 %v7494_v19, %v7493_v28 }
 0x6aa   : > { %8888 = vmatmul.mubr.bf16.gmra.mrb[44].mxu0 %v15894_v1  ;;  %8742 = vmatprep.mubr.bf16.mxu1 %v15915_v26  ;;  %v7455_v1 = vld [vmem:[#allocation2 + $0x1e8] sm:$0xff]  ;;  %v8330_v26 = vadd.f32 %v12172_v12, %v15977_v8 }
 0x6ab   : > { %v15987_v6 = vadd.f32 %v12278_v33, %v8322_v39  ;;  %8895 = vmatprep.mubr.bf16.mxu0 %v7473_v38  ;;  %v7474_v25 = vpack.c.bf16 %v7456_v46, %v7455_v1 }
 0x6ac   : > { %v12173_v11 = vpop.f32.mrb[168].mxu1 }
 0x6ad   : > { %v12279_v30 = vpop.f32.mrb[196].mxu0  ;;  %v12174_v14 = vpop.f32.mrb[169].mxu1 }
 0x6ae   : > { %v12175_v15 = vadd.f32 %v12174_v14, %v12173_v11  ;;  %v12280_v62 = vpop.f32.mrb[197].mxu0  ;;  %v12176_v13 = vpop.f32.mrb[170].mxu1  ;;  %v7396_v14 = vld [vmem:[#allocation2 + $0x22f] sm:$0xff] }
 0x6af   : > { %v12281_v32 = vadd.f32 %v12280_v62, %v12279_v30  ;;  %v12282_v40 = vpop.f32.mrb[198].mxu0  ;;  %v12177_v36 = vpop.f32.mrb[171].mxu1  ;;  %v7395_v30 = vld [vmem:[#allocation2 + $0x227] sm:$0xff] }
 0x6b0   : > { %v12178_v59 = vadd.f32 %v12177_v36, %v12176_v13  ;;  %v12283_v5 = vpop.f32.mrb[199].mxu0  ;;  %v8335_v54 = vadd.f32 %v12175_v15, %v15977_v8  ;;  %v7495_v62 = vld [vmem:[#allocation2 + $0x69] sm:$0xff]  ;;  %v7496_v13 = vld [vmem:[#allocation2 + $0x71] sm:$0xff]  ;;  %v7412_v1 = vpack.c.bf16 %v7396_v14, %v7395_v30 }
 0x6b1   : > { %v15991_v50 = vadd.f32 %v12281_v32, %v8327_v63  ;;  %v12284_v3 = vadd.f32 %v12283_v5, %v12282_v40  ;;  %8743 = vmatmul.mubr.bf16.gmra.mrb[20].mxu1 %v7473_v38  ;;  %v7497_v32 = vld [vmem:[#allocation2 + $0x89] sm:$0xff]  ;;  %v7498_v40 = vld [vmem:[#allocation2 + $0x91] sm:$0xff] }
 0x6b2   : > { %8896 = vmatmul.mubr.bf16.gmra.mrb[48].mxu0 %v15902_v23  ;;  %8750 = vmatprep.mubr.bf16.mxu1 %v15923_v48  ;;  %v15998_v48 = vpack.c.bf16 %v7332_v9, %v7331_v55  ;;  %v8338_v17 = vadd.f32 %v12178_v59, %v15977_v8 }
 0x6b3   : > { %v15995_v60 = vadd.f32 %v12284_v3, %v8330_v26  ;;  %8903 = vmatprep.mubr.bf16.mxu0 %v7474_v25 }
 0x6b4   : > { %v12179_v2 = vpop.f32.mrb[172].mxu1 }
 0x6b5   : > { %v12285_v37 = vpop.f32.mrb[200].mxu0  ;;  %v12180_v16 = vpop.f32.mrb[173].mxu1 }
 0x6b6   : > { %v12181_v41 = vadd.f32 %v12180_v16, %v12179_v2  ;;  %v12286_v56 = vpop.f32.mrb[201].mxu0  ;;  %v12182_v58 = vpop.f32.mrb[174].mxu1  ;;  %v7526_v2 = vpack.c.bf16 %v7496_v13, %v7495_v62  ;;  %v7527_v16 = vpack.c.bf16 %v7498_v40, %v7497_v32 }
 0x6b7   : > { %v12287_v43 = vadd.f32 %v12286_v56, %v12285_v37  ;;  %v12288_v4 = vpop.f32.mrb[202].mxu0  ;;  %v12183_v51 = vpop.f32.mrb[175].mxu1 }
 0x6b8   : > { %v12184_v23 = vadd.f32 %v12183_v51, %v12182_v58  ;;  %v12289_v47 = vpop.f32.mrb[203].mxu0  ;;  %v8343_v52 = vadd.f32 %v12181_v41, %v15977_v8  ;;  %v7501_v51 = vld [vmem:[#allocation2 + $0xc9] sm:$0xff] }
 0x6b9   : > { %v16001_v31 = vadd.f32 %v12287_v43, %v8335_v54  ;;  %v12290_v0 = vadd.f32 %v12289_v47, %v12288_v4  ;;  %8751 = vmatmul.mubr.bf16.gmra.mrb[24].mxu1 %v7474_v25  ;;  %v7500_v54 = vld [vmem:[#allocation2 + $0xb1] sm:$0xff] }
 0x6ba   : > { %8904 = vmatmul.mubr.bf16.gmra.mrb[52].mxu0 %v15910_v21  ;;  %8758 = vmatprep.mubr.bf16.mxu1 %v15998_v48  ;;  %v8346_v39 = vadd.f32 %v12184_v23, %v15977_v8  ;;  %v7502_v23 = vld [vmem:[#allocation2 + $0xd1] sm:$0xff] }
 0x6bb   : > { %v16005_v20 = vadd.f32 %v12290_v0, %v8338_v17  ;;  %8911 = vmatprep.mubr.bf16.mxu0 %v7475_v10 }
 0x6bc   : > { %v12185_v35 = vpop.f32.mrb[176].mxu1 }
 0x6bd   : > { %v12291_v61 = vpop.f32.mrb[204].mxu0  ;;  %v12186_v42 = vpop.f32.mrb[177].mxu1 }
 0x6be   : > { %v12187_v22 = vadd.f32 %v12186_v42, %v12185_v35  ;;  %v12292_v27 = vpop.f32.mrb[205].mxu0  ;;  %v12188_v49 = vpop.f32.mrb[178].mxu1  ;;  %v7528_v42 = vpack.c.bf16 %v7500_v54, %v7499_v45 }
 0x6bf   : > { %v12293_v57 = vadd.f32 %v12292_v27, %v12291_v61  ;;  %v12294_v53 = vpop.f32.mrb[206].mxu0  ;;  %v12189_v12 = vpop.f32.mrb[179].mxu1 }
 0x6c0   : > { %v12190_v34 = vadd.f32 %v12189_v12, %v12188_v49  ;;  %v12295_v21 = vpop.f32.mrb[207].mxu0  ;;  %v7503_v12 = vld [vmem:[#allocation2 + $0xe9] sm:$0xff] }
 0x6c1   : > { %v16009_v33 = vadd.f32 %v12293_v57, %v8343_v52  ;;  %v12296_v38 = vadd.f32 %v12295_v21, %v12294_v53  ;;  %8759 = vmatmul.mubr.bf16.gmra.mrb[28].mxu1 %v7475_v10 }
 0x6c2   : > { %8912 = vmatmul.mubr.bf16.gmra.mrb[56].mxu0 %v15918_v24  ;;  %12795 = vmatprep.mubr.bf16.mxu1 %v7525_v29  ;;  %v8351_v24 = vadd.f32 %v12187_v22, %v15977_v8  ;;  %v8354_v55 = vadd.f32 %v12190_v34, %v15977_v8  ;;  %v7529_v22 = vpack.c.bf16 %v7502_v23, %v7501_v51  ;;  %v7504_v34 = vld [vmem:[#allocation2 + $0xf1] sm:$0xff] }
 0x6c3   : > { %v16012_v11 = vadd.f32 %v12296_v38, %v8346_v39  ;;  %8919 = vmatprep.mubr.bf16.mxu0 %v15930_v7  ;;  %v7505_v39 = vld [vmem:[#allocation2 + $0x109] sm:$0xff]  ;;  %v7506_v38 = vld [vmem:[#allocation2 + $0x111] sm:$0xff]  ;;  %v7530_v32 = vpack.c.bf16 %v7504_v34, %v7503_v12 }
 0x6c4   : > { %v12191_v15 = vpop.f32.mrb[180].mxu1 }
 0x6c5   : > { %v12297_v46 = vpop.f32.mrb[208].mxu0  ;;  %v12192_v63 = vpop.f32.mrb[181].mxu1 }
 0x6c6   : > { %v12193_v36 = vadd.f32 %v12192_v63, %v12191_v15  ;;  %v12298_v59 = vpop.f32.mrb[209].mxu0  ;;  %v12194_v5 = vpop.f32.mrb[182].mxu1 }
 0x6c7   : > { %v12299_v26 = vadd.f32 %v12298_v59, %v12297_v46  ;;  %v12300_v3 = vpop.f32.mrb[210].mxu0  ;;  %v12195_v25 = vpop.f32.mrb[183].mxu1  ;;  %v7531_v59 = vpack.c.bf16 %v7506_v38, %v7505_v39 }
 0x6c8   : > { %v12196_v7 = vadd.f32 %v12195_v25, %v12194_v5  ;;  %v12301_v37 = vpop.f32.mrb[211].mxu0  ;;  %v8359_v0 = vadd.f32 %v12193_v36, %v15977_v8  ;;  %v7507_v25 = vld [vmem:[#allocation2 + $0x129] sm:$0xff] }
 0x6c9   : > { %v16017_v9 = vadd.f32 %v12299_v26, %v8351_v24  ;;  %v12302_v41 = vadd.f32 %v12301_v37, %v12300_v3  ;;  %12796 = vmatmul.mubr.bf16.vlgmr.msra.gmra.mrb[32].mxu1 %v7526_v2  ;;  %v7508_v2 = vld [vmem:[#allocation2 + $0x131] sm:$0xff] }
 0x6ca   : > { %8920 = vmatmul.mubr.bf16.gmra.mrb[60].mxu0 %v7412_v1  ;;  %12799 = vmatprep.mubr.bf16.mxu1 %v7527_v16  ;;  %v8362_v27 = vadd.f32 %v12196_v7, %v15977_v8  ;;  %v7509_v16 = vld [vmem:[#allocation2 + $0x149] sm:$0xff]  ;;  %v7532_v23 = vpack.c.bf16 %v7508_v2, %v7507_v25  ;;  %v7518_v2 = vld [vmem:[#allocation2 + $0x1d1] sm:$0xff] }
 0x6cb   : > { %v16019_v56 = vadd.f32 %v12302_v41, %v8354_v55  ;;  %v7510_v55 = vld [vmem:[#allocation2 + $0x151] sm:$0xff]  ;;  %v7517_v25 = vld [vmem:[#allocation2 + $0x1c9] sm:$0xff] }
 0x6cc   : > { %v12197_v58 = vpop.f32.mrb[184].mxu1 }
 0x6cd   : > { %v12303_v43 = vpop.f32.mrb[212].mxu0  ;;  %v12198_v4 = vpop.f32.mrb[185].mxu1 }
 0x6ce   : > { %v12199_v47 = vadd.f32 %v12198_v4, %v12197_v58  ;;  %v12304_v18 = vpop.f32.mrb[213].mxu0  ;;  %v12200_v17 = vpop.f32.mrb[186].mxu1 }
 0x6cf   : > { %v12305_v10 = vadd.f32 %v12304_v18, %v12303_v43  ;;  %v12306_v35 = vpop.f32.mrb[214].mxu0  ;;  %v12201_v61 = vpop.f32.mrb[187].mxu1 }
 0x6d0   : > { %v12202_v28 = vadd.f32 %v12201_v61, %v12200_v17  ;;  %v12307_v19 = vpop.f32.mrb[215].mxu0  ;;  %v8367_v62 = vadd.f32 %v12199_v47, %v15977_v8  ;;  %v7533_v17 = vpack.c.bf16 %v7510_v55, %v7509_v16 }
 0x6d1   : > { %v16023_v49 = vadd.f32 %v12305_v10, %v8359_v0  ;;  %v12308_v52 = vadd.f32 %v12307_v19, %v12306_v35  ;;  %12800 = vmatmul.mubr.bf16.gmra.mrb[36].mxu1 %v7528_v42  ;;  %v7512_v19 = vld [vmem:[#allocation2 + $0x171] sm:$0xff] }
 0x6d2   : > { %12803 = vmatprep.mubr.bf16.mxu1 %v7529_v22  ;;  %v8370_v5 = vadd.f32 %v12202_v28, %v15977_v8  ;;  %v7511_v28 = vld [vmem:[#allocation2 + $0x169] sm:$0xff] }
 0x6d3   : > { %v16025_v57 = vadd.f32 %v12308_v52, %v8362_v27  ;;  %v7513_v52 = vld [vmem:[#allocation2 + $0x189] sm:$0xff] }
 0x6d4   : > { %v12203_v53 = vpop.f32.mrb[188].mxu1 }
 0x6d5   : > { %v12309_v21 = vpop.f32.mrb[216].mxu0  ;;  %v12204_v29 = vpop.f32.mrb[189].mxu1 }
 0x6d6   : > { %v12205_v30 = vadd.f32 %v12204_v29, %v12203_v53  ;;  %v12310_v14 = vpop.f32.mrb[217].mxu0  ;;  %v12206_v15 = vpop.f32.mrb[190].mxu1  ;;  %v7514_v53 = vld [vmem:[#allocation2 + $0x191] sm:$0xff] }
 0x6d7   : > { %v12311_v13 = vadd.f32 %v12310_v14, %v12309_v21  ;;  %v12312_v46 = vpop.f32.mrb[218].mxu0  ;;  %v12207_v63 = vpop.f32.mrb[191].mxu1  ;;  %v7534_v14 = vpack.c.bf16 %v7512_v19, %v7511_v28 }
 0x6d8   : > { %v12208_v40 = vadd.f32 %v12207_v63, %v12206_v15  ;;  %v12313_v36 = vpop.f32.mrb[219].mxu0  ;;  %v8375_v54 = vadd.f32 %v12205_v30, %v15977_v8 }
 0x6d9   : > { %v16029_v1 = vadd.f32 %v12311_v13, %v8367_v62  ;;  %v12314_v24 = vadd.f32 %v12313_v36, %v12312_v46  ;;  %12804 = vmatmul.mubr.bf16.gmra.mrb[40].mxu1 %v7530_v32  ;;  %v7535_v13 = vpack.c.bf16 %v7514_v53, %v7513_v52 }
 0x6da   : > { %12807 = vmatprep.mubr.bf16.mxu1 %v7531_v59  ;;  %v8378_v0 = vadd.f32 %v12208_v40, %v15977_v8  ;;  %v7515_v59 = vld [vmem:[#allocation2 + $0x1a9] sm:$0xff] }
 0x6db   : > { %v16031_v26 = vadd.f32 %v12314_v24, %v8370_v5  ;;  %v7516_v5 = vld [vmem:[#allocation2 + $0x1b1] sm:$0xff] }
 0x6dc   : > { %v12209_v3 = vpop.f32.mrb[192].mxu1 }
 0x6dd   : > { %v12315_v7 = vpop.f32.mrb[220].mxu0  ;;  %v12210_v37 = vpop.f32.mrb[193].mxu1 }
 0x6de   : > { %v12211_v41 = vadd.f32 %v12210_v37, %v12209_v3  ;;  %v12316_v58 = vpop.f32.mrb[221].mxu0  ;;  %v12212_v45 = vpop.f32.mrb[194].mxu1 }
 0x6df   : > { %v12317_v43 = vadd.f32 %v12316_v58, %v12315_v7  ;;  %v12318_v4 = vpop.f32.mrb[222].mxu0  ;;  %v12213_v51 = vpop.f32.mrb[195].mxu1 }
 0x6e0   : > { %v12214_v47 = vadd.f32 %v12213_v51, %v12212_v45  ;;  %v12319_v18 = vpop.f32.mrb[223].mxu0  ;;  %v8383_v29 = vadd.f32 %v12211_v41, %v15977_v8  ;;  %v7537_v51 = vpack.c.bf16 %v7518_v2, %v7517_v25 }
 0x6e1   : > { %v16035_v10 = vadd.f32 %v12317_v43, %v8375_v54  ;;  %v12320_v35 = vadd.f32 %v12319_v18, %v12318_v4  ;;  %12808 = vmatmul.mubr.bf16.gmra.mrb[44].mxu1 %v7532_v23  ;;  %v7536_v54 = vpack.c.bf16 %v7516_v5, %v7515_v59 }
 0x6e2   : > { %12811 = vmatprep.mubr.bf16.mxu1 %v7533_v17  ;;  %v8386_v46 = vadd.f32 %v12214_v47, %v15977_v8 }
 0x6e3   : > { %v16037_v61 = vadd.f32 %v12320_v35, %v8378_v0  ;;  %v7519_v35 = vld [vmem:[#allocation2 + $0x1e9] sm:$0xff] }
 0x6e4   : > { %v12215_v42 = vpop.f32.mrb[196].mxu1 }
 0x6e5   : > { %v12321_v22 = vpop.f32.mrb[224].mxu0  ;;  %v12216_v27 = vpop.f32.mrb[197].mxu1 }
 0x6e6   : > { %v12217_v12 = vadd.f32 %v12216_v27, %v12215_v42  ;;  %v12322_v34 = vpop.f32.mrb[225].mxu0  ;;  %v12218_v21 = vpop.f32.mrb[198].mxu1  ;;  %v7520_v42 = vld [vmem:[#allocation2 + $0x1f1] sm:$0xff] }
 0x6e7   : > { %v12323_v39 = vadd.f32 %v12322_v34, %v12321_v22  ;;  %v12324_v38 = vpop.f32.mrb[226].mxu0  ;;  %v12219_v30 = vpop.f32.mrb[199].mxu1 }
 0x6e8   : > { %v12220_v15 = vadd.f32 %v12219_v30, %v12218_v21  ;;  %v12325_v62 = vpop.f32.mrb[227].mxu0  ;;  %v8391_v55 = vadd.f32 %v12217_v12, %v15977_v8 }
 0x6e9   : > { %v16041_v63 = vadd.f32 %v12323_v39, %v8383_v29  ;;  %v12326_v32 = vadd.f32 %v12325_v62, %v12324_v38  ;;  %12812 = vmatmul.mubr.bf16.gmra.mrb[48].mxu1 %v7534_v14  ;;  %v7538_v29 = vpack.c.bf16 %v7520_v42, %v7519_v35  ;;  %v7523_v62 = vld [vmem:[#allocation2 + $0x229] sm:$0xff] }
 0x6ea   : > { %12815 = vmatprep.mubr.bf16.mxu1 %v7535_v13  ;;  %v8394_v23 = vadd.f32 %v12220_v15, %v15977_v8  ;;  %v7524_v13 = vld [vmem:[#allocation2 + $0x231] sm:$0xff] }
 0x6eb   : > { %v16043_v40 = vadd.f32 %v12326_v32, %v8386_v46  ;;  %v7540_v5 = vpack.c.bf16 %v7524_v13, %v7523_v62 }
 0x6ec   : > { %v12221_v36 = vpop.f32.mrb[200].mxu1 }
 0x6ed   : > { %v12327_v24 = vpop.f32.mrb[228].mxu0  ;;  %v12222_v3 = vpop.f32.mrb[201].mxu1 }
 0x6ee   : > { %v12223_v7 = vadd.f32 %v12222_v3, %v12221_v36  ;;  %v12328_v37 = vpop.f32.mrb[229].mxu0  ;;  %v12224_v16 = vpop.f32.mrb[202].mxu1 }
 0x6ef   : > { %v12329_v41 = vadd.f32 %v12328_v37, %v12327_v24  ;;  %v12330_v58 = vpop.f32.mrb[230].mxu0  ;;  %v12225_v45 = vpop.f32.mrb[203].mxu1 }
 0x6f0   : > { %v12226_v43 = vadd.f32 %v12225_v45, %v12224_v16  ;;  %v12331_v4 = vpop.f32.mrb[231].mxu0  ;;  %v8399_v53 = vadd.f32 %v12223_v7, %v15977_v8 }
 0x6f1   : > { %v16047_v47 = vadd.f32 %v12329_v41, %v8391_v55  ;;  %v12332_v18 = vadd.f32 %v12331_v4, %v12330_v58  ;;  %12816 = vmatmul.mubr.bf16.gmra.mrb[52].mxu1 %v7536_v54 }
 0x6f2   : > { %12819 = vmatprep.mubr.bf16.mxu1 %v7537_v51  ;;  %v8402_v30 = vadd.f32 %v12226_v43, %v15977_v8 }
 0x6f3   : > { %v16049_v17 = vadd.f32 %v12332_v18, %v8394_v23 }
 0x6f4   : > { %v12227_v0 = vpop.f32.mrb[204].mxu1 }
 0x6f5   : > { %v12333_v28 = vpop.f32.mrb[232].mxu0  ;;  %v12228_v19 = vpop.f32.mrb[205].mxu1 }
 0x6f6   : > { %v12229_v22 = vadd.f32 %v12228_v19, %v12227_v0  ;;  %v12334_v27 = vpop.f32.mrb[233].mxu0  ;;  %v12230_v52 = vpop.f32.mrb[206].mxu1 }
 0x6f7   : > { %v12335_v12 = vadd.f32 %v12334_v27, %v12333_v28  ;;  %v12336_v34 = vpop.f32.mrb[234].mxu0  ;;  %v12231_v21 = vpop.f32.mrb[207].mxu1 }
 0x6f8   : > { %v12232_v39 = vadd.f32 %v12231_v21, %v12230_v52  ;;  %v12337_v38 = vpop.f32.mrb[235].mxu0  ;;  %v8407_v2 = vadd.f32 %v12229_v22, %v15977_v8 }
 0x6f9   : > { %v16053_v14 = vadd.f32 %v12335_v12, %v8399_v53  ;;  %v12338_v15 = vadd.f32 %v12337_v38, %v12336_v34  ;;  %12820 = vmatmul.mubr.bf16.gmra.mrb[56].mxu1 %v7538_v29 }
 0x6fa   : > { %12823 = vmatprep.mubr.bf16.mxu1 %v15998_v48  ;;  %v8410_v48 = vadd.f32 %v12232_v39, %v15977_v8 }
 0x6fb   : > { %v16056_v46 = vadd.f32 %v12338_v15, %v8402_v30 }
 0x6fc   : > { %v12233_v32 = vpop.f32.mrb[208].mxu1 }
 0x6fd   : > { %v12339_v36 = vpop.f32.mrb[236].mxu0  ;;  %v12234_v59 = vpop.f32.mrb[209].mxu1 }
 0x6fe   : > { %v12235_v24 = vadd.f32 %v12234_v59, %v12233_v32  ;;  %v12340_v3 = vpop.f32.mrb[237].mxu0  ;;  %v12236_v25 = vpop.f32.mrb[210].mxu1 }
 0x6ff   : > { %v12341_v7 = vadd.f32 %v12340_v3, %v12339_v36  ;;  %v12342_v37 = vpop.f32.mrb[238].mxu0  ;;  %v12237_v16 = vpop.f32.mrb[211].mxu1 }
 0x700   : > { %v12238_v55 = vadd.f32 %v12237_v16, %v12236_v25  ;;  %v12343_v41 = vpop.f32.mrb[239].mxu0  ;;  %v8415_v35 = vadd.f32 %v12235_v24, %v15977_v8 }
 0x701   : > { %v16060_v58 = vadd.f32 %v12341_v7, %v8407_v2  ;;  %v12344_v45 = vadd.f32 %v12343_v41, %v12342_v37  ;;  %12824 = vmatmul.mubr.bf16.gmra.mrb[60].mxu1 %v7540_v5 }
 0x702   : > { %v8418_v52 = vadd.f32 %v12238_v55, %v15977_v8 }
 0x703   : > { %v16062_v54 = vadd.f32 %v12344_v45, %v8410_v48 }
 0x704   : > { %v12239_v43 = vpop.f32.mrb[212].mxu1 }
 0x705   : > { %v12345_v4 = vpop.f32.mrb[240].mxu0  ;;  %v12240_v51 = vpop.f32.mrb[213].mxu1 }
 0x706   : > { %v12241_v23 = vadd.f32 %v12240_v51, %v12239_v43  ;;  %v12346_v18 = vpop.f32.mrb[241].mxu0  ;;  %v12242_v0 = vpop.f32.mrb[214].mxu1 }
 0x707   : > { %v12347_v42 = vadd.f32 %v12346_v18, %v12345_v4  ;;  %v12348_v28 = vpop.f32.mrb[242].mxu0  ;;  %v12243_v19 = vpop.f32.mrb[215].mxu1 }
 0x708   : > { %v12244_v22 = vadd.f32 %v12243_v19, %v12242_v0  ;;  %v12349_v27 = vpop.f32.mrb[243].mxu0  ;;  %v8423_v62 = vadd.f32 %v12241_v23, %v15977_v8 }
 0x709   : > { %v16066_v53 = vadd.f32 %v12347_v42, %v8415_v35  ;;  %v12350_v12 = vadd.f32 %v12349_v27, %v12348_v28 }
 0x70a   : > { %v8426_v24 = vadd.f32 %v12244_v22, %v15977_v8 }
 0x70b   : > { %v16068_v34 = vadd.f32 %v12350_v12, %v8418_v52 }
 0x70c   : > { %v12245_v21 = vpop.f32.mrb[216].mxu1 }
 0x70d   : > { %v12351_v29 = vpop.f32.mrb[244].mxu0  ;;  %v12246_v39 = vpop.f32.mrb[217].mxu1 }
 0x70e   : > { %v12247_v38 = vadd.f32 %v12246_v39, %v12245_v21  ;;  %v12352_v30 = vpop.f32.mrb[245].mxu0  ;;  %v12248_v15 = vpop.f32.mrb[218].mxu1 }
 0x70f   : > { %v12353_v13 = vadd.f32 %v12352_v30, %v12351_v29  ;;  %v12354_v32 = vpop.f32.mrb[246].mxu0  ;;  %v12249_v36 = vpop.f32.mrb[219].mxu1 }
 0x710   : > { %v12250_v59 = vadd.f32 %v12249_v36, %v12248_v15  ;;  %v12355_v5 = vpop.f32.mrb[247].mxu0  ;;  %v8431_v45 = vadd.f32 %v12247_v38, %v15977_v8 }
 0x711   : > { %v16072_v3 = vadd.f32 %v12353_v13, %v8423_v62  ;;  %v12356_v25 = vadd.f32 %v12355_v5, %v12354_v32 }
 0x712   : > { %v8434_v0 = vadd.f32 %v12250_v59, %v15977_v8 }
 0x713   : > { %v16074_v2 = vadd.f32 %v12356_v25, %v8426_v24 }
 0x714   : > { %v12251_v7 = vpop.f32.mrb[220].mxu1 }
 0x715   : > { %v12357_v37 = vpop.f32.mrb[248].mxu0  ;;  %v12252_v16 = vpop.f32.mrb[221].mxu1 }
 0x716   : > { %v12253_v55 = vadd.f32 %v12252_v16, %v12251_v7  ;;  %v12358_v41 = vpop.f32.mrb[249].mxu0  ;;  %v12254_v48 = vpop.f32.mrb[222].mxu1 }
 0x717   : > { %v12359_v43 = vadd.f32 %v12358_v41, %v12357_v37  ;;  %v12360_v4 = vpop.f32.mrb[250].mxu0  ;;  %v12255_v51 = vpop.f32.mrb[223].mxu1 }
 0x718   : > { %v12256_v23 = vadd.f32 %v12255_v51, %v12254_v48  ;;  %v12361_v18 = vpop.f32.mrb[251].mxu0  ;;  %v8439_v29 = vadd.f32 %v12253_v55, %v15977_v8 }
 0x719   : > { %v16078_v35 = vadd.f32 %v12359_v43, %v8431_v45  ;;  %v12362_v42 = vadd.f32 %v12361_v18, %v12360_v4  ;;  %v9153_v43 = vld [vmem:[#allocation2 + $0x7] sm:$0xff]  ;;  %v9154_v4 = vld [vmem:[#allocation2 + $0xf] sm:$0xff] }
 0x71a   : > { %v8442_v32 = vadd.f32 %v12256_v23, %v15977_v8  ;;  %v9185_v18 = vpack.c.bf16 %v9154_v4, %v9153_v43 }
 0x71b   : > { %v16080_v28 = vadd.f32 %v12362_v42, %v8434_v0 }
 0x71c   : > { %v12385_v19 = vpop.f32.mrb[224].mxu1  ;;  %9911 = vmatpush1.bf16.xpose.msra.mxu0 %v9185_v18 }
 0x71d   : > { %v12363_v22 = vpop.f32.mrb[252].mxu0  ;;  %v12386_v27 = vpop.f32.mrb[225].mxu1 }
 0x71e   : > { %v12364_v52 = vpop.f32.mrb[253].mxu0  ;;  %v12387_v12 = vadd.f32 %v12386_v27, %v12385_v19  ;;  %v12388_v21 = vpop.f32.mrb[226].mxu1 }
 0x71f   : > { %v12365_v39 = vadd.f32 %v12364_v52, %v12363_v22  ;;  %v12366_v38 = vpop.f32.mrb[254].mxu0  ;;  %v12389_v30 = vpop.f32.mrb[227].mxu1 }
 0x720   : > { %v8641_v15 = vadd.f32 %v12387_v12, %v15983_v44  ;;  %v12367_v62 = vpop.f32.mrb[255].mxu0  ;;  %v12390_v13 = vadd.f32 %v12389_v30, %v12388_v21 }
 0x721   : > { %v16085_v36 = vadd.f32 %v12365_v39, %v8439_v29  ;;  %v12368_v59 = vadd.f32 %v12367_v62, %v12366_v38 }
 0x722   : > { %v8644_v5 = vadd.f32 %v12390_v13, %v15987_v6 }
 0x723   : > { %v16088_v24 = vadd.f32 %v12368_v59, %v8442_v32 }
 0x724   : > { %v12391_v25 = vpop.f32.mrb[228].mxu1 }
 0x725   : > { %v12497_v7 = vpop.f32.mrb[0].mxu0  ;;  %v12392_v37 = vpop.f32.mrb[229].mxu1 }
 0x726   : > { %v12393_v16 = vadd.f32 %v12392_v37, %v12391_v25  ;;  %v12498_v55 = vpop.f32.mrb[1].mxu0  ;;  %v12394_v41 = vpop.f32.mrb[230].mxu1 }
 0x727   : > { %v12499_v48 = vadd.f32 %v12498_v55, %v12497_v7  ;;  %v12500_v45 = vpop.f32.mrb[2].mxu0  ;;  %v12395_v44 = vpop.f32.mrb[231].mxu1 }
 0x728   : > { %v8649_v8 = vadd.f32 %v12393_v16, %v15991_v50  ;;  %v12396_v51 = vadd.f32 %v12395_v44, %v12394_v41  ;;  %v12501_v23 = vpop.f32.mrb[3].mxu0 }
 0x729   : > { %v12502_v0 = vadd.f32 %v12501_v23, %v12500_v45  ;;  %v16091_v6 = vadd.f32 %v12499_v48, %v8641_v15 }
 0x72a   : > { %v8652_v42 = vadd.f32 %v12396_v51, %v15995_v60 }
 0x72b   : > { %v16094_v19 = vadd.f32 %v12502_v0, %v8644_v5 }
 0x72c   : > { %v12397_v22 = vpop.f32.mrb[232].mxu1 }
 0x72d   : > { %v12503_v27 = vpop.f32.mrb[4].mxu0  ;;  %v12398_v52 = vpop.f32.mrb[233].mxu1 }
 0x72e   : > { %v12399_v12 = vadd.f32 %v12398_v52, %v12397_v22  ;;  %v12504_v21 = vpop.f32.mrb[5].mxu0  ;;  %v12400_v29 = vpop.f32.mrb[234].mxu1 }
 0x72f   : > { %v12505_v39 = vadd.f32 %v12504_v21, %v12503_v27  ;;  %v12506_v38 = vpop.f32.mrb[6].mxu0  ;;  %v12401_v50 = vpop.f32.mrb[235].mxu1 }
 0x730   : > { %v8657_v30 = vadd.f32 %v12399_v12, %v16001_v31  ;;  %v12402_v62 = vadd.f32 %v12401_v50, %v12400_v29  ;;  %v12507_v13 = vpop.f32.mrb[7].mxu0 }
 0x731   : > { %v12508_v15 = vadd.f32 %v12507_v13, %v12506_v38  ;;  %v16097_v32 = vadd.f32 %v12505_v39, %v8649_v8 }
 0x732   : > { %v8660_v60 = vadd.f32 %v12402_v62, %v16005_v20 }
 0x733   : > { %v16100_v59 = vadd.f32 %v12508_v15, %v8652_v42 }
 0x734   : > { %v12403_v5 = vpop.f32.mrb[236].mxu1 }
 0x735   : > { %v12509_v25 = vpop.f32.mrb[8].mxu0  ;;  %v12404_v7 = vpop.f32.mrb[237].mxu1 }
 0x736   : > { %v12405_v37 = vadd.f32 %v12404_v7, %v12403_v5  ;;  %v12510_v16 = vpop.f32.mrb[9].mxu0  ;;  %v12406_v55 = vpop.f32.mrb[238].mxu1 }
 0x737   : > { %v12511_v41 = vadd.f32 %v12510_v16, %v12509_v25  ;;  %v12512_v48 = vpop.f32.mrb[10].mxu0  ;;  %v12407_v45 = vpop.f32.mrb[239].mxu1 }
 0x738   : > { %v8665_v31 = vadd.f32 %v12405_v37, %v16009_v33  ;;  %v12408_v44 = vadd.f32 %v12407_v45, %v12406_v55  ;;  %v12513_v43 = vpop.f32.mrb[11].mxu0 }
 0x739   : > { %v12514_v4 = vadd.f32 %v12513_v43, %v12512_v48  ;;  %v16103_v8 = vadd.f32 %v12511_v41, %v8657_v30 }
 0x73a   : > { %v8668_v20 = vadd.f32 %v12408_v44, %v16012_v11 }
 0x73b   : > { %v16106_v51 = vadd.f32 %v12514_v4, %v8660_v60 }
 0x73c   : > { %v12409_v23 = vpop.f32.mrb[240].mxu1 }
 0x73d   : > { %v12515_v18 = vpop.f32.mrb[12].mxu0  ;;  %v12410_v0 = vpop.f32.mrb[241].mxu1 }
 0x73e   : > { %v12411_v42 = vadd.f32 %v12410_v0, %v12409_v23  ;;  %v12516_v22 = vpop.f32.mrb[13].mxu0  ;;  %v12412_v27 = vpop.f32.mrb[242].mxu1 }
 0x73f   : > { %v12517_v52 = vadd.f32 %v12516_v22, %v12515_v18  ;;  %v12518_v12 = vpop.f32.mrb[14].mxu0  ;;  %v12413_v21 = vpop.f32.mrb[243].mxu1 }
 0x740   : > { %v8673_v33 = vadd.f32 %v12411_v42, %v16017_v9  ;;  %v12414_v29 = vadd.f32 %v12413_v21, %v12412_v27  ;;  %v12519_v39 = vpop.f32.mrb[15].mxu0 }
 0x741   : > { %v12520_v38 = vadd.f32 %v12519_v39, %v12518_v12  ;;  %v16109_v50 = vadd.f32 %v12517_v52, %v8665_v31 }
 0x742   : > { %v8676_v11 = vadd.f32 %v12414_v29, %v16019_v56 }
 0x743   : > { %v16112_v30 = vadd.f32 %v12520_v38, %v8668_v20 }
 0x744   : > { %v12415_v62 = vpop.f32.mrb[244].mxu1 }
 0x745   : > { %v12521_v13 = vpop.f32.mrb[16].mxu0  ;;  %v12416_v15 = vpop.f32.mrb[245].mxu1 }
 0x746   : > { %v12417_v60 = vadd.f32 %v12416_v15, %v12415_v62  ;;  %v12522_v5 = vpop.f32.mrb[17].mxu0  ;;  %v12418_v25 = vpop.f32.mrb[246].mxu1 }
 0x747   : > { %v12523_v7 = vadd.f32 %v12522_v5, %v12521_v13  ;;  %v12524_v37 = vpop.f32.mrb[18].mxu0  ;;  %v12419_v16 = vpop.f32.mrb[247].mxu1 }
 0x748   : > { %v8681_v9 = vadd.f32 %v12417_v60, %v16023_v49  ;;  %v12420_v55 = vadd.f32 %v12419_v16, %v12418_v25  ;;  %v12525_v41 = vpop.f32.mrb[19].mxu0 }
 0x749   : > { %v12526_v48 = vadd.f32 %v12525_v41, %v12524_v37  ;;  %v16115_v45 = vadd.f32 %v12523_v7, %v8673_v33 }
 0x74a   : > { %v8684_v56 = vadd.f32 %v12420_v55, %v16025_v57 }
 0x74b   : > { %v16118_v31 = vadd.f32 %v12526_v48, %v8676_v11 }
 0x74c   : > { %v12421_v44 = vpop.f32.mrb[248].mxu1 }
 0x74d   : > { %v12527_v43 = vpop.f32.mrb[20].mxu0  ;;  %v12422_v4 = vpop.f32.mrb[249].mxu1 }
 0x74e   : > { %v12423_v20 = vadd.f32 %v12422_v4, %v12421_v44  ;;  %v12528_v23 = vpop.f32.mrb[21].mxu0  ;;  %v12424_v18 = vpop.f32.mrb[250].mxu1 }
 0x74f   : > { %v12529_v0 = vadd.f32 %v12528_v23, %v12527_v43  ;;  %v12530_v42 = vpop.f32.mrb[22].mxu0  ;;  %v12425_v22 = vpop.f32.mrb[251].mxu1 }
 0x750   : > { %v8689_v49 = vadd.f32 %v12423_v20, %v16029_v1  ;;  %v12426_v27 = vadd.f32 %v12425_v22, %v12424_v18  ;;  %v12531_v52 = vpop.f32.mrb[23].mxu0 }
 0x751   : > { %v12532_v12 = vadd.f32 %v12531_v52, %v12530_v42  ;;  %v16121_v21 = vadd.f32 %v12529_v0, %v8681_v9 }
 0x752   : > { %v8692_v57 = vadd.f32 %v12426_v27, %v16031_v26 }
 0x753   : > { %v16124_v33 = vadd.f32 %v12532_v12, %v8684_v56 }
 0x754   : > { %v12427_v29 = vpop.f32.mrb[252].mxu1 }
 0x755   : > { %v12533_v39 = vpop.f32.mrb[24].mxu0  ;;  %v12428_v38 = vpop.f32.mrb[253].mxu1 }
 0x756   : > { %v12429_v11 = vadd.f32 %v12428_v38, %v12427_v29  ;;  %v12534_v62 = vpop.f32.mrb[25].mxu0  ;;  %v12430_v13 = vpop.f32.mrb[254].mxu1 }
 0x757   : > { %v12535_v15 = vadd.f32 %v12534_v62, %v12533_v39  ;;  %v12536_v60 = vpop.f32.mrb[26].mxu0  ;;  %v12431_v5 = vpop.f32.mrb[255].mxu1 }
 0x758   : > { %v8697_v1 = vadd.f32 %v12429_v11, %v16035_v10  ;;  %v12432_v25 = vadd.f32 %v12431_v5, %v12430_v13  ;;  %v12537_v7 = vpop.f32.mrb[27].mxu0 }
 0x759   : > { %v12538_v37 = vadd.f32 %v12537_v7, %v12536_v60  ;;  %v16127_v16 = vadd.f32 %v12535_v15, %v8689_v49 }
 0x75a   : > { %v8700_v26 = vadd.f32 %v12432_v25, %v16037_v61 }
 0x75b   : > { %v16130_v9 = vadd.f32 %v12538_v37, %v8692_v57 }
 0x75c   : > { %v12433_v55 = vpop.f32.mrb[0].mxu1 }
 0x75d   : > { %v12539_v41 = vpop.f32.mrb[28].mxu0  ;;  %v12434_v48 = vpop.f32.mrb[1].mxu1 }
 0x75e   : > { %v12435_v56 = vadd.f32 %v12434_v48, %v12433_v55  ;;  %v12540_v44 = vpop.f32.mrb[29].mxu0  ;;  %v12436_v43 = vpop.f32.mrb[2].mxu1 }
 0x75f   : > { %v12541_v4 = vadd.f32 %v12540_v44, %v12539_v41  ;;  %v12542_v20 = vpop.f32.mrb[30].mxu0  ;;  %v12437_v23 = vpop.f32.mrb[3].mxu1 }
 0x760   : > { %v8705_v10 = vadd.f32 %v12435_v56, %v16041_v63  ;;  %v12438_v18 = vadd.f32 %v12437_v23, %v12436_v43  ;;  %v12543_v0 = vpop.f32.mrb[31].mxu0 }
 0x761   : > { %v12544_v42 = vadd.f32 %v12543_v0, %v12542_v20  ;;  %v16133_v22 = vadd.f32 %v12541_v4, %v8697_v1 }
 0x762   : > { %v8708_v61 = vadd.f32 %v12438_v18, %v16043_v40 }
 0x763   : > { %v16136_v49 = vadd.f32 %v12544_v42, %v8700_v26 }
 0x764   : > { %v12439_v27 = vpop.f32.mrb[4].mxu1 }
 0x765   : > { %v12545_v52 = vpop.f32.mrb[32].mxu0  ;;  %v12440_v12 = vpop.f32.mrb[5].mxu1 }
 0x766   : > { %v12441_v57 = vadd.f32 %v12440_v12, %v12439_v27  ;;  %v12546_v29 = vpop.f32.mrb[33].mxu0  ;;  %v12442_v39 = vpop.f32.mrb[6].mxu1 }
 0x767   : > { %v12547_v38 = vadd.f32 %v12546_v29, %v12545_v52  ;;  %v12548_v11 = vpop.f32.mrb[34].mxu0  ;;  %v12443_v62 = vpop.f32.mrb[7].mxu1 }
 0x768   : > { %v8713_v63 = vadd.f32 %v12441_v57, %v16047_v47  ;;  %v12444_v13 = vadd.f32 %v12443_v62, %v12442_v39  ;;  %v12549_v15 = vpop.f32.mrb[35].mxu0 }
 0x769   : > { %v12550_v60 = vadd.f32 %v12549_v15, %v12548_v11  ;;  %v16139_v5 = vadd.f32 %v12547_v38, %v8705_v10 }
 0x76a   : > { %v8716_v40 = vadd.f32 %v12444_v13, %v16049_v17 }
 0x76b   : > { %v16142_v1 = vadd.f32 %v12550_v60, %v8708_v61 }
 0x76c   : > { %v12445_v25 = vpop.f32.mrb[8].mxu1 }
 0x76d   : > { %v12551_v7 = vpop.f32.mrb[36].mxu0  ;;  %v12446_v37 = vpop.f32.mrb[9].mxu1 }
 0x76e   : > { %v12447_v26 = vadd.f32 %v12446_v37, %v12445_v25  ;;  %v12552_v55 = vpop.f32.mrb[37].mxu0  ;;  %v12448_v41 = vpop.f32.mrb[10].mxu1 }
 0x76f   : > { %v12553_v48 = vadd.f32 %v12552_v55, %v12551_v7  ;;  %v12554_v56 = vpop.f32.mrb[38].mxu0  ;;  %v12449_v44 = vpop.f32.mrb[11].mxu1 }
 0x770   : > { %v8721_v47 = vadd.f32 %v12447_v26, %v16053_v14  ;;  %v12450_v43 = vadd.f32 %v12449_v44, %v12448_v41  ;;  %v12555_v4 = vpop.f32.mrb[39].mxu0 }
 0x771   : > { %v12556_v20 = vadd.f32 %v12555_v4, %v12554_v56  ;;  %v16145_v23 = vadd.f32 %v12553_v48, %v8713_v63 }
 0x772   : > { %v8724_v17 = vadd.f32 %v12450_v43, %v16056_v46 }
 0x773   : > { %v16148_v10 = vadd.f32 %v12556_v20, %v8716_v40 }
 0x774   : > { %v12451_v18 = vpop.f32.mrb[12].mxu1 }
 0x775   : > { %v12557_v0 = vpop.f32.mrb[40].mxu0  ;;  %v12452_v42 = vpop.f32.mrb[13].mxu1 }
 0x776   : > { %v12453_v61 = vadd.f32 %v12452_v42, %v12451_v18  ;;  %v12558_v27 = vpop.f32.mrb[41].mxu0  ;;  %v12454_v52 = vpop.f32.mrb[14].mxu1 }
 0x777   : > { %v12559_v12 = vadd.f32 %v12558_v27, %v12557_v0  ;;  %v12560_v57 = vpop.f32.mrb[42].mxu0  ;;  %v12455_v29 = vpop.f32.mrb[15].mxu1 }
 0x778   : > { %v8729_v14 = vadd.f32 %v12453_v61, %v16060_v58  ;;  %v12456_v39 = vadd.f32 %v12455_v29, %v12454_v52  ;;  %v12561_v38 = vpop.f32.mrb[43].mxu0 }
 0x779   : > { %v12562_v11 = vadd.f32 %v12561_v38, %v12560_v57  ;;  %v16151_v62 = vadd.f32 %v12559_v12, %v8721_v47 }
 0x77a   : > { %v8732_v46 = vadd.f32 %v12456_v39, %v16062_v54 }
 0x77b   : > { %v16154_v63 = vadd.f32 %v12562_v11, %v8724_v17 }
 0x77c   : > { %v12457_v13 = vpop.f32.mrb[16].mxu1 }
 0x77d   : > { %v12563_v15 = vpop.f32.mrb[44].mxu0  ;;  %v12458_v60 = vpop.f32.mrb[17].mxu1 }
 0x77e   : > { %v12459_v40 = vadd.f32 %v12458_v60, %v12457_v13  ;;  %v12564_v25 = vpop.f32.mrb[45].mxu0  ;;  %v12460_v7 = vpop.f32.mrb[18].mxu1 }
 0x77f   : > { %v12565_v37 = vadd.f32 %v12564_v25, %v12563_v15  ;;  %v12566_v26 = vpop.f32.mrb[46].mxu0  ;;  %v12461_v55 = vpop.f32.mrb[19].mxu1 }
 0x780   : > { %v8737_v58 = vadd.f32 %v12459_v40, %v16066_v53  ;;  %v12462_v41 = vadd.f32 %v12461_v55, %v12460_v7  ;;  %v12567_v48 = vpop.f32.mrb[47].mxu0 }
 0x781   : > { %v12568_v56 = vadd.f32 %v12567_v48, %v12566_v26  ;;  %v16157_v44 = vadd.f32 %v12565_v37, %v8729_v14 }
 0x782   : > { %v8740_v54 = vadd.f32 %v12462_v41, %v16068_v34 }
 0x783   : > { %v16160_v47 = vadd.f32 %v12568_v56, %v8732_v46 }
 0x784   : > { %v12463_v43 = vpop.f32.mrb[20].mxu1 }
 0x785   : > { %v12569_v4 = vpop.f32.mrb[48].mxu0  ;;  %v12464_v20 = vpop.f32.mrb[21].mxu1 }
 0x786   : > { %v12465_v17 = vadd.f32 %v12464_v20, %v12463_v43  ;;  %v12570_v18 = vpop.f32.mrb[49].mxu0  ;;  %v12466_v0 = vpop.f32.mrb[22].mxu1 }
 0x787   : > { %v12571_v42 = vadd.f32 %v12570_v18, %v12569_v4  ;;  %v12572_v61 = vpop.f32.mrb[50].mxu0  ;;  %v12467_v27 = vpop.f32.mrb[23].mxu1 }
 0x788   : > { %v8745_v53 = vadd.f32 %v12465_v17, %v16072_v3  ;;  %v12468_v52 = vadd.f32 %v12467_v27, %v12466_v0  ;;  %v12573_v12 = vpop.f32.mrb[51].mxu0 }
 0x789   : > { %v12574_v57 = vadd.f32 %v12573_v12, %v12572_v61  ;;  %v16163_v29 = vadd.f32 %v12571_v42, %v8737_v58 }
 0x78a   : > { %v8748_v34 = vadd.f32 %v12468_v52, %v16074_v2 }
 0x78b   : > { %v16166_v14 = vadd.f32 %v12574_v57, %v8740_v54 }
 0x78c   : > { %v12469_v39 = vpop.f32.mrb[24].mxu1 }
 0x78d   : > { %v12575_v38 = vpop.f32.mrb[52].mxu0  ;;  %v12470_v11 = vpop.f32.mrb[25].mxu1 }
 0x78e   : > { %v12471_v46 = vadd.f32 %v12470_v11, %v12469_v39  ;;  %v12576_v13 = vpop.f32.mrb[53].mxu0  ;;  %v12472_v15 = vpop.f32.mrb[26].mxu1 }
 0x78f   : > { %v12577_v60 = vadd.f32 %v12576_v13, %v12575_v38  ;;  %v12578_v40 = vpop.f32.mrb[54].mxu0  ;;  %v12473_v25 = vpop.f32.mrb[27].mxu1 }
 0x790   : > { %v8753_v3 = vadd.f32 %v12471_v46, %v16078_v35  ;;  %v12474_v7 = vadd.f32 %v12473_v25, %v12472_v15  ;;  %v12579_v37 = vpop.f32.mrb[55].mxu0 }
 0x791   : > { %v12580_v26 = vadd.f32 %v12579_v37, %v12578_v40  ;;  %v16169_v55 = vadd.f32 %v12577_v60, %v8745_v53 }
 0x792   : > { %v8756_v2 = vadd.f32 %v12474_v7, %v16080_v28 }
 0x793   : > { %v16172_v58 = vadd.f32 %v12580_v26, %v8748_v34 }
 0x794   : > { %v12475_v41 = vpop.f32.mrb[28].mxu1 }
 0x795   : > { %v12581_v48 = vpop.f32.mrb[56].mxu0  ;;  %v12476_v56 = vpop.f32.mrb[29].mxu1 }
 0x796   : > { %v12477_v54 = vadd.f32 %v12476_v56, %v12475_v41  ;;  %v12582_v43 = vpop.f32.mrb[57].mxu0  ;;  %v12478_v4 = vpop.f32.mrb[30].mxu1 }
 0x797   : > { %v12583_v20 = vadd.f32 %v12582_v43, %v12581_v48  ;;  %v12584_v17 = vpop.f32.mrb[58].mxu0  ;;  %v12479_v18 = vpop.f32.mrb[31].mxu1 }
 0x798   : > { %v8761_v35 = vadd.f32 %v12477_v54, %v16085_v36  ;;  %v12480_v0 = vadd.f32 %v12479_v18, %v12478_v4  ;;  %v12585_v42 = vpop.f32.mrb[59].mxu0  ;;  %v9281_v18 = vld [vmem:[#allocation2 + $0x9] sm:$0xff] }
 0x799   : > { %v12586_v61 = vadd.f32 %v12585_v42, %v12584_v17  ;;  %v16175_v27 = vadd.f32 %v12583_v20, %v8753_v3  ;;  %v16187_v3 = vld [vmem:[%s16563_s9] sm:$0xff] }
 0x79a   : > { %v8764_v28 = vadd.f32 %v12480_v0, %v16088_v24  ;;  %v16206_v0 = vld [vmem:[%s16563_s9 + $0x8] sm:$0xff] }
 0x79b   : > { %v16178_v53 = vadd.f32 %v12586_v61, %v8756_v2 }
 0x79c   : > { %v12797_v52 = vpop.f32.mrb[32].mxu1 }
 0x79d   : > { %v12587_v12 = vpop.f32.mrb[60].mxu0  ;;  %v8971_v57 = vadd.f32 %v12797_v52, %v16097_v32  ;;  %v8962_v34 = vpop.f32.mrb[33].mxu1 }
 0x79e   : > { %v12588_v39 = vpop.f32.mrb[61].mxu0  ;;  %v8963_v38 = vadd.f32 %v8962_v34, %v16091_v6  ;;  %v12798_v11 = vpop.f32.mrb[34].mxu1 }
 0x79f   : > { %v9091_v46 = vmax.f32 %v8971_v57, 0.0  ;;  %v12589_v36 = vadd.f32 %v12588_v39, %v12587_v12  ;;  %v12590_v13 = vpop.f32.mrb[62].mxu0  ;;  %v8974_v15 = vadd.f32 %v12798_v11, %v16100_v59  ;;  %v8965_v60 = vpop.f32.mrb[35].mxu1  ;;  %v10715_v59 = vcombine.high %v16187_v3, %v16187_v3 }
 0x7a0   : > { %v9089_v40 = vmax.f32 %v8963_v38, 0.0  ;;  %v12591_v25 = vpop.f32.mrb[63].mxu0  ;;  %v8966_v24 = vadd.f32 %v8965_v60, %v16094_v19 }
 0x7a1   : > { %9123 = vst.msk [vmem:[#allocation2 + $0x48] sm:$0xff] %vm2603_vm0, %v9091_v46  ;;  %v9092_v32 = vmax.f32 %v8974_v15, 0.0  ;;  %v12592_v6 = vadd.f32 %v12591_v25, %v12590_v13  ;;  %v16190_v7 = vadd.f32 %v12589_v36, %v8761_v35  ;;  %9942 = vmatprep.mubr.bf16.mxu0 %v10715_v59  ;;  %v9282_v35 = vld [vmem:[#allocation2 + $0x11] sm:$0xff] }
 0x7a2   : > { %9121 = vst.msk [vmem:[#allocation2 + $0x28] sm:$0xff] %vm2603_vm0, %v9089_v40  ;;  %v9090_v37 = vmax.f32 %v8966_v24, 0.0  ;;  %v9313_v12 = vpack.c.bf16 %v9282_v35, %v9281_v18 }
 0x7a3   : > { %9124 = vst.msk [vmem:[#allocation2 + $0x50] sm:$0xff] %vm2603_vm0, %v9092_v32  ;;  %v16196_v19 = vadd.f32 %v12592_v6, %v8764_v28 }
 0x7a4   : > { %9122 = vst.msk [vmem:[#allocation2 + $0x30] sm:$0xff] %vm2603_vm0, %v9090_v37  ;;  %v12801_v26 = vpop.f32.mrb[36].mxu1 }
 0x7a5   : > { %v8987_v2 = vadd.f32 %v12801_v26, %v16109_v50  ;;  %v8978_v41 = vpop.f32.mrb[37].mxu1 }
 0x7a6   : > { %v8979_v48 = vadd.f32 %v8978_v41, %v16103_v8  ;;  %v12802_v56 = vpop.f32.mrb[38].mxu1  ;;  %v10717_v8 = vcombine.high %v16206_v0, %v16206_v0 }
 0x7a7   : > { %v9095_v54 = vmax.f32 %v8987_v2, 0.0  ;;  %v8990_v43 = vadd.f32 %v12802_v56, %v16112_v30  ;;  %v8981_v4 = vpop.f32.mrb[39].mxu1 }
 0x7a8   : > { %v9093_v20 = vmax.f32 %v8979_v48, 0.0  ;;  %v8982_v17 = vadd.f32 %v8981_v4, %v16106_v51  ;;  %9983 = vmatprep.mubr.bf16.mxu1 %v10717_v8  ;;  %v9221_v36 = vld [vmem:[#allocation2 + $0x48] sm:$0xff] }
 0x7a9   : > { %9127 = vst.msk [vmem:[#allocation2 + $0x88] sm:$0xff] %vm2603_vm0, %v9095_v54  ;;  %v9096_v50 = vmax.f32 %v8990_v43, 0.0  ;;  %v9219_v42 = vld [vmem:[#allocation2 + $0x28] sm:$0xff] }
 0x7aa   : > { %9125 = vst.msk [vmem:[#allocation2 + $0x68] sm:$0xff] %vm2603_vm0, %v9093_v20  ;;  %v9094_v30 = vmax.f32 %v8982_v17, 0.0  ;;  %v9345_v61 = vld [vmem:[#allocation2 + $0x27] sm:$0xff]  ;;  %v9222_v28 = vld [vmem:[#allocation2 + $0x50] sm:$0xff] }
 0x7ab   : > { %9128 = vst.msk [vmem:[#allocation2 + $0x90] sm:$0xff] %vm2603_vm0, %v9096_v50  ;;  %v9220_v51 = vld [vmem:[#allocation2 + $0x30] sm:$0xff]  ;;  %v9347_v13 = vld [vmem:[#allocation2 + $0x47] sm:$0xff]  ;;  %v16219_v40 = vpack.c.bf16 %v9222_v28, %v9221_v36 }
 0x7ac   : > { %v9346_v52 = vld [vmem:[#allocation2 + $0x2f] sm:$0xff]  ;;  %9126 = vst.msk [vmem:[#allocation2 + $0x70] sm:$0xff] %vm2603_vm0, %v9094_v30  ;;  %v12805_v34 = vpop.f32.mrb[40].mxu1  ;;  %v16214_v39 = vpack.c.bf16 %v9220_v51, %v9219_v42 }
 0x7ad   : > { %v9348_v57 = vld [vmem:[#allocation2 + $0x4f] sm:$0xff]  ;;  %v9377_v38 = vpack.c.bf16 %v9346_v52, %v9345_v61  ;;  %v9003_v11 = vadd.f32 %v12805_v34, %v16121_v21  ;;  %v8994_v46 = vpop.f32.mrb[41].mxu1 }
 0x7ae   : > { %v8995_v15 = vadd.f32 %v8994_v46, %v16115_v45  ;;  %v12806_v60 = vpop.f32.mrb[42].mxu1  ;;  %9912 = vmatprep.subr.bf16.mxu0 %v16214_v39  ;;  %v16221_v25 = vpack.c.bf16 %v9348_v57, %v9347_v13  ;;  %v9283_v26 = vld [vmem:[#allocation2 + $0x29] sm:$0xff]  ;;  %v9284_v2 = vld [vmem:[#allocation2 + $0x31] sm:$0xff] }
 0x7af   : > { %9951 = vmatprep.subr.bf16.mxu1 %v9377_v38  ;;  %v9099_v24 = vmax.f32 %v9003_v11, 0.0  ;;  %v9006_v32 = vadd.f32 %v12806_v60, %v16124_v33  ;;  %v8997_v6 = vpop.f32.mrb[43].mxu1  ;;  %9913 = vmatpush1.bf16.xpose.msra.mxu0 %v9377_v38  ;;  %v16232_v54 = vpack.c.bf16 %v9284_v2, %v9283_v26  ;;  %v9285_v28 = vld [vmem:[#allocation2 + $0x49] sm:$0xff] }
 0x7b0   : > { %9952 = vmatpush1.bf16.xpose.msra.mxu1 %v9313_v12  ;;  %v9097_v21 = vmax.f32 %v8995_v15, 0.0  ;;  %v8998_v37 = vadd.f32 %v8997_v6, %v16118_v31  ;;  %9914 = vmatprep.subr.bf16.mxu0 %v16219_v40  ;;  %v9225_v38 = vld [vmem:[#allocation2 + $0x88] sm:$0xff] }
 0x7b1   : > { %9953 = vmatprep.subr.bf16.mxu1 %v16221_v25  ;;  %9131 = vst.msk [vmem:[#allocation2 + $0xc8] sm:$0xff] %vm2603_vm0, %v9099_v24  ;;  %v9100_v45 = vmax.f32 %v9006_v32, 0.0  ;;  %v9223_v43 = vld [vmem:[#allocation2 + $0x68] sm:$0xff] }
 0x7b2   : > { %9129 = vst.msk [vmem:[#allocation2 + $0xa8] sm:$0xff] %vm2603_vm0, %v9097_v21  ;;  %v9098_v59 = vmax.f32 %v8998_v37, 0.0  ;;  %v9349_v4 = vld [vmem:[#allocation2 + $0x67] sm:$0xff]  ;;  %v9226_v51 = vld [vmem:[#allocation2 + $0x90] sm:$0xff] }
 0x7b3   : > { %9132 = vst.msk [vmem:[#allocation2 + $0xd0] sm:$0xff] %vm2603_vm0, %v9100_v45  ;;  %v9224_v33 = vld [vmem:[#allocation2 + $0x70] sm:$0xff]  ;;  %v9351_v11 = vld [vmem:[#allocation2 + $0x87] sm:$0xff]  ;;  %v16253_v13 = vpack.c.bf16 %v9226_v51, %v9225_v38 }
 0x7b4   : > { %v9350_v41 = vld [vmem:[#allocation2 + $0x6f] sm:$0xff]  ;;  %9130 = vst.msk [vmem:[#allocation2 + $0xb0] sm:$0xff] %vm2603_vm0, %v9098_v59  ;;  %v12809_v48 = vpop.f32.mrb[44].mxu1  ;;  %v16235_v18 = vpack.c.bf16 %v9224_v33, %v9223_v43 }
 0x7b5   : > { %v9019_v31 = vadd.f32 %v12809_v48, %v16133_v22  ;;  %v9010_v56 = vpop.f32.mrb[45].mxu1  ;;  %v16237_v35 = vpack.c.bf16 %v9350_v41, %v9349_v4  ;;  %v9352_v52 = vld [vmem:[#allocation2 + $0x8f] sm:$0xff] }
 0x7b6   : > { %v9011_v20 = vadd.f32 %v9010_v56, %v16127_v16  ;;  %v12810_v17 = vpop.f32.mrb[46].mxu1  ;;  %v16255_v15 = vpack.c.bf16 %v9352_v52, %v9351_v11  ;;  %v9287_v37 = vld [vmem:[#allocation2 + $0x69] sm:$0xff] }
 0x7b7   : > { %v9103_v50 = vmax.f32 %v9019_v31, 0.0  ;;  %v9022_v8 = vadd.f32 %v12810_v17, %v16136_v49  ;;  %v9013_v30 = vpop.f32.mrb[47].mxu1  ;;  %9915 = vmatpush1.bf16.xpose.msra.mxu0 %v16221_v25  ;;  %v9286_v49 = vld [vmem:[#allocation2 + $0x51] sm:$0xff] }
 0x7b8   : > { %9954 = vmatpush1.bf16.xpose.msra.mxu1 %v16232_v54  ;;  %v9101_v22 = vmax.f32 %v9011_v20, 0.0  ;;  %v9014_v42 = vadd.f32 %v9013_v30, %v16130_v9  ;;  %9916 = vmatprep.subr.bf16.mxu0 %v16235_v18  ;;  %v16250_v34 = vpack.c.bf16 %v9286_v49, %v9285_v28  ;;  %v9229_v51 = vld [vmem:[#allocation2 + $0xc8] sm:$0xff] }
 0x7b9   : > { %9955 = vmatprep.subr.bf16.mxu1 %v16237_v35  ;;  %9135 = vst.msk [vmem:[#allocation2 + $0x108] sm:$0xff] %vm2603_vm0, %v9103_v50  ;;  %v9104_v16 = vmax.f32 %v9022_v8, 0.0  ;;  %v9227_v41 = vld [vmem:[#allocation2 + $0xa8] sm:$0xff] }
 0x7ba   : > { %9133 = vst.msk [vmem:[#allocation2 + $0xe8] sm:$0xff] %vm2603_vm0, %v9101_v22  ;;  %v9102_v61 = vmax.f32 %v9014_v42, 0.0  ;;  %v9353_v48 = vld [vmem:[#allocation2 + $0xa7] sm:$0xff]  ;;  %v9230_v42 = vld [vmem:[#allocation2 + $0xd0] sm:$0xff] }
 0x7bb   : > { %9136 = vst.msk [vmem:[#allocation2 + $0x110] sm:$0xff] %vm2603_vm0, %v9104_v16  ;;  %v9228_v45 = vld [vmem:[#allocation2 + $0xb0] sm:$0xff]  ;;  %v9355_v52 = vld [vmem:[#allocation2 + $0xc7] sm:$0xff] }
 0x7bc   : > { %9134 = vst.msk [vmem:[#allocation2 + $0xf0] sm:$0xff] %vm2603_vm0, %v9102_v61  ;;  %v12813_v12 = vpop.f32.mrb[48].mxu1  ;;  %v9354_v59 = vld [vmem:[#allocation2 + $0xaf] sm:$0xff]  ;;  %v16271_v43 = vpack.c.bf16 %v9228_v45, %v9227_v41 }
 0x7bd   : > { %v9035_v9 = vadd.f32 %v12813_v12, %v16145_v23  ;;  %v9026_v57 = vpop.f32.mrb[49].mxu1  ;;  %v16273_v4 = vpack.c.bf16 %v9354_v59, %v9353_v48  ;;  %v9289_v22 = vld [vmem:[#allocation2 + $0x89] sm:$0xff] }
 0x7be   : > { %v9027_v46 = vadd.f32 %v9026_v57, %v16139_v5  ;;  %v12814_v36 = vpop.f32.mrb[50].mxu1  ;;  %v9356_v16 = vld [vmem:[#allocation2 + $0xcf] sm:$0xff]  ;;  %v16289_v57 = vpack.c.bf16 %v9230_v42, %v9229_v51 }
 0x7bf   : > { %v9107_v60 = vmax.f32 %v9035_v9, 0.0  ;;  %v9038_v24 = vadd.f32 %v12814_v36, %v16148_v10  ;;  %v9029_v32 = vpop.f32.mrb[51].mxu1  ;;  %9917 = vmatpush1.bf16.xpose.msra.mxu0 %v16237_v35  ;;  %v9288_v10 = vld [vmem:[#allocation2 + $0x71] sm:$0xff]  ;;  %v16291_v38 = vpack.c.bf16 %v9356_v16, %v9355_v52 }
 0x7c0   : > { %9956 = vmatpush1.bf16.xpose.msra.mxu1 %v16250_v34  ;;  %v9105_v23 = vmax.f32 %v9027_v46, 0.0  ;;  %v9030_v6 = vadd.f32 %v9029_v32, %v16142_v1  ;;  %9918 = vmatprep.subr.bf16.mxu0 %v16253_v13  ;;  %v16268_v33 = vpack.c.bf16 %v9288_v10, %v9287_v37  ;;  %v9291_v32 = vld [vmem:[#allocation2 + $0xa9] sm:$0xff] }
 0x7c1   : > { %9957 = vmatprep.subr.bf16.mxu1 %v16255_v15  ;;  %9139 = vst.msk [vmem:[#allocation2 + $0x148] sm:$0xff] %vm2603_vm0, %v9107_v60  ;;  %v9108_v5 = vmax.f32 %v9038_v24, 0.0  ;;  %v9231_v10 = vld [vmem:[#allocation2 + $0xe8] sm:$0xff] }
 0x7c2   : > { %9137 = vst.msk [vmem:[#allocation2 + $0x128] sm:$0xff] %vm2603_vm0, %v9105_v23  ;;  %v9106_v21 = vmax.f32 %v9030_v6, 0.0  ;;  %v9357_v45 = vld [vmem:[#allocation2 + $0xe7] sm:$0xff] }
 0x7c3   : > { %9140 = vst.msk [vmem:[#allocation2 + $0x150] sm:$0xff] %vm2603_vm0, %v9108_v5  ;;  %v9232_v23 = vld [vmem:[#allocation2 + $0xf0] sm:$0xff] }
 0x7c4   : > { %9138 = vst.msk [vmem:[#allocation2 + $0x130] sm:$0xff] %vm2603_vm0, %v9106_v21  ;;  %v12817_v26 = vpop.f32.mrb[52].mxu1  ;;  %v9358_v6 = vld [vmem:[#allocation2 + $0xef] sm:$0xff] }
 0x7c5   : > { %v9051_v1 = vadd.f32 %v12817_v26, %v16157_v44  ;;  %v9042_v2 = vpop.f32.mrb[53].mxu1  ;;  %v9296_v42 = vld [vmem:[#allocation2 + $0xf1] sm:$0xff] }
 0x7c6   : > { %v9043_v31 = vadd.f32 %v9042_v2, %v16151_v62  ;;  %v12818_v56 = vpop.f32.mrb[54].mxu1  ;;  %v16309_v2 = vpack.c.bf16 %v9358_v6, %v9357_v45 }
 0x7c7   : > { %v9111_v20 = vmax.f32 %v9051_v1, 0.0  ;;  %v9054_v17 = vadd.f32 %v12818_v56, %v16160_v47  ;;  %v9045_v50 = vpop.f32.mrb[55].mxu1  ;;  %9919 = vmatpush1.bf16.xpose.msra.mxu0 %v16255_v15  ;;  %v9290_v47 = vld [vmem:[#allocation2 + $0x91] sm:$0xff]  ;;  %v16307_v1 = vpack.c.bf16 %v9232_v23, %v9231_v10 }
 0x7c8   : > { %9958 = vmatpush1.bf16.xpose.msra.mxu1 %v16268_v33  ;;  %v9109_v44 = vmax.f32 %v9043_v31, 0.0  ;;  %v9046_v8 = vadd.f32 %v9045_v50, %v16154_v63  ;;  %9920 = vmatprep.subr.bf16.mxu0 %v16271_v43  ;;  %v16286_v49 = vpack.c.bf16 %v9290_v47, %v9289_v22  ;;  %v9234_v50 = vld [vmem:[#allocation2 + $0x110] sm:$0xff] }
 0x7c9   : > { %9959 = vmatprep.subr.bf16.mxu1 %v16273_v4  ;;  %9143 = vst.msk [vmem:[#allocation2 + $0x188] sm:$0xff] %vm2603_vm0, %v9111_v20  ;;  %v9112_v62 = vmax.f32 %v9054_v17, 0.0  ;;  %v9293_v17 = vld [vmem:[#allocation2 + $0xc9] sm:$0xff] }
 0x7ca   : > { %9141 = vst.msk [vmem:[#allocation2 + $0x168] sm:$0xff] %vm2603_vm0, %v9109_v44  ;;  %v9110_v30 = vmax.f32 %v9046_v8, 0.0  ;;  %v9360_v44 = vld [vmem:[#allocation2 + $0x10f] sm:$0xff]  ;;  %v9361_v51 = vld [vmem:[#allocation2 + $0x127] sm:$0xff] }
 0x7cb   : > { %9144 = vst.msk [vmem:[#allocation2 + $0x190] sm:$0xff] %vm2603_vm0, %v9112_v62  ;;  %v9359_v62 = vld [vmem:[#allocation2 + $0x107] sm:$0xff]  ;;  %v9236_v16 = vld [vmem:[#allocation2 + $0x130] sm:$0xff] }
 0x7cc   : > { %9142 = vst.msk [vmem:[#allocation2 + $0x170] sm:$0xff] %vm2603_vm0, %v9110_v30  ;;  %v12821_v61 = vpop.f32.mrb[56].mxu1  ;;  %v16325_v22 = vpack.c.bf16 %v9360_v44, %v9359_v62  ;;  %v9295_v47 = vld [vmem:[#allocation2 + $0xe9] sm:$0xff]  ;;  %v9300_v23 = vld [vmem:[#allocation2 + $0x131] sm:$0xff] }
 0x7cd   : > { %v9067_v63 = vadd.f32 %v12821_v61, %v16169_v55  ;;  %v9058_v28 = vpop.f32.mrb[57].mxu1  ;;  %v9362_v61 = vld [vmem:[#allocation2 + $0x12f] sm:$0xff] }
 0x7ce   : > { %v9059_v12 = vadd.f32 %v9058_v28, %v16163_v29  ;;  %v12822_v9 = vpop.f32.mrb[58].mxu1  ;;  %v9235_v28 = vld [vmem:[#allocation2 + $0x128] sm:$0xff] }
 0x7cf   : > { %v9115_v11 = vmax.f32 %v9067_v63, 0.0  ;;  %v9070_v46 = vadd.f32 %v12822_v9, %v16172_v58  ;;  %v9061_v36 = vpop.f32.mrb[59].mxu1  ;;  %9921 = vmatpush1.bf16.xpose.msra.mxu0 %v16273_v4  ;;  %v9292_v58 = vld [vmem:[#allocation2 + $0xb1] sm:$0xff]  ;;  %v16331_v63 = vpack.c.bf16 %v9296_v42, %v9295_v47  ;;  %v16333_v52 = vpack.c.bf16 %v9236_v16, %v9235_v28  ;;  %v9297_v9 = vld [vmem:[#allocation2 + $0x109] sm:$0xff] }
 0x7d0   : > { %9960 = vmatpush1.bf16.xpose.msra.mxu1 %v16286_v49  ;;  %v9113_v55 = vmax.f32 %v9059_v12, 0.0  ;;  %v9062_v60 = vadd.f32 %v9061_v36, %v16166_v14  ;;  %9922 = vmatprep.subr.bf16.mxu0 %v16289_v57  ;;  %v16304_v37 = vpack.c.bf16 %v9292_v58, %v9291_v32  ;;  %v16335_v12 = vpack.c.bf16 %v9362_v61, %v9361_v51  ;;  %v9364_v36 = vld [vmem:[#allocation2 + $0x14f] sm:$0xff] }
 0x7d1   : > { %9961 = vmatprep.subr.bf16.mxu1 %v16291_v38  ;;  %9147 = vst.msk [vmem:[#allocation2 + $0x1c8] sm:$0xff] %vm2603_vm0, %v9115_v11  ;;  %v9116_v29 = vmax.f32 %v9070_v46, 0.0  ;;  %v9298_v11 = vld [vmem:[#allocation2 + $0x111] sm:$0xff]  ;;  %v9299_v58 = vld [vmem:[#allocation2 + $0x129] sm:$0xff] }
 0x7d2   : > { %9145 = vst.msk [vmem:[#allocation2 + $0x1a8] sm:$0xff] %vm2603_vm0, %v9113_v55  ;;  %v9114_v24 = vmax.f32 %v9062_v60, 0.0  ;;  %v9238_v46 = vld [vmem:[#allocation2 + $0x150] sm:$0xff]  ;;  %v16341_v55 = vpack.c.bf16 %v9298_v11, %v9297_v9  ;;  %v9237_v60 = vld [vmem:[#allocation2 + $0x148] sm:$0xff] }
 0x7d3   : > { %9148 = vst.msk [vmem:[#allocation2 + $0x1d0] sm:$0xff] %vm2603_vm0, %v9116_v29  ;;  %v9363_v29 = vld [vmem:[#allocation2 + $0x147] sm:$0xff]  ;;  %v9240_v6 = vld [vmem:[#allocation2 + $0x170] sm:$0xff] }
 0x7d4   : > { %9146 = vst.msk [vmem:[#allocation2 + $0x1b0] sm:$0xff] %vm2603_vm0, %v9114_v24  ;;  %v12825_v5 = vpop.f32.mrb[60].mxu1  ;;  %v16343_v24 = vpack.c.bf16 %v9238_v46, %v9237_v60  ;;  %v16345_v32 = vpack.c.bf16 %v9364_v36, %v9363_v29  ;;  %v9365_v10 = vld [vmem:[#allocation2 + $0x167] sm:$0xff]  ;;  %v9306_v51 = vld [vmem:[#allocation2 + $0x191] sm:$0xff] }
 0x7d5   : > { %v9083_v14 = vadd.f32 %v12825_v5, %v16190_v7  ;;  %v9074_v21 = vpop.f32.mrb[61].mxu1  ;;  %v9366_v5 = vld [vmem:[#allocation2 + $0x16f] sm:$0xff] }
 0x7d6   : > { %v9075_v59 = vadd.f32 %v9074_v21, %v16175_v27  ;;  %v12826_v26 = vpop.f32.mrb[62].mxu1  ;;  %v9239_v21 = vld [vmem:[#allocation2 + $0x168] sm:$0xff] }
 0x7d7   : > { %v9119_v41 = vmax.f32 %v9083_v14, 0.0  ;;  %v9086_v48 = vadd.f32 %v12826_v26, %v16196_v19  ;;  %v9077_v31 = vpop.f32.mrb[63].mxu1  ;;  %9923 = vmatpush1.bf16.xpose.msra.mxu0 %v16291_v38  ;;  %v9294_v19 = vld [vmem:[#allocation2 + $0xd1] sm:$0xff]  ;;  %v16351_v14 = vpack.c.bf16 %v9300_v23, %v9299_v58  ;;  %v16353_v45 = vpack.c.bf16 %v9240_v6, %v9239_v21  ;;  %v9301_v26 = vld [vmem:[#allocation2 + $0x149] sm:$0xff] }
 0x7d8   : > { %9962 = vmatpush1.bf16.xpose.msra.mxu1 %v16304_v37  ;;  %v9117_v7 = vmax.f32 %v9075_v59, 0.0  ;;  %v9078_v56 = vadd.f32 %v9077_v31, %v16178_v53  ;;  %9924 = vmatprep.subr.bf16.mxu0 %v16307_v1  ;;  %v16321_v8 = vpack.c.bf16 %v9294_v19, %v9293_v17  ;;  %v9233_v53 = vld [vmem:[#allocation2 + $0x108] sm:$0xff]  ;;  %v16355_v59 = vpack.c.bf16 %v9366_v5, %v9365_v10 }
 0x7d9   : > { %9963 = vmatprep.subr.bf16.mxu1 %v16309_v2  ;;  %9151 = vst.msk [vmem:[#allocation2 + $0x208] sm:$0xff] %vm2603_vm0, %v9119_v41  ;;  %v9120_v27 = vmax.f32 %v9086_v48, 0.0  ;;  %v16323_v30 = vpack.c.bf16 %v9234_v50, %v9233_v53  ;;  %v9302_v41 = vld [vmem:[#allocation2 + $0x151] sm:$0xff]  ;;  %v9303_v19 = vld [vmem:[#allocation2 + $0x169] sm:$0xff] }
 0x7da   : > { %9149 = vst.msk [vmem:[#allocation2 + $0x1e8] sm:$0xff] %vm2603_vm0, %v9117_v7  ;;  %v9118_v20 = vmax.f32 %v9078_v56, 0.0  ;;  %v9242_v48 = vld [vmem:[#allocation2 + $0x190] sm:$0xff]  ;;  %v16361_v7 = vpack.c.bf16 %v9302_v41, %v9301_v26  ;;  %v9241_v56 = vld [vmem:[#allocation2 + $0x188] sm:$0xff] }
 0x7db   : > { %9152 = vst.msk [vmem:[#allocation2 + $0x210] sm:$0xff] %vm2603_vm0, %v9120_v27  ;;  %v9368_v31 = vld [vmem:[#allocation2 + $0x18f] sm:$0xff]  ;;  %v9367_v27 = vld [vmem:[#allocation2 + $0x187] sm:$0xff] }
 0x7dc   : > { %9150 = vst.msk [vmem:[#allocation2 + $0x1f0] sm:$0xff] %vm2603_vm0, %v9118_v20  ;;  %v16363_v20 = vpack.c.bf16 %v9242_v48, %v9241_v56  ;;  %v16365_v17 = vpack.c.bf16 %v9368_v31, %v9367_v27  ;;  %v9304_v50 = vld [vmem:[#allocation2 + $0x171] sm:$0xff]  ;;  %v9243_v47 = vld [vmem:[#allocation2 + $0x1a8] sm:$0xff] }
 0x7dd   : > { %v9244_v44 = vld [vmem:[#allocation2 + $0x1b0] sm:$0xff]  ;;  %v16371_v62 = vpack.c.bf16 %v9304_v50, %v9303_v19  ;;  %v9369_v42 = vld [vmem:[#allocation2 + $0x1a7] sm:$0xff] }
 0x7de   : > { %v9370_v53 = vld [vmem:[#allocation2 + $0x1af] sm:$0xff]  ;;  %v16373_v16 = vpack.c.bf16 %v9244_v44, %v9243_v47  ;;  %v9371_v60 = vld [vmem:[#allocation2 + $0x1c7] sm:$0xff]  ;;  %v10714_v47 = vcombine.low %v16187_v3, %v16187_v3  ;;  %v10716_v3 = vcombine.low %v16206_v0, %v16206_v0  ;;  %v13238_v0 = vmov 0  }
 0x7df   : > { %9925 = vmatpush1.bf16.xpose.msra.mxu0 %v16309_v2  ;;  %v16375_v61 = vpack.c.bf16 %v9370_v53, %v9369_v42  ;;  %v9305_v28 = vld [vmem:[#allocation2 + $0x189] sm:$0xff]  ;;  %v9308_v6 = vld [vmem:[#allocation2 + $0x1b1] sm:$0xff]  ;;  %12870 = vset.pattern.permute.xlu0 %v13238_v0 }
 0x7e0   : > { %9964 = vmatpush1.bf16.xpose.msra.mxu1 %v16321_v8  ;;  %9926 = vmatprep.subr.bf16.mxu0 %v16323_v30  ;;  %v9246_v9 = vld [vmem:[#allocation2 + $0x1d0] sm:$0xff]  ;;  %v16381_v46 = vpack.c.bf16 %v9306_v51, %v9305_v28  ;;  %v9245_v36 = vld [vmem:[#allocation2 + $0x1c8] sm:$0xff] }
 0x7e1   : > { %9965 = vmatprep.subr.bf16.mxu1 %v16325_v22  ;;  %v9372_v11 = vld [vmem:[#allocation2 + $0x1cf] sm:$0xff]  ;;  %v16383_v29 = vpack.c.bf16 %v9246_v9, %v9245_v36  ;;  %v9373_v41 = vld [vmem:[#allocation2 + $0x1e7] sm:$0xff] }
 0x7e2   : > { %v16385_v58 = vpack.c.bf16 %v9372_v11, %v9371_v60  ;;  %v9307_v23 = vld [vmem:[#allocation2 + $0x1a9] sm:$0xff]  ;;  %v9310_v27 = vld [vmem:[#allocation2 + $0x1d1] sm:$0xff] }
 0x7e3   : > { %v9248_v5 = vld [vmem:[#allocation2 + $0x1f0] sm:$0xff]  ;;  %v16391_v10 = vpack.c.bf16 %v9308_v6, %v9307_v23  ;;  %v9247_v26 = vld [vmem:[#allocation2 + $0x1e8] sm:$0xff] }
 0x7e4   : > { %v9374_v21 = vld [vmem:[#allocation2 + $0x1ef] sm:$0xff]  ;;  %v16393_v48 = vpack.c.bf16 %v9248_v5, %v9247_v26  ;;  %v9375_v44 = vld [vmem:[#allocation2 + $0x207] sm:$0xff] }
 0x7e5   : > { %v16395_v31 = vpack.c.bf16 %v9374_v21, %v9373_v41  ;;  %v9309_v56 = vld [vmem:[#allocation2 + $0x1c9] sm:$0xff]  ;;  %v9312_v28 = vld [vmem:[#allocation2 + $0x1f1] sm:$0xff] }
 0x7e6   : > { %v9376_v19 = vld [vmem:[#allocation2 + $0x20f] sm:$0xff]  ;;  %v16401_v50 = vpack.c.bf16 %v9310_v27, %v9309_v56  ;;  %v13239_v27 = vmov 1966171168  }
 0x7e7   : > { %9927 = vmatpush1.bf16.xpose.msra.mxu0 %v16325_v22  ;;  %v16403_v53 = vpack.c.bf16 %v9376_v19, %v9375_v44  ;;  %v9311_v42 = vld [vmem:[#allocation2 + $0x1e9] sm:$0xff]  ;;  %v10131_v19 = vunpack.c.l.s4 %v13239_v27 }
 0x7e8   : > { %9966 = vmatpush1.bf16.xpose.msra.mxu1 %v16331_v63  ;;  %9928 = vmatprep.subr.bf16.mxu0 %v16333_v52  ;;  %v16414_v51 = vld [vmem:[%s16563_s9 + $0x10] sm:$0xff]  ;;  %v16416_v9 = vpack.c.bf16 %v9312_v28, %v9311_v42 }
 0x7e9   : > { %9967 = vmatprep.subr.bf16.mxu1 %v16335_v12  ;;  %v10719_v11 = vcombine.high %v16414_v51, %v16414_v51 }
 0x7ef   : > { %9929 = vmatpush1.bf16.xpose.msra.mxu0 %v16335_v12 }
 0x7f0   : > { %9968 = vmatpush1.bf16.xpose.msra.mxu1 %v16341_v55  ;;  %9930 = vmatprep.subr.bf16.mxu0 %v16343_v24 }
 0x7f1   : > { %9969 = vmatprep.subr.bf16.mxu1 %v16345_v32 }
 0x7f7   : > { %9931 = vmatpush1.bf16.xpose.msra.mxu0 %v16345_v32 }
 0x7f8   : > { %9970 = vmatpush1.bf16.xpose.msra.mxu1 %v16351_v14  ;;  %9932 = vmatprep.subr.bf16.mxu0 %v16353_v45 }
 0x7f9   : > { %9971 = vmatprep.subr.bf16.mxu1 %v16355_v59 }
 0x7ff   : > { %9933 = vmatpush1.bf16.xpose.msra.mxu0 %v16355_v59 }
 0x800   : > { %9972 = vmatpush1.bf16.xpose.msra.mxu1 %v16361_v7  ;;  %9934 = vmatprep.subr.bf16.mxu0 %v16363_v20 }
 0x801   : > { %9973 = vmatprep.subr.bf16.mxu1 %v16365_v17 }
 0x807   : > { %9935 = vmatpush1.bf16.xpose.msra.mxu0 %v16365_v17 }
 0x808   : > { %9974 = vmatpush1.bf16.xpose.msra.mxu1 %v16371_v62  ;;  %9936 = vmatprep.subr.bf16.mxu0 %v16373_v16 }
 0x809   : > { %9975 = vmatprep.subr.bf16.mxu1 %v16375_v61 }
 0x80f   : > { %9937 = vmatpush1.bf16.xpose.msra.mxu0 %v16375_v61 }
 0x810   : > { %9976 = vmatpush1.bf16.xpose.msra.mxu1 %v16381_v46  ;;  %9938 = vmatprep.subr.bf16.mxu0 %v16383_v29 }
 0x811   : > { %9977 = vmatprep.subr.bf16.mxu1 %v16385_v58 }
 0x817   : > { %9939 = vmatpush1.bf16.xpose.msra.mxu0 %v16385_v58 }
 0x818   : > { %9978 = vmatpush1.bf16.xpose.msra.mxu1 %v16391_v10  ;;  %9940 = vmatprep.subr.bf16.mxu0 %v16393_v48 }
 0x819   : > { %9979 = vmatprep.subr.bf16.mxu1 %v16395_v31 }
 0x81f   : > { %9941 = vmatpush1.bf16.xpose.msra.mxu0 %v16395_v31 }
 0x820   : > { %9980 = vmatpush1.bf16.xpose.msra.mxu1 %v16401_v50  ;;  %9992 = vmatprep.subr.bf16.mxu0 %v16232_v54  ;;  %v16429_v54 = vld [vmem:[%s16563_s9 + $0x18] sm:$0xff] }
 0x821   : > { %9981 = vmatprep.subr.bf16.mxu1 %v16403_v53  ;;  %v10721_v36 = vcombine.high %v16429_v54, %v16429_v54 }
 0x826   : > { %9943 = vmatmul.mubr.bf16.vlgmr.msra.gmra.mrb[64].mxu0 %v10714_v47 }
 0x827   : > { %9993 = vmatpush1.bf16.xpose.msra.mxu0 %v16214_v39  ;;  %10024 = vmatprep.mubr.bf16.mxu0 %v10719_v11  ;;  %v10115_v39 = vld [vmem:[#allocation4] sm:$0x1] }
 0x828   : > { %9982 = vmatpush1.bf16.xpose.msra.mxu1 %v16416_v9  ;;  %9994 = vmatprep.subr.bf16.mxu0 %v16250_v34 }
 0x829   : > { %10033 = vmatprep.subr.bf16.mxu1 %v16219_v40  ;;  %10118 = vperm.xlu0 %12870, %v10115_v39  }
 0x82f   : > { %9984 = vmatmul.mubr.bf16.vlgmr.msra.gmra.mrb[64].mxu1 %v10716_v3  ;;  %9995 = vmatpush1.bf16.xpose.msra.mxu0 %v16219_v40  ;;  %v9503_v40 = vld [vmem:[#allocation2 + $0x209] sm:$0xff] }
 0x830   : > { %10034 = vmatpush1.bf16.xpose.msra.mxu1 %v16221_v25  ;;  %9996 = vmatprep.subr.bf16.mxu0 %v16268_v33  ;;  %v9504_v25 = vld [vmem:[#allocation2 + $0x211] sm:$0xff] }
 0x831   : > { %10035 = vmatprep.subr.bf16.mxu1 %v16235_v18  ;;  %10065 = vmatprep.mubr.bf16.mxu1 %v10721_v36  ;;  %v9520_v34 = vpack.c.bf16 %v9504_v25, %v9503_v40 }
 0x837   : > { %9997 = vmatpush1.bf16.xpose.msra.mxu0 %v16235_v18  ;;  %v9630_v18 = vld [vmem:[#allocation2 + $0x210] sm:$0xff] }
 0x838   : > { %10036 = vmatpush1.bf16.xpose.msra.mxu1 %v16237_v35  ;;  %9998 = vmatprep.subr.bf16.mxu0 %v16286_v49  ;;  %v9629_v35 = vld [vmem:[#allocation2 + $0x208] sm:$0xff] }
 0x839   : > { %10037 = vmatprep.subr.bf16.mxu1 %v16253_v13 }
 0x83f   : > { %9999 = vmatpush1.bf16.xpose.msra.mxu0 %v16253_v13  ;;  %v9647_v13 = vpack.c.bf16 %v9630_v18, %v9629_v35 }
 0x840   : > { %10038 = vmatpush1.bf16.xpose.msra.mxu1 %v16255_v15  ;;  %10000 = vmatprep.subr.bf16.mxu0 %v16304_v37  ;;  %v13171_v15 = vld [vmem:[#allocation2] sm:$0xff] }
 0x841   : > { %10039 = vmatprep.subr.bf16.mxu1 %v16271_v43  ;;  %v9648_v33 = vpack.c.bf16 %v13171_v15, %v13171_v15 }
 0x847   : > { %10001 = vmatpush1.bf16.xpose.msra.mxu0 %v16271_v43  ;;  %v9567_v43 = vld [vmem:[#allocation2 + $0x227] sm:$0xff] }
 0x848   : > { %10040 = vmatpush1.bf16.xpose.msra.mxu1 %v16273_v4  ;;  %10002 = vmatprep.subr.bf16.mxu0 %v16321_v8  ;;  %v9568_v4 = vld [vmem:[#allocation2 + $0x22f] sm:$0xff] }
 0x849   : > { %10041 = vmatprep.subr.bf16.mxu1 %v16289_v57 }
 0x84f   : > { %10003 = vmatpush1.bf16.xpose.msra.mxu0 %v16289_v57  ;;  %v10718_v57 = vcombine.low %v16414_v51, %v16414_v51 }
 0x850   : > { %10042 = vmatpush1.bf16.xpose.msra.mxu1 %v16291_v38  ;;  %10004 = vmatprep.subr.bf16.mxu0 %v16331_v63  ;;  %v9665_v38 = vld [vmem:[#allocation2 + $0x49] sm:$0xff] }
 0x851   : > { %10043 = vmatprep.subr.bf16.mxu1 %v16307_v1 }
 0x857   : > { %10005 = vmatpush1.bf16.xpose.msra.mxu0 %v16307_v1  ;;  %v9666_v1 = vld [vmem:[#allocation2 + $0x51] sm:$0xff] }
 0x858   : > { %10044 = vmatpush1.bf16.xpose.msra.mxu1 %v16309_v2  ;;  %10006 = vmatprep.subr.bf16.mxu0 %v16341_v55  ;;  %v9584_v2 = vpack.c.bf16 %v9568_v4, %v9567_v43 }
 0x859   : > { %10045 = vmatprep.subr.bf16.mxu1 %v16323_v30 }
 0x85f   : > { %10007 = vmatpush1.bf16.xpose.msra.mxu0 %v16323_v30  ;;  %v13167_v30 = vld [vmem:[%s16563_s9 + $0x20] ss:$0 sps:$4 sm:$0xff]  }
 0x860   : > { %10046 = vmatpush1.bf16.xpose.msra.mxu1 %v16325_v22  ;;  %10008 = vmatprep.subr.bf16.mxu0 %v16351_v14  ;;  %v9697_v22 = vpack.c.bf16 %v9666_v1, %v9665_v38 }
 0x861   : > { %10047 = vmatprep.subr.bf16.mxu1 %v16333_v52 }
 0x867   : > { %10009 = vmatpush1.bf16.xpose.msra.mxu0 %v16333_v52  ;;  %v10720_v52 = vcombine.low %v16429_v54, %v16429_v54 }
 0x868   : > { %10048 = vmatpush1.bf16.xpose.msra.mxu1 %v16335_v12  ;;  %10010 = vmatprep.subr.bf16.mxu0 %v16361_v7  ;;  %v9667_v12 = vld [vmem:[#allocation2 + $0x69] sm:$0xff] }
 0x869   : > { %10049 = vmatprep.subr.bf16.mxu1 %v16343_v24 }
 0x86f   : > { %10011 = vmatpush1.bf16.xpose.msra.mxu0 %v16343_v24  ;;  %v9668_v24 = vld [vmem:[#allocation2 + $0x71] sm:$0xff] }
 0x870   : > { %10050 = vmatpush1.bf16.xpose.msra.mxu1 %v16345_v32  ;;  %10012 = vmatprep.subr.bf16.mxu0 %v16371_v62  ;;  %v9698_v32 = vpack.c.bf16 %v9668_v24, %v9667_v12 }
 0x871   : > { %10051 = vmatprep.subr.bf16.mxu1 %v16353_v45 }
 0x877   : > { %10013 = vmatpush1.bf16.xpose.msra.mxu0 %v16353_v45  ;;  %v9695_v45 = vld [vmem:[#allocation2 + $0x229] sm:$0xff] }
 0x878   : > { %10052 = vmatpush1.bf16.xpose.msra.mxu1 %v16355_v59  ;;  %10014 = vmatprep.subr.bf16.mxu0 %v16381_v46  ;;  %v9696_v59 = vld [vmem:[#allocation2 + $0x231] sm:$0xff] }
 0x879   : > { %10053 = vmatprep.subr.bf16.mxu1 %v16363_v20 }
 0x87f   : > { %10015 = vmatpush1.bf16.xpose.msra.mxu0 %v16363_v20 }
 0x880   : > { %10054 = vmatpush1.bf16.xpose.msra.mxu1 %v16365_v17  ;;  %10016 = vmatprep.subr.bf16.mxu0 %v16391_v10 }
 0x881   : > { %10055 = vmatprep.subr.bf16.mxu1 %v16373_v16 }
 0x887   : > { %10017 = vmatpush1.bf16.xpose.msra.mxu0 %v16373_v16 }
 0x888   : > { %10056 = vmatpush1.bf16.xpose.msra.mxu1 %v16375_v61  ;;  %10018 = vmatprep.subr.bf16.mxu0 %v16401_v50 }
 0x889   : > { %10057 = vmatprep.subr.bf16.mxu1 %v16383_v29 }
 0x88f   : > { %10019 = vmatpush1.bf16.xpose.msra.mxu0 %v16383_v29 }
 0x890   : > { %10058 = vmatpush1.bf16.xpose.msra.mxu1 %v16385_v58  ;;  %10020 = vmatprep.subr.bf16.mxu0 %v16416_v9 }
 0x891   : > { %10059 = vmatprep.subr.bf16.mxu1 %v16393_v48 }
 0x897   : > { %10021 = vmatpush1.bf16.xpose.msra.mxu0 %v16393_v48  ;;  %v10121_v48 = vlaneseq }
 0x898   : > { %10060 = vmatpush1.bf16.xpose.msra.mxu1 %v16395_v31  ;;  %10022 = vmatprep.subr.bf16.mxu0 %v9520_v34 }
 0x899   : > { %10061 = vmatprep.subr.bf16.mxu1 %v9647_v13  ;;  %v10122_v31 = vshrl.u32 %v10121_v48, 7  ;;  %vm10147_vm1 = vcmp.lt.s32.totalorder %v10121_v48, 256 }
 0x89b   : > { %v10123_v56 = vsub.s32 0, %v10122_v31 }
 0x89f   : > { %10023 = vmatpush1.bf16.xpose.msra.mxu0 %v9647_v13 }
 0x8a0   : > { %10062 = vmatpush1.bf16.xpose.msra.mxu1 %v16403_v53  ;;  %12617 = vmatprep.subr.bf16.mxu0 %v16361_v7  ;;  %v9712_v7 = vpack.c.bf16 %v9696_v59, %v9695_v45  ;;  %v10132_v53 = vunpack.c.0.s8 %v10131_v19 }
 0x8a1   : > { %10063 = vmatprep.subr.bf16.mxu1 %v9648_v33 }
 0x8a2   : > { %v10135_v54 = vsub.s32 %v10132_v53, %v10122_v31 }
 0x8a6   : > { %10025 = vmatmul.mubr.bf16.vlgmr.msra.gmra.mrb[68].mxu0 %v10718_v57 }
 0x8a7   : > { %12618 = vmatpush3.bf16.xpose.msra.mxu0 %v9697_v22  ;;  %12633 = vmatprep.mubr.bf16.mxu0 %v13167_v30 }
 0x8a8   : > { %10064 = vmatpush1.bf16.xpose.msra.mxu1 %v9584_v2  ;;  %12619 = vmatprep.subr.bf16.mxu0 %v16371_v62 }
 0x8af   : > { %10066 = vmatmul.mubr.bf16.vlgmr.msra.gmra.mrb[68].mxu1 %v10720_v52  ;;  %12620 = vmatpush3.bf16.xpose.msra.mxu0 %v9698_v32 }
 0x8b0   : > { %12621 = vmatprep.subr.bf16.mxu0 %v16381_v46 }
 0x8b7   : > { %12622 = vmatpush3.bf16.xpose.msra.mxu0 %v16286_v49 }
 0x8b8   : > { %12623 = vmatprep.subr.bf16.mxu0 %v16391_v10 }
 0x8bf   : > { %12624 = vmatpush3.bf16.xpose.msra.mxu0 %v16304_v37 }
 0x8c0   : > { %12625 = vmatprep.subr.bf16.mxu0 %v16401_v50  ;;  %v10119_v50 = vpop.permute.xlu0 %10118 }
 0x8c1   : > { %v10124_v44 = vrot.slane %v10119_v50, %v10123_v56 }
 0x8c7   : > { %12626 = vmatpush3.bf16.xpose.msra.mxu0 %v16321_v8 }
 0x8c8   : > { %12627 = vmatprep.subr.bf16.mxu0 %v16416_v9 }
 0x8cf   : > { %12628 = vmatpush3.bf16.xpose.msra.mxu0 %v16331_v63 }
 0x8d0   : > { %12629 = vmatprep.subr.bf16.mxu0 %v9520_v34 }
 0x8d7   : > { %12630 = vmatpush3.bf16.xpose.msra.mxu0 %v16341_v55 }
 0x8d8   : > { %12631 = vmatprep.subr.bf16.mxu0 %v9712_v7 }
 0x8df   : > { %12632 = vmatpush3.bf16.xpose.msra.mxu0 %v16351_v14 }
 0x8e6   : > { %12634 = vmatmul.mubr.bf16.vlgmr.msra.gmra.mrb[72].mxu0 %v13167_v30 }
 0x8f9   : > { %v9944_v49 = vpop.f32.mrb[64].mxu0 }
 0x8fa   : > { %v9946_v37 = vpop.f32.mrb[65].mxu0 }
 0x8fb   : > { %v9948_v20 = vpop.f32.mrb[66].mxu0 }
 0x8fc   : > { %v9949_v17 = vpop.f32.mrb[67].mxu0 }
 0x902   : > { %v9985_v62 = vpop.f32.mrb[64].mxu1 }
 0x903   : > { %v9986_v8 = vadd.f32 %v9985_v62, %v9944_v49  ;;  %v9987_v16 = vpop.f32.mrb[65].mxu1 }
 0x904   : > { %v9988_v61 = vadd.f32 %v9987_v16, %v9946_v37  ;;  %v9989_v46 = vpop.f32.mrb[66].mxu1 }
 0x905   : > { %v9990_v63 = vpop.f32.mrb[67].mxu1 }
 0x979   : > { %v10026_v60 = vpop.f32.mrb[68].mxu0 }
 0x97a   : > { %v10027_v29 = vadd.f32 %v10026_v60, %v9986_v8  ;;  %v10028_v58 = vpop.f32.mrb[69].mxu0 }
 0x97b   : > { %v10029_v23 = vadd.f32 %v10028_v58, %v9988_v61  ;;  %v10030_v55 = vpop.f32.mrb[70].mxu0 }
 0x97c   : > { %v10031_v6 = vpop.f32.mrb[71].mxu0 }
 0x982   : > { %v10067_v5 = vpop.f32.mrb[68].mxu1 }
 0x983   : > { %v10068_v14 = vadd.f32 %v10067_v5, %v10027_v29  ;;  %v10069_v21 = vpop.f32.mrb[69].mxu1 }
 0x984   : > { %v10070_v10 = vadd.f32 %v10069_v21, %v10029_v23  ;;  %v10071_v26 = vpop.f32.mrb[70].mxu1 }
 0x985   : > { %v10072_v41 = vpop.f32.mrb[71].mxu1 }
 0x9b9   : > { %v10108_v47 = vpop.f32.mrb[72].mxu0 }
 0x9ba   : > { %v10109_v42 = vadd.f32 %v10108_v47, %v10068_v14  ;;  %v10110_v28 = vpop.f32.mrb[73].mxu0 }
 0x9bb   : > { %v10111_v51 = vadd.f32 %v10110_v28, %v10070_v10  ;;  %v10112_v9 = vpop.f32.mrb[74].mxu0 }
 0x9bc   : > { %v10125_v11 = vadd.f32 %v10124_v44, %v10109_v42  ;;  %v10113_v3 = vpop.f32.mrb[75].mxu0 }
 0x9bd   : > { %v10126_v36 = vadd.f32 %v10124_v44, %v10111_v51 }
 0x9bf   : > { %v10129_v0 = vcombine.low %v10125_v11, %v10126_v36 }
 0x9c1   : > { %v10136_v39 = vrot.slane %v10129_v0, %v10135_v54 }
 0x9c3   : > { %v10143_v40 = vrot.slane %v10136_v39, %v10135_v54 }
 0x9c5   : > { %10149 = vst.msk [vmem:[%s381_s26] sm:$0x3] %vm10147_vm1, %v10143_v40 }
 0x9c6   : > { %13185 = shalt.err (!%p13182_p3)
}
 0x9c7   : > { %s13186_s16 = scalar_lea.hbm %s16512_s13, 32  ;;  %s13190_s23 = scalar_lea.hbm %s16565_s11, 64 }
 0x9c8   : > { %p13187_p4 = scmp.ne.s32.totalorder %s16512_s13, %s13186_s16  ;;  %p13191_p9 = scmp.lt.u32.totalorder %s16512_s13, %s16565_s11 }
 0x9c9   : > { %p13192_p10 = scmp.lt.u32.totalorder %s13190_s23, %s13186_s16  ;;  %p13194_p12 = scmp.lt.u32.totalorder %s13186_s16, %s16512_s13 }
 0x9ca   : > { %p13188_p7 = pnand %p13187_p4, %p13342_p5 }
 0x9cb   : > { %p13193_p11 = por %p13192_p10, %p13191_p9 }
 0x9cc   : > { %p13189_p8 = pneg %p13188_p7 }
 0x9cd   : > { %p13195_p13 = por %p13194_p12, %p13193_p11 }
 0x9cf   : > { %p13196_p0 = pnand %p13195_p13, %p13189_p8 }
 0x9d1   : > { %13199 = shalt.err (!%p13196_p0)
}
 0x9d2   : > { %12828 = dma.vmem_to_hbm [thread:$0]  (%p13342_p5), %s16514_s30, 32, %s16512_s13, %s10151_s18  }
 0x9d3 PF: > { %p12834_p1 = scmp.ge.s32.totalorder %s13234_s22, 2  ;;  %s10177_s14 = sand.u32 1, %s13222_s19  }
 0x9d4   : > { %s10178_s15 = scalar_lea.sflag [#allocation6], %s10177_s14 }
 0x9d5   : > { %p12831_p2 = pnand %p12834_p1, %p13346_p6 }
 0x9d7   : > { %13217 = dma.done.wait (!%p12831_p2), %s10178_s15, 32  }
 0x9d8   : > { %13219 = vsyncadd (!%p12831_p2), %s10178_s15, 4294967264  ;;  %p23_p3 = scmp.ge.s32.totalorder %s13329_s24, 4   ;;  %s16568_s19 = smov %s13226_s20 }
 0x9d9   : > { %s16569_s20 = smov %s13230_s21  ;;  %s16570_s21 = smov %s13340_s27 }
 0x9da   : > { %s16571_s22 = smov %s13329_s24  ;;  %25 = sbr.rel (!%p23_p3) target bundleno = 6 (0x6), region = 103 }
 0x9e1   :  { %10183 = vsyncpa [#allocation6], 1 }
 0x9e2   :  { %10185 = vsyncpa [#allocation6 + $0x1], 1 }

</bundles_post_ra>
